<compile_context>
chip_gen: v7x
topology: tpu7x:2x2x1
jax: 0.10.0
libtpu: 0.0.40
codegen_flags: <defaults>
</compile_context>

<pallas_src>
import functools
import numpy as np

import jax
import jax.numpy as jnp
from jax.experimental import pallas as pl
from jax.experimental.pallas import tpu as pltpu

# Model dims fixed by the PyTorch module definition.
INPUT = 100          # GRU input_size
H = 128              # GRU hidden_size
E = 2 * H            # attention embed_dim = 256
NHEADS = 4
DH = E // NHEADS     # 64
PW = 2 * E + 128     # fused projection width: [q | k | vwf (padded to 128)]


def _round_up(n, m):
    return ((n + m - 1) // m) * m


def _vmem_capacity_bytes():
    try:
        info = pltpu.get_tpu_info()
        for name in ("vmem_capacity_bytes", "vmem_size_bytes", "vmem_bytes"):
            v = getattr(info, name, None)
            if v:
                return int(v)
    except Exception:
        pass
    return 64 * 1024 * 1024        # conservative (v7x-sized) fallback


def _pick_gru_chunk(T, cap):
    """Largest divisor of T <= cap (prefer multiples of 8)."""
    if T <= cap:
        return T
    divs = [d for d in range(int(cap), 0, -1) if T % d == 0]
    for d in divs:
        if d % 8 == 0:
            return d
    return divs[0]


def _pick_att_chunk(T, cap):
    """Divisor of T <= cap; prefer lane-dense (multiple of 128) output blocks
    and >=2 grid steps (keeps both v7x TensorCores busy)."""
    lane = [d for d in range(min(int(cap), T), 127, -1)
            if T % d == 0 and d % 128 == 0]
    for d in lane:
        if T // d >= 2:
            return d
    if lane:
        return lane[0]
    if T <= cap:
        return T
    # TODO(synk): non-lane-dense fallback for awkward T (block last dim < 128).
    divs = [d for d in range(int(cap), 0, -1) if T % d == 0]
    return divs[0]


def _unroll_for(n, cap=8):
    for u in (cap, 4, 2):
        if u <= n and n % u == 0:
            return u
    return 1


# --------------------------------------------------------------------------
# Direction-fused bidirectional GRU.
# grid = (chunk c,)  ["arbitrary"].  Forward consumes time block c, backward
# consumes time block C-1-c (reversed inside the chunk); both hidden states
# live in one (Bp, 2H) VMEM scratch carried across chunks.
# x is time-major, flattened to (T*Bp, IP), bf16.  PyTorch gate order: r,z,n.
# --------------------------------------------------------------------------
def bigru_kernel(xf_ref, xb_ref, wih_ref, whh_ref, bih_ref, bhh_ref,
                 outf_ref, outb_ref, h_scr, gif_scr, gib_scr, *, unroll):
    Bp = h_scr.shape[0]
    Tc = outf_ref.shape[0] // Bp

    @pl.when(pl.program_id(0) == 0)
    def _():
        h_scr[...] = jnp.zeros_like(h_scr)

    # Hoisted input projections: one big bf16 MXU matmul per direction/chunk.
    gif_scr[...] = (jnp.dot(xf_ref[...], wih_ref[0],
                            preferred_element_type=jnp.float32) + bih_ref[0])
    gib_scr[...] = (jnp.dot(xb_ref[...], wih_ref[1],
                            preferred_element_type=jnp.float32) + bih_ref[1])

    whhf = whh_ref[0]          # (H, 3H) bf16
    whhb = whh_ref[1]
    bhhf = bhh_ref[0]          # (1, 3H) f32
    bhhb = bhh_ref[1]

    def step(j, h):
        hf = h[:, :H]
        hb = h[:, H:]
        rf0 = pl.multiple_of(j * Bp, Bp)                 # fwd: ascending rows
        rb0 = pl.multiple_of((Tc - 1 - j) * Bp, Bp)      # bwd: descending rows
        ghf = jnp.dot(hf.astype(jnp.bfloat16), whhf,
                      preferred_element_type=jnp.float32) + bhhf
        ghb = jnp.dot(hb.astype(jnp.bfloat16), whhb,
                      preferred_element_type=jnp.float32) + bhhb
        gif = gif_scr[pl.ds(rf0, Bp), :]
        gib = gib_scr[pl.ds(rb0, Bp), :]

        rf = jax.nn.sigmoid(gif[:, 0:H] + ghf[:, 0:H])
        zf = jax.nn.sigmoid(gif[:, H:2 * H] + ghf[:, H:2 * H])
        nf = jnp.tanh(gif[:, 2 * H:] + rf * ghf[:, 2 * H:])
        hf_new = (1.0 - zf) * nf + zf * hf

        rb = jax.nn.sigmoid(gib[:, 0:H] + ghb[:, 0:H])
        zb = jax.nn.sigmoid(gib[:, H:2 * H] + ghb[:, H:2 * H])
        nb = jnp.tanh(gib[:, 2 * H:] + rb * ghb[:, 2 * H:])
        hb_new = (1.0 - zb) * nb + zb * hb

        outf_ref[pl.ds(rf0, Bp), :] = hf_new.astype(outf_ref.dtype)
        outb_ref[pl.ds(rb0, Bp), :] = hb_new.astype(outb_ref.dtype)
        return jnp.concatenate([hf_new, hb_new], axis=1)

    h_scr[...] = jax.lax.fori_loop(0, Tc, step, h_scr[...], unroll=unroll)


# --------------------------------------------------------------------------
# Fused multi-head self-attention (over the batch axis per time step, i.e.
# PyTorch MHA batch_first=False semantics on the (B,T,E) GRU output) with the
# final Linear(256->1) folded into V, plus Sigmoid.  Output is a lane-dense
# (Bp, Tt) slab per grid step.
# --------------------------------------------------------------------------
def mha_fold_kernel(gf_ref, gb_ref, wbig_ref, bbig_ref, bf_ref, out_ref,
                    proj_scr, *, batch, unroll):
    Bp, Tt = out_ref.shape

    # One chunk-wide projection: [q*scale | k | v@wf_heads], bf16 MXU, f32 acc.
    proj_scr[...] = (
        jnp.dot(gf_ref[...], wbig_ref[0:H, :], preferred_element_type=jnp.float32)
        + jnp.dot(gb_ref[...], wbig_ref[H:2 * H, :], preferred_element_type=jnp.float32)
        + bbig_ref[...])

    # Key mask: zero-padded batch rows must not participate as attention keys.
    kmask = jax.lax.broadcasted_iota(jnp.int32, (Bp, Bp), 1) < batch
    col_ids = jax.lax.broadcasted_iota(jnp.int32, (Bp, Tt), 1)
    bf = bf_ref[0, 0]

    def step(j, acc_all):
        r0 = pl.multiple_of(j * Bp, Bp)
        row = proj_scr[pl.ds(r0, Bp), :]          # (Bp, PW) f32
        qj = row[:, 0:E]
        kj = row[:, E:2 * E]
        vwf = row[:, 2 * E:]                      # (Bp, 128); cols [0,NHEADS) valid
        acc = jnp.zeros((Bp, 1), jnp.float32)
        for h in range(NHEADS):
            hs = slice(h * DH, (h + 1) * DH)
            s = jax.lax.dot_general(qj[:, hs], kj[:, hs],
                                    (((1,), (1,)), ((), ())),
                                    preferred_element_type=jnp.float32)   # (Bp,Bp)
            s = jnp.where(kmask, s, -1e30)
            s = s - jnp.max(s, axis=-1, keepdims=True)
            p = jnp.exp(s)
            p = p * pl.reciprocal(jnp.sum(p, axis=-1, keepdims=True), approx=True)
            acc = acc + jnp.dot(p, vwf[:, h:h + 1],
                                preferred_element_type=jnp.float32)       # (Bp,1)
        col = jax.nn.sigmoid(acc + bf)            # (Bp, 1)
        return jnp.where(col_ids == j, col, acc_all)

    out_ref[...] = jax.lax.fori_loop(0, Tt, step,
                                     jnp.zeros((Bp, Tt), jnp.float32),
                                     unroll=unroll)


def gru_with_att_forward(params, x):
    """x: (B, T, INPUT), batch_first like the PyTorch module.  Returns (B, T)."""
    B, T, I = x.shape
    Bp = _round_up(max(B, 8), 8)               # sublane-aligned batch
    IP = _round_up(I, 128)                     # lane-aligned input features

    # ---- VMEM-driven chunk sizes ------------------------------------------
    vmem_cap = _vmem_capacity_bytes()
    budget = int(vmem_cap * 0.35)              # for double-buffered blocks + scratch
    vmem_limit = int(vmem_cap * 0.75)

    gru_per_t = Bp * (2 * 2 * IP * 2           # xf+xb blocks, dbl-buffered, bf16
                      + 2 * 2 * H * 2          # outf+outb blocks, dbl-buffered, bf16
                      + 2 * 3 * H * 4)         # gi fwd+bwd scratch, f32
    att_per_t = Bp * (2 * 2 * H * 2            # gf+gb blocks, dbl-buffered, bf16
                      + PW * 4                 # projection scratch, f32
                      + 2 * 4)                 # output column, dbl-buffered, f32
    Tc = _pick_gru_chunk(T, max(8, budget // gru_per_t))
    Tt = _pick_att_chunk(T, max(8, budget // att_per_t))
    C = T // Tc
    gru_unroll = _unroll_for(Tc)
    att_unroll = _unroll_for(Tt)

    # ---- time-major, pad batch -> Bp and features -> IP, flatten, cast bf16
    x_t = jnp.transpose(x, (1, 0, 2)).astype(jnp.float32)          # (T, B, I)
    x_t = jnp.pad(x_t, ((0, 0), (0, Bp - B), (0, IP - I)))
    x2 = x_t.reshape(T * Bp, IP).astype(jnp.bfloat16)

    # ---- GRU weights: stack [forward, backward], pre-transpose, pad, bf16
    wihT = jnp.pad(jnp.stack([params['w_ih_f'].T, params['w_ih_b'].T]),
                   ((0, 0), (0, IP - I), (0, 0))).astype(jnp.bfloat16)  # (2,IP,3H)
    whhT = jnp.stack([params['w_hh_f'].T,
                      params['w_hh_b'].T]).astype(jnp.bfloat16)         # (2,H,3H)
    bih = jnp.stack([params['b_ih_f'], params['b_ih_b']])[:, None, :]   # (2,1,3H) f32
    bhh = jnp.stack([params['b_hh_f'], params['b_hh_b']])[:, None, :]

    gru_f, gru_b = pl.pallas_call(
        functools.partial(bigru_kernel, unroll=gru_unroll),
        out_shape=[jax.ShapeDtypeStruct((T * Bp, H), jnp.bfloat16),
                   jax.ShapeDtypeStruct((T * Bp, H), jnp.bfloat16)],
        grid_spec=pltpu.PrefetchScalarGridSpec(
            num_scalar_prefetch=0,
            grid=(C,),
            in_specs=[
                pl.BlockSpec((Tc * Bp, IP), lambda c: (c, 0)),           # x fwd slab
                pl.BlockSpec((Tc * Bp, IP), lambda c: (C - 1 - c, 0)),   # x bwd slab
                pl.BlockSpec((2, IP, 3 * H), lambda c: (0, 0, 0)),
                pl.BlockSpec((2, H, 3 * H), lambda c: (0, 0, 0)),
                pl.BlockSpec((2, 1, 3 * H), lambda c: (0, 0, 0)),
                pl.BlockSpec((2, 1, 3 * H), lambda c: (0, 0, 0)),
            ],
            out_specs=[
                pl.BlockSpec((Tc * Bp, H), lambda c: (c, 0)),            # fwd h
                pl.BlockSpec((Tc * Bp, H), lambda c: (C - 1 - c, 0)),    # bwd h
            ],
            scratch_shapes=[pltpu.VMEM((Bp, 2 * H), jnp.float32),        # h state
                            pltpu.VMEM((Tc * Bp, 3 * H), jnp.float32),   # gi fwd
                            pltpu.VMEM((Tc * Bp, 3 * H), jnp.float32)],  # gi bwd
        ),
        compiler_params=pltpu.CompilerParams(
            dimension_semantics=("arbitrary",),
            vmem_limit_bytes=vmem_limit),
    )(x2, x2, wihT, whhT, bih, bhh)

    # ---- attention weight prep: fold scale into Q, Linear(256->1) into V ----
    scale = jnp.float32(1.0 / np.sqrt(DH))
    wfold = params['wl'] @ params['wo']                                  # (1, E)
    bfold = (params['bo'] @ params['wl'].T + params['bl']).reshape(1, 1)

    wf_heads = jnp.zeros((E, NHEADS), jnp.float32)
    for h in range(NHEADS):
        wf_heads = wf_heads.at[h * DH:(h + 1) * DH, h].set(
            wfold[0, h * DH:(h + 1) * DH])

    w_q = params['wq'].T * scale                                         # (E, E)
    w_k = params['wk'].T                                                 # (E, E)
    w_vwf = jnp.pad(params['wv'].T @ wf_heads, ((0, 0), (0, 128 - NHEADS)))
    w_big = jnp.concatenate([w_q, w_k, w_vwf], axis=1).astype(jnp.bfloat16)  # (E,PW)

    b_big = jnp.concatenate([params['bq'] * scale, params['bk'],
                             jnp.pad(params['bv'] @ wf_heads,
                                     (0, 128 - NHEADS))])[None, :]       # (1,PW) f32

    out_bt = pl.pallas_call(
        functools.partial(mha_fold_kernel, batch=B, unroll=att_unroll),
        out_shape=jax.ShapeDtypeStruct((Bp, T), jnp.float32),
        grid_spec=pltpu.PrefetchScalarGridSpec(
            num_scalar_prefetch=0,
            grid=(T // Tt,),
            in_specs=[
                pl.BlockSpec((Tt * Bp, H), lambda i: (i, 0)),            # fwd GRU h
                pl.BlockSpec((Tt * Bp, H), lambda i: (i, 0)),            # bwd GRU h
                pl.BlockSpec((E, PW), lambda i: (0, 0)),                 # fused proj W
                pl.BlockSpec((1, PW), lambda i: (0, 0)),                 # fused proj b
                pl.BlockSpec((1, 1), lambda i: (0, 0)),                  # folded bias
            ],
            out_specs=pl.BlockSpec((Bp, Tt), lambda i: (0, i)),
            scratch_shapes=[pltpu.VMEM((Tt * Bp, PW), jnp.float32)],
        ),
        compiler_params=pltpu.CompilerParams(
            dimension_semantics=("parallel",),
            vmem_limit_bytes=vmem_limit),
    )(gru_f, gru_b, w_big, b_big, bfold)

    return out_bt[:B, :]                                                 # (B, T)


# --------------------------------------------------------------------------
# Pure-JAX f32 reference (same math, no Pallas) for a correctness check.
# --------------------------------------------------------------------------
def reference_forward(params, x):
    B, T, _ = x.shape

    def gru_ref(xs, w_ih, w_hh, b_ih, b_hh):
        def step(h, xt):
            gi = xt @ w_ih.T + b_ih
            gh = h @ w_hh.T + b_hh
            r = jax.nn.sigmoid(gi[:, :H] + gh[:, :H])
            z = jax.nn.sigmoid(gi[:, H:2 * H] + gh[:, H:2 * H])
            n = jnp.tanh(gi[:, 2 * H:] + r * gh[:, 2 * H:])
            h_new = (1.0 - z) * n + z * h
            return h_new, h_new
        h0 = jnp.zeros((xs.shape[1], H), jnp.float32)
        _, ys = jax.lax.scan(step, h0, xs)
        return ys

    xs = jnp.transpose(x, (1, 0, 2))
    fwd = gru_ref(xs, params['w_ih_f'], params['w_hh_f'], params['b_ih_f'], params['b_hh_f'])
    bwd = gru_ref(xs[::-1], params['w_ih_b'], params['w_hh_b'], params['b_ih_b'], params['b_hh_b'])[::-1]
    out = jnp.concatenate([fwd, bwd], axis=-1)               # (N=T, L=B, E)

    q = out @ params['wq'].T + params['bq']
    k = out @ params['wk'].T + params['bk']
    v = out @ params['wv'].T + params['bv']
    qh = q.reshape(T, B, NHEADS, DH)
    kh = k.reshape(T, B, NHEADS, DH)
    vh = v.reshape(T, B, NHEADS, DH)
    s = jnp.einsum('nlhd,nmhd->nhlm', qh, kh) / jnp.sqrt(jnp.float32(DH))
    p = jax.nn.softmax(s, axis=-1)
    ctx = jnp.einsum('nhlm,nmhd->nlhd', p, vh).reshape(T, B, E)
    attn = ctx @ params['wo'].T + params['bo']
    logits = attn @ params['wl'].T + params['bl']
    return jnp.transpose(jax.nn.sigmoid(logits)[:, :, 0], (1, 0))


def init_params(key):
    ks = jax.random.split(key, 16)

    def u(k, shape, s):
        return jax.random.uniform(k, shape, jnp.float32, minval=-s, maxval=s)

    s_gru = 1.0 / float(np.sqrt(H))
    s_att = 1.0 / float(np.sqrt(E))
    return dict(
        # GRU forward direction
        w_ih_f=u(ks[0], (3 * H, INPUT), s_gru),
        w_hh_f=u(ks[1], (3 * H, H), s_gru),
        b_ih_f=u(ks[2], (3 * H,), s_gru),
        b_hh_f=u(ks[3], (3 * H,), s_gru),
        # GRU reverse direction
        w_ih_b=u(ks[4], (3 * H, INPUT), s_gru),
        w_hh_b=u(ks[5], (3 * H, H), s_gru),
        b_ih_b=u(ks[6], (3 * H,), s_gru),
        b_hh_b=u(ks[7], (3 * H,), s_gru),
        # MultiheadAttention in/out projections (biases init to 0, like PyTorch)
        wq=u(ks[8], (E, E), s_att),
        wk=u(ks[9], (E, E), s_att),
        wv=u(ks[10], (E, E), s_att),
        bq=jnp.zeros((E,), jnp.float32),
        bk=jnp.zeros((E,), jnp.float32),
        bv=jnp.zeros((E,), jnp.float32),
        wo=u(ks[11], (E, E), s_att),
        bo=jnp.zeros((E,), jnp.float32),
        # linear1: 256 -> 1
        wl=u(ks[12], (1, E), s_att),
        bl=u(ks[13], (1,), s_att),
    )


if __name__ == "__main__":
    key = jax.random.PRNGKey(0)
    pkey, xkey = jax.random.split(key)
    params = init_params(pkey)

    B, T = 2, 8                    # small shapes; feature dims fixed by module
    x = jax.random.normal(xkey, (B, T, INPUT), jnp.float32)

    out = jax.jit(gru_with_att_forward)(params, x)
    out = jax.block_until_ready(out)
    assert out.shape == (B, T), out.shape

    ref = reference_forward(params, x)
    # bf16 MXU operands (per perf review) -> slightly looser tolerance vs f32 ref.
    np.testing.assert_allclose(np.asarray(out), np.asarray(ref),
                               rtol=1e-2, atol=1e-2)
    print("KERNEL_OK")
</pallas_src>

<mosaic_0001>
module attributes {stable_mosaic.version = 11 : i64} {
  func.func @bigru_kernel(%arg0: i32, %arg1: memref<64x128xbf16, #tpu.memory_space<vmem>>, %arg2: memref<64x128xbf16, #tpu.memory_space<vmem>>, %arg3: memref<2x128x384xbf16, #tpu.memory_space<vmem>>, %arg4: memref<2x128x384xbf16, #tpu.memory_space<vmem>>, %arg5: memref<2x1x384xf32, #tpu.memory_space<vmem>>, %arg6: memref<2x1x384xf32, #tpu.memory_space<vmem>>, %arg7: memref<64x128xbf16, #tpu.memory_space<vmem>>, %arg8: memref<64x128xbf16, #tpu.memory_space<vmem>>, %arg9: memref<8x256xf32, #tpu.memory_space<vmem>>, %arg10: memref<64x384xf32, #tpu.memory_space<vmem>>, %arg11: memref<64x384xf32, #tpu.memory_space<vmem>>) attributes {dimension_semantics = [#tpu.dimension_semantics<arbitrary>], iteration_bounds = array<i64: 1>, scalar_prefetch = 0 : i64, scratch_operands = 3 : i64, tpu.core_type = #tpu.core_type<tc>, window_params = [{transform_indices = @transform_0, window_bounds = array<i64: 64, 128>}, {transform_indices = @transform_1, window_bounds = array<i64: 64, 128>}, {pipeline_mode = #tpu.pipeline_mode<synchronous>, transform_indices = @transform_2, window_bounds = array<i64: 2, 128, 384>}, {pipeline_mode = #tpu.pipeline_mode<synchronous>, transform_indices = @transform_3, window_bounds = array<i64: 2, 128, 384>}, {pipeline_mode = #tpu.pipeline_mode<synchronous>, transform_indices = @transform_4, window_bounds = array<i64: 2, 1, 384>}, {pipeline_mode = #tpu.pipeline_mode<synchronous>, transform_indices = @transform_5, window_bounds = array<i64: 2, 1, 384>}, {transform_indices = @transform_6, window_bounds = array<i64: 64, 128>}, {transform_indices = @transform_7, window_bounds = array<i64: 64, 128>}]} {
    %c0_i32 = arith.constant 0 : i32
    %0 = arith.cmpi eq, %arg0, %c0_i32 : i32
    %1 = arith.extui %0 : i1 to i32
    %c0_i32_0 = arith.constant 0 : i32
    %2 = arith.cmpi ne, %1, %c0_i32_0 : i32
    scf.if %2 {
      %cst_157 = arith.constant 0.000000e+00 : f32
      %655 = vector.broadcast %cst_157 : f32 to vector<8x256xf32>
      %c0_158 = arith.constant 0 : index
      %c0_159 = arith.constant 0 : index
      %656 = vector.load %arg9[%c0_158, %c0_159] : memref<8x256xf32, #tpu.memory_space<vmem>>, vector<8x256xf32>
      tpu.vector_store %arg9[%c0_158, %c0_159], %655 {strides = array<i32>} : memref<8x256xf32, #tpu.memory_space<vmem>>, vector<8x256xf32>,
    } else {
    }
    %c0 = arith.constant 0 : index
    %c0_1 = arith.constant 0 : index
    %3 = vector.load %arg1[%c0, %c0_1] : memref<64x128xbf16, #tpu.memory_space<vmem>>, vector<64x128xbf16>
    %c0_2 = arith.constant 0 : index
    %c0_3 = arith.constant 0 : index
    %c0_4 = arith.constant 0 : index
    %4 = vector.load %arg3[%c0_2, %c0_3, %c0_4] : memref<2x128x384xbf16, #tpu.memory_space<vmem>>, vector<1x128x384xbf16>
    %5 = vector.shape_cast %4 : vector<1x128x384xbf16> to vector<128x384xbf16>
    %cst = arith.constant dense<0.000000e+00> : vector<64x384xf32>
    %6 = tpu.matmul %3, %5, %cst {dimension_numbers = #tpu.dot_dimension_numbers<[1], [0], [0], [1], [0, 0, 1, 1], [], []>} : vector<64x128xbf16>, vector<128x384xbf16>, vector<64x384xf32> -> vector<64x384xf32>
    %c0_5 = arith.constant 0 : index
    %c0_6 = arith.constant 0 : index
    %c0_7 = arith.constant 0 : index
    %7 = vector.load %arg5[%c0_5, %c0_6, %c0_7] : memref<2x1x384xf32, #tpu.memory_space<vmem>>, vector<1x1x384xf32>
    %8 = vector.shape_cast %7 : vector<1x1x384xf32> to vector<1x384xf32>
    %9 = vector.broadcast %8 : vector<1x384xf32> to vector<64x384xf32>
    %10 = arith.addf %6, %9 : vector<64x384xf32>
    %c0_8 = arith.constant 0 : index
    %c0_9 = arith.constant 0 : index
    %11 = vector.load %arg10[%c0_8, %c0_9] : memref<64x384xf32, #tpu.memory_space<vmem>>, vector<64x384xf32>
    tpu.vector_store %arg10[%c0_8, %c0_9], %10 {strides = array<i32>} : memref<64x384xf32, #tpu.memory_space<vmem>>, vector<64x384xf32>,
    %c0_10 = arith.constant 0 : index
    %c0_11 = arith.constant 0 : index
    %12 = vector.load %arg2[%c0_10, %c0_11] : memref<64x128xbf16, #tpu.memory_space<vmem>>, vector<64x128xbf16>
    %c1 = arith.constant 1 : index
    %c0_12 = arith.constant 0 : index
    %c0_13 = arith.constant 0 : index
    %13 = vector.load %arg3[%c1, %c0_12, %c0_13] : memref<2x128x384xbf16, #tpu.memory_space<vmem>>, vector<1x128x384xbf16>
    %14 = vector.shape_cast %13 : vector<1x128x384xbf16> to vector<128x384xbf16>
    %cst_14 = arith.constant dense<0.000000e+00> : vector<64x384xf32>
    %15 = tpu.matmul %12, %14, %cst_14 {dimension_numbers = #tpu.dot_dimension_numbers<[1], [0], [0], [1], [0, 0, 1, 1], [], []>} : vector<64x128xbf16>, vector<128x384xbf16>, vector<64x384xf32> -> vector<64x384xf32>
    %c1_15 = arith.constant 1 : index
    %c0_16 = arith.constant 0 : index
    %c0_17 = arith.constant 0 : index
    %16 = vector.load %arg5[%c1_15, %c0_16, %c0_17] : memref<2x1x384xf32, #tpu.memory_space<vmem>>, vector<1x1x384xf32>
    %17 = vector.shape_cast %16 : vector<1x1x384xf32> to vector<1x384xf32>
    %18 = vector.broadcast %17 : vector<1x384xf32> to vector<64x384xf32>
    %19 = arith.addf %15, %18 : vector<64x384xf32>
    %c0_18 = arith.constant 0 : index
    %c0_19 = arith.constant 0 : index
    %20 = vector.load %arg11[%c0_18, %c0_19] : memref<64x384xf32, #tpu.memory_space<vmem>>, vector<64x384xf32>
    tpu.vector_store %arg11[%c0_18, %c0_19], %19 {strides = array<i32>} : memref<64x384xf32, #tpu.memory_space<vmem>>, vector<64x384xf32>,
    %c0_20 = arith.constant 0 : index
    %c0_21 = arith.constant 0 : index
    %c0_22 = arith.constant 0 : index
    %21 = vector.load %arg4[%c0_20, %c0_21, %c0_22] : memref<2x128x384xbf16, #tpu.memory_space<vmem>>, vector<1x128x384xbf16>
    %22 = vector.shape_cast %21 : vector<1x128x384xbf16> to vector<128x384xbf16>
    %c1_23 = arith.constant 1 : index
    %c0_24 = arith.constant 0 : index
    %c0_25 = arith.constant 0 : index
    %23 = vector.load %arg4[%c1_23, %c0_24, %c0_25] : memref<2x128x384xbf16, #tpu.memory_space<vmem>>, vector<1x128x384xbf16>
    %24 = vector.shape_cast %23 : vector<1x128x384xbf16> to vector<128x384xbf16>
    %c0_26 = arith.constant 0 : index
    %c0_27 = arith.constant 0 : index
    %c0_28 = arith.constant 0 : index
    %25 = vector.load %arg6[%c0_26, %c0_27, %c0_28] : memref<2x1x384xf32, #tpu.memory_space<vmem>>, vector<1x1x384xf32>
    %26 = vector.shape_cast %25 : vector<1x1x384xf32> to vector<1x384xf32>
    %c1_29 = arith.constant 1 : index
    %c0_30 = arith.constant 0 : index
    %c0_31 = arith.constant 0 : index
    %27 = vector.load %arg6[%c1_29, %c0_30, %c0_31] : memref<2x1x384xf32, #tpu.memory_space<vmem>>, vector<1x1x384xf32>
    %28 = vector.shape_cast %27 : vector<1x1x384xf32> to vector<1x384xf32>
    %c0_32 = arith.constant 0 : index
    %c0_33 = arith.constant 0 : index
    %29 = vector.load %arg9[%c0_32, %c0_33] : memref<8x256xf32, #tpu.memory_space<vmem>>, vector<8x256xf32>
    %c0_i32_34 = arith.constant 0 : i32
    %30 = vector.extract_strided_slice %29 {offsets = [0, 0], sizes = [8, 128], strides = [1, 1]} : vector<8x256xf32> to vector<8x128xf32>
    %31 = vector.extract_strided_slice %29 {offsets = [0, 128], sizes = [8, 128], strides = [1, 1]} : vector<8x256xf32> to vector<8x128xf32>
    %c8_i32 = arith.constant 8 : i32
    %32 = arith.muli %c0_i32_34, %c8_i32 : i32
    %33 = tpu.assume_multiple %32, 8 : i32
    %c7_i32 = arith.constant 7 : i32
    %34 = arith.subi %c7_i32, %c0_i32_34 : i32
    %c8_i32_35 = arith.constant 8 : i32
    %35 = arith.muli %34, %c8_i32_35 : i32
    %36 = tpu.assume_multiple %35, 8 : i32
    %37 = arith.truncf %30 : vector<8x128xf32> to vector<8x128xbf16>
    %cst_36 = arith.constant dense<0.000000e+00> : vector<8x384xf32>
    %38 = tpu.matmul %37, %22, %cst_36 {dimension_numbers = #tpu.dot_dimension_numbers<[1], [0], [0], [1], [0, 0, 1, 1], [], []>} : vector<8x128xbf16>, vector<128x384xbf16>, vector<8x384xf32> -> vector<8x384xf32>
    %39 = vector.broadcast %26 : vector<1x384xf32> to vector<8x384xf32>
    %40 = arith.addf %38, %39 : vector<8x384xf32>
    %41 = arith.truncf %31 : vector<8x128xf32> to vector<8x128xbf16>
    %cst_37 = arith.constant dense<0.000000e+00> : vector<8x384xf32>
    %42 = tpu.matmul %41, %24, %cst_37 {dimension_numbers = #tpu.dot_dimension_numbers<[1], [0], [0], [1], [0, 0, 1, 1], [], []>} : vector<8x128xbf16>, vector<128x384xbf16>, vector<8x384xf32> -> vector<8x384xf32>
    %43 = vector.broadcast %28 : vector<1x384xf32> to vector<8x384xf32>
    %44 = arith.addf %42, %43 : vector<8x384xf32>
    %45 = arith.index_cast %33 : i32 to index
    %c0_38 = arith.constant 0 : index
    %46 = vector.load %arg10[%45, %c0_38] : memref<64x384xf32, #tpu.memory_space<vmem>>, vector<8x384xf32>
    %47 = arith.index_cast %36 : i32 to index
    %c0_39 = arith.constant 0 : index
    %48 = vector.load %arg11[%47, %c0_39] : memref<64x384xf32, #tpu.memory_space<vmem>>, vector<8x384xf32>
    %49 = vector.extract_strided_slice %46 {offsets = [0, 0], sizes = [8, 128], strides = [1, 1]} : vector<8x384xf32> to vector<8x128xf32>
    %50 = vector.extract_strided_slice %40 {offsets = [0, 0], sizes = [8, 128], strides = [1, 1]} : vector<8x384xf32> to vector<8x128xf32>
    %51 = arith.addf %49, %50 : vector<8x128xf32>
    %52 = arith.negf %51 : vector<8x128xf32>
    %53 = math.exp %52 : vector<8x128xf32>
    %cst_40 = arith.constant 1.000000e+00 : f32
    %54 = vector.broadcast %cst_40 : f32 to vector<8x128xf32>
    %55 = arith.addf %54, %53 : vector<8x128xf32>
    %56 = arith.divf %54, %55 : vector<8x128xf32>
    %57 = vector.extract_strided_slice %46 {offsets = [0, 128], sizes = [8, 128], strides = [1, 1]} : vector<8x384xf32> to vector<8x128xf32>
    %58 = vector.extract_strided_slice %40 {offsets = [0, 128], sizes = [8, 128], strides = [1, 1]} : vector<8x384xf32> to vector<8x128xf32>
    %59 = arith.addf %57, %58 : vector<8x128xf32>
    %60 = arith.negf %59 : vector<8x128xf32>
    %61 = math.exp %60 : vector<8x128xf32>
    %cst_41 = arith.constant 1.000000e+00 : f32
    %62 = vector.broadcast %cst_41 : f32 to vector<8x128xf32>
    %63 = arith.addf %62, %61 : vector<8x128xf32>
    %64 = arith.divf %62, %63 : vector<8x128xf32>
    %65 = vector.extract_strided_slice %46 {offsets = [0, 256], sizes = [8, 128], strides = [1, 1]} : vector<8x384xf32> to vector<8x128xf32>
    %66 = vector.extract_strided_slice %40 {offsets = [0, 256], sizes = [8, 128], strides = [1, 1]} : vector<8x384xf32> to vector<8x128xf32>
    %67 = arith.mulf %56, %66 : vector<8x128xf32>
    %68 = arith.addf %65, %67 : vector<8x128xf32>
    %69 = math.tanh %68 : vector<8x128xf32>
    %cst_42 = arith.constant 1.000000e+00 : f32
    %70 = vector.broadcast %cst_42 : f32 to vector<8x128xf32>
    %71 = arith.subf %70, %64 : vector<8x128xf32>
    %72 = arith.mulf %71, %69 : vector<8x128xf32>
    %73 = arith.mulf %64, %30 : vector<8x128xf32>
    %74 = arith.addf %72, %73 : vector<8x128xf32>
    %75 = vector.extract_strided_slice %48 {offsets = [0, 0], sizes = [8, 128], strides = [1, 1]} : vector<8x384xf32> to vector<8x128xf32>
    %76 = vector.extract_strided_slice %44 {offsets = [0, 0], sizes = [8, 128], strides = [1, 1]} : vector<8x384xf32> to vector<8x128xf32>
    %77 = arith.addf %75, %76 : vector<8x128xf32>
    %78 = arith.negf %77 : vector<8x128xf32>
    %79 = math.exp %78 : vector<8x128xf32>
    %cst_43 = arith.constant 1.000000e+00 : f32
    %80 = vector.broadcast %cst_43 : f32 to vector<8x128xf32>
    %81 = arith.addf %80, %79 : vector<8x128xf32>
    %82 = arith.divf %80, %81 : vector<8x128xf32>
    %83 = vector.extract_strided_slice %48 {offsets = [0, 128], sizes = [8, 128], strides = [1, 1]} : vector<8x384xf32> to vector<8x128xf32>
    %84 = vector.extract_strided_slice %44 {offsets = [0, 128], sizes = [8, 128], strides = [1, 1]} : vector<8x384xf32> to vector<8x128xf32>
    %85 = arith.addf %83, %84 : vector<8x128xf32>
    %86 = arith.negf %85 : vector<8x128xf32>
    %87 = math.exp %86 : vector<8x128xf32>
    %cst_44 = arith.constant 1.000000e+00 : f32
    %88 = vector.broadcast %cst_44 : f32 to vector<8x128xf32>
    %89 = arith.addf %88, %87 : vector<8x128xf32>
    %90 = arith.divf %88, %89 : vector<8x128xf32>
    %91 = vector.extract_strided_slice %48 {offsets = [0, 256], sizes = [8, 128], strides = [1, 1]} : vector<8x384xf32> to vector<8x128xf32>
    %92 = vector.extract_strided_slice %44 {offsets = [0, 256], sizes = [8, 128], strides = [1, 1]} : vector<8x384xf32> to vector<8x128xf32>
    %93 = arith.mulf %82, %92 : vector<8x128xf32>
    %94 = arith.addf %91, %93 : vector<8x128xf32>
    %95 = math.tanh %94 : vector<8x128xf32>
    %cst_45 = arith.constant 1.000000e+00 : f32
    %96 = vector.broadcast %cst_45 : f32 to vector<8x128xf32>
    %97 = arith.subf %96, %90 : vector<8x128xf32>
    %98 = arith.mulf %97, %95 : vector<8x128xf32>
    %99 = arith.mulf %90, %31 : vector<8x128xf32>
    %100 = arith.addf %98, %99 : vector<8x128xf32>
    %101 = arith.truncf %74 : vector<8x128xf32> to vector<8x128xbf16>
    %102 = arith.index_cast %33 : i32 to index
    %c0_46 = arith.constant 0 : index
    %103 = vector.load %arg7[%102, %c0_46] : memref<64x128xbf16, #tpu.memory_space<vmem>>, vector<8x128xbf16>
    tpu.vector_store %arg7[%102, %c0_46], %101 {strides = array<i32>} : memref<64x128xbf16, #tpu.memory_space<vmem>>, vector<8x128xbf16>,
    %104 = arith.truncf %100 : vector<8x128xf32> to vector<8x128xbf16>
    %105 = arith.index_cast %36 : i32 to index
    %c0_47 = arith.constant 0 : index
    %106 = vector.load %arg8[%105, %c0_47] : memref<64x128xbf16, #tpu.memory_space<vmem>>, vector<8x128xbf16>
    tpu.vector_store %arg8[%105, %c0_47], %104 {strides = array<i32>} : memref<64x128xbf16, #tpu.memory_space<vmem>>, vector<8x128xbf16>,
    %107 = tpu.concatenate %74, %100 in 1 : vector<8x128xf32>, vector<8x128xf32> -> vector<8x256xf32>
    %c1_i32 = arith.constant 1 : i32
    %108 = vector.extract_strided_slice %107 {offsets = [0, 0], sizes = [8, 128], strides = [1, 1]} : vector<8x256xf32> to vector<8x128xf32>
    %109 = vector.extract_strided_slice %107 {offsets = [0, 128], sizes = [8, 128], strides = [1, 1]} : vector<8x256xf32> to vector<8x128xf32>
    %c8_i32_48 = arith.constant 8 : i32
    %110 = arith.muli %c1_i32, %c8_i32_48 : i32
    %111 = tpu.assume_multiple %110, 8 : i32
    %c7_i32_49 = arith.constant 7 : i32
    %112 = arith.subi %c7_i32_49, %c1_i32 : i32
    %c8_i32_50 = arith.constant 8 : i32
    %113 = arith.muli %112, %c8_i32_50 : i32
    %114 = tpu.assume_multiple %113, 8 : i32
    %115 = arith.truncf %108 : vector<8x128xf32> to vector<8x128xbf16>
    %cst_51 = arith.constant dense<0.000000e+00> : vector<8x384xf32>
    %116 = tpu.matmul %115, %22, %cst_51 {dimension_numbers = #tpu.dot_dimension_numbers<[1], [0], [0], [1], [0, 0, 1, 1], [], []>} : vector<8x128xbf16>, vector<128x384xbf16>, vector<8x384xf32> -> vector<8x384xf32>
    %117 = vector.broadcast %26 : vector<1x384xf32> to vector<8x384xf32>
    %118 = arith.addf %116, %117 : vector<8x384xf32>
    %119 = arith.truncf %109 : vector<8x128xf32> to vector<8x128xbf16>
    %cst_52 = arith.constant dense<0.000000e+00> : vector<8x384xf32>
    %120 = tpu.matmul %119, %24, %cst_52 {dimension_numbers = #tpu.dot_dimension_numbers<[1], [0], [0], [1], [0, 0, 1, 1], [], []>} : vector<8x128xbf16>, vector<128x384xbf16>, vector<8x384xf32> -> vector<8x384xf32>
    %121 = vector.broadcast %28 : vector<1x384xf32> to vector<8x384xf32>
    %122 = arith.addf %120, %121 : vector<8x384xf32>
    %123 = arith.index_cast %111 : i32 to index
    %c0_53 = arith.constant 0 : index
    %124 = vector.load %arg10[%123, %c0_53] : memref<64x384xf32, #tpu.memory_space<vmem>>, vector<8x384xf32>
    %125 = arith.index_cast %114 : i32 to index
    %c0_54 = arith.constant 0 : index
    %126 = vector.load %arg11[%125, %c0_54] : memref<64x384xf32, #tpu.memory_space<vmem>>, vector<8x384xf32>
    %127 = vector.extract_strided_slice %124 {offsets = [0, 0], sizes = [8, 128], strides = [1, 1]} : vector<8x384xf32> to vector<8x128xf32>
    %128 = vector.extract_strided_slice %118 {offsets = [0, 0], sizes = [8, 128], strides = [1, 1]} : vector<8x384xf32> to vector<8x128xf32>
    %129 = arith.addf %127, %128 : vector<8x128xf32>
    %130 = arith.negf %129 : vector<8x128xf32>
    %131 = math.exp %130 : vector<8x128xf32>
    %cst_55 = arith.constant 1.000000e+00 : f32
    %132 = vector.broadcast %cst_55 : f32 to vector<8x128xf32>
    %133 = arith.addf %132, %131 : vector<8x128xf32>
    %134 = arith.divf %132, %133 : vector<8x128xf32>
    %135 = vector.extract_strided_slice %124 {offsets = [0, 128], sizes = [8, 128], strides = [1, 1]} : vector<8x384xf32> to vector<8x128xf32>
    %136 = vector.extract_strided_slice %118 {offsets = [0, 128], sizes = [8, 128], strides = [1, 1]} : vector<8x384xf32> to vector<8x128xf32>
    %137 = arith.addf %135, %136 : vector<8x128xf32>
    %138 = arith.negf %137 : vector<8x128xf32>
    %139 = math.exp %138 : vector<8x128xf32>
    %cst_56 = arith.constant 1.000000e+00 : f32
    %140 = vector.broadcast %cst_56 : f32 to vector<8x128xf32>
    %141 = arith.addf %140, %139 : vector<8x128xf32>
    %142 = arith.divf %140, %141 : vector<8x128xf32>
    %143 = vector.extract_strided_slice %124 {offsets = [0, 256], sizes = [8, 128], strides = [1, 1]} : vector<8x384xf32> to vector<8x128xf32>
    %144 = vector.extract_strided_slice %118 {offsets = [0, 256], sizes = [8, 128], strides = [1, 1]} : vector<8x384xf32> to vector<8x128xf32>
    %145 = arith.mulf %134, %144 : vector<8x128xf32>
    %146 = arith.addf %143, %145 : vector<8x128xf32>
    %147 = math.tanh %146 : vector<8x128xf32>
    %cst_57 = arith.constant 1.000000e+00 : f32
    %148 = vector.broadcast %cst_57 : f32 to vector<8x128xf32>
    %149 = arith.subf %148, %142 : vector<8x128xf32>
    %150 = arith.mulf %149, %147 : vector<8x128xf32>
    %151 = arith.mulf %142, %108 : vector<8x128xf32>
    %152 = arith.addf %150, %151 : vector<8x128xf32>
    %153 = vector.extract_strided_slice %126 {offsets = [0, 0], sizes = [8, 128], strides = [1, 1]} : vector<8x384xf32> to vector<8x128xf32>
    %154 = vector.extract_strided_slice %122 {offsets = [0, 0], sizes = [8, 128], strides = [1, 1]} : vector<8x384xf32> to vector<8x128xf32>
    %155 = arith.addf %153, %154 : vector<8x128xf32>
    %156 = arith.negf %155 : vector<8x128xf32>
    %157 = math.exp %156 : vector<8x128xf32>
    %cst_58 = arith.constant 1.000000e+00 : f32
    %158 = vector.broadcast %cst_58 : f32 to vector<8x128xf32>
    %159 = arith.addf %158, %157 : vector<8x128xf32>
    %160 = arith.divf %158, %159 : vector<8x128xf32>
    %161 = vector.extract_strided_slice %126 {offsets = [0, 128], sizes = [8, 128], strides = [1, 1]} : vector<8x384xf32> to vector<8x128xf32>
    %162 = vector.extract_strided_slice %122 {offsets = [0, 128], sizes = [8, 128], strides = [1, 1]} : vector<8x384xf32> to vector<8x128xf32>
    %163 = arith.addf %161, %162 : vector<8x128xf32>
    %164 = arith.negf %163 : vector<8x128xf32>
    %165 = math.exp %164 : vector<8x128xf32>
    %cst_59 = arith.constant 1.000000e+00 : f32
    %166 = vector.broadcast %cst_59 : f32 to vector<8x128xf32>
    %167 = arith.addf %166, %165 : vector<8x128xf32>
    %168 = arith.divf %166, %167 : vector<8x128xf32>
    %169 = vector.extract_strided_slice %126 {offsets = [0, 256], sizes = [8, 128], strides = [1, 1]} : vector<8x384xf32> to vector<8x128xf32>
    %170 = vector.extract_strided_slice %122 {offsets = [0, 256], sizes = [8, 128], strides = [1, 1]} : vector<8x384xf32> to vector<8x128xf32>
    %171 = arith.mulf %160, %170 : vector<8x128xf32>
    %172 = arith.addf %169, %171 : vector<8x128xf32>
    %173 = math.tanh %172 : vector<8x128xf32>
    %cst_60 = arith.constant 1.000000e+00 : f32
    %174 = vector.broadcast %cst_60 : f32 to vector<8x128xf32>
    %175 = arith.subf %174, %168 : vector<8x128xf32>
    %176 = arith.mulf %175, %173 : vector<8x128xf32>
    %177 = arith.mulf %168, %109 : vector<8x128xf32>
    %178 = arith.addf %176, %177 : vector<8x128xf32>
    %179 = arith.truncf %152 : vector<8x128xf32> to vector<8x128xbf16>
    %180 = arith.index_cast %111 : i32 to index
    %c0_61 = arith.constant 0 : index
    %181 = vector.load %arg7[%180, %c0_61] : memref<64x128xbf16, #tpu.memory_space<vmem>>, vector<8x128xbf16>
    tpu.vector_store %arg7[%180, %c0_61], %179 {strides = array<i32>} : memref<64x128xbf16, #tpu.memory_space<vmem>>, vector<8x128xbf16>,
    %182 = arith.truncf %178 : vector<8x128xf32> to vector<8x128xbf16>
    %183 = arith.index_cast %114 : i32 to index
    %c0_62 = arith.constant 0 : index
    %184 = vector.load %arg8[%183, %c0_62] : memref<64x128xbf16, #tpu.memory_space<vmem>>, vector<8x128xbf16>
    tpu.vector_store %arg8[%183, %c0_62], %182 {strides = array<i32>} : memref<64x128xbf16, #tpu.memory_space<vmem>>, vector<8x128xbf16>,
    %185 = tpu.concatenate %152, %178 in 1 : vector<8x128xf32>, vector<8x128xf32> -> vector<8x256xf32>
    %c2_i32 = arith.constant 2 : i32
    %186 = vector.extract_strided_slice %185 {offsets = [0, 0], sizes = [8, 128], strides = [1, 1]} : vector<8x256xf32> to vector<8x128xf32>
    %187 = vector.extract_strided_slice %185 {offsets = [0, 128], sizes = [8, 128], strides = [1, 1]} : vector<8x256xf32> to vector<8x128xf32>
    %c8_i32_63 = arith.constant 8 : i32
    %188 = arith.muli %c2_i32, %c8_i32_63 : i32
    %189 = tpu.assume_multiple %188, 8 : i32
    %c7_i32_64 = arith.constant 7 : i32
    %190 = arith.subi %c7_i32_64, %c2_i32 : i32
    %c8_i32_65 = arith.constant 8 : i32
    %191 = arith.muli %190, %c8_i32_65 : i32
    %192 = tpu.assume_multiple %191, 8 : i32
    %193 = arith.truncf %186 : vector<8x128xf32> to vector<8x128xbf16>
    %cst_66 = arith.constant dense<0.000000e+00> : vector<8x384xf32>
    %194 = tpu.matmul %193, %22, %cst_66 {dimension_numbers = #tpu.dot_dimension_numbers<[1], [0], [0], [1], [0, 0, 1, 1], [], []>} : vector<8x128xbf16>, vector<128x384xbf16>, vector<8x384xf32> -> vector<8x384xf32>
    %195 = vector.broadcast %26 : vector<1x384xf32> to vector<8x384xf32>
    %196 = arith.addf %194, %195 : vector<8x384xf32>
    %197 = arith.truncf %187 : vector<8x128xf32> to vector<8x128xbf16>
    %cst_67 = arith.constant dense<0.000000e+00> : vector<8x384xf32>
    %198 = tpu.matmul %197, %24, %cst_67 {dimension_numbers = #tpu.dot_dimension_numbers<[1], [0], [0], [1], [0, 0, 1, 1], [], []>} : vector<8x128xbf16>, vector<128x384xbf16>, vector<8x384xf32> -> vector<8x384xf32>
    %199 = vector.broadcast %28 : vector<1x384xf32> to vector<8x384xf32>
    %200 = arith.addf %198, %199 : vector<8x384xf32>
    %201 = arith.index_cast %189 : i32 to index
    %c0_68 = arith.constant 0 : index
    %202 = vector.load %arg10[%201, %c0_68] : memref<64x384xf32, #tpu.memory_space<vmem>>, vector<8x384xf32>
    %203 = arith.index_cast %192 : i32 to index
    %c0_69 = arith.constant 0 : index
    %204 = vector.load %arg11[%203, %c0_69] : memref<64x384xf32, #tpu.memory_space<vmem>>, vector<8x384xf32>
    %205 = vector.extract_strided_slice %202 {offsets = [0, 0], sizes = [8, 128], strides = [1, 1]} : vector<8x384xf32> to vector<8x128xf32>
    %206 = vector.extract_strided_slice %196 {offsets = [0, 0], sizes = [8, 128], strides = [1, 1]} : vector<8x384xf32> to vector<8x128xf32>
    %207 = arith.addf %205, %206 : vector<8x128xf32>
    %208 = arith.negf %207 : vector<8x128xf32>
    %209 = math.exp %208 : vector<8x128xf32>
    %cst_70 = arith.constant 1.000000e+00 : f32
    %210 = vector.broadcast %cst_70 : f32 to vector<8x128xf32>
    %211 = arith.addf %210, %209 : vector<8x128xf32>
    %212 = arith.divf %210, %211 : vector<8x128xf32>
    %213 = vector.extract_strided_slice %202 {offsets = [0, 128], sizes = [8, 128], strides = [1, 1]} : vector<8x384xf32> to vector<8x128xf32>
    %214 = vector.extract_strided_slice %196 {offsets = [0, 128], sizes = [8, 128], strides = [1, 1]} : vector<8x384xf32> to vector<8x128xf32>
    %215 = arith.addf %213, %214 : vector<8x128xf32>
    %216 = arith.negf %215 : vector<8x128xf32>
    %217 = math.exp %216 : vector<8x128xf32>
    %cst_71 = arith.constant 1.000000e+00 : f32
    %218 = vector.broadcast %cst_71 : f32 to vector<8x128xf32>
    %219 = arith.addf %218, %217 : vector<8x128xf32>
    %220 = arith.divf %218, %219 : vector<8x128xf32>
    %221 = vector.extract_strided_slice %202 {offsets = [0, 256], sizes = [8, 128], strides = [1, 1]} : vector<8x384xf32> to vector<8x128xf32>
    %222 = vector.extract_strided_slice %196 {offsets = [0, 256], sizes = [8, 128], strides = [1, 1]} : vector<8x384xf32> to vector<8x128xf32>
    %223 = arith.mulf %212, %222 : vector<8x128xf32>
    %224 = arith.addf %221, %223 : vector<8x128xf32>
    %225 = math.tanh %224 : vector<8x128xf32>
    %cst_72 = arith.constant 1.000000e+00 : f32
    %226 = vector.broadcast %cst_72 : f32 to vector<8x128xf32>
    %227 = arith.subf %226, %220 : vector<8x128xf32>
    %228 = arith.mulf %227, %225 : vector<8x128xf32>
    %229 = arith.mulf %220, %186 : vector<8x128xf32>
    %230 = arith.addf %228, %229 : vector<8x128xf32>
    %231 = vector.extract_strided_slice %204 {offsets = [0, 0], sizes = [8, 128], strides = [1, 1]} : vector<8x384xf32> to vector<8x128xf32>
    %232 = vector.extract_strided_slice %200 {offsets = [0, 0], sizes = [8, 128], strides = [1, 1]} : vector<8x384xf32> to vector<8x128xf32>
    %233 = arith.addf %231, %232 : vector<8x128xf32>
    %234 = arith.negf %233 : vector<8x128xf32>
    %235 = math.exp %234 : vector<8x128xf32>
    %cst_73 = arith.constant 1.000000e+00 : f32
    %236 = vector.broadcast %cst_73 : f32 to vector<8x128xf32>
    %237 = arith.addf %236, %235 : vector<8x128xf32>
    %238 = arith.divf %236, %237 : vector<8x128xf32>
    %239 = vector.extract_strided_slice %204 {offsets = [0, 128], sizes = [8, 128], strides = [1, 1]} : vector<8x384xf32> to vector<8x128xf32>
    %240 = vector.extract_strided_slice %200 {offsets = [0, 128], sizes = [8, 128], strides = [1, 1]} : vector<8x384xf32> to vector<8x128xf32>
    %241 = arith.addf %239, %240 : vector<8x128xf32>
    %242 = arith.negf %241 : vector<8x128xf32>
    %243 = math.exp %242 : vector<8x128xf32>
    %cst_74 = arith.constant 1.000000e+00 : f32
    %244 = vector.broadcast %cst_74 : f32 to vector<8x128xf32>
    %245 = arith.addf %244, %243 : vector<8x128xf32>
    %246 = arith.divf %244, %245 : vector<8x128xf32>
    %247 = vector.extract_strided_slice %204 {offsets = [0, 256], sizes = [8, 128], strides = [1, 1]} : vector<8x384xf32> to vector<8x128xf32>
    %248 = vector.extract_strided_slice %200 {offsets = [0, 256], sizes = [8, 128], strides = [1, 1]} : vector<8x384xf32> to vector<8x128xf32>
    %249 = arith.mulf %238, %248 : vector<8x128xf32>
    %250 = arith.addf %247, %249 : vector<8x128xf32>
    %251 = math.tanh %250 : vector<8x128xf32>
    %cst_75 = arith.constant 1.000000e+00 : f32
    %252 = vector.broadcast %cst_75 : f32 to vector<8x128xf32>
    %253 = arith.subf %252, %246 : vector<8x128xf32>
    %254 = arith.mulf %253, %251 : vector<8x128xf32>
    %255 = arith.mulf %246, %187 : vector<8x128xf32>
    %256 = arith.addf %254, %255 : vector<8x128xf32>
    %257 = arith.truncf %230 : vector<8x128xf32> to vector<8x128xbf16>
    %258 = arith.index_cast %189 : i32 to index
    %c0_76 = arith.constant 0 : index
    %259 = vector.load %arg7[%258, %c0_76] : memref<64x128xbf16, #tpu.memory_space<vmem>>, vector<8x128xbf16>
    tpu.vector_store %arg7[%258, %c0_76], %257 {strides = array<i32>} : memref<64x128xbf16, #tpu.memory_space<vmem>>, vector<8x128xbf16>,
    %260 = arith.truncf %256 : vector<8x128xf32> to vector<8x128xbf16>
    %261 = arith.index_cast %192 : i32 to index
    %c0_77 = arith.constant 0 : index
    %262 = vector.load %arg8[%261, %c0_77] : memref<64x128xbf16, #tpu.memory_space<vmem>>, vector<8x128xbf16>
    tpu.vector_store %arg8[%261, %c0_77], %260 {strides = array<i32>} : memref<64x128xbf16, #tpu.memory_space<vmem>>, vector<8x128xbf16>,
    %263 = tpu.concatenate %230, %256 in 1 : vector<8x128xf32>, vector<8x128xf32> -> vector<8x256xf32>
    %c3_i32 = arith.constant 3 : i32
    %264 = vector.extract_strided_slice %263 {offsets = [0, 0], sizes = [8, 128], strides = [1, 1]} : vector<8x256xf32> to vector<8x128xf32>
    %265 = vector.extract_strided_slice %263 {offsets = [0, 128], sizes = [8, 128], strides = [1, 1]} : vector<8x256xf32> to vector<8x128xf32>
    %c8_i32_78 = arith.constant 8 : i32
    %266 = arith.muli %c3_i32, %c8_i32_78 : i32
    %267 = tpu.assume_multiple %266, 8 : i32
    %c7_i32_79 = arith.constant 7 : i32
    %268 = arith.subi %c7_i32_79, %c3_i32 : i32
    %c8_i32_80 = arith.constant 8 : i32
    %269 = arith.muli %268, %c8_i32_80 : i32
    %270 = tpu.assume_multiple %269, 8 : i32
    %271 = arith.truncf %264 : vector<8x128xf32> to vector<8x128xbf16>
    %cst_81 = arith.constant dense<0.000000e+00> : vector<8x384xf32>
    %272 = tpu.matmul %271, %22, %cst_81 {dimension_numbers = #tpu.dot_dimension_numbers<[1], [0], [0], [1], [0, 0, 1, 1], [], []>} : vector<8x128xbf16>, vector<128x384xbf16>, vector<8x384xf32> -> vector<8x384xf32>
    %273 = vector.broadcast %26 : vector<1x384xf32> to vector<8x384xf32>
    %274 = arith.addf %272, %273 : vector<8x384xf32>
    %275 = arith.truncf %265 : vector<8x128xf32> to vector<8x128xbf16>
    %cst_82 = arith.constant dense<0.000000e+00> : vector<8x384xf32>
    %276 = tpu.matmul %275, %24, %cst_82 {dimension_numbers = #tpu.dot_dimension_numbers<[1], [0], [0], [1], [0, 0, 1, 1], [], []>} : vector<8x128xbf16>, vector<128x384xbf16>, vector<8x384xf32> -> vector<8x384xf32>
    %277 = vector.broadcast %28 : vector<1x384xf32> to vector<8x384xf32>
    %278 = arith.addf %276, %277 : vector<8x384xf32>
    %279 = arith.index_cast %267 : i32 to index
    %c0_83 = arith.constant 0 : index
    %280 = vector.load %arg10[%279, %c0_83] : memref<64x384xf32, #tpu.memory_space<vmem>>, vector<8x384xf32>
    %281 = arith.index_cast %270 : i32 to index
    %c0_84 = arith.constant 0 : index
    %282 = vector.load %arg11[%281, %c0_84] : memref<64x384xf32, #tpu.memory_space<vmem>>, vector<8x384xf32>
    %283 = vector.extract_strided_slice %280 {offsets = [0, 0], sizes = [8, 128], strides = [1, 1]} : vector<8x384xf32> to vector<8x128xf32>
    %284 = vector.extract_strided_slice %274 {offsets = [0, 0], sizes = [8, 128], strides = [1, 1]} : vector<8x384xf32> to vector<8x128xf32>
    %285 = arith.addf %283, %284 : vector<8x128xf32>
    %286 = arith.negf %285 : vector<8x128xf32>
    %287 = math.exp %286 : vector<8x128xf32>
    %cst_85 = arith.constant 1.000000e+00 : f32
    %288 = vector.broadcast %cst_85 : f32 to vector<8x128xf32>
    %289 = arith.addf %288, %287 : vector<8x128xf32>
    %290 = arith.divf %288, %289 : vector<8x128xf32>
    %291 = vector.extract_strided_slice %280 {offsets = [0, 128], sizes = [8, 128], strides = [1, 1]} : vector<8x384xf32> to vector<8x128xf32>
    %292 = vector.extract_strided_slice %274 {offsets = [0, 128], sizes = [8, 128], strides = [1, 1]} : vector<8x384xf32> to vector<8x128xf32>
    %293 = arith.addf %291, %292 : vector<8x128xf32>
    %294 = arith.negf %293 : vector<8x128xf32>
    %295 = math.exp %294 : vector<8x128xf32>
    %cst_86 = arith.constant 1.000000e+00 : f32
    %296 = vector.broadcast %cst_86 : f32 to vector<8x128xf32>
    %297 = arith.addf %296, %295 : vector<8x128xf32>
    %298 = arith.divf %296, %297 : vector<8x128xf32>
    %299 = vector.extract_strided_slice %280 {offsets = [0, 256], sizes = [8, 128], strides = [1, 1]} : vector<8x384xf32> to vector<8x128xf32>
    %300 = vector.extract_strided_slice %274 {offsets = [0, 256], sizes = [8, 128], strides = [1, 1]} : vector<8x384xf32> to vector<8x128xf32>
    %301 = arith.mulf %290, %300 : vector<8x128xf32>
    %302 = arith.addf %299, %301 : vector<8x128xf32>
    %303 = math.tanh %302 : vector<8x128xf32>
    %cst_87 = arith.constant 1.000000e+00 : f32
    %304 = vector.broadcast %cst_87 : f32 to vector<8x128xf32>
    %305 = arith.subf %304, %298 : vector<8x128xf32>
    %306 = arith.mulf %305, %303 : vector<8x128xf32>
    %307 = arith.mulf %298, %264 : vector<8x128xf32>
    %308 = arith.addf %306, %307 : vector<8x128xf32>
    %309 = vector.extract_strided_slice %282 {offsets = [0, 0], sizes = [8, 128], strides = [1, 1]} : vector<8x384xf32> to vector<8x128xf32>
    %310 = vector.extract_strided_slice %278 {offsets = [0, 0], sizes = [8, 128], strides = [1, 1]} : vector<8x384xf32> to vector<8x128xf32>
    %311 = arith.addf %309, %310 : vector<8x128xf32>
    %312 = arith.negf %311 : vector<8x128xf32>
    %313 = math.exp %312 : vector<8x128xf32>
    %cst_88 = arith.constant 1.000000e+00 : f32
    %314 = vector.broadcast %cst_88 : f32 to vector<8x128xf32>
    %315 = arith.addf %314, %313 : vector<8x128xf32>
    %316 = arith.divf %314, %315 : vector<8x128xf32>
    %317 = vector.extract_strided_slice %282 {offsets = [0, 128], sizes = [8, 128], strides = [1, 1]} : vector<8x384xf32> to vector<8x128xf32>
    %318 = vector.extract_strided_slice %278 {offsets = [0, 128], sizes = [8, 128], strides = [1, 1]} : vector<8x384xf32> to vector<8x128xf32>
    %319 = arith.addf %317, %318 : vector<8x128xf32>
    %320 = arith.negf %319 : vector<8x128xf32>
    %321 = math.exp %320 : vector<8x128xf32>
    %cst_89 = arith.constant 1.000000e+00 : f32
    %322 = vector.broadcast %cst_89 : f32 to vector<8x128xf32>
    %323 = arith.addf %322, %321 : vector<8x128xf32>
    %324 = arith.divf %322, %323 : vector<8x128xf32>
    %325 = vector.extract_strided_slice %282 {offsets = [0, 256], sizes = [8, 128], strides = [1, 1]} : vector<8x384xf32> to vector<8x128xf32>
    %326 = vector.extract_strided_slice %278 {offsets = [0, 256], sizes = [8, 128], strides = [1, 1]} : vector<8x384xf32> to vector<8x128xf32>
    %327 = arith.mulf %316, %326 : vector<8x128xf32>
    %328 = arith.addf %325, %327 : vector<8x128xf32>
    %329 = math.tanh %328 : vector<8x128xf32>
    %cst_90 = arith.constant 1.000000e+00 : f32
    %330 = vector.broadcast %cst_90 : f32 to vector<8x128xf32>
    %331 = arith.subf %330, %324 : vector<8x128xf32>
    %332 = arith.mulf %331, %329 : vector<8x128xf32>
    %333 = arith.mulf %324, %265 : vector<8x128xf32>
    %334 = arith.addf %332, %333 : vector<8x128xf32>
    %335 = arith.truncf %308 : vector<8x128xf32> to vector<8x128xbf16>
    %336 = arith.index_cast %267 : i32 to index
    %c0_91 = arith.constant 0 : index
    %337 = vector.load %arg7[%336, %c0_91] : memref<64x128xbf16, #tpu.memory_space<vmem>>, vector<8x128xbf16>
    tpu.vector_store %arg7[%336, %c0_91], %335 {strides = array<i32>} : memref<64x128xbf16, #tpu.memory_space<vmem>>, vector<8x128xbf16>,
    %338 = arith.truncf %334 : vector<8x128xf32> to vector<8x128xbf16>
    %339 = arith.index_cast %270 : i32 to index
    %c0_92 = arith.constant 0 : index
    %340 = vector.load %arg8[%339, %c0_92] : memref<64x128xbf16, #tpu.memory_space<vmem>>, vector<8x128xbf16>
    tpu.vector_store %arg8[%339, %c0_92], %338 {strides = array<i32>} : memref<64x128xbf16, #tpu.memory_space<vmem>>, vector<8x128xbf16>,
    %341 = tpu.concatenate %308, %334 in 1 : vector<8x128xf32>, vector<8x128xf32> -> vector<8x256xf32>
    %c4_i32 = arith.constant 4 : i32
    %342 = vector.extract_strided_slice %341 {offsets = [0, 0], sizes = [8, 128], strides = [1, 1]} : vector<8x256xf32> to vector<8x128xf32>
    %343 = vector.extract_strided_slice %341 {offsets = [0, 128], sizes = [8, 128], strides = [1, 1]} : vector<8x256xf32> to vector<8x128xf32>
    %c8_i32_93 = arith.constant 8 : i32
    %344 = arith.muli %c4_i32, %c8_i32_93 : i32
    %345 = tpu.assume_multiple %344, 8 : i32
    %c7_i32_94 = arith.constant 7 : i32
    %346 = arith.subi %c7_i32_94, %c4_i32 : i32
    %c8_i32_95 = arith.constant 8 : i32
    %347 = arith.muli %346, %c8_i32_95 : i32
    %348 = tpu.assume_multiple %347, 8 : i32
    %349 = arith.truncf %342 : vector<8x128xf32> to vector<8x128xbf16>
    %cst_96 = arith.constant dense<0.000000e+00> : vector<8x384xf32>
    %350 = tpu.matmul %349, %22, %cst_96 {dimension_numbers = #tpu.dot_dimension_numbers<[1], [0], [0], [1], [0, 0, 1, 1], [], []>} : vector<8x128xbf16>, vector<128x384xbf16>, vector<8x384xf32> -> vector<8x384xf32>
    %351 = vector.broadcast %26 : vector<1x384xf32> to vector<8x384xf32>
    %352 = arith.addf %350, %351 : vector<8x384xf32>
    %353 = arith.truncf %343 : vector<8x128xf32> to vector<8x128xbf16>
    %cst_97 = arith.constant dense<0.000000e+00> : vector<8x384xf32>
    %354 = tpu.matmul %353, %24, %cst_97 {dimension_numbers = #tpu.dot_dimension_numbers<[1], [0], [0], [1], [0, 0, 1, 1], [], []>} : vector<8x128xbf16>, vector<128x384xbf16>, vector<8x384xf32> -> vector<8x384xf32>
    %355 = vector.broadcast %28 : vector<1x384xf32> to vector<8x384xf32>
    %356 = arith.addf %354, %355 : vector<8x384xf32>
    %357 = arith.index_cast %345 : i32 to index
    %c0_98 = arith.constant 0 : index
    %358 = vector.load %arg10[%357, %c0_98] : memref<64x384xf32, #tpu.memory_space<vmem>>, vector<8x384xf32>
    %359 = arith.index_cast %348 : i32 to index
    %c0_99 = arith.constant 0 : index
    %360 = vector.load %arg11[%359, %c0_99] : memref<64x384xf32, #tpu.memory_space<vmem>>, vector<8x384xf32>
    %361 = vector.extract_strided_slice %358 {offsets = [0, 0], sizes = [8, 128], strides = [1, 1]} : vector<8x384xf32> to vector<8x128xf32>
    %362 = vector.extract_strided_slice %352 {offsets = [0, 0], sizes = [8, 128], strides = [1, 1]} : vector<8x384xf32> to vector<8x128xf32>
    %363 = arith.addf %361, %362 : vector<8x128xf32>
    %364 = arith.negf %363 : vector<8x128xf32>
    %365 = math.exp %364 : vector<8x128xf32>
    %cst_100 = arith.constant 1.000000e+00 : f32
    %366 = vector.broadcast %cst_100 : f32 to vector<8x128xf32>
    %367 = arith.addf %366, %365 : vector<8x128xf32>
    %368 = arith.divf %366, %367 : vector<8x128xf32>
    %369 = vector.extract_strided_slice %358 {offsets = [0, 128], sizes = [8, 128], strides = [1, 1]} : vector<8x384xf32> to vector<8x128xf32>
    %370 = vector.extract_strided_slice %352 {offsets = [0, 128], sizes = [8, 128], strides = [1, 1]} : vector<8x384xf32> to vector<8x128xf32>
    %371 = arith.addf %369, %370 : vector<8x128xf32>
    %372 = arith.negf %371 : vector<8x128xf32>
    %373 = math.exp %372 : vector<8x128xf32>
    %cst_101 = arith.constant 1.000000e+00 : f32
    %374 = vector.broadcast %cst_101 : f32 to vector<8x128xf32>
    %375 = arith.addf %374, %373 : vector<8x128xf32>
    %376 = arith.divf %374, %375 : vector<8x128xf32>
    %377 = vector.extract_strided_slice %358 {offsets = [0, 256], sizes = [8, 128], strides = [1, 1]} : vector<8x384xf32> to vector<8x128xf32>
    %378 = vector.extract_strided_slice %352 {offsets = [0, 256], sizes = [8, 128], strides = [1, 1]} : vector<8x384xf32> to vector<8x128xf32>
    %379 = arith.mulf %368, %378 : vector<8x128xf32>
    %380 = arith.addf %377, %379 : vector<8x128xf32>
    %381 = math.tanh %380 : vector<8x128xf32>
    %cst_102 = arith.constant 1.000000e+00 : f32
    %382 = vector.broadcast %cst_102 : f32 to vector<8x128xf32>
    %383 = arith.subf %382, %376 : vector<8x128xf32>
    %384 = arith.mulf %383, %381 : vector<8x128xf32>
    %385 = arith.mulf %376, %342 : vector<8x128xf32>
    %386 = arith.addf %384, %385 : vector<8x128xf32>
    %387 = vector.extract_strided_slice %360 {offsets = [0, 0], sizes = [8, 128], strides = [1, 1]} : vector<8x384xf32> to vector<8x128xf32>
    %388 = vector.extract_strided_slice %356 {offsets = [0, 0], sizes = [8, 128], strides = [1, 1]} : vector<8x384xf32> to vector<8x128xf32>
    %389 = arith.addf %387, %388 : vector<8x128xf32>
    %390 = arith.negf %389 : vector<8x128xf32>
    %391 = math.exp %390 : vector<8x128xf32>
    %cst_103 = arith.constant 1.000000e+00 : f32
    %392 = vector.broadcast %cst_103 : f32 to vector<8x128xf32>
    %393 = arith.addf %392, %391 : vector<8x128xf32>
    %394 = arith.divf %392, %393 : vector<8x128xf32>
    %395 = vector.extract_strided_slice %360 {offsets = [0, 128], sizes = [8, 128], strides = [1, 1]} : vector<8x384xf32> to vector<8x128xf32>
    %396 = vector.extract_strided_slice %356 {offsets = [0, 128], sizes = [8, 128], strides = [1, 1]} : vector<8x384xf32> to vector<8x128xf32>
    %397 = arith.addf %395, %396 : vector<8x128xf32>
    %398 = arith.negf %397 : vector<8x128xf32>
    %399 = math.exp %398 : vector<8x128xf32>
    %cst_104 = arith.constant 1.000000e+00 : f32
    %400 = vector.broadcast %cst_104 : f32 to vector<8x128xf32>
    %401 = arith.addf %400, %399 : vector<8x128xf32>
    %402 = arith.divf %400, %401 : vector<8x128xf32>
    %403 = vector.extract_strided_slice %360 {offsets = [0, 256], sizes = [8, 128], strides = [1, 1]} : vector<8x384xf32> to vector<8x128xf32>
    %404 = vector.extract_strided_slice %356 {offsets = [0, 256], sizes = [8, 128], strides = [1, 1]} : vector<8x384xf32> to vector<8x128xf32>
    %405 = arith.mulf %394, %404 : vector<8x128xf32>
    %406 = arith.addf %403, %405 : vector<8x128xf32>
    %407 = math.tanh %406 : vector<8x128xf32>
    %cst_105 = arith.constant 1.000000e+00 : f32
    %408 = vector.broadcast %cst_105 : f32 to vector<8x128xf32>
    %409 = arith.subf %408, %402 : vector<8x128xf32>
    %410 = arith.mulf %409, %407 : vector<8x128xf32>
    %411 = arith.mulf %402, %343 : vector<8x128xf32>
    %412 = arith.addf %410, %411 : vector<8x128xf32>
    %413 = arith.truncf %386 : vector<8x128xf32> to vector<8x128xbf16>
    %414 = arith.index_cast %345 : i32 to index
    %c0_106 = arith.constant 0 : index
    %415 = vector.load %arg7[%414, %c0_106] : memref<64x128xbf16, #tpu.memory_space<vmem>>, vector<8x128xbf16>
    tpu.vector_store %arg7[%414, %c0_106], %413 {strides = array<i32>} : memref<64x128xbf16, #tpu.memory_space<vmem>>, vector<8x128xbf16>,
    %416 = arith.truncf %412 : vector<8x128xf32> to vector<8x128xbf16>
    %417 = arith.index_cast %348 : i32 to index
    %c0_107 = arith.constant 0 : index
    %418 = vector.load %arg8[%417, %c0_107] : memref<64x128xbf16, #tpu.memory_space<vmem>>, vector<8x128xbf16>
    tpu.vector_store %arg8[%417, %c0_107], %416 {strides = array<i32>} : memref<64x128xbf16, #tpu.memory_space<vmem>>, vector<8x128xbf16>,
    %419 = tpu.concatenate %386, %412 in 1 : vector<8x128xf32>, vector<8x128xf32> -> vector<8x256xf32>
    %c5_i32 = arith.constant 5 : i32
    %420 = vector.extract_strided_slice %419 {offsets = [0, 0], sizes = [8, 128], strides = [1, 1]} : vector<8x256xf32> to vector<8x128xf32>
    %421 = vector.extract_strided_slice %419 {offsets = [0, 128], sizes = [8, 128], strides = [1, 1]} : vector<8x256xf32> to vector<8x128xf32>
    %c8_i32_108 = arith.constant 8 : i32
    %422 = arith.muli %c5_i32, %c8_i32_108 : i32
    %423 = tpu.assume_multiple %422, 8 : i32
    %c7_i32_109 = arith.constant 7 : i32
    %424 = arith.subi %c7_i32_109, %c5_i32 : i32
    %c8_i32_110 = arith.constant 8 : i32
    %425 = arith.muli %424, %c8_i32_110 : i32
    %426 = tpu.assume_multiple %425, 8 : i32
    %427 = arith.truncf %420 : vector<8x128xf32> to vector<8x128xbf16>
    %cst_111 = arith.constant dense<0.000000e+00> : vector<8x384xf32>
    %428 = tpu.matmul %427, %22, %cst_111 {dimension_numbers = #tpu.dot_dimension_numbers<[1], [0], [0], [1], [0, 0, 1, 1], [], []>} : vector<8x128xbf16>, vector<128x384xbf16>, vector<8x384xf32> -> vector<8x384xf32>
    %429 = vector.broadcast %26 : vector<1x384xf32> to vector<8x384xf32>
    %430 = arith.addf %428, %429 : vector<8x384xf32>
    %431 = arith.truncf %421 : vector<8x128xf32> to vector<8x128xbf16>
    %cst_112 = arith.constant dense<0.000000e+00> : vector<8x384xf32>
    %432 = tpu.matmul %431, %24, %cst_112 {dimension_numbers = #tpu.dot_dimension_numbers<[1], [0], [0], [1], [0, 0, 1, 1], [], []>} : vector<8x128xbf16>, vector<128x384xbf16>, vector<8x384xf32> -> vector<8x384xf32>
    %433 = vector.broadcast %28 : vector<1x384xf32> to vector<8x384xf32>
    %434 = arith.addf %432, %433 : vector<8x384xf32>
    %435 = arith.index_cast %423 : i32 to index
    %c0_113 = arith.constant 0 : index
    %436 = vector.load %arg10[%435, %c0_113] : memref<64x384xf32, #tpu.memory_space<vmem>>, vector<8x384xf32>
    %437 = arith.index_cast %426 : i32 to index
    %c0_114 = arith.constant 0 : index
    %438 = vector.load %arg11[%437, %c0_114] : memref<64x384xf32, #tpu.memory_space<vmem>>, vector<8x384xf32>
    %439 = vector.extract_strided_slice %436 {offsets = [0, 0], sizes = [8, 128], strides = [1, 1]} : vector<8x384xf32> to vector<8x128xf32>
    %440 = vector.extract_strided_slice %430 {offsets = [0, 0], sizes = [8, 128], strides = [1, 1]} : vector<8x384xf32> to vector<8x128xf32>
    %441 = arith.addf %439, %440 : vector<8x128xf32>
    %442 = arith.negf %441 : vector<8x128xf32>
    %443 = math.exp %442 : vector<8x128xf32>
    %cst_115 = arith.constant 1.000000e+00 : f32
    %444 = vector.broadcast %cst_115 : f32 to vector<8x128xf32>
    %445 = arith.addf %444, %443 : vector<8x128xf32>
    %446 = arith.divf %444, %445 : vector<8x128xf32>
    %447 = vector.extract_strided_slice %436 {offsets = [0, 128], sizes = [8, 128], strides = [1, 1]} : vector<8x384xf32> to vector<8x128xf32>
    %448 = vector.extract_strided_slice %430 {offsets = [0, 128], sizes = [8, 128], strides = [1, 1]} : vector<8x384xf32> to vector<8x128xf32>
    %449 = arith.addf %447, %448 : vector<8x128xf32>
    %450 = arith.negf %449 : vector<8x128xf32>
    %451 = math.exp %450 : vector<8x128xf32>
    %cst_116 = arith.constant 1.000000e+00 : f32
    %452 = vector.broadcast %cst_116 : f32 to vector<8x128xf32>
    %453 = arith.addf %452, %451 : vector<8x128xf32>
    %454 = arith.divf %452, %453 : vector<8x128xf32>
    %455 = vector.extract_strided_slice %436 {offsets = [0, 256], sizes = [8, 128], strides = [1, 1]} : vector<8x384xf32> to vector<8x128xf32>
    %456 = vector.extract_strided_slice %430 {offsets = [0, 256], sizes = [8, 128], strides = [1, 1]} : vector<8x384xf32> to vector<8x128xf32>
    %457 = arith.mulf %446, %456 : vector<8x128xf32>
    %458 = arith.addf %455, %457 : vector<8x128xf32>
    %459 = math.tanh %458 : vector<8x128xf32>
    %cst_117 = arith.constant 1.000000e+00 : f32
    %460 = vector.broadcast %cst_117 : f32 to vector<8x128xf32>
    %461 = arith.subf %460, %454 : vector<8x128xf32>
    %462 = arith.mulf %461, %459 : vector<8x128xf32>
    %463 = arith.mulf %454, %420 : vector<8x128xf32>
    %464 = arith.addf %462, %463 : vector<8x128xf32>
    %465 = vector.extract_strided_slice %438 {offsets = [0, 0], sizes = [8, 128], strides = [1, 1]} : vector<8x384xf32> to vector<8x128xf32>
    %466 = vector.extract_strided_slice %434 {offsets = [0, 0], sizes = [8, 128], strides = [1, 1]} : vector<8x384xf32> to vector<8x128xf32>
    %467 = arith.addf %465, %466 : vector<8x128xf32>
    %468 = arith.negf %467 : vector<8x128xf32>
    %469 = math.exp %468 : vector<8x128xf32>
    %cst_118 = arith.constant 1.000000e+00 : f32
    %470 = vector.broadcast %cst_118 : f32 to vector<8x128xf32>
    %471 = arith.addf %470, %469 : vector<8x128xf32>
    %472 = arith.divf %470, %471 : vector<8x128xf32>
    %473 = vector.extract_strided_slice %438 {offsets = [0, 128], sizes = [8, 128], strides = [1, 1]} : vector<8x384xf32> to vector<8x128xf32>
    %474 = vector.extract_strided_slice %434 {offsets = [0, 128], sizes = [8, 128], strides = [1, 1]} : vector<8x384xf32> to vector<8x128xf32>
    %475 = arith.addf %473, %474 : vector<8x128xf32>
    %476 = arith.negf %475 : vector<8x128xf32>
    %477 = math.exp %476 : vector<8x128xf32>
    %cst_119 = arith.constant 1.000000e+00 : f32
    %478 = vector.broadcast %cst_119 : f32 to vector<8x128xf32>
    %479 = arith.addf %478, %477 : vector<8x128xf32>
    %480 = arith.divf %478, %479 : vector<8x128xf32>
    %481 = vector.extract_strided_slice %438 {offsets = [0, 256], sizes = [8, 128], strides = [1, 1]} : vector<8x384xf32> to vector<8x128xf32>
    %482 = vector.extract_strided_slice %434 {offsets = [0, 256], sizes = [8, 128], strides = [1, 1]} : vector<8x384xf32> to vector<8x128xf32>
    %483 = arith.mulf %472, %482 : vector<8x128xf32>
    %484 = arith.addf %481, %483 : vector<8x128xf32>
    %485 = math.tanh %484 : vector<8x128xf32>
    %cst_120 = arith.constant 1.000000e+00 : f32
    %486 = vector.broadcast %cst_120 : f32 to vector<8x128xf32>
    %487 = arith.subf %486, %480 : vector<8x128xf32>
    %488 = arith.mulf %487, %485 : vector<8x128xf32>
    %489 = arith.mulf %480, %421 : vector<8x128xf32>
    %490 = arith.addf %488, %489 : vector<8x128xf32>
    %491 = arith.truncf %464 : vector<8x128xf32> to vector<8x128xbf16>
    %492 = arith.index_cast %423 : i32 to index
    %c0_121 = arith.constant 0 : index
    %493 = vector.load %arg7[%492, %c0_121] : memref<64x128xbf16, #tpu.memory_space<vmem>>, vector<8x128xbf16>
    tpu.vector_store %arg7[%492, %c0_121], %491 {strides = array<i32>} : memref<64x128xbf16, #tpu.memory_space<vmem>>, vector<8x128xbf16>,
    %494 = arith.truncf %490 : vector<8x128xf32> to vector<8x128xbf16>
    %495 = arith.index_cast %426 : i32 to index
    %c0_122 = arith.constant 0 : index
    %496 = vector.load %arg8[%495, %c0_122] : memref<64x128xbf16, #tpu.memory_space<vmem>>, vector<8x128xbf16>
    tpu.vector_store %arg8[%495, %c0_122], %494 {strides = array<i32>} : memref<64x128xbf16, #tpu.memory_space<vmem>>, vector<8x128xbf16>,
    %497 = tpu.concatenate %464, %490 in 1 : vector<8x128xf32>, vector<8x128xf32> -> vector<8x256xf32>
    %c6_i32 = arith.constant 6 : i32
    %498 = vector.extract_strided_slice %497 {offsets = [0, 0], sizes = [8, 128], strides = [1, 1]} : vector<8x256xf32> to vector<8x128xf32>
    %499 = vector.extract_strided_slice %497 {offsets = [0, 128], sizes = [8, 128], strides = [1, 1]} : vector<8x256xf32> to vector<8x128xf32>
    %c8_i32_123 = arith.constant 8 : i32
    %500 = arith.muli %c6_i32, %c8_i32_123 : i32
    %501 = tpu.assume_multiple %500, 8 : i32
    %c7_i32_124 = arith.constant 7 : i32
    %502 = arith.subi %c7_i32_124, %c6_i32 : i32
    %c8_i32_125 = arith.constant 8 : i32
    %503 = arith.muli %502, %c8_i32_125 : i32
    %504 = tpu.assume_multiple %503, 8 : i32
    %505 = arith.truncf %498 : vector<8x128xf32> to vector<8x128xbf16>
    %cst_126 = arith.constant dense<0.000000e+00> : vector<8x384xf32>
    %506 = tpu.matmul %505, %22, %cst_126 {dimension_numbers = #tpu.dot_dimension_numbers<[1], [0], [0], [1], [0, 0, 1, 1], [], []>} : vector<8x128xbf16>, vector<128x384xbf16>, vector<8x384xf32> -> vector<8x384xf32>
    %507 = vector.broadcast %26 : vector<1x384xf32> to vector<8x384xf32>
    %508 = arith.addf %506, %507 : vector<8x384xf32>
    %509 = arith.truncf %499 : vector<8x128xf32> to vector<8x128xbf16>
    %cst_127 = arith.constant dense<0.000000e+00> : vector<8x384xf32>
    %510 = tpu.matmul %509, %24, %cst_127 {dimension_numbers = #tpu.dot_dimension_numbers<[1], [0], [0], [1], [0, 0, 1, 1], [], []>} : vector<8x128xbf16>, vector<128x384xbf16>, vector<8x384xf32> -> vector<8x384xf32>
    %511 = vector.broadcast %28 : vector<1x384xf32> to vector<8x384xf32>
    %512 = arith.addf %510, %511 : vector<8x384xf32>
    %513 = arith.index_cast %501 : i32 to index
    %c0_128 = arith.constant 0 : index
    %514 = vector.load %arg10[%513, %c0_128] : memref<64x384xf32, #tpu.memory_space<vmem>>, vector<8x384xf32>
    %515 = arith.index_cast %504 : i32 to index
    %c0_129 = arith.constant 0 : index
    %516 = vector.load %arg11[%515, %c0_129] : memref<64x384xf32, #tpu.memory_space<vmem>>, vector<8x384xf32>
    %517 = vector.extract_strided_slice %514 {offsets = [0, 0], sizes = [8, 128], strides = [1, 1]} : vector<8x384xf32> to vector<8x128xf32>
    %518 = vector.extract_strided_slice %508 {offsets = [0, 0], sizes = [8, 128], strides = [1, 1]} : vector<8x384xf32> to vector<8x128xf32>
    %519 = arith.addf %517, %518 : vector<8x128xf32>
    %520 = arith.negf %519 : vector<8x128xf32>
    %521 = math.exp %520 : vector<8x128xf32>
    %cst_130 = arith.constant 1.000000e+00 : f32
    %522 = vector.broadcast %cst_130 : f32 to vector<8x128xf32>
    %523 = arith.addf %522, %521 : vector<8x128xf32>
    %524 = arith.divf %522, %523 : vector<8x128xf32>
    %525 = vector.extract_strided_slice %514 {offsets = [0, 128], sizes = [8, 128], strides = [1, 1]} : vector<8x384xf32> to vector<8x128xf32>
    %526 = vector.extract_strided_slice %508 {offsets = [0, 128], sizes = [8, 128], strides = [1, 1]} : vector<8x384xf32> to vector<8x128xf32>
    %527 = arith.addf %525, %526 : vector<8x128xf32>
    %528 = arith.negf %527 : vector<8x128xf32>
    %529 = math.exp %528 : vector<8x128xf32>
    %cst_131 = arith.constant 1.000000e+00 : f32
    %530 = vector.broadcast %cst_131 : f32 to vector<8x128xf32>
    %531 = arith.addf %530, %529 : vector<8x128xf32>
    %532 = arith.divf %530, %531 : vector<8x128xf32>
    %533 = vector.extract_strided_slice %514 {offsets = [0, 256], sizes = [8, 128], strides = [1, 1]} : vector<8x384xf32> to vector<8x128xf32>
    %534 = vector.extract_strided_slice %508 {offsets = [0, 256], sizes = [8, 128], strides = [1, 1]} : vector<8x384xf32> to vector<8x128xf32>
    %535 = arith.mulf %524, %534 : vector<8x128xf32>
    %536 = arith.addf %533, %535 : vector<8x128xf32>
    %537 = math.tanh %536 : vector<8x128xf32>
    %cst_132 = arith.constant 1.000000e+00 : f32
    %538 = vector.broadcast %cst_132 : f32 to vector<8x128xf32>
    %539 = arith.subf %538, %532 : vector<8x128xf32>
    %540 = arith.mulf %539, %537 : vector<8x128xf32>
    %541 = arith.mulf %532, %498 : vector<8x128xf32>
    %542 = arith.addf %540, %541 : vector<8x128xf32>
    %543 = vector.extract_strided_slice %516 {offsets = [0, 0], sizes = [8, 128], strides = [1, 1]} : vector<8x384xf32> to vector<8x128xf32>
    %544 = vector.extract_strided_slice %512 {offsets = [0, 0], sizes = [8, 128], strides = [1, 1]} : vector<8x384xf32> to vector<8x128xf32>
    %545 = arith.addf %543, %544 : vector<8x128xf32>
    %546 = arith.negf %545 : vector<8x128xf32>
    %547 = math.exp %546 : vector<8x128xf32>
    %cst_133 = arith.constant 1.000000e+00 : f32
    %548 = vector.broadcast %cst_133 : f32 to vector<8x128xf32>
    %549 = arith.addf %548, %547 : vector<8x128xf32>
    %550 = arith.divf %548, %549 : vector<8x128xf32>
    %551 = vector.extract_strided_slice %516 {offsets = [0, 128], sizes = [8, 128], strides = [1, 1]} : vector<8x384xf32> to vector<8x128xf32>
    %552 = vector.extract_strided_slice %512 {offsets = [0, 128], sizes = [8, 128], strides = [1, 1]} : vector<8x384xf32> to vector<8x128xf32>
    %553 = arith.addf %551, %552 : vector<8x128xf32>
    %554 = arith.negf %553 : vector<8x128xf32>
    %555 = math.exp %554 : vector<8x128xf32>
    %cst_134 = arith.constant 1.000000e+00 : f32
    %556 = vector.broadcast %cst_134 : f32 to vector<8x128xf32>
    %557 = arith.addf %556, %555 : vector<8x128xf32>
    %558 = arith.divf %556, %557 : vector<8x128xf32>
    %559 = vector.extract_strided_slice %516 {offsets = [0, 256], sizes = [8, 128], strides = [1, 1]} : vector<8x384xf32> to vector<8x128xf32>
    %560 = vector.extract_strided_slice %512 {offsets = [0, 256], sizes = [8, 128], strides = [1, 1]} : vector<8x384xf32> to vector<8x128xf32>
    %561 = arith.mulf %550, %560 : vector<8x128xf32>
    %562 = arith.addf %559, %561 : vector<8x128xf32>
    %563 = math.tanh %562 : vector<8x128xf32>
    %cst_135 = arith.constant 1.000000e+00 : f32
    %564 = vector.broadcast %cst_135 : f32 to vector<8x128xf32>
    %565 = arith.subf %564, %558 : vector<8x128xf32>
    %566 = arith.mulf %565, %563 : vector<8x128xf32>
    %567 = arith.mulf %558, %499 : vector<8x128xf32>
    %568 = arith.addf %566, %567 : vector<8x128xf32>
    %569 = arith.truncf %542 : vector<8x128xf32> to vector<8x128xbf16>
    %570 = arith.index_cast %501 : i32 to index
    %c0_136 = arith.constant 0 : index
    %571 = vector.load %arg7[%570, %c0_136] : memref<64x128xbf16, #tpu.memory_space<vmem>>, vector<8x128xbf16>
    tpu.vector_store %arg7[%570, %c0_136], %569 {strides = array<i32>} : memref<64x128xbf16, #tpu.memory_space<vmem>>, vector<8x128xbf16>,
    %572 = arith.truncf %568 : vector<8x128xf32> to vector<8x128xbf16>
    %573 = arith.index_cast %504 : i32 to index
    %c0_137 = arith.constant 0 : index
    %574 = vector.load %arg8[%573, %c0_137] : memref<64x128xbf16, #tpu.memory_space<vmem>>, vector<8x128xbf16>
    tpu.vector_store %arg8[%573, %c0_137], %572 {strides = array<i32>} : memref<64x128xbf16, #tpu.memory_space<vmem>>, vector<8x128xbf16>,
    %575 = tpu.concatenate %542, %568 in 1 : vector<8x128xf32>, vector<8x128xf32> -> vector<8x256xf32>
    %c7_i32_138 = arith.constant 7 : i32
    %576 = vector.extract_strided_slice %575 {offsets = [0, 0], sizes = [8, 128], strides = [1, 1]} : vector<8x256xf32> to vector<8x128xf32>
    %577 = vector.extract_strided_slice %575 {offsets = [0, 128], sizes = [8, 128], strides = [1, 1]} : vector<8x256xf32> to vector<8x128xf32>
    %c8_i32_139 = arith.constant 8 : i32
    %578 = arith.muli %c7_i32_138, %c8_i32_139 : i32
    %579 = tpu.assume_multiple %578, 8 : i32
    %c7_i32_140 = arith.constant 7 : i32
    %580 = arith.subi %c7_i32_140, %c7_i32_138 : i32
    %c8_i32_141 = arith.constant 8 : i32
    %581 = arith.muli %580, %c8_i32_141 : i32
    %582 = tpu.assume_multiple %581, 8 : i32
    %583 = arith.truncf %576 : vector<8x128xf32> to vector<8x128xbf16>
    %cst_142 = arith.constant dense<0.000000e+00> : vector<8x384xf32>
    %584 = tpu.matmul %583, %22, %cst_142 {dimension_numbers = #tpu.dot_dimension_numbers<[1], [0], [0], [1], [0, 0, 1, 1], [], []>} : vector<8x128xbf16>, vector<128x384xbf16>, vector<8x384xf32> -> vector<8x384xf32>
    %585 = vector.broadcast %26 : vector<1x384xf32> to vector<8x384xf32>
    %586 = arith.addf %584, %585 : vector<8x384xf32>
    %587 = arith.truncf %577 : vector<8x128xf32> to vector<8x128xbf16>
    %cst_143 = arith.constant dense<0.000000e+00> : vector<8x384xf32>
    %588 = tpu.matmul %587, %24, %cst_143 {dimension_numbers = #tpu.dot_dimension_numbers<[1], [0], [0], [1], [0, 0, 1, 1], [], []>} : vector<8x128xbf16>, vector<128x384xbf16>, vector<8x384xf32> -> vector<8x384xf32>
    %589 = vector.broadcast %28 : vector<1x384xf32> to vector<8x384xf32>
    %590 = arith.addf %588, %589 : vector<8x384xf32>
    %591 = arith.index_cast %579 : i32 to index
    %c0_144 = arith.constant 0 : index
    %592 = vector.load %arg10[%591, %c0_144] : memref<64x384xf32, #tpu.memory_space<vmem>>, vector<8x384xf32>
    %593 = arith.index_cast %582 : i32 to index
    %c0_145 = arith.constant 0 : index
    %594 = vector.load %arg11[%593, %c0_145] : memref<64x384xf32, #tpu.memory_space<vmem>>, vector<8x384xf32>
    %595 = vector.extract_strided_slice %592 {offsets = [0, 0], sizes = [8, 128], strides = [1, 1]} : vector<8x384xf32> to vector<8x128xf32>
    %596 = vector.extract_strided_slice %586 {offsets = [0, 0], sizes = [8, 128], strides = [1, 1]} : vector<8x384xf32> to vector<8x128xf32>
    %597 = arith.addf %595, %596 : vector<8x128xf32>
    %598 = arith.negf %597 : vector<8x128xf32>
    %599 = math.exp %598 : vector<8x128xf32>
    %cst_146 = arith.constant 1.000000e+00 : f32
    %600 = vector.broadcast %cst_146 : f32 to vector<8x128xf32>
    %601 = arith.addf %600, %599 : vector<8x128xf32>
    %602 = arith.divf %600, %601 : vector<8x128xf32>
    %603 = vector.extract_strided_slice %592 {offsets = [0, 128], sizes = [8, 128], strides = [1, 1]} : vector<8x384xf32> to vector<8x128xf32>
    %604 = vector.extract_strided_slice %586 {offsets = [0, 128], sizes = [8, 128], strides = [1, 1]} : vector<8x384xf32> to vector<8x128xf32>
    %605 = arith.addf %603, %604 : vector<8x128xf32>
    %606 = arith.negf %605 : vector<8x128xf32>
    %607 = math.exp %606 : vector<8x128xf32>
    %cst_147 = arith.constant 1.000000e+00 : f32
    %608 = vector.broadcast %cst_147 : f32 to vector<8x128xf32>
    %609 = arith.addf %608, %607 : vector<8x128xf32>
    %610 = arith.divf %608, %609 : vector<8x128xf32>
    %611 = vector.extract_strided_slice %592 {offsets = [0, 256], sizes = [8, 128], strides = [1, 1]} : vector<8x384xf32> to vector<8x128xf32>
    %612 = vector.extract_strided_slice %586 {offsets = [0, 256], sizes = [8, 128], strides = [1, 1]} : vector<8x384xf32> to vector<8x128xf32>
    %613 = arith.mulf %602, %612 : vector<8x128xf32>
    %614 = arith.addf %611, %613 : vector<8x128xf32>
    %615 = math.tanh %614 : vector<8x128xf32>
    %cst_148 = arith.constant 1.000000e+00 : f32
    %616 = vector.broadcast %cst_148 : f32 to vector<8x128xf32>
    %617 = arith.subf %616, %610 : vector<8x128xf32>
    %618 = arith.mulf %617, %615 : vector<8x128xf32>
    %619 = arith.mulf %610, %576 : vector<8x128xf32>
    %620 = arith.addf %618, %619 : vector<8x128xf32>
    %621 = vector.extract_strided_slice %594 {offsets = [0, 0], sizes = [8, 128], strides = [1, 1]} : vector<8x384xf32> to vector<8x128xf32>
    %622 = vector.extract_strided_slice %590 {offsets = [0, 0], sizes = [8, 128], strides = [1, 1]} : vector<8x384xf32> to vector<8x128xf32>
    %623 = arith.addf %621, %622 : vector<8x128xf32>
    %624 = arith.negf %623 : vector<8x128xf32>
    %625 = math.exp %624 : vector<8x128xf32>
    %cst_149 = arith.constant 1.000000e+00 : f32
    %626 = vector.broadcast %cst_149 : f32 to vector<8x128xf32>
    %627 = arith.addf %626, %625 : vector<8x128xf32>
    %628 = arith.divf %626, %627 : vector<8x128xf32>
    %629 = vector.extract_strided_slice %594 {offsets = [0, 128], sizes = [8, 128], strides = [1, 1]} : vector<8x384xf32> to vector<8x128xf32>
    %630 = vector.extract_strided_slice %590 {offsets = [0, 128], sizes = [8, 128], strides = [1, 1]} : vector<8x384xf32> to vector<8x128xf32>
    %631 = arith.addf %629, %630 : vector<8x128xf32>
    %632 = arith.negf %631 : vector<8x128xf32>
    %633 = math.exp %632 : vector<8x128xf32>
    %cst_150 = arith.constant 1.000000e+00 : f32
    %634 = vector.broadcast %cst_150 : f32 to vector<8x128xf32>
    %635 = arith.addf %634, %633 : vector<8x128xf32>
    %636 = arith.divf %634, %635 : vector<8x128xf32>
    %637 = vector.extract_strided_slice %594 {offsets = [0, 256], sizes = [8, 128], strides = [1, 1]} : vector<8x384xf32> to vector<8x128xf32>
    %638 = vector.extract_strided_slice %590 {offsets = [0, 256], sizes = [8, 128], strides = [1, 1]} : vector<8x384xf32> to vector<8x128xf32>
    %639 = arith.mulf %628, %638 : vector<8x128xf32>
    %640 = arith.addf %637, %639 : vector<8x128xf32>
    %641 = math.tanh %640 : vector<8x128xf32>
    %cst_151 = arith.constant 1.000000e+00 : f32
    %642 = vector.broadcast %cst_151 : f32 to vector<8x128xf32>
    %643 = arith.subf %642, %636 : vector<8x128xf32>
    %644 = arith.mulf %643, %641 : vector<8x128xf32>
    %645 = arith.mulf %636, %577 : vector<8x128xf32>
    %646 = arith.addf %644, %645 : vector<8x128xf32>
    %647 = arith.truncf %620 : vector<8x128xf32> to vector<8x128xbf16>
    %648 = arith.index_cast %579 : i32 to index
    %c0_152 = arith.constant 0 : index
    %649 = vector.load %arg7[%648, %c0_152] : memref<64x128xbf16, #tpu.memory_space<vmem>>, vector<8x128xbf16>
    tpu.vector_store %arg7[%648, %c0_152], %647 {strides = array<i32>} : memref<64x128xbf16, #tpu.memory_space<vmem>>, vector<8x128xbf16>,
    %650 = arith.truncf %646 : vector<8x128xf32> to vector<8x128xbf16>
    %651 = arith.index_cast %582 : i32 to index
    %c0_153 = arith.constant 0 : index
    %652 = vector.load %arg8[%651, %c0_153] : memref<64x128xbf16, #tpu.memory_space<vmem>>, vector<8x128xbf16>
    tpu.vector_store %arg8[%651, %c0_153], %650 {strides = array<i32>} : memref<64x128xbf16, #tpu.memory_space<vmem>>, vector<8x128xbf16>,
    %653 = tpu.concatenate %620, %646 in 1 : vector<8x128xf32>, vector<8x128xf32> -> vector<8x256xf32>
    %c8_i32_154 = arith.constant 8 : i32
    %c0_155 = arith.constant 0 : index
    %c0_156 = arith.constant 0 : index
    %654 = vector.load %arg9[%c0_155, %c0_156] : memref<8x256xf32, #tpu.memory_space<vmem>>, vector<8x256xf32>
    tpu.vector_store %arg9[%c0_155, %c0_156], %653 {strides = array<i32>} : memref<8x256xf32, #tpu.memory_space<vmem>>, vector<8x256xf32>,
    return
  }
  func.func @transform_0(%arg0: i32) -> (i32, i32) {
    %c0_i32 = arith.constant 0 : i32
    %c0_i32_0 = arith.constant 0 : i32
    return %arg0, %c0_i32 : i32, i32
  }
  func.func @transform_1(%arg0: i32) -> (i32, i32) {
    %c0_i32 = arith.constant 0 : i32
    %0 = arith.subi %c0_i32, %arg0 : i32
    %c0_i32_0 = arith.constant 0 : i32
    %c0_i32_1 = arith.constant 0 : i32
    return %0, %c0_i32_0 : i32, i32
  }
  func.func @transform_2(%arg0: i32) -> (i32, i32, i32) {
    %c0_i32 = arith.constant 0 : i32
    %c0_i32_0 = arith.constant 0 : i32
    %c0_i32_1 = arith.constant 0 : i32
    %c0_i32_2 = arith.constant 0 : i32
    return %c0_i32, %c0_i32_0, %c0_i32_1 : i32, i32, i32
  }
  func.func @transform_3(%arg0: i32) -> (i32, i32, i32) {
    %c0_i32 = arith.constant 0 : i32
    %c0_i32_0 = arith.constant 0 : i32
    %c0_i32_1 = arith.constant 0 : i32
    %c0_i32_2 = arith.constant 0 : i32
    return %c0_i32, %c0_i32_0, %c0_i32_1 : i32, i32, i32
  }
  func.func @transform_4(%arg0: i32) -> (i32, i32, i32) {
    %c0_i32 = arith.constant 0 : i32
    %c0_i32_0 = arith.constant 0 : i32
    %c0_i32_1 = arith.constant 0 : i32
    %c0_i32_2 = arith.constant 0 : i32
    return %c0_i32, %c0_i32_0, %c0_i32_1 : i32, i32, i32
  }
  func.func @transform_5(%arg0: i32) -> (i32, i32, i32) {
    %c0_i32 = arith.constant 0 : i32
    %c0_i32_0 = arith.constant 0 : i32
    %c0_i32_1 = arith.constant 0 : i32
    %c0_i32_2 = arith.constant 0 : i32
    return %c0_i32, %c0_i32_0, %c0_i32_1 : i32, i32, i32
  }
  func.func @transform_6(%arg0: i32) -> (i32, i32) {
    %c0_i32 = arith.constant 0 : i32
    %c0_i32_0 = arith.constant 0 : i32
    return %arg0, %c0_i32 : i32, i32
  }
  func.func @transform_7(%arg0: i32) -> (i32, i32) {
    %c0_i32 = arith.constant 0 : i32
    %0 = arith.subi %c0_i32, %arg0 : i32
    %c0_i32_0 = arith.constant 0 : i32
    %c0_i32_1 = arith.constant 0 : i32
    return %0, %c0_i32_0 : i32, i32
  }
}

module attributes {stable_mosaic.version = 11 : i64} {
  func.func @mha_fold_kernel(%arg0: i32, %arg1: memref<64x128xbf16, #tpu.memory_space<vmem>>, %arg2: memref<64x128xbf16, #tpu.memory_space<vmem>>, %arg3: memref<256x640xbf16, #tpu.memory_space<vmem>>, %arg4: memref<1x640xf32, #tpu.memory_space<vmem>>, %arg5: memref<1x1xf32, #tpu.memory_space<vmem>>, %arg6: memref<8x8xf32, #tpu.memory_space<vmem>>, %arg7: memref<64x640xf32, #tpu.memory_space<vmem>>) attributes {dimension_semantics = [#tpu.dimension_semantics<parallel>], iteration_bounds = array<i64: 1>, scalar_prefetch = 0 : i64, scratch_operands = 1 : i64, tpu.core_type = #tpu.core_type<tc>, window_params = [{transform_indices = @transform_0, window_bounds = array<i64: 64, 128>}, {transform_indices = @transform_1, window_bounds = array<i64: 64, 128>}, {pipeline_mode = #tpu.pipeline_mode<synchronous>, transform_indices = @transform_2, window_bounds = array<i64: 256, 640>}, {pipeline_mode = #tpu.pipeline_mode<synchronous>, transform_indices = @transform_3, window_bounds = array<i64: 1, 640>}, {pipeline_mode = #tpu.pipeline_mode<synchronous>, transform_indices = @transform_4, window_bounds = array<i64: 1, 1>}, {transform_indices = @transform_5, window_bounds = array<i64: 8, 8>}]} {
    %c0 = arith.constant 0 : index
    %c0_0 = arith.constant 0 : index
    %0 = vector.load %arg1[%c0, %c0_0] : memref<64x128xbf16, #tpu.memory_space<vmem>>, vector<64x128xbf16>
    %c0_1 = arith.constant 0 : index
    %c0_2 = arith.constant 0 : index
    %1 = vector.load %arg3[%c0_1, %c0_2] : memref<256x640xbf16, #tpu.memory_space<vmem>>, vector<128x640xbf16>
    %cst = arith.constant dense<0.000000e+00> : vector<64x640xf32>
    %2 = tpu.matmul %0, %1, %cst {dimension_numbers = #tpu.dot_dimension_numbers<[1], [0], [0], [1], [0, 0, 1, 1], [], []>} : vector<64x128xbf16>, vector<128x640xbf16>, vector<64x640xf32> -> vector<64x640xf32>
    %c0_3 = arith.constant 0 : index
    %c0_4 = arith.constant 0 : index
    %3 = vector.load %arg2[%c0_3, %c0_4] : memref<64x128xbf16, #tpu.memory_space<vmem>>, vector<64x128xbf16>
    %c128 = arith.constant 128 : index
    %c0_5 = arith.constant 0 : index
    %4 = vector.load %arg3[%c128, %c0_5] : memref<256x640xbf16, #tpu.memory_space<vmem>>, vector<128x640xbf16>
    %cst_6 = arith.constant dense<0.000000e+00> : vector<64x640xf32>
    %5 = tpu.matmul %3, %4, %cst_6 {dimension_numbers = #tpu.dot_dimension_numbers<[1], [0], [0], [1], [0, 0, 1, 1], [], []>} : vector<64x128xbf16>, vector<128x640xbf16>, vector<64x640xf32> -> vector<64x640xf32>
    %6 = arith.addf %2, %5 : vector<64x640xf32>
    %c0_7 = arith.constant 0 : index
    %c0_8 = arith.constant 0 : index
    %7 = vector.load %arg4[%c0_7, %c0_8] : memref<1x640xf32, #tpu.memory_space<vmem>>, vector<1x640xf32>
    %8 = vector.broadcast %7 : vector<1x640xf32> to vector<64x640xf32>
    %9 = arith.addf %6, %8 : vector<64x640xf32>
    %c0_9 = arith.constant 0 : index
    %c0_10 = arith.constant 0 : index
    %10 = vector.load %arg7[%c0_9, %c0_10] : memref<64x640xf32, #tpu.memory_space<vmem>>, vector<64x640xf32>
    tpu.vector_store %arg7[%c0_9, %c0_10], %9 {strides = array<i32>} : memref<64x640xf32, #tpu.memory_space<vmem>>, vector<64x640xf32>,
    %11 = tpu.iota {dimensions = array<i32: 1>} : vector<8x8xi32>
    %c2_i32 = arith.constant 2 : i32
    %12 = vector.broadcast %c2_i32 : i32 to vector<8x8xi32>
    %13 = arith.cmpi slt, %11, %12 : vector<8x8xi32>
    %14 = tpu.iota {dimensions = array<i32: 1>} : vector<8x8xi32>
    %c0_11 = arith.constant 0 : index
    %c0_12 = arith.constant 0 : index
    %15 = vector.load %arg5[%c0_11, %c0_12] : memref<1x1xf32, #tpu.memory_space<vmem>>, vector<1x1xf32>
    %16 = vector.extract %15[0, 0] : f32 from vector<1x1xf32>
    %cst_13 = arith.constant 0.000000e+00 : f32
    %17 = vector.broadcast %cst_13 : f32 to vector<8x8xf32>
    %c0_i32 = arith.constant 0 : i32
    %c8_i32 = arith.constant 8 : i32
    %18 = arith.muli %c0_i32, %c8_i32 : i32
    %19 = tpu.assume_multiple %18, 8 : i32
    %20 = arith.index_cast %19 : i32 to index
    %c0_14 = arith.constant 0 : index
    %21 = vector.load %arg7[%20, %c0_14] : memref<64x640xf32, #tpu.memory_space<vmem>>, vector<8x640xf32>
    %22 = vector.extract_strided_slice %21 {offsets = [0, 0], sizes = [8, 256], strides = [1, 1]} : vector<8x640xf32> to vector<8x256xf32>
    %23 = vector.extract_strided_slice %21 {offsets = [0, 256], sizes = [8, 256], strides = [1, 1]} : vector<8x640xf32> to vector<8x256xf32>
    %24 = vector.extract_strided_slice %21 {offsets = [0, 512], sizes = [8, 128], strides = [1, 1]} : vector<8x640xf32> to vector<8x128xf32>
    %cst_15 = arith.constant 0.000000e+00 : f32
    %25 = vector.broadcast %cst_15 : f32 to vector<8x1xf32>
    %26 = vector.extract_strided_slice %22 {offsets = [0, 0], sizes = [8, 64], strides = [1, 1]} : vector<8x256xf32> to vector<8x64xf32>
    %27 = vector.extract_strided_slice %23 {offsets = [0, 0], sizes = [8, 64], strides = [1, 1]} : vector<8x256xf32> to vector<8x64xf32>
    %cst_16 = arith.constant dense<0.000000e+00> : vector<8x8xf32>
    %28 = tpu.matmul %26, %27, %cst_16 {dimension_numbers = #tpu.dot_dimension_numbers<[1], [1], [0], [0], [0, 0, 1, 0], [], []>} : vector<8x64xf32>, vector<8x64xf32>, vector<8x8xf32> -> vector<8x8xf32>
    %cst_17 = arith.constant -1.000000e+30 : f32
    %29 = vector.broadcast %cst_17 : f32 to vector<8x8xf32>
    %30 = arith.select %13, %28, %29 : vector<8x8xi1>, vector<8x8xf32>
    %cst_18 = arith.constant dense<0xFF800000> : vector<8xf32>
    %31 = vector.multi_reduction <maximumf>, %30, %cst_18 [1] : vector<8x8xf32> to vector<8xf32>
    %32 = vector.shape_cast %31 : vector<8xf32> to vector<8x1xf32>
    %33 = vector.broadcast %32 : vector<8x1xf32> to vector<8x8xf32>
    %34 = arith.subf %30, %33 : vector<8x8xf32>
    %35 = math.exp %34 : vector<8x8xf32>
    %cst_19 = arith.constant dense<0.000000e+00> : vector<8xf32>
    %36 = vector.multi_reduction <add>, %35, %cst_19 [1] : vector<8x8xf32> to vector<8xf32>
    %37 = vector.shape_cast %36 : vector<8xf32> to vector<8x1xf32>
    %38 = tpu.reciprocal %37 {approx = true} : vector<8x1xf32> -> vector<8x1xf32>
    %39 = vector.broadcast %38 : vector<8x1xf32> to vector<8x8xf32>
    %40 = arith.mulf %35, %39 : vector<8x8xf32>
    %41 = vector.extract_strided_slice %24 {offsets = [0, 0], sizes = [8, 1], strides = [1, 1]} : vector<8x128xf32> to vector<8x1xf32>
    %cst_20 = arith.constant dense<0.000000e+00> : vector<8x1xf32>
    %42 = tpu.matmul %40, %41, %cst_20 {dimension_numbers = #tpu.dot_dimension_numbers<[1], [0], [0], [1], [0, 0, 1, 1], [], []>} : vector<8x8xf32>, vector<8x1xf32>, vector<8x1xf32> -> vector<8x1xf32>
    %43 = arith.addf %25, %42 : vector<8x1xf32>
    %44 = vector.extract_strided_slice %22 {offsets = [0, 64], sizes = [8, 64], strides = [1, 1]} : vector<8x256xf32> to vector<8x64xf32>
    %45 = vector.extract_strided_slice %23 {offsets = [0, 64], sizes = [8, 64], strides = [1, 1]} : vector<8x256xf32> to vector<8x64xf32>
    %cst_21 = arith.constant dense<0.000000e+00> : vector<8x8xf32>
    %46 = tpu.matmul %44, %45, %cst_21 {dimension_numbers = #tpu.dot_dimension_numbers<[1], [1], [0], [0], [0, 0, 1, 0], [], []>} : vector<8x64xf32>, vector<8x64xf32>, vector<8x8xf32> -> vector<8x8xf32>
    %cst_22 = arith.constant -1.000000e+30 : f32
    %47 = vector.broadcast %cst_22 : f32 to vector<8x8xf32>
    %48 = arith.select %13, %46, %47 : vector<8x8xi1>, vector<8x8xf32>
    %cst_23 = arith.constant dense<0xFF800000> : vector<8xf32>
    %49 = vector.multi_reduction <maximumf>, %48, %cst_23 [1] : vector<8x8xf32> to vector<8xf32>
    %50 = vector.shape_cast %49 : vector<8xf32> to vector<8x1xf32>
    %51 = vector.broadcast %50 : vector<8x1xf32> to vector<8x8xf32>
    %52 = arith.subf %48, %51 : vector<8x8xf32>
    %53 = math.exp %52 : vector<8x8xf32>
    %cst_24 = arith.constant dense<0.000000e+00> : vector<8xf32>
    %54 = vector.multi_reduction <add>, %53, %cst_24 [1] : vector<8x8xf32> to vector<8xf32>
    %55 = vector.shape_cast %54 : vector<8xf32> to vector<8x1xf32>
    %56 = tpu.reciprocal %55 {approx = true} : vector<8x1xf32> -> vector<8x1xf32>
    %57 = vector.broadcast %56 : vector<8x1xf32> to vector<8x8xf32>
    %58 = arith.mulf %53, %57 : vector<8x8xf32>
    %59 = vector.extract_strided_slice %24 {offsets = [0, 1], sizes = [8, 1], strides = [1, 1]} : vector<8x128xf32> to vector<8x1xf32>
    %cst_25 = arith.constant dense<0.000000e+00> : vector<8x1xf32>
    %60 = tpu.matmul %58, %59, %cst_25 {dimension_numbers = #tpu.dot_dimension_numbers<[1], [0], [0], [1], [0, 0, 1, 1], [], []>} : vector<8x8xf32>, vector<8x1xf32>, vector<8x1xf32> -> vector<8x1xf32>
    %61 = arith.addf %43, %60 : vector<8x1xf32>
    %62 = vector.extract_strided_slice %22 {offsets = [0, 128], sizes = [8, 64], strides = [1, 1]} : vector<8x256xf32> to vector<8x64xf32>
    %63 = vector.extract_strided_slice %23 {offsets = [0, 128], sizes = [8, 64], strides = [1, 1]} : vector<8x256xf32> to vector<8x64xf32>
    %cst_26 = arith.constant dense<0.000000e+00> : vector<8x8xf32>
    %64 = tpu.matmul %62, %63, %cst_26 {dimension_numbers = #tpu.dot_dimension_numbers<[1], [1], [0], [0], [0, 0, 1, 0], [], []>} : vector<8x64xf32>, vector<8x64xf32>, vector<8x8xf32> -> vector<8x8xf32>
    %cst_27 = arith.constant -1.000000e+30 : f32
    %65 = vector.broadcast %cst_27 : f32 to vector<8x8xf32>
    %66 = arith.select %13, %64, %65 : vector<8x8xi1>, vector<8x8xf32>
    %cst_28 = arith.constant dense<0xFF800000> : vector<8xf32>
    %67 = vector.multi_reduction <maximumf>, %66, %cst_28 [1] : vector<8x8xf32> to vector<8xf32>
    %68 = vector.shape_cast %67 : vector<8xf32> to vector<8x1xf32>
    %69 = vector.broadcast %68 : vector<8x1xf32> to vector<8x8xf32>
    %70 = arith.subf %66, %69 : vector<8x8xf32>
    %71 = math.exp %70 : vector<8x8xf32>
    %cst_29 = arith.constant dense<0.000000e+00> : vector<8xf32>
    %72 = vector.multi_reduction <add>, %71, %cst_29 [1] : vector<8x8xf32> to vector<8xf32>
    %73 = vector.shape_cast %72 : vector<8xf32> to vector<8x1xf32>
    %74 = tpu.reciprocal %73 {approx = true} : vector<8x1xf32> -> vector<8x1xf32>
    %75 = vector.broadcast %74 : vector<8x1xf32> to vector<8x8xf32>
    %76 = arith.mulf %71, %75 : vector<8x8xf32>
    %77 = vector.extract_strided_slice %24 {offsets = [0, 2], sizes = [8, 1], strides = [1, 1]} : vector<8x128xf32> to vector<8x1xf32>
    %cst_30 = arith.constant dense<0.000000e+00> : vector<8x1xf32>
    %78 = tpu.matmul %76, %77, %cst_30 {dimension_numbers = #tpu.dot_dimension_numbers<[1], [0], [0], [1], [0, 0, 1, 1], [], []>} : vector<8x8xf32>, vector<8x1xf32>, vector<8x1xf32> -> vector<8x1xf32>
    %79 = arith.addf %61, %78 : vector<8x1xf32>
    %80 = vector.extract_strided_slice %22 {offsets = [0, 192], sizes = [8, 64], strides = [1, 1]} : vector<8x256xf32> to vector<8x64xf32>
    %81 = vector.extract_strided_slice %23 {offsets = [0, 192], sizes = [8, 64], strides = [1, 1]} : vector<8x256xf32> to vector<8x64xf32>
    %cst_31 = arith.constant dense<0.000000e+00> : vector<8x8xf32>
    %82 = tpu.matmul %80, %81, %cst_31 {dimension_numbers = #tpu.dot_dimension_numbers<[1], [1], [0], [0], [0, 0, 1, 0], [], []>} : vector<8x64xf32>, vector<8x64xf32>, vector<8x8xf32> -> vector<8x8xf32>
    %cst_32 = arith.constant -1.000000e+30 : f32
    %83 = vector.broadcast %cst_32 : f32 to vector<8x8xf32>
    %84 = arith.select %13, %82, %83 : vector<8x8xi1>, vector<8x8xf32>
    %cst_33 = arith.constant dense<0xFF800000> : vector<8xf32>
    %85 = vector.multi_reduction <maximumf>, %84, %cst_33 [1] : vector<8x8xf32> to vector<8xf32>
    %86 = vector.shape_cast %85 : vector<8xf32> to vector<8x1xf32>
    %87 = vector.broadcast %86 : vector<8x1xf32> to vector<8x8xf32>
    %88 = arith.subf %84, %87 : vector<8x8xf32>
    %89 = math.exp %88 : vector<8x8xf32>
    %cst_34 = arith.constant dense<0.000000e+00> : vector<8xf32>
    %90 = vector.multi_reduction <add>, %89, %cst_34 [1] : vector<8x8xf32> to vector<8xf32>
    %91 = vector.shape_cast %90 : vector<8xf32> to vector<8x1xf32>
    %92 = tpu.reciprocal %91 {approx = true} : vector<8x1xf32> -> vector<8x1xf32>
    %93 = vector.broadcast %92 : vector<8x1xf32> to vector<8x8xf32>
    %94 = arith.mulf %89, %93 : vector<8x8xf32>
    %95 = vector.extract_strided_slice %24 {offsets = [0, 3], sizes = [8, 1], strides = [1, 1]} : vector<8x128xf32> to vector<8x1xf32>
    %cst_35 = arith.constant dense<0.000000e+00> : vector<8x1xf32>
    %96 = tpu.matmul %94, %95, %cst_35 {dimension_numbers = #tpu.dot_dimension_numbers<[1], [0], [0], [1], [0, 0, 1, 1], [], []>} : vector<8x8xf32>, vector<8x1xf32>, vector<8x1xf32> -> vector<8x1xf32>
    %97 = arith.addf %79, %96 : vector<8x1xf32>
    %98 = vector.broadcast %16 : f32 to vector<8x1xf32>
    %99 = arith.addf %97, %98 : vector<8x1xf32>
    %100 = arith.negf %99 : vector<8x1xf32>
    %101 = math.exp %100 : vector<8x1xf32>
    %cst_36 = arith.constant 1.000000e+00 : f32
    %102 = vector.broadcast %cst_36 : f32 to vector<8x1xf32>
    %103 = arith.addf %102, %101 : vector<8x1xf32>
    %104 = arith.divf %102, %103 : vector<8x1xf32>
    %105 = vector.broadcast %c0_i32 : i32 to vector<8x8xi32>
    %106 = arith.cmpi eq, %14, %105 : vector<8x8xi32>
    %107 = vector.shape_cast %104 : vector<8x1xf32> to vector<8x1xf32>
    %108 = vector.broadcast %107 : vector<8x1xf32> to vector<8x8xf32>
    %109 = arith.select %106, %108, %17 : vector<8x8xi1>, vector<8x8xf32>
    %c1_i32 = arith.constant 1 : i32
    %c8_i32_37 = arith.constant 8 : i32
    %110 = arith.muli %c1_i32, %c8_i32_37 : i32
    %111 = tpu.assume_multiple %110, 8 : i32
    %112 = arith.index_cast %111 : i32 to index
    %c0_38 = arith.constant 0 : index
    %113 = vector.load %arg7[%112, %c0_38] : memref<64x640xf32, #tpu.memory_space<vmem>>, vector<8x640xf32>
    %114 = vector.extract_strided_slice %113 {offsets = [0, 0], sizes = [8, 256], strides = [1, 1]} : vector<8x640xf32> to vector<8x256xf32>
    %115 = vector.extract_strided_slice %113 {offsets = [0, 256], sizes = [8, 256], strides = [1, 1]} : vector<8x640xf32> to vector<8x256xf32>
    %116 = vector.extract_strided_slice %113 {offsets = [0, 512], sizes = [8, 128], strides = [1, 1]} : vector<8x640xf32> to vector<8x128xf32>
    %cst_39 = arith.constant 0.000000e+00 : f32
    %117 = vector.broadcast %cst_39 : f32 to vector<8x1xf32>
    %118 = vector.extract_strided_slice %114 {offsets = [0, 0], sizes = [8, 64], strides = [1, 1]} : vector<8x256xf32> to vector<8x64xf32>
    %119 = vector.extract_strided_slice %115 {offsets = [0, 0], sizes = [8, 64], strides = [1, 1]} : vector<8x256xf32> to vector<8x64xf32>
    %cst_40 = arith.constant dense<0.000000e+00> : vector<8x8xf32>
    %120 = tpu.matmul %118, %119, %cst_40 {dimension_numbers = #tpu.dot_dimension_numbers<[1], [1], [0], [0], [0, 0, 1, 0], [], []>} : vector<8x64xf32>, vector<8x64xf32>, vector<8x8xf32> -> vector<8x8xf32>
    %cst_41 = arith.constant -1.000000e+30 : f32
    %121 = vector.broadcast %cst_41 : f32 to vector<8x8xf32>
    %122 = arith.select %13, %120, %121 : vector<8x8xi1>, vector<8x8xf32>
    %cst_42 = arith.constant dense<0xFF800000> : vector<8xf32>
    %123 = vector.multi_reduction <maximumf>, %122, %cst_42 [1] : vector<8x8xf32> to vector<8xf32>
    %124 = vector.shape_cast %123 : vector<8xf32> to vector<8x1xf32>
    %125 = vector.broadcast %124 : vector<8x1xf32> to vector<8x8xf32>
    %126 = arith.subf %122, %125 : vector<8x8xf32>
    %127 = math.exp %126 : vector<8x8xf32>
    %cst_43 = arith.constant dense<0.000000e+00> : vector<8xf32>
    %128 = vector.multi_reduction <add>, %127, %cst_43 [1] : vector<8x8xf32> to vector<8xf32>
    %129 = vector.shape_cast %128 : vector<8xf32> to vector<8x1xf32>
    %130 = tpu.reciprocal %129 {approx = true} : vector<8x1xf32> -> vector<8x1xf32>
    %131 = vector.broadcast %130 : vector<8x1xf32> to vector<8x8xf32>
    %132 = arith.mulf %127, %131 : vector<8x8xf32>
    %133 = vector.extract_strided_slice %116 {offsets = [0, 0], sizes = [8, 1], strides = [1, 1]} : vector<8x128xf32> to vector<8x1xf32>
    %cst_44 = arith.constant dense<0.000000e+00> : vector<8x1xf32>
    %134 = tpu.matmul %132, %133, %cst_44 {dimension_numbers = #tpu.dot_dimension_numbers<[1], [0], [0], [1], [0, 0, 1, 1], [], []>} : vector<8x8xf32>, vector<8x1xf32>, vector<8x1xf32> -> vector<8x1xf32>
    %135 = arith.addf %117, %134 : vector<8x1xf32>
    %136 = vector.extract_strided_slice %114 {offsets = [0, 64], sizes = [8, 64], strides = [1, 1]} : vector<8x256xf32> to vector<8x64xf32>
    %137 = vector.extract_strided_slice %115 {offsets = [0, 64], sizes = [8, 64], strides = [1, 1]} : vector<8x256xf32> to vector<8x64xf32>
    %cst_45 = arith.constant dense<0.000000e+00> : vector<8x8xf32>
    %138 = tpu.matmul %136, %137, %cst_45 {dimension_numbers = #tpu.dot_dimension_numbers<[1], [1], [0], [0], [0, 0, 1, 0], [], []>} : vector<8x64xf32>, vector<8x64xf32>, vector<8x8xf32> -> vector<8x8xf32>
    %cst_46 = arith.constant -1.000000e+30 : f32
    %139 = vector.broadcast %cst_46 : f32 to vector<8x8xf32>
    %140 = arith.select %13, %138, %139 : vector<8x8xi1>, vector<8x8xf32>
    %cst_47 = arith.constant dense<0xFF800000> : vector<8xf32>
    %141 = vector.multi_reduction <maximumf>, %140, %cst_47 [1] : vector<8x8xf32> to vector<8xf32>
    %142 = vector.shape_cast %141 : vector<8xf32> to vector<8x1xf32>
    %143 = vector.broadcast %142 : vector<8x1xf32> to vector<8x8xf32>
    %144 = arith.subf %140, %143 : vector<8x8xf32>
    %145 = math.exp %144 : vector<8x8xf32>
    %cst_48 = arith.constant dense<0.000000e+00> : vector<8xf32>
    %146 = vector.multi_reduction <add>, %145, %cst_48 [1] : vector<8x8xf32> to vector<8xf32>
    %147 = vector.shape_cast %146 : vector<8xf32> to vector<8x1xf32>
    %148 = tpu.reciprocal %147 {approx = true} : vector<8x1xf32> -> vector<8x1xf32>
    %149 = vector.broadcast %148 : vector<8x1xf32> to vector<8x8xf32>
    %150 = arith.mulf %145, %149 : vector<8x8xf32>
    %151 = vector.extract_strided_slice %116 {offsets = [0, 1], sizes = [8, 1], strides = [1, 1]} : vector<8x128xf32> to vector<8x1xf32>
    %cst_49 = arith.constant dense<0.000000e+00> : vector<8x1xf32>
    %152 = tpu.matmul %150, %151, %cst_49 {dimension_numbers = #tpu.dot_dimension_numbers<[1], [0], [0], [1], [0, 0, 1, 1], [], []>} : vector<8x8xf32>, vector<8x1xf32>, vector<8x1xf32> -> vector<8x1xf32>
    %153 = arith.addf %135, %152 : vector<8x1xf32>
    %154 = vector.extract_strided_slice %114 {offsets = [0, 128], sizes = [8, 64], strides = [1, 1]} : vector<8x256xf32> to vector<8x64xf32>
    %155 = vector.extract_strided_slice %115 {offsets = [0, 128], sizes = [8, 64], strides = [1, 1]} : vector<8x256xf32> to vector<8x64xf32>
    %cst_50 = arith.constant dense<0.000000e+00> : vector<8x8xf32>
    %156 = tpu.matmul %154, %155, %cst_50 {dimension_numbers = #tpu.dot_dimension_numbers<[1], [1], [0], [0], [0, 0, 1, 0], [], []>} : vector<8x64xf32>, vector<8x64xf32>, vector<8x8xf32> -> vector<8x8xf32>
    %cst_51 = arith.constant -1.000000e+30 : f32
    %157 = vector.broadcast %cst_51 : f32 to vector<8x8xf32>
    %158 = arith.select %13, %156, %157 : vector<8x8xi1>, vector<8x8xf32>
    %cst_52 = arith.constant dense<0xFF800000> : vector<8xf32>
    %159 = vector.multi_reduction <maximumf>, %158, %cst_52 [1] : vector<8x8xf32> to vector<8xf32>
    %160 = vector.shape_cast %159 : vector<8xf32> to vector<8x1xf32>
    %161 = vector.broadcast %160 : vector<8x1xf32> to vector<8x8xf32>
    %162 = arith.subf %158, %161 : vector<8x8xf32>
    %163 = math.exp %162 : vector<8x8xf32>
    %cst_53 = arith.constant dense<0.000000e+00> : vector<8xf32>
    %164 = vector.multi_reduction <add>, %163, %cst_53 [1] : vector<8x8xf32> to vector<8xf32>
    %165 = vector.shape_cast %164 : vector<8xf32> to vector<8x1xf32>
    %166 = tpu.reciprocal %165 {approx = true} : vector<8x1xf32> -> vector<8x1xf32>
    %167 = vector.broadcast %166 : vector<8x1xf32> to vector<8x8xf32>
    %168 = arith.mulf %163, %167 : vector<8x8xf32>
    %169 = vector.extract_strided_slice %116 {offsets = [0, 2], sizes = [8, 1], strides = [1, 1]} : vector<8x128xf32> to vector<8x1xf32>
    %cst_54 = arith.constant dense<0.000000e+00> : vector<8x1xf32>
    %170 = tpu.matmul %168, %169, %cst_54 {dimension_numbers = #tpu.dot_dimension_numbers<[1], [0], [0], [1], [0, 0, 1, 1], [], []>} : vector<8x8xf32>, vector<8x1xf32>, vector<8x1xf32> -> vector<8x1xf32>
    %171 = arith.addf %153, %170 : vector<8x1xf32>
    %172 = vector.extract_strided_slice %114 {offsets = [0, 192], sizes = [8, 64], strides = [1, 1]} : vector<8x256xf32> to vector<8x64xf32>
    %173 = vector.extract_strided_slice %115 {offsets = [0, 192], sizes = [8, 64], strides = [1, 1]} : vector<8x256xf32> to vector<8x64xf32>
    %cst_55 = arith.constant dense<0.000000e+00> : vector<8x8xf32>
    %174 = tpu.matmul %172, %173, %cst_55 {dimension_numbers = #tpu.dot_dimension_numbers<[1], [1], [0], [0], [0, 0, 1, 0], [], []>} : vector<8x64xf32>, vector<8x64xf32>, vector<8x8xf32> -> vector<8x8xf32>
    %cst_56 = arith.constant -1.000000e+30 : f32
    %175 = vector.broadcast %cst_56 : f32 to vector<8x8xf32>
    %176 = arith.select %13, %174, %175 : vector<8x8xi1>, vector<8x8xf32>
    %cst_57 = arith.constant dense<0xFF800000> : vector<8xf32>
    %177 = vector.multi_reduction <maximumf>, %176, %cst_57 [1] : vector<8x8xf32> to vector<8xf32>
    %178 = vector.shape_cast %177 : vector<8xf32> to vector<8x1xf32>
    %179 = vector.broadcast %178 : vector<8x1xf32> to vector<8x8xf32>
    %180 = arith.subf %176, %179 : vector<8x8xf32>
    %181 = math.exp %180 : vector<8x8xf32>
    %cst_58 = arith.constant dense<0.000000e+00> : vector<8xf32>
    %182 = vector.multi_reduction <add>, %181, %cst_58 [1] : vector<8x8xf32> to vector<8xf32>
    %183 = vector.shape_cast %182 : vector<8xf32> to vector<8x1xf32>
    %184 = tpu.reciprocal %183 {approx = true} : vector<8x1xf32> -> vector<8x1xf32>
    %185 = vector.broadcast %184 : vector<8x1xf32> to vector<8x8xf32>
    %186 = arith.mulf %181, %185 : vector<8x8xf32>
    %187 = vector.extract_strided_slice %116 {offsets = [0, 3], sizes = [8, 1], strides = [1, 1]} : vector<8x128xf32> to vector<8x1xf32>
    %cst_59 = arith.constant dense<0.000000e+00> : vector<8x1xf32>
    %188 = tpu.matmul %186, %187, %cst_59 {dimension_numbers = #tpu.dot_dimension_numbers<[1], [0], [0], [1], [0, 0, 1, 1], [], []>} : vector<8x8xf32>, vector<8x1xf32>, vector<8x1xf32> -> vector<8x1xf32>
    %189 = arith.addf %171, %188 : vector<8x1xf32>
    %190 = vector.broadcast %16 : f32 to vector<8x1xf32>
    %191 = arith.addf %189, %190 : vector<8x1xf32>
    %192 = arith.negf %191 : vector<8x1xf32>
    %193 = math.exp %192 : vector<8x1xf32>
    %cst_60 = arith.constant 1.000000e+00 : f32
    %194 = vector.broadcast %cst_60 : f32 to vector<8x1xf32>
    %195 = arith.addf %194, %193 : vector<8x1xf32>
    %196 = arith.divf %194, %195 : vector<8x1xf32>
    %197 = vector.broadcast %c1_i32 : i32 to vector<8x8xi32>
    %198 = arith.cmpi eq, %14, %197 : vector<8x8xi32>
    %199 = vector.shape_cast %196 : vector<8x1xf32> to vector<8x1xf32>
    %200 = vector.broadcast %199 : vector<8x1xf32> to vector<8x8xf32>
    %201 = arith.select %198, %200, %109 : vector<8x8xi1>, vector<8x8xf32>
    %c2_i32_61 = arith.constant 2 : i32
    %c8_i32_62 = arith.constant 8 : i32
    %202 = arith.muli %c2_i32_61, %c8_i32_62 : i32
    %203 = tpu.assume_multiple %202, 8 : i32
    %204 = arith.index_cast %203 : i32 to index
    %c0_63 = arith.constant 0 : index
    %205 = vector.load %arg7[%204, %c0_63] : memref<64x640xf32, #tpu.memory_space<vmem>>, vector<8x640xf32>
    %206 = vector.extract_strided_slice %205 {offsets = [0, 0], sizes = [8, 256], strides = [1, 1]} : vector<8x640xf32> to vector<8x256xf32>
    %207 = vector.extract_strided_slice %205 {offsets = [0, 256], sizes = [8, 256], strides = [1, 1]} : vector<8x640xf32> to vector<8x256xf32>
    %208 = vector.extract_strided_slice %205 {offsets = [0, 512], sizes = [8, 128], strides = [1, 1]} : vector<8x640xf32> to vector<8x128xf32>
    %cst_64 = arith.constant 0.000000e+00 : f32
    %209 = vector.broadcast %cst_64 : f32 to vector<8x1xf32>
    %210 = vector.extract_strided_slice %206 {offsets = [0, 0], sizes = [8, 64], strides = [1, 1]} : vector<8x256xf32> to vector<8x64xf32>
    %211 = vector.extract_strided_slice %207 {offsets = [0, 0], sizes = [8, 64], strides = [1, 1]} : vector<8x256xf32> to vector<8x64xf32>
    %cst_65 = arith.constant dense<0.000000e+00> : vector<8x8xf32>
    %212 = tpu.matmul %210, %211, %cst_65 {dimension_numbers = #tpu.dot_dimension_numbers<[1], [1], [0], [0], [0, 0, 1, 0], [], []>} : vector<8x64xf32>, vector<8x64xf32>, vector<8x8xf32> -> vector<8x8xf32>
    %cst_66 = arith.constant -1.000000e+30 : f32
    %213 = vector.broadcast %cst_66 : f32 to vector<8x8xf32>
    %214 = arith.select %13, %212, %213 : vector<8x8xi1>, vector<8x8xf32>
    %cst_67 = arith.constant dense<0xFF800000> : vector<8xf32>
    %215 = vector.multi_reduction <maximumf>, %214, %cst_67 [1] : vector<8x8xf32> to vector<8xf32>
    %216 = vector.shape_cast %215 : vector<8xf32> to vector<8x1xf32>
    %217 = vector.broadcast %216 : vector<8x1xf32> to vector<8x8xf32>
    %218 = arith.subf %214, %217 : vector<8x8xf32>
    %219 = math.exp %218 : vector<8x8xf32>
    %cst_68 = arith.constant dense<0.000000e+00> : vector<8xf32>
    %220 = vector.multi_reduction <add>, %219, %cst_68 [1] : vector<8x8xf32> to vector<8xf32>
    %221 = vector.shape_cast %220 : vector<8xf32> to vector<8x1xf32>
    %222 = tpu.reciprocal %221 {approx = true} : vector<8x1xf32> -> vector<8x1xf32>
    %223 = vector.broadcast %222 : vector<8x1xf32> to vector<8x8xf32>
    %224 = arith.mulf %219, %223 : vector<8x8xf32>
    %225 = vector.extract_strided_slice %208 {offsets = [0, 0], sizes = [8, 1], strides = [1, 1]} : vector<8x128xf32> to vector<8x1xf32>
    %cst_69 = arith.constant dense<0.000000e+00> : vector<8x1xf32>
    %226 = tpu.matmul %224, %225, %cst_69 {dimension_numbers = #tpu.dot_dimension_numbers<[1], [0], [0], [1], [0, 0, 1, 1], [], []>} : vector<8x8xf32>, vector<8x1xf32>, vector<8x1xf32> -> vector<8x1xf32>
    %227 = arith.addf %209, %226 : vector<8x1xf32>
    %228 = vector.extract_strided_slice %206 {offsets = [0, 64], sizes = [8, 64], strides = [1, 1]} : vector<8x256xf32> to vector<8x64xf32>
    %229 = vector.extract_strided_slice %207 {offsets = [0, 64], sizes = [8, 64], strides = [1, 1]} : vector<8x256xf32> to vector<8x64xf32>
    %cst_70 = arith.constant dense<0.000000e+00> : vector<8x8xf32>
    %230 = tpu.matmul %228, %229, %cst_70 {dimension_numbers = #tpu.dot_dimension_numbers<[1], [1], [0], [0], [0, 0, 1, 0], [], []>} : vector<8x64xf32>, vector<8x64xf32>, vector<8x8xf32> -> vector<8x8xf32>
    %cst_71 = arith.constant -1.000000e+30 : f32
    %231 = vector.broadcast %cst_71 : f32 to vector<8x8xf32>
    %232 = arith.select %13, %230, %231 : vector<8x8xi1>, vector<8x8xf32>
    %cst_72 = arith.constant dense<0xFF800000> : vector<8xf32>
    %233 = vector.multi_reduction <maximumf>, %232, %cst_72 [1] : vector<8x8xf32> to vector<8xf32>
    %234 = vector.shape_cast %233 : vector<8xf32> to vector<8x1xf32>
    %235 = vector.broadcast %234 : vector<8x1xf32> to vector<8x8xf32>
    %236 = arith.subf %232, %235 : vector<8x8xf32>
    %237 = math.exp %236 : vector<8x8xf32>
    %cst_73 = arith.constant dense<0.000000e+00> : vector<8xf32>
    %238 = vector.multi_reduction <add>, %237, %cst_73 [1] : vector<8x8xf32> to vector<8xf32>
    %239 = vector.shape_cast %238 : vector<8xf32> to vector<8x1xf32>
    %240 = tpu.reciprocal %239 {approx = true} : vector<8x1xf32> -> vector<8x1xf32>
    %241 = vector.broadcast %240 : vector<8x1xf32> to vector<8x8xf32>
    %242 = arith.mulf %237, %241 : vector<8x8xf32>
    %243 = vector.extract_strided_slice %208 {offsets = [0, 1], sizes = [8, 1], strides = [1, 1]} : vector<8x128xf32> to vector<8x1xf32>
    %cst_74 = arith.constant dense<0.000000e+00> : vector<8x1xf32>
    %244 = tpu.matmul %242, %243, %cst_74 {dimension_numbers = #tpu.dot_dimension_numbers<[1], [0], [0], [1], [0, 0, 1, 1], [], []>} : vector<8x8xf32>, vector<8x1xf32>, vector<8x1xf32> -> vector<8x1xf32>
    %245 = arith.addf %227, %244 : vector<8x1xf32>
    %246 = vector.extract_strided_slice %206 {offsets = [0, 128], sizes = [8, 64], strides = [1, 1]} : vector<8x256xf32> to vector<8x64xf32>
    %247 = vector.extract_strided_slice %207 {offsets = [0, 128], sizes = [8, 64], strides = [1, 1]} : vector<8x256xf32> to vector<8x64xf32>
    %cst_75 = arith.constant dense<0.000000e+00> : vector<8x8xf32>
    %248 = tpu.matmul %246, %247, %cst_75 {dimension_numbers = #tpu.dot_dimension_numbers<[1], [1], [0], [0], [0, 0, 1, 0], [], []>} : vector<8x64xf32>, vector<8x64xf32>, vector<8x8xf32> -> vector<8x8xf32>
    %cst_76 = arith.constant -1.000000e+30 : f32
    %249 = vector.broadcast %cst_76 : f32 to vector<8x8xf32>
    %250 = arith.select %13, %248, %249 : vector<8x8xi1>, vector<8x8xf32>
    %cst_77 = arith.constant dense<0xFF800000> : vector<8xf32>
    %251 = vector.multi_reduction <maximumf>, %250, %cst_77 [1] : vector<8x8xf32> to vector<8xf32>
    %252 = vector.shape_cast %251 : vector<8xf32> to vector<8x1xf32>
    %253 = vector.broadcast %252 : vector<8x1xf32> to vector<8x8xf32>
    %254 = arith.subf %250, %253 : vector<8x8xf32>
    %255 = math.exp %254 : vector<8x8xf32>
    %cst_78 = arith.constant dense<0.000000e+00> : vector<8xf32>
    %256 = vector.multi_reduction <add>, %255, %cst_78 [1] : vector<8x8xf32> to vector<8xf32>
    %257 = vector.shape_cast %256 : vector<8xf32> to vector<8x1xf32>
    %258 = tpu.reciprocal %257 {approx = true} : vector<8x1xf32> -> vector<8x1xf32>
    %259 = vector.broadcast %258 : vector<8x1xf32> to vector<8x8xf32>
    %260 = arith.mulf %255, %259 : vector<8x8xf32>
    %261 = vector.extract_strided_slice %208 {offsets = [0, 2], sizes = [8, 1], strides = [1, 1]} : vector<8x128xf32> to vector<8x1xf32>
    %cst_79 = arith.constant dense<0.000000e+00> : vector<8x1xf32>
    %262 = tpu.matmul %260, %261, %cst_79 {dimension_numbers = #tpu.dot_dimension_numbers<[1], [0], [0], [1], [0, 0, 1, 1], [], []>} : vector<8x8xf32>, vector<8x1xf32>, vector<8x1xf32> -> vector<8x1xf32>
    %263 = arith.addf %245, %262 : vector<8x1xf32>
    %264 = vector.extract_strided_slice %206 {offsets = [0, 192], sizes = [8, 64], strides = [1, 1]} : vector<8x256xf32> to vector<8x64xf32>
    %265 = vector.extract_strided_slice %207 {offsets = [0, 192], sizes = [8, 64], strides = [1, 1]} : vector<8x256xf32> to vector<8x64xf32>
    %cst_80 = arith.constant dense<0.000000e+00> : vector<8x8xf32>
    %266 = tpu.matmul %264, %265, %cst_80 {dimension_numbers = #tpu.dot_dimension_numbers<[1], [1], [0], [0], [0, 0, 1, 0], [], []>} : vector<8x64xf32>, vector<8x64xf32>, vector<8x8xf32> -> vector<8x8xf32>
    %cst_81 = arith.constant -1.000000e+30 : f32
    %267 = vector.broadcast %cst_81 : f32 to vector<8x8xf32>
    %268 = arith.select %13, %266, %267 : vector<8x8xi1>, vector<8x8xf32>
    %cst_82 = arith.constant dense<0xFF800000> : vector<8xf32>
    %269 = vector.multi_reduction <maximumf>, %268, %cst_82 [1] : vector<8x8xf32> to vector<8xf32>
    %270 = vector.shape_cast %269 : vector<8xf32> to vector<8x1xf32>
    %271 = vector.broadcast %270 : vector<8x1xf32> to vector<8x8xf32>
    %272 = arith.subf %268, %271 : vector<8x8xf32>
    %273 = math.exp %272 : vector<8x8xf32>
    %cst_83 = arith.constant dense<0.000000e+00> : vector<8xf32>
    %274 = vector.multi_reduction <add>, %273, %cst_83 [1] : vector<8x8xf32> to vector<8xf32>
    %275 = vector.shape_cast %274 : vector<8xf32> to vector<8x1xf32>
    %276 = tpu.reciprocal %275 {approx = true} : vector<8x1xf32> -> vector<8x1xf32>
    %277 = vector.broadcast %276 : vector<8x1xf32> to vector<8x8xf32>
    %278 = arith.mulf %273, %277 : vector<8x8xf32>
    %279 = vector.extract_strided_slice %208 {offsets = [0, 3], sizes = [8, 1], strides = [1, 1]} : vector<8x128xf32> to vector<8x1xf32>
    %cst_84 = arith.constant dense<0.000000e+00> : vector<8x1xf32>
    %280 = tpu.matmul %278, %279, %cst_84 {dimension_numbers = #tpu.dot_dimension_numbers<[1], [0], [0], [1], [0, 0, 1, 1], [], []>} : vector<8x8xf32>, vector<8x1xf32>, vector<8x1xf32> -> vector<8x1xf32>
    %281 = arith.addf %263, %280 : vector<8x1xf32>
    %282 = vector.broadcast %16 : f32 to vector<8x1xf32>
    %283 = arith.addf %281, %282 : vector<8x1xf32>
    %284 = arith.negf %283 : vector<8x1xf32>
    %285 = math.exp %284 : vector<8x1xf32>
    %cst_85 = arith.constant 1.000000e+00 : f32
    %286 = vector.broadcast %cst_85 : f32 to vector<8x1xf32>
    %287 = arith.addf %286, %285 : vector<8x1xf32>
    %288 = arith.divf %286, %287 : vector<8x1xf32>
    %289 = vector.broadcast %c2_i32_61 : i32 to vector<8x8xi32>
    %290 = arith.cmpi eq, %14, %289 : vector<8x8xi32>
    %291 = vector.shape_cast %288 : vector<8x1xf32> to vector<8x1xf32>
    %292 = vector.broadcast %291 : vector<8x1xf32> to vector<8x8xf32>
    %293 = arith.select %290, %292, %201 : vector<8x8xi1>, vector<8x8xf32>
    %c3_i32 = arith.constant 3 : i32
    %c8_i32_86 = arith.constant 8 : i32
    %294 = arith.muli %c3_i32, %c8_i32_86 : i32
    %295 = tpu.assume_multiple %294, 8 : i32
    %296 = arith.index_cast %295 : i32 to index
    %c0_87 = arith.constant 0 : index
    %297 = vector.load %arg7[%296, %c0_87] : memref<64x640xf32, #tpu.memory_space<vmem>>, vector<8x640xf32>
    %298 = vector.extract_strided_slice %297 {offsets = [0, 0], sizes = [8, 256], strides = [1, 1]} : vector<8x640xf32> to vector<8x256xf32>
    %299 = vector.extract_strided_slice %297 {offsets = [0, 256], sizes = [8, 256], strides = [1, 1]} : vector<8x640xf32> to vector<8x256xf32>
    %300 = vector.extract_strided_slice %297 {offsets = [0, 512], sizes = [8, 128], strides = [1, 1]} : vector<8x640xf32> to vector<8x128xf32>
    %cst_88 = arith.constant 0.000000e+00 : f32
    %301 = vector.broadcast %cst_88 : f32 to vector<8x1xf32>
    %302 = vector.extract_strided_slice %298 {offsets = [0, 0], sizes = [8, 64], strides = [1, 1]} : vector<8x256xf32> to vector<8x64xf32>
    %303 = vector.extract_strided_slice %299 {offsets = [0, 0], sizes = [8, 64], strides = [1, 1]} : vector<8x256xf32> to vector<8x64xf32>
    %cst_89 = arith.constant dense<0.000000e+00> : vector<8x8xf32>
    %304 = tpu.matmul %302, %303, %cst_89 {dimension_numbers = #tpu.dot_dimension_numbers<[1], [1], [0], [0], [0, 0, 1, 0], [], []>} : vector<8x64xf32>, vector<8x64xf32>, vector<8x8xf32> -> vector<8x8xf32>
    %cst_90 = arith.constant -1.000000e+30 : f32
    %305 = vector.broadcast %cst_90 : f32 to vector<8x8xf32>
    %306 = arith.select %13, %304, %305 : vector<8x8xi1>, vector<8x8xf32>
    %cst_91 = arith.constant dense<0xFF800000> : vector<8xf32>
    %307 = vector.multi_reduction <maximumf>, %306, %cst_91 [1] : vector<8x8xf32> to vector<8xf32>
    %308 = vector.shape_cast %307 : vector<8xf32> to vector<8x1xf32>
    %309 = vector.broadcast %308 : vector<8x1xf32> to vector<8x8xf32>
    %310 = arith.subf %306, %309 : vector<8x8xf32>
    %311 = math.exp %310 : vector<8x8xf32>
    %cst_92 = arith.constant dense<0.000000e+00> : vector<8xf32>
    %312 = vector.multi_reduction <add>, %311, %cst_92 [1] : vector<8x8xf32> to vector<8xf32>
    %313 = vector.shape_cast %312 : vector<8xf32> to vector<8x1xf32>
    %314 = tpu.reciprocal %313 {approx = true} : vector<8x1xf32> -> vector<8x1xf32>
    %315 = vector.broadcast %314 : vector<8x1xf32> to vector<8x8xf32>
    %316 = arith.mulf %311, %315 : vector<8x8xf32>
    %317 = vector.extract_strided_slice %300 {offsets = [0, 0], sizes = [8, 1], strides = [1, 1]} : vector<8x128xf32> to vector<8x1xf32>
    %cst_93 = arith.constant dense<0.000000e+00> : vector<8x1xf32>
    %318 = tpu.matmul %316, %317, %cst_93 {dimension_numbers = #tpu.dot_dimension_numbers<[1], [0], [0], [1], [0, 0, 1, 1], [], []>} : vector<8x8xf32>, vector<8x1xf32>, vector<8x1xf32> -> vector<8x1xf32>
    %319 = arith.addf %301, %318 : vector<8x1xf32>
    %320 = vector.extract_strided_slice %298 {offsets = [0, 64], sizes = [8, 64], strides = [1, 1]} : vector<8x256xf32> to vector<8x64xf32>
    %321 = vector.extract_strided_slice %299 {offsets = [0, 64], sizes = [8, 64], strides = [1, 1]} : vector<8x256xf32> to vector<8x64xf32>
    %cst_94 = arith.constant dense<0.000000e+00> : vector<8x8xf32>
    %322 = tpu.matmul %320, %321, %cst_94 {dimension_numbers = #tpu.dot_dimension_numbers<[1], [1], [0], [0], [0, 0, 1, 0], [], []>} : vector<8x64xf32>, vector<8x64xf32>, vector<8x8xf32> -> vector<8x8xf32>
    %cst_95 = arith.constant -1.000000e+30 : f32
    %323 = vector.broadcast %cst_95 : f32 to vector<8x8xf32>
    %324 = arith.select %13, %322, %323 : vector<8x8xi1>, vector<8x8xf32>
    %cst_96 = arith.constant dense<0xFF800000> : vector<8xf32>
    %325 = vector.multi_reduction <maximumf>, %324, %cst_96 [1] : vector<8x8xf32> to vector<8xf32>
    %326 = vector.shape_cast %325 : vector<8xf32> to vector<8x1xf32>
    %327 = vector.broadcast %326 : vector<8x1xf32> to vector<8x8xf32>
    %328 = arith.subf %324, %327 : vector<8x8xf32>
    %329 = math.exp %328 : vector<8x8xf32>
    %cst_97 = arith.constant dense<0.000000e+00> : vector<8xf32>
    %330 = vector.multi_reduction <add>, %329, %cst_97 [1] : vector<8x8xf32> to vector<8xf32>
    %331 = vector.shape_cast %330 : vector<8xf32> to vector<8x1xf32>
    %332 = tpu.reciprocal %331 {approx = true} : vector<8x1xf32> -> vector<8x1xf32>
    %333 = vector.broadcast %332 : vector<8x1xf32> to vector<8x8xf32>
    %334 = arith.mulf %329, %333 : vector<8x8xf32>
    %335 = vector.extract_strided_slice %300 {offsets = [0, 1], sizes = [8, 1], strides = [1, 1]} : vector<8x128xf32> to vector<8x1xf32>
    %cst_98 = arith.constant dense<0.000000e+00> : vector<8x1xf32>
    %336 = tpu.matmul %334, %335, %cst_98 {dimension_numbers = #tpu.dot_dimension_numbers<[1], [0], [0], [1], [0, 0, 1, 1], [], []>} : vector<8x8xf32>, vector<8x1xf32>, vector<8x1xf32> -> vector<8x1xf32>
    %337 = arith.addf %319, %336 : vector<8x1xf32>
    %338 = vector.extract_strided_slice %298 {offsets = [0, 128], sizes = [8, 64], strides = [1, 1]} : vector<8x256xf32> to vector<8x64xf32>
    %339 = vector.extract_strided_slice %299 {offsets = [0, 128], sizes = [8, 64], strides = [1, 1]} : vector<8x256xf32> to vector<8x64xf32>
    %cst_99 = arith.constant dense<0.000000e+00> : vector<8x8xf32>
    %340 = tpu.matmul %338, %339, %cst_99 {dimension_numbers = #tpu.dot_dimension_numbers<[1], [1], [0], [0], [0, 0, 1, 0], [], []>} : vector<8x64xf32>, vector<8x64xf32>, vector<8x8xf32> -> vector<8x8xf32>
    %cst_100 = arith.constant -1.000000e+30 : f32
    %341 = vector.broadcast %cst_100 : f32 to vector<8x8xf32>
    %342 = arith.select %13, %340, %341 : vector<8x8xi1>, vector<8x8xf32>
    %cst_101 = arith.constant dense<0xFF800000> : vector<8xf32>
    %343 = vector.multi_reduction <maximumf>, %342, %cst_101 [1] : vector<8x8xf32> to vector<8xf32>
    %344 = vector.shape_cast %343 : vector<8xf32> to vector<8x1xf32>
    %345 = vector.broadcast %344 : vector<8x1xf32> to vector<8x8xf32>
    %346 = arith.subf %342, %345 : vector<8x8xf32>
    %347 = math.exp %346 : vector<8x8xf32>
    %cst_102 = arith.constant dense<0.000000e+00> : vector<8xf32>
    %348 = vector.multi_reduction <add>, %347, %cst_102 [1] : vector<8x8xf32> to vector<8xf32>
    %349 = vector.shape_cast %348 : vector<8xf32> to vector<8x1xf32>
    %350 = tpu.reciprocal %349 {approx = true} : vector<8x1xf32> -> vector<8x1xf32>
    %351 = vector.broadcast %350 : vector<8x1xf32> to vector<8x8xf32>
    %352 = arith.mulf %347, %351 : vector<8x8xf32>
    %353 = vector.extract_strided_slice %300 {offsets = [0, 2], sizes = [8, 1], strides = [1, 1]} : vector<8x128xf32> to vector<8x1xf32>
    %cst_103 = arith.constant dense<0.000000e+00> : vector<8x1xf32>
    %354 = tpu.matmul %352, %353, %cst_103 {dimension_numbers = #tpu.dot_dimension_numbers<[1], [0], [0], [1], [0, 0, 1, 1], [], []>} : vector<8x8xf32>, vector<8x1xf32>, vector<8x1xf32> -> vector<8x1xf32>
    %355 = arith.addf %337, %354 : vector<8x1xf32>
    %356 = vector.extract_strided_slice %298 {offsets = [0, 192], sizes = [8, 64], strides = [1, 1]} : vector<8x256xf32> to vector<8x64xf32>
    %357 = vector.extract_strided_slice %299 {offsets = [0, 192], sizes = [8, 64], strides = [1, 1]} : vector<8x256xf32> to vector<8x64xf32>
    %cst_104 = arith.constant dense<0.000000e+00> : vector<8x8xf32>
    %358 = tpu.matmul %356, %357, %cst_104 {dimension_numbers = #tpu.dot_dimension_numbers<[1], [1], [0], [0], [0, 0, 1, 0], [], []>} : vector<8x64xf32>, vector<8x64xf32>, vector<8x8xf32> -> vector<8x8xf32>
    %cst_105 = arith.constant -1.000000e+30 : f32
    %359 = vector.broadcast %cst_105 : f32 to vector<8x8xf32>
    %360 = arith.select %13, %358, %359 : vector<8x8xi1>, vector<8x8xf32>
    %cst_106 = arith.constant dense<0xFF800000> : vector<8xf32>
    %361 = vector.multi_reduction <maximumf>, %360, %cst_106 [1] : vector<8x8xf32> to vector<8xf32>
    %362 = vector.shape_cast %361 : vector<8xf32> to vector<8x1xf32>
    %363 = vector.broadcast %362 : vector<8x1xf32> to vector<8x8xf32>
    %364 = arith.subf %360, %363 : vector<8x8xf32>
    %365 = math.exp %364 : vector<8x8xf32>
    %cst_107 = arith.constant dense<0.000000e+00> : vector<8xf32>
    %366 = vector.multi_reduction <add>, %365, %cst_107 [1] : vector<8x8xf32> to vector<8xf32>
    %367 = vector.shape_cast %366 : vector<8xf32> to vector<8x1xf32>
    %368 = tpu.reciprocal %367 {approx = true} : vector<8x1xf32> -> vector<8x1xf32>
    %369 = vector.broadcast %368 : vector<8x1xf32> to vector<8x8xf32>
    %370 = arith.mulf %365, %369 : vector<8x8xf32>
    %371 = vector.extract_strided_slice %300 {offsets = [0, 3], sizes = [8, 1], strides = [1, 1]} : vector<8x128xf32> to vector<8x1xf32>
    %cst_108 = arith.constant dense<0.000000e+00> : vector<8x1xf32>
    %372 = tpu.matmul %370, %371, %cst_108 {dimension_numbers = #tpu.dot_dimension_numbers<[1], [0], [0], [1], [0, 0, 1, 1], [], []>} : vector<8x8xf32>, vector<8x1xf32>, vector<8x1xf32> -> vector<8x1xf32>
    %373 = arith.addf %355, %372 : vector<8x1xf32>
    %374 = vector.broadcast %16 : f32 to vector<8x1xf32>
    %375 = arith.addf %373, %374 : vector<8x1xf32>
    %376 = arith.negf %375 : vector<8x1xf32>
    %377 = math.exp %376 : vector<8x1xf32>
    %cst_109 = arith.constant 1.000000e+00 : f32
    %378 = vector.broadcast %cst_109 : f32 to vector<8x1xf32>
    %379 = arith.addf %378, %377 : vector<8x1xf32>
    %380 = arith.divf %378, %379 : vector<8x1xf32>
    %381 = vector.broadcast %c3_i32 : i32 to vector<8x8xi32>
    %382 = arith.cmpi eq, %14, %381 : vector<8x8xi32>
    %383 = vector.shape_cast %380 : vector<8x1xf32> to vector<8x1xf32>
    %384 = vector.broadcast %383 : vector<8x1xf32> to vector<8x8xf32>
    %385 = arith.select %382, %384, %293 : vector<8x8xi1>, vector<8x8xf32>
    %c4_i32 = arith.constant 4 : i32
    %c8_i32_110 = arith.constant 8 : i32
    %386 = arith.muli %c4_i32, %c8_i32_110 : i32
    %387 = tpu.assume_multiple %386, 8 : i32
    %388 = arith.index_cast %387 : i32 to index
    %c0_111 = arith.constant 0 : index
    %389 = vector.load %arg7[%388, %c0_111] : memref<64x640xf32, #tpu.memory_space<vmem>>, vector<8x640xf32>
    %390 = vector.extract_strided_slice %389 {offsets = [0, 0], sizes = [8, 256], strides = [1, 1]} : vector<8x640xf32> to vector<8x256xf32>
    %391 = vector.extract_strided_slice %389 {offsets = [0, 256], sizes = [8, 256], strides = [1, 1]} : vector<8x640xf32> to vector<8x256xf32>
    %392 = vector.extract_strided_slice %389 {offsets = [0, 512], sizes = [8, 128], strides = [1, 1]} : vector<8x640xf32> to vector<8x128xf32>
    %cst_112 = arith.constant 0.000000e+00 : f32
    %393 = vector.broadcast %cst_112 : f32 to vector<8x1xf32>
    %394 = vector.extract_strided_slice %390 {offsets = [0, 0], sizes = [8, 64], strides = [1, 1]} : vector<8x256xf32> to vector<8x64xf32>
    %395 = vector.extract_strided_slice %391 {offsets = [0, 0], sizes = [8, 64], strides = [1, 1]} : vector<8x256xf32> to vector<8x64xf32>
    %cst_113 = arith.constant dense<0.000000e+00> : vector<8x8xf32>
    %396 = tpu.matmul %394, %395, %cst_113 {dimension_numbers = #tpu.dot_dimension_numbers<[1], [1], [0], [0], [0, 0, 1, 0], [], []>} : vector<8x64xf32>, vector<8x64xf32>, vector<8x8xf32> -> vector<8x8xf32>
    %cst_114 = arith.constant -1.000000e+30 : f32
    %397 = vector.broadcast %cst_114 : f32 to vector<8x8xf32>
    %398 = arith.select %13, %396, %397 : vector<8x8xi1>, vector<8x8xf32>
    %cst_115 = arith.constant dense<0xFF800000> : vector<8xf32>
    %399 = vector.multi_reduction <maximumf>, %398, %cst_115 [1] : vector<8x8xf32> to vector<8xf32>
    %400 = vector.shape_cast %399 : vector<8xf32> to vector<8x1xf32>
    %401 = vector.broadcast %400 : vector<8x1xf32> to vector<8x8xf32>
    %402 = arith.subf %398, %401 : vector<8x8xf32>
    %403 = math.exp %402 : vector<8x8xf32>
    %cst_116 = arith.constant dense<0.000000e+00> : vector<8xf32>
    %404 = vector.multi_reduction <add>, %403, %cst_116 [1] : vector<8x8xf32> to vector<8xf32>
    %405 = vector.shape_cast %404 : vector<8xf32> to vector<8x1xf32>
    %406 = tpu.reciprocal %405 {approx = true} : vector<8x1xf32> -> vector<8x1xf32>
    %407 = vector.broadcast %406 : vector<8x1xf32> to vector<8x8xf32>
    %408 = arith.mulf %403, %407 : vector<8x8xf32>
    %409 = vector.extract_strided_slice %392 {offsets = [0, 0], sizes = [8, 1], strides = [1, 1]} : vector<8x128xf32> to vector<8x1xf32>
    %cst_117 = arith.constant dense<0.000000e+00> : vector<8x1xf32>
    %410 = tpu.matmul %408, %409, %cst_117 {dimension_numbers = #tpu.dot_dimension_numbers<[1], [0], [0], [1], [0, 0, 1, 1], [], []>} : vector<8x8xf32>, vector<8x1xf32>, vector<8x1xf32> -> vector<8x1xf32>
    %411 = arith.addf %393, %410 : vector<8x1xf32>
    %412 = vector.extract_strided_slice %390 {offsets = [0, 64], sizes = [8, 64], strides = [1, 1]} : vector<8x256xf32> to vector<8x64xf32>
    %413 = vector.extract_strided_slice %391 {offsets = [0, 64], sizes = [8, 64], strides = [1, 1]} : vector<8x256xf32> to vector<8x64xf32>
    %cst_118 = arith.constant dense<0.000000e+00> : vector<8x8xf32>
    %414 = tpu.matmul %412, %413, %cst_118 {dimension_numbers = #tpu.dot_dimension_numbers<[1], [1], [0], [0], [0, 0, 1, 0], [], []>} : vector<8x64xf32>, vector<8x64xf32>, vector<8x8xf32> -> vector<8x8xf32>
    %cst_119 = arith.constant -1.000000e+30 : f32
    %415 = vector.broadcast %cst_119 : f32 to vector<8x8xf32>
    %416 = arith.select %13, %414, %415 : vector<8x8xi1>, vector<8x8xf32>
    %cst_120 = arith.constant dense<0xFF800000> : vector<8xf32>
    %417 = vector.multi_reduction <maximumf>, %416, %cst_120 [1] : vector<8x8xf32> to vector<8xf32>
    %418 = vector.shape_cast %417 : vector<8xf32> to vector<8x1xf32>
    %419 = vector.broadcast %418 : vector<8x1xf32> to vector<8x8xf32>
    %420 = arith.subf %416, %419 : vector<8x8xf32>
    %421 = math.exp %420 : vector<8x8xf32>
    %cst_121 = arith.constant dense<0.000000e+00> : vector<8xf32>
    %422 = vector.multi_reduction <add>, %421, %cst_121 [1] : vector<8x8xf32> to vector<8xf32>
    %423 = vector.shape_cast %422 : vector<8xf32> to vector<8x1xf32>
    %424 = tpu.reciprocal %423 {approx = true} : vector<8x1xf32> -> vector<8x1xf32>
    %425 = vector.broadcast %424 : vector<8x1xf32> to vector<8x8xf32>
    %426 = arith.mulf %421, %425 : vector<8x8xf32>
    %427 = vector.extract_strided_slice %392 {offsets = [0, 1], sizes = [8, 1], strides = [1, 1]} : vector<8x128xf32> to vector<8x1xf32>
    %cst_122 = arith.constant dense<0.000000e+00> : vector<8x1xf32>
    %428 = tpu.matmul %426, %427, %cst_122 {dimension_numbers = #tpu.dot_dimension_numbers<[1], [0], [0], [1], [0, 0, 1, 1], [], []>} : vector<8x8xf32>, vector<8x1xf32>, vector<8x1xf32> -> vector<8x1xf32>
    %429 = arith.addf %411, %428 : vector<8x1xf32>
    %430 = vector.extract_strided_slice %390 {offsets = [0, 128], sizes = [8, 64], strides = [1, 1]} : vector<8x256xf32> to vector<8x64xf32>
    %431 = vector.extract_strided_slice %391 {offsets = [0, 128], sizes = [8, 64], strides = [1, 1]} : vector<8x256xf32> to vector<8x64xf32>
    %cst_123 = arith.constant dense<0.000000e+00> : vector<8x8xf32>
    %432 = tpu.matmul %430, %431, %cst_123 {dimension_numbers = #tpu.dot_dimension_numbers<[1], [1], [0], [0], [0, 0, 1, 0], [], []>} : vector<8x64xf32>, vector<8x64xf32>, vector<8x8xf32> -> vector<8x8xf32>
    %cst_124 = arith.constant -1.000000e+30 : f32
    %433 = vector.broadcast %cst_124 : f32 to vector<8x8xf32>
    %434 = arith.select %13, %432, %433 : vector<8x8xi1>, vector<8x8xf32>
    %cst_125 = arith.constant dense<0xFF800000> : vector<8xf32>
    %435 = vector.multi_reduction <maximumf>, %434, %cst_125 [1] : vector<8x8xf32> to vector<8xf32>
    %436 = vector.shape_cast %435 : vector<8xf32> to vector<8x1xf32>
    %437 = vector.broadcast %436 : vector<8x1xf32> to vector<8x8xf32>
    %438 = arith.subf %434, %437 : vector<8x8xf32>
    %439 = math.exp %438 : vector<8x8xf32>
    %cst_126 = arith.constant dense<0.000000e+00> : vector<8xf32>
    %440 = vector.multi_reduction <add>, %439, %cst_126 [1] : vector<8x8xf32> to vector<8xf32>
    %441 = vector.shape_cast %440 : vector<8xf32> to vector<8x1xf32>
    %442 = tpu.reciprocal %441 {approx = true} : vector<8x1xf32> -> vector<8x1xf32>
    %443 = vector.broadcast %442 : vector<8x1xf32> to vector<8x8xf32>
    %444 = arith.mulf %439, %443 : vector<8x8xf32>
    %445 = vector.extract_strided_slice %392 {offsets = [0, 2], sizes = [8, 1], strides = [1, 1]} : vector<8x128xf32> to vector<8x1xf32>
    %cst_127 = arith.constant dense<0.000000e+00> : vector<8x1xf32>
    %446 = tpu.matmul %444, %445, %cst_127 {dimension_numbers = #tpu.dot_dimension_numbers<[1], [0], [0], [1], [0, 0, 1, 1], [], []>} : vector<8x8xf32>, vector<8x1xf32>, vector<8x1xf32> -> vector<8x1xf32>
    %447 = arith.addf %429, %446 : vector<8x1xf32>
    %448 = vector.extract_strided_slice %390 {offsets = [0, 192], sizes = [8, 64], strides = [1, 1]} : vector<8x256xf32> to vector<8x64xf32>
    %449 = vector.extract_strided_slice %391 {offsets = [0, 192], sizes = [8, 64], strides = [1, 1]} : vector<8x256xf32> to vector<8x64xf32>
    %cst_128 = arith.constant dense<0.000000e+00> : vector<8x8xf32>
    %450 = tpu.matmul %448, %449, %cst_128 {dimension_numbers = #tpu.dot_dimension_numbers<[1], [1], [0], [0], [0, 0, 1, 0], [], []>} : vector<8x64xf32>, vector<8x64xf32>, vector<8x8xf32> -> vector<8x8xf32>
    %cst_129 = arith.constant -1.000000e+30 : f32
    %451 = vector.broadcast %cst_129 : f32 to vector<8x8xf32>
    %452 = arith.select %13, %450, %451 : vector<8x8xi1>, vector<8x8xf32>
    %cst_130 = arith.constant dense<0xFF800000> : vector<8xf32>
    %453 = vector.multi_reduction <maximumf>, %452, %cst_130 [1] : vector<8x8xf32> to vector<8xf32>
    %454 = vector.shape_cast %453 : vector<8xf32> to vector<8x1xf32>
    %455 = vector.broadcast %454 : vector<8x1xf32> to vector<8x8xf32>
    %456 = arith.subf %452, %455 : vector<8x8xf32>
    %457 = math.exp %456 : vector<8x8xf32>
    %cst_131 = arith.constant dense<0.000000e+00> : vector<8xf32>
    %458 = vector.multi_reduction <add>, %457, %cst_131 [1] : vector<8x8xf32> to vector<8xf32>
    %459 = vector.shape_cast %458 : vector<8xf32> to vector<8x1xf32>
    %460 = tpu.reciprocal %459 {approx = true} : vector<8x1xf32> -> vector<8x1xf32>
    %461 = vector.broadcast %460 : vector<8x1xf32> to vector<8x8xf32>
    %462 = arith.mulf %457, %461 : vector<8x8xf32>
    %463 = vector.extract_strided_slice %392 {offsets = [0, 3], sizes = [8, 1], strides = [1, 1]} : vector<8x128xf32> to vector<8x1xf32>
    %cst_132 = arith.constant dense<0.000000e+00> : vector<8x1xf32>
    %464 = tpu.matmul %462, %463, %cst_132 {dimension_numbers = #tpu.dot_dimension_numbers<[1], [0], [0], [1], [0, 0, 1, 1], [], []>} : vector<8x8xf32>, vector<8x1xf32>, vector<8x1xf32> -> vector<8x1xf32>
    %465 = arith.addf %447, %464 : vector<8x1xf32>
    %466 = vector.broadcast %16 : f32 to vector<8x1xf32>
    %467 = arith.addf %465, %466 : vector<8x1xf32>
    %468 = arith.negf %467 : vector<8x1xf32>
    %469 = math.exp %468 : vector<8x1xf32>
    %cst_133 = arith.constant 1.000000e+00 : f32
    %470 = vector.broadcast %cst_133 : f32 to vector<8x1xf32>
    %471 = arith.addf %470, %469 : vector<8x1xf32>
    %472 = arith.divf %470, %471 : vector<8x1xf32>
    %473 = vector.broadcast %c4_i32 : i32 to vector<8x8xi32>
    %474 = arith.cmpi eq, %14, %473 : vector<8x8xi32>
    %475 = vector.shape_cast %472 : vector<8x1xf32> to vector<8x1xf32>
    %476 = vector.broadcast %475 : vector<8x1xf32> to vector<8x8xf32>
    %477 = arith.select %474, %476, %385 : vector<8x8xi1>, vector<8x8xf32>
    %c5_i32 = arith.constant 5 : i32
    %c8_i32_134 = arith.constant 8 : i32
    %478 = arith.muli %c5_i32, %c8_i32_134 : i32
    %479 = tpu.assume_multiple %478, 8 : i32
    %480 = arith.index_cast %479 : i32 to index
    %c0_135 = arith.constant 0 : index
    %481 = vector.load %arg7[%480, %c0_135] : memref<64x640xf32, #tpu.memory_space<vmem>>, vector<8x640xf32>
    %482 = vector.extract_strided_slice %481 {offsets = [0, 0], sizes = [8, 256], strides = [1, 1]} : vector<8x640xf32> to vector<8x256xf32>
    %483 = vector.extract_strided_slice %481 {offsets = [0, 256], sizes = [8, 256], strides = [1, 1]} : vector<8x640xf32> to vector<8x256xf32>
    %484 = vector.extract_strided_slice %481 {offsets = [0, 512], sizes = [8, 128], strides = [1, 1]} : vector<8x640xf32> to vector<8x128xf32>
    %cst_136 = arith.constant 0.000000e+00 : f32
    %485 = vector.broadcast %cst_136 : f32 to vector<8x1xf32>
    %486 = vector.extract_strided_slice %482 {offsets = [0, 0], sizes = [8, 64], strides = [1, 1]} : vector<8x256xf32> to vector<8x64xf32>
    %487 = vector.extract_strided_slice %483 {offsets = [0, 0], sizes = [8, 64], strides = [1, 1]} : vector<8x256xf32> to vector<8x64xf32>
    %cst_137 = arith.constant dense<0.000000e+00> : vector<8x8xf32>
    %488 = tpu.matmul %486, %487, %cst_137 {dimension_numbers = #tpu.dot_dimension_numbers<[1], [1], [0], [0], [0, 0, 1, 0], [], []>} : vector<8x64xf32>, vector<8x64xf32>, vector<8x8xf32> -> vector<8x8xf32>
    %cst_138 = arith.constant -1.000000e+30 : f32
    %489 = vector.broadcast %cst_138 : f32 to vector<8x8xf32>
    %490 = arith.select %13, %488, %489 : vector<8x8xi1>, vector<8x8xf32>
    %cst_139 = arith.constant dense<0xFF800000> : vector<8xf32>
    %491 = vector.multi_reduction <maximumf>, %490, %cst_139 [1] : vector<8x8xf32> to vector<8xf32>
    %492 = vector.shape_cast %491 : vector<8xf32> to vector<8x1xf32>
    %493 = vector.broadcast %492 : vector<8x1xf32> to vector<8x8xf32>
    %494 = arith.subf %490, %493 : vector<8x8xf32>
    %495 = math.exp %494 : vector<8x8xf32>
    %cst_140 = arith.constant dense<0.000000e+00> : vector<8xf32>
    %496 = vector.multi_reduction <add>, %495, %cst_140 [1] : vector<8x8xf32> to vector<8xf32>
    %497 = vector.shape_cast %496 : vector<8xf32> to vector<8x1xf32>
    %498 = tpu.reciprocal %497 {approx = true} : vector<8x1xf32> -> vector<8x1xf32>
    %499 = vector.broadcast %498 : vector<8x1xf32> to vector<8x8xf32>
    %500 = arith.mulf %495, %499 : vector<8x8xf32>
    %501 = vector.extract_strided_slice %484 {offsets = [0, 0], sizes = [8, 1], strides = [1, 1]} : vector<8x128xf32> to vector<8x1xf32>
    %cst_141 = arith.constant dense<0.000000e+00> : vector<8x1xf32>
    %502 = tpu.matmul %500, %501, %cst_141 {dimension_numbers = #tpu.dot_dimension_numbers<[1], [0], [0], [1], [0, 0, 1, 1], [], []>} : vector<8x8xf32>, vector<8x1xf32>, vector<8x1xf32> -> vector<8x1xf32>
    %503 = arith.addf %485, %502 : vector<8x1xf32>
    %504 = vector.extract_strided_slice %482 {offsets = [0, 64], sizes = [8, 64], strides = [1, 1]} : vector<8x256xf32> to vector<8x64xf32>
    %505 = vector.extract_strided_slice %483 {offsets = [0, 64], sizes = [8, 64], strides = [1, 1]} : vector<8x256xf32> to vector<8x64xf32>
    %cst_142 = arith.constant dense<0.000000e+00> : vector<8x8xf32>
    %506 = tpu.matmul %504, %505, %cst_142 {dimension_numbers = #tpu.dot_dimension_numbers<[1], [1], [0], [0], [0, 0, 1, 0], [], []>} : vector<8x64xf32>, vector<8x64xf32>, vector<8x8xf32> -> vector<8x8xf32>
    %cst_143 = arith.constant -1.000000e+30 : f32
    %507 = vector.broadcast %cst_143 : f32 to vector<8x8xf32>
    %508 = arith.select %13, %506, %507 : vector<8x8xi1>, vector<8x8xf32>
    %cst_144 = arith.constant dense<0xFF800000> : vector<8xf32>
    %509 = vector.multi_reduction <maximumf>, %508, %cst_144 [1] : vector<8x8xf32> to vector<8xf32>
    %510 = vector.shape_cast %509 : vector<8xf32> to vector<8x1xf32>
    %511 = vector.broadcast %510 : vector<8x1xf32> to vector<8x8xf32>
    %512 = arith.subf %508, %511 : vector<8x8xf32>
    %513 = math.exp %512 : vector<8x8xf32>
    %cst_145 = arith.constant dense<0.000000e+00> : vector<8xf32>
    %514 = vector.multi_reduction <add>, %513, %cst_145 [1] : vector<8x8xf32> to vector<8xf32>
    %515 = vector.shape_cast %514 : vector<8xf32> to vector<8x1xf32>
    %516 = tpu.reciprocal %515 {approx = true} : vector<8x1xf32> -> vector<8x1xf32>
    %517 = vector.broadcast %516 : vector<8x1xf32> to vector<8x8xf32>
    %518 = arith.mulf %513, %517 : vector<8x8xf32>
    %519 = vector.extract_strided_slice %484 {offsets = [0, 1], sizes = [8, 1], strides = [1, 1]} : vector<8x128xf32> to vector<8x1xf32>
    %cst_146 = arith.constant dense<0.000000e+00> : vector<8x1xf32>
    %520 = tpu.matmul %518, %519, %cst_146 {dimension_numbers = #tpu.dot_dimension_numbers<[1], [0], [0], [1], [0, 0, 1, 1], [], []>} : vector<8x8xf32>, vector<8x1xf32>, vector<8x1xf32> -> vector<8x1xf32>
    %521 = arith.addf %503, %520 : vector<8x1xf32>
    %522 = vector.extract_strided_slice %482 {offsets = [0, 128], sizes = [8, 64], strides = [1, 1]} : vector<8x256xf32> to vector<8x64xf32>
    %523 = vector.extract_strided_slice %483 {offsets = [0, 128], sizes = [8, 64], strides = [1, 1]} : vector<8x256xf32> to vector<8x64xf32>
    %cst_147 = arith.constant dense<0.000000e+00> : vector<8x8xf32>
    %524 = tpu.matmul %522, %523, %cst_147 {dimension_numbers = #tpu.dot_dimension_numbers<[1], [1], [0], [0], [0, 0, 1, 0], [], []>} : vector<8x64xf32>, vector<8x64xf32>, vector<8x8xf32> -> vector<8x8xf32>
    %cst_148 = arith.constant -1.000000e+30 : f32
    %525 = vector.broadcast %cst_148 : f32 to vector<8x8xf32>
    %526 = arith.select %13, %524, %525 : vector<8x8xi1>, vector<8x8xf32>
    %cst_149 = arith.constant dense<0xFF800000> : vector<8xf32>
    %527 = vector.multi_reduction <maximumf>, %526, %cst_149 [1] : vector<8x8xf32> to vector<8xf32>
    %528 = vector.shape_cast %527 : vector<8xf32> to vector<8x1xf32>
    %529 = vector.broadcast %528 : vector<8x1xf32> to vector<8x8xf32>
    %530 = arith.subf %526, %529 : vector<8x8xf32>
    %531 = math.exp %530 : vector<8x8xf32>
    %cst_150 = arith.constant dense<0.000000e+00> : vector<8xf32>
    %532 = vector.multi_reduction <add>, %531, %cst_150 [1] : vector<8x8xf32> to vector<8xf32>
    %533 = vector.shape_cast %532 : vector<8xf32> to vector<8x1xf32>
    %534 = tpu.reciprocal %533 {approx = true} : vector<8x1xf32> -> vector<8x1xf32>
    %535 = vector.broadcast %534 : vector<8x1xf32> to vector<8x8xf32>
    %536 = arith.mulf %531, %535 : vector<8x8xf32>
    %537 = vector.extract_strided_slice %484 {offsets = [0, 2], sizes = [8, 1], strides = [1, 1]} : vector<8x128xf32> to vector<8x1xf32>
    %cst_151 = arith.constant dense<0.000000e+00> : vector<8x1xf32>
    %538 = tpu.matmul %536, %537, %cst_151 {dimension_numbers = #tpu.dot_dimension_numbers<[1], [0], [0], [1], [0, 0, 1, 1], [], []>} : vector<8x8xf32>, vector<8x1xf32>, vector<8x1xf32> -> vector<8x1xf32>
    %539 = arith.addf %521, %538 : vector<8x1xf32>
    %540 = vector.extract_strided_slice %482 {offsets = [0, 192], sizes = [8, 64], strides = [1, 1]} : vector<8x256xf32> to vector<8x64xf32>
    %541 = vector.extract_strided_slice %483 {offsets = [0, 192], sizes = [8, 64], strides = [1, 1]} : vector<8x256xf32> to vector<8x64xf32>
    %cst_152 = arith.constant dense<0.000000e+00> : vector<8x8xf32>
    %542 = tpu.matmul %540, %541, %cst_152 {dimension_numbers = #tpu.dot_dimension_numbers<[1], [1], [0], [0], [0, 0, 1, 0], [], []>} : vector<8x64xf32>, vector<8x64xf32>, vector<8x8xf32> -> vector<8x8xf32>
    %cst_153 = arith.constant -1.000000e+30 : f32
    %543 = vector.broadcast %cst_153 : f32 to vector<8x8xf32>
    %544 = arith.select %13, %542, %543 : vector<8x8xi1>, vector<8x8xf32>
    %cst_154 = arith.constant dense<0xFF800000> : vector<8xf32>
    %545 = vector.multi_reduction <maximumf>, %544, %cst_154 [1] : vector<8x8xf32> to vector<8xf32>
    %546 = vector.shape_cast %545 : vector<8xf32> to vector<8x1xf32>
    %547 = vector.broadcast %546 : vector<8x1xf32> to vector<8x8xf32>
    %548 = arith.subf %544, %547 : vector<8x8xf32>
    %549 = math.exp %548 : vector<8x8xf32>
    %cst_155 = arith.constant dense<0.000000e+00> : vector<8xf32>
    %550 = vector.multi_reduction <add>, %549, %cst_155 [1] : vector<8x8xf32> to vector<8xf32>
    %551 = vector.shape_cast %550 : vector<8xf32> to vector<8x1xf32>
    %552 = tpu.reciprocal %551 {approx = true} : vector<8x1xf32> -> vector<8x1xf32>
    %553 = vector.broadcast %552 : vector<8x1xf32> to vector<8x8xf32>
    %554 = arith.mulf %549, %553 : vector<8x8xf32>
    %555 = vector.extract_strided_slice %484 {offsets = [0, 3], sizes = [8, 1], strides = [1, 1]} : vector<8x128xf32> to vector<8x1xf32>
    %cst_156 = arith.constant dense<0.000000e+00> : vector<8x1xf32>
    %556 = tpu.matmul %554, %555, %cst_156 {dimension_numbers = #tpu.dot_dimension_numbers<[1], [0], [0], [1], [0, 0, 1, 1], [], []>} : vector<8x8xf32>, vector<8x1xf32>, vector<8x1xf32> -> vector<8x1xf32>
    %557 = arith.addf %539, %556 : vector<8x1xf32>
    %558 = vector.broadcast %16 : f32 to vector<8x1xf32>
    %559 = arith.addf %557, %558 : vector<8x1xf32>
    %560 = arith.negf %559 : vector<8x1xf32>
    %561 = math.exp %560 : vector<8x1xf32>
    %cst_157 = arith.constant 1.000000e+00 : f32
    %562 = vector.broadcast %cst_157 : f32 to vector<8x1xf32>
    %563 = arith.addf %562, %561 : vector<8x1xf32>
    %564 = arith.divf %562, %563 : vector<8x1xf32>
    %565 = vector.broadcast %c5_i32 : i32 to vector<8x8xi32>
    %566 = arith.cmpi eq, %14, %565 : vector<8x8xi32>
    %567 = vector.shape_cast %564 : vector<8x1xf32> to vector<8x1xf32>
    %568 = vector.broadcast %567 : vector<8x1xf32> to vector<8x8xf32>
    %569 = arith.select %566, %568, %477 : vector<8x8xi1>, vector<8x8xf32>
    %c6_i32 = arith.constant 6 : i32
    %c8_i32_158 = arith.constant 8 : i32
    %570 = arith.muli %c6_i32, %c8_i32_158 : i32
    %571 = tpu.assume_multiple %570, 8 : i32
    %572 = arith.index_cast %571 : i32 to index
    %c0_159 = arith.constant 0 : index
    %573 = vector.load %arg7[%572, %c0_159] : memref<64x640xf32, #tpu.memory_space<vmem>>, vector<8x640xf32>
    %574 = vector.extract_strided_slice %573 {offsets = [0, 0], sizes = [8, 256], strides = [1, 1]} : vector<8x640xf32> to vector<8x256xf32>
    %575 = vector.extract_strided_slice %573 {offsets = [0, 256], sizes = [8, 256], strides = [1, 1]} : vector<8x640xf32> to vector<8x256xf32>
    %576 = vector.extract_strided_slice %573 {offsets = [0, 512], sizes = [8, 128], strides = [1, 1]} : vector<8x640xf32> to vector<8x128xf32>
    %cst_160 = arith.constant 0.000000e+00 : f32
    %577 = vector.broadcast %cst_160 : f32 to vector<8x1xf32>
    %578 = vector.extract_strided_slice %574 {offsets = [0, 0], sizes = [8, 64], strides = [1, 1]} : vector<8x256xf32> to vector<8x64xf32>
    %579 = vector.extract_strided_slice %575 {offsets = [0, 0], sizes = [8, 64], strides = [1, 1]} : vector<8x256xf32> to vector<8x64xf32>
    %cst_161 = arith.constant dense<0.000000e+00> : vector<8x8xf32>
    %580 = tpu.matmul %578, %579, %cst_161 {dimension_numbers = #tpu.dot_dimension_numbers<[1], [1], [0], [0], [0, 0, 1, 0], [], []>} : vector<8x64xf32>, vector<8x64xf32>, vector<8x8xf32> -> vector<8x8xf32>
    %cst_162 = arith.constant -1.000000e+30 : f32
    %581 = vector.broadcast %cst_162 : f32 to vector<8x8xf32>
    %582 = arith.select %13, %580, %581 : vector<8x8xi1>, vector<8x8xf32>
    %cst_163 = arith.constant dense<0xFF800000> : vector<8xf32>
    %583 = vector.multi_reduction <maximumf>, %582, %cst_163 [1] : vector<8x8xf32> to vector<8xf32>
    %584 = vector.shape_cast %583 : vector<8xf32> to vector<8x1xf32>
    %585 = vector.broadcast %584 : vector<8x1xf32> to vector<8x8xf32>
    %586 = arith.subf %582, %585 : vector<8x8xf32>
    %587 = math.exp %586 : vector<8x8xf32>
    %cst_164 = arith.constant dense<0.000000e+00> : vector<8xf32>
    %588 = vector.multi_reduction <add>, %587, %cst_164 [1] : vector<8x8xf32> to vector<8xf32>
    %589 = vector.shape_cast %588 : vector<8xf32> to vector<8x1xf32>
    %590 = tpu.reciprocal %589 {approx = true} : vector<8x1xf32> -> vector<8x1xf32>
    %591 = vector.broadcast %590 : vector<8x1xf32> to vector<8x8xf32>
    %592 = arith.mulf %587, %591 : vector<8x8xf32>
    %593 = vector.extract_strided_slice %576 {offsets = [0, 0], sizes = [8, 1], strides = [1, 1]} : vector<8x128xf32> to vector<8x1xf32>
    %cst_165 = arith.constant dense<0.000000e+00> : vector<8x1xf32>
    %594 = tpu.matmul %592, %593, %cst_165 {dimension_numbers = #tpu.dot_dimension_numbers<[1], [0], [0], [1], [0, 0, 1, 1], [], []>} : vector<8x8xf32>, vector<8x1xf32>, vector<8x1xf32> -> vector<8x1xf32>
    %595 = arith.addf %577, %594 : vector<8x1xf32>
    %596 = vector.extract_strided_slice %574 {offsets = [0, 64], sizes = [8, 64], strides = [1, 1]} : vector<8x256xf32> to vector<8x64xf32>
    %597 = vector.extract_strided_slice %575 {offsets = [0, 64], sizes = [8, 64], strides = [1, 1]} : vector<8x256xf32> to vector<8x64xf32>
    %cst_166 = arith.constant dense<0.000000e+00> : vector<8x8xf32>
    %598 = tpu.matmul %596, %597, %cst_166 {dimension_numbers = #tpu.dot_dimension_numbers<[1], [1], [0], [0], [0, 0, 1, 0], [], []>} : vector<8x64xf32>, vector<8x64xf32>, vector<8x8xf32> -> vector<8x8xf32>
    %cst_167 = arith.constant -1.000000e+30 : f32
    %599 = vector.broadcast %cst_167 : f32 to vector<8x8xf32>
    %600 = arith.select %13, %598, %599 : vector<8x8xi1>, vector<8x8xf32>
    %cst_168 = arith.constant dense<0xFF800000> : vector<8xf32>
    %601 = vector.multi_reduction <maximumf>, %600, %cst_168 [1] : vector<8x8xf32> to vector<8xf32>
    %602 = vector.shape_cast %601 : vector<8xf32> to vector<8x1xf32>
    %603 = vector.broadcast %602 : vector<8x1xf32> to vector<8x8xf32>
    %604 = arith.subf %600, %603 : vector<8x8xf32>
    %605 = math.exp %604 : vector<8x8xf32>
    %cst_169 = arith.constant dense<0.000000e+00> : vector<8xf32>
    %606 = vector.multi_reduction <add>, %605, %cst_169 [1] : vector<8x8xf32> to vector<8xf32>
    %607 = vector.shape_cast %606 : vector<8xf32> to vector<8x1xf32>
    %608 = tpu.reciprocal %607 {approx = true} : vector<8x1xf32> -> vector<8x1xf32>
    %609 = vector.broadcast %608 : vector<8x1xf32> to vector<8x8xf32>
    %610 = arith.mulf %605, %609 : vector<8x8xf32>
    %611 = vector.extract_strided_slice %576 {offsets = [0, 1], sizes = [8, 1], strides = [1, 1]} : vector<8x128xf32> to vector<8x1xf32>
    %cst_170 = arith.constant dense<0.000000e+00> : vector<8x1xf32>
    %612 = tpu.matmul %610, %611, %cst_170 {dimension_numbers = #tpu.dot_dimension_numbers<[1], [0], [0], [1], [0, 0, 1, 1], [], []>} : vector<8x8xf32>, vector<8x1xf32>, vector<8x1xf32> -> vector<8x1xf32>
    %613 = arith.addf %595, %612 : vector<8x1xf32>
    %614 = vector.extract_strided_slice %574 {offsets = [0, 128], sizes = [8, 64], strides = [1, 1]} : vector<8x256xf32> to vector<8x64xf32>
    %615 = vector.extract_strided_slice %575 {offsets = [0, 128], sizes = [8, 64], strides = [1, 1]} : vector<8x256xf32> to vector<8x64xf32>
    %cst_171 = arith.constant dense<0.000000e+00> : vector<8x8xf32>
    %616 = tpu.matmul %614, %615, %cst_171 {dimension_numbers = #tpu.dot_dimension_numbers<[1], [1], [0], [0], [0, 0, 1, 0], [], []>} : vector<8x64xf32>, vector<8x64xf32>, vector<8x8xf32> -> vector<8x8xf32>
    %cst_172 = arith.constant -1.000000e+30 : f32
    %617 = vector.broadcast %cst_172 : f32 to vector<8x8xf32>
    %618 = arith.select %13, %616, %617 : vector<8x8xi1>, vector<8x8xf32>
    %cst_173 = arith.constant dense<0xFF800000> : vector<8xf32>
    %619 = vector.multi_reduction <maximumf>, %618, %cst_173 [1] : vector<8x8xf32> to vector<8xf32>
    %620 = vector.shape_cast %619 : vector<8xf32> to vector<8x1xf32>
    %621 = vector.broadcast %620 : vector<8x1xf32> to vector<8x8xf32>
    %622 = arith.subf %618, %621 : vector<8x8xf32>
    %623 = math.exp %622 : vector<8x8xf32>
    %cst_174 = arith.constant dense<0.000000e+00> : vector<8xf32>
    %624 = vector.multi_reduction <add>, %623, %cst_174 [1] : vector<8x8xf32> to vector<8xf32>
    %625 = vector.shape_cast %624 : vector<8xf32> to vector<8x1xf32>
    %626 = tpu.reciprocal %625 {approx = true} : vector<8x1xf32> -> vector<8x1xf32>
    %627 = vector.broadcast %626 : vector<8x1xf32> to vector<8x8xf32>
    %628 = arith.mulf %623, %627 : vector<8x8xf32>
    %629 = vector.extract_strided_slice %576 {offsets = [0, 2], sizes = [8, 1], strides = [1, 1]} : vector<8x128xf32> to vector<8x1xf32>
    %cst_175 = arith.constant dense<0.000000e+00> : vector<8x1xf32>
    %630 = tpu.matmul %628, %629, %cst_175 {dimension_numbers = #tpu.dot_dimension_numbers<[1], [0], [0], [1], [0, 0, 1, 1], [], []>} : vector<8x8xf32>, vector<8x1xf32>, vector<8x1xf32> -> vector<8x1xf32>
    %631 = arith.addf %613, %630 : vector<8x1xf32>
    %632 = vector.extract_strided_slice %574 {offsets = [0, 192], sizes = [8, 64], strides = [1, 1]} : vector<8x256xf32> to vector<8x64xf32>
    %633 = vector.extract_strided_slice %575 {offsets = [0, 192], sizes = [8, 64], strides = [1, 1]} : vector<8x256xf32> to vector<8x64xf32>
    %cst_176 = arith.constant dense<0.000000e+00> : vector<8x8xf32>
    %634 = tpu.matmul %632, %633, %cst_176 {dimension_numbers = #tpu.dot_dimension_numbers<[1], [1], [0], [0], [0, 0, 1, 0], [], []>} : vector<8x64xf32>, vector<8x64xf32>, vector<8x8xf32> -> vector<8x8xf32>
    %cst_177 = arith.constant -1.000000e+30 : f32
    %635 = vector.broadcast %cst_177 : f32 to vector<8x8xf32>
    %636 = arith.select %13, %634, %635 : vector<8x8xi1>, vector<8x8xf32>
    %cst_178 = arith.constant dense<0xFF800000> : vector<8xf32>
    %637 = vector.multi_reduction <maximumf>, %636, %cst_178 [1] : vector<8x8xf32> to vector<8xf32>
    %638 = vector.shape_cast %637 : vector<8xf32> to vector<8x1xf32>
    %639 = vector.broadcast %638 : vector<8x1xf32> to vector<8x8xf32>
    %640 = arith.subf %636, %639 : vector<8x8xf32>
    %641 = math.exp %640 : vector<8x8xf32>
    %cst_179 = arith.constant dense<0.000000e+00> : vector<8xf32>
    %642 = vector.multi_reduction <add>, %641, %cst_179 [1] : vector<8x8xf32> to vector<8xf32>
    %643 = vector.shape_cast %642 : vector<8xf32> to vector<8x1xf32>
    %644 = tpu.reciprocal %643 {approx = true} : vector<8x1xf32> -> vector<8x1xf32>
    %645 = vector.broadcast %644 : vector<8x1xf32> to vector<8x8xf32>
    %646 = arith.mulf %641, %645 : vector<8x8xf32>
    %647 = vector.extract_strided_slice %576 {offsets = [0, 3], sizes = [8, 1], strides = [1, 1]} : vector<8x128xf32> to vector<8x1xf32>
    %cst_180 = arith.constant dense<0.000000e+00> : vector<8x1xf32>
    %648 = tpu.matmul %646, %647, %cst_180 {dimension_numbers = #tpu.dot_dimension_numbers<[1], [0], [0], [1], [0, 0, 1, 1], [], []>} : vector<8x8xf32>, vector<8x1xf32>, vector<8x1xf32> -> vector<8x1xf32>
    %649 = arith.addf %631, %648 : vector<8x1xf32>
    %650 = vector.broadcast %16 : f32 to vector<8x1xf32>
    %651 = arith.addf %649, %650 : vector<8x1xf32>
    %652 = arith.negf %651 : vector<8x1xf32>
    %653 = math.exp %652 : vector<8x1xf32>
    %cst_181 = arith.constant 1.000000e+00 : f32
    %654 = vector.broadcast %cst_181 : f32 to vector<8x1xf32>
    %655 = arith.addf %654, %653 : vector<8x1xf32>
    %656 = arith.divf %654, %655 : vector<8x1xf32>
    %657 = vector.broadcast %c6_i32 : i32 to vector<8x8xi32>
    %658 = arith.cmpi eq, %14, %657 : vector<8x8xi32>
    %659 = vector.shape_cast %656 : vector<8x1xf32> to vector<8x1xf32>
    %660 = vector.broadcast %659 : vector<8x1xf32> to vector<8x8xf32>
    %661 = arith.select %658, %660, %569 : vector<8x8xi1>, vector<8x8xf32>
    %c7_i32 = arith.constant 7 : i32
    %c8_i32_182 = arith.constant 8 : i32
    %662 = arith.muli %c7_i32, %c8_i32_182 : i32
    %663 = tpu.assume_multiple %662, 8 : i32
    %664 = arith.index_cast %663 : i32 to index
    %c0_183 = arith.constant 0 : index
    %665 = vector.load %arg7[%664, %c0_183] : memref<64x640xf32, #tpu.memory_space<vmem>>, vector<8x640xf32>
    %666 = vector.extract_strided_slice %665 {offsets = [0, 0], sizes = [8, 256], strides = [1, 1]} : vector<8x640xf32> to vector<8x256xf32>
    %667 = vector.extract_strided_slice %665 {offsets = [0, 256], sizes = [8, 256], strides = [1, 1]} : vector<8x640xf32> to vector<8x256xf32>
    %668 = vector.extract_strided_slice %665 {offsets = [0, 512], sizes = [8, 128], strides = [1, 1]} : vector<8x640xf32> to vector<8x128xf32>
    %cst_184 = arith.constant 0.000000e+00 : f32
    %669 = vector.broadcast %cst_184 : f32 to vector<8x1xf32>
    %670 = vector.extract_strided_slice %666 {offsets = [0, 0], sizes = [8, 64], strides = [1, 1]} : vector<8x256xf32> to vector<8x64xf32>
    %671 = vector.extract_strided_slice %667 {offsets = [0, 0], sizes = [8, 64], strides = [1, 1]} : vector<8x256xf32> to vector<8x64xf32>
    %cst_185 = arith.constant dense<0.000000e+00> : vector<8x8xf32>
    %672 = tpu.matmul %670, %671, %cst_185 {dimension_numbers = #tpu.dot_dimension_numbers<[1], [1], [0], [0], [0, 0, 1, 0], [], []>} : vector<8x64xf32>, vector<8x64xf32>, vector<8x8xf32> -> vector<8x8xf32>
    %cst_186 = arith.constant -1.000000e+30 : f32
    %673 = vector.broadcast %cst_186 : f32 to vector<8x8xf32>
    %674 = arith.select %13, %672, %673 : vector<8x8xi1>, vector<8x8xf32>
    %cst_187 = arith.constant dense<0xFF800000> : vector<8xf32>
    %675 = vector.multi_reduction <maximumf>, %674, %cst_187 [1] : vector<8x8xf32> to vector<8xf32>
    %676 = vector.shape_cast %675 : vector<8xf32> to vector<8x1xf32>
    %677 = vector.broadcast %676 : vector<8x1xf32> to vector<8x8xf32>
    %678 = arith.subf %674, %677 : vector<8x8xf32>
    %679 = math.exp %678 : vector<8x8xf32>
    %cst_188 = arith.constant dense<0.000000e+00> : vector<8xf32>
    %680 = vector.multi_reduction <add>, %679, %cst_188 [1] : vector<8x8xf32> to vector<8xf32>
    %681 = vector.shape_cast %680 : vector<8xf32> to vector<8x1xf32>
    %682 = tpu.reciprocal %681 {approx = true} : vector<8x1xf32> -> vector<8x1xf32>
    %683 = vector.broadcast %682 : vector<8x1xf32> to vector<8x8xf32>
    %684 = arith.mulf %679, %683 : vector<8x8xf32>
    %685 = vector.extract_strided_slice %668 {offsets = [0, 0], sizes = [8, 1], strides = [1, 1]} : vector<8x128xf32> to vector<8x1xf32>
    %cst_189 = arith.constant dense<0.000000e+00> : vector<8x1xf32>
    %686 = tpu.matmul %684, %685, %cst_189 {dimension_numbers = #tpu.dot_dimension_numbers<[1], [0], [0], [1], [0, 0, 1, 1], [], []>} : vector<8x8xf32>, vector<8x1xf32>, vector<8x1xf32> -> vector<8x1xf32>
    %687 = arith.addf %669, %686 : vector<8x1xf32>
    %688 = vector.extract_strided_slice %666 {offsets = [0, 64], sizes = [8, 64], strides = [1, 1]} : vector<8x256xf32> to vector<8x64xf32>
    %689 = vector.extract_strided_slice %667 {offsets = [0, 64], sizes = [8, 64], strides = [1, 1]} : vector<8x256xf32> to vector<8x64xf32>
    %cst_190 = arith.constant dense<0.000000e+00> : vector<8x8xf32>
    %690 = tpu.matmul %688, %689, %cst_190 {dimension_numbers = #tpu.dot_dimension_numbers<[1], [1], [0], [0], [0, 0, 1, 0], [], []>} : vector<8x64xf32>, vector<8x64xf32>, vector<8x8xf32> -> vector<8x8xf32>
    %cst_191 = arith.constant -1.000000e+30 : f32
    %691 = vector.broadcast %cst_191 : f32 to vector<8x8xf32>
    %692 = arith.select %13, %690, %691 : vector<8x8xi1>, vector<8x8xf32>
    %cst_192 = arith.constant dense<0xFF800000> : vector<8xf32>
    %693 = vector.multi_reduction <maximumf>, %692, %cst_192 [1] : vector<8x8xf32> to vector<8xf32>
    %694 = vector.shape_cast %693 : vector<8xf32> to vector<8x1xf32>
    %695 = vector.broadcast %694 : vector<8x1xf32> to vector<8x8xf32>
    %696 = arith.subf %692, %695 : vector<8x8xf32>
    %697 = math.exp %696 : vector<8x8xf32>
    %cst_193 = arith.constant dense<0.000000e+00> : vector<8xf32>
    %698 = vector.multi_reduction <add>, %697, %cst_193 [1] : vector<8x8xf32> to vector<8xf32>
    %699 = vector.shape_cast %698 : vector<8xf32> to vector<8x1xf32>
    %700 = tpu.reciprocal %699 {approx = true} : vector<8x1xf32> -> vector<8x1xf32>
    %701 = vector.broadcast %700 : vector<8x1xf32> to vector<8x8xf32>
    %702 = arith.mulf %697, %701 : vector<8x8xf32>
    %703 = vector.extract_strided_slice %668 {offsets = [0, 1], sizes = [8, 1], strides = [1, 1]} : vector<8x128xf32> to vector<8x1xf32>
    %cst_194 = arith.constant dense<0.000000e+00> : vector<8x1xf32>
    %704 = tpu.matmul %702, %703, %cst_194 {dimension_numbers = #tpu.dot_dimension_numbers<[1], [0], [0], [1], [0, 0, 1, 1], [], []>} : vector<8x8xf32>, vector<8x1xf32>, vector<8x1xf32> -> vector<8x1xf32>
    %705 = arith.addf %687, %704 : vector<8x1xf32>
    %706 = vector.extract_strided_slice %666 {offsets = [0, 128], sizes = [8, 64], strides = [1, 1]} : vector<8x256xf32> to vector<8x64xf32>
    %707 = vector.extract_strided_slice %667 {offsets = [0, 128], sizes = [8, 64], strides = [1, 1]} : vector<8x256xf32> to vector<8x64xf32>
    %cst_195 = arith.constant dense<0.000000e+00> : vector<8x8xf32>
    %708 = tpu.matmul %706, %707, %cst_195 {dimension_numbers = #tpu.dot_dimension_numbers<[1], [1], [0], [0], [0, 0, 1, 0], [], []>} : vector<8x64xf32>, vector<8x64xf32>, vector<8x8xf32> -> vector<8x8xf32>
    %cst_196 = arith.constant -1.000000e+30 : f32
    %709 = vector.broadcast %cst_196 : f32 to vector<8x8xf32>
    %710 = arith.select %13, %708, %709 : vector<8x8xi1>, vector<8x8xf32>
    %cst_197 = arith.constant dense<0xFF800000> : vector<8xf32>
    %711 = vector.multi_reduction <maximumf>, %710, %cst_197 [1] : vector<8x8xf32> to vector<8xf32>
    %712 = vector.shape_cast %711 : vector<8xf32> to vector<8x1xf32>
    %713 = vector.broadcast %712 : vector<8x1xf32> to vector<8x8xf32>
    %714 = arith.subf %710, %713 : vector<8x8xf32>
    %715 = math.exp %714 : vector<8x8xf32>
    %cst_198 = arith.constant dense<0.000000e+00> : vector<8xf32>
    %716 = vector.multi_reduction <add>, %715, %cst_198 [1] : vector<8x8xf32> to vector<8xf32>
    %717 = vector.shape_cast %716 : vector<8xf32> to vector<8x1xf32>
    %718 = tpu.reciprocal %717 {approx = true} : vector<8x1xf32> -> vector<8x1xf32>
    %719 = vector.broadcast %718 : vector<8x1xf32> to vector<8x8xf32>
    %720 = arith.mulf %715, %719 : vector<8x8xf32>
    %721 = vector.extract_strided_slice %668 {offsets = [0, 2], sizes = [8, 1], strides = [1, 1]} : vector<8x128xf32> to vector<8x1xf32>
    %cst_199 = arith.constant dense<0.000000e+00> : vector<8x1xf32>
    %722 = tpu.matmul %720, %721, %cst_199 {dimension_numbers = #tpu.dot_dimension_numbers<[1], [0], [0], [1], [0, 0, 1, 1], [], []>} : vector<8x8xf32>, vector<8x1xf32>, vector<8x1xf32> -> vector<8x1xf32>
    %723 = arith.addf %705, %722 : vector<8x1xf32>
    %724 = vector.extract_strided_slice %666 {offsets = [0, 192], sizes = [8, 64], strides = [1, 1]} : vector<8x256xf32> to vector<8x64xf32>
    %725 = vector.extract_strided_slice %667 {offsets = [0, 192], sizes = [8, 64], strides = [1, 1]} : vector<8x256xf32> to vector<8x64xf32>
    %cst_200 = arith.constant dense<0.000000e+00> : vector<8x8xf32>
    %726 = tpu.matmul %724, %725, %cst_200 {dimension_numbers = #tpu.dot_dimension_numbers<[1], [1], [0], [0], [0, 0, 1, 0], [], []>} : vector<8x64xf32>, vector<8x64xf32>, vector<8x8xf32> -> vector<8x8xf32>
    %cst_201 = arith.constant -1.000000e+30 : f32
    %727 = vector.broadcast %cst_201 : f32 to vector<8x8xf32>
    %728 = arith.select %13, %726, %727 : vector<8x8xi1>, vector<8x8xf32>
    %cst_202 = arith.constant dense<0xFF800000> : vector<8xf32>
    %729 = vector.multi_reduction <maximumf>, %728, %cst_202 [1] : vector<8x8xf32> to vector<8xf32>
    %730 = vector.shape_cast %729 : vector<8xf32> to vector<8x1xf32>
    %731 = vector.broadcast %730 : vector<8x1xf32> to vector<8x8xf32>
    %732 = arith.subf %728, %731 : vector<8x8xf32>
    %733 = math.exp %732 : vector<8x8xf32>
    %cst_203 = arith.constant dense<0.000000e+00> : vector<8xf32>
    %734 = vector.multi_reduction <add>, %733, %cst_203 [1] : vector<8x8xf32> to vector<8xf32>
    %735 = vector.shape_cast %734 : vector<8xf32> to vector<8x1xf32>
    %736 = tpu.reciprocal %735 {approx = true} : vector<8x1xf32> -> vector<8x1xf32>
    %737 = vector.broadcast %736 : vector<8x1xf32> to vector<8x8xf32>
    %738 = arith.mulf %733, %737 : vector<8x8xf32>
    %739 = vector.extract_strided_slice %668 {offsets = [0, 3], sizes = [8, 1], strides = [1, 1]} : vector<8x128xf32> to vector<8x1xf32>
    %cst_204 = arith.constant dense<0.000000e+00> : vector<8x1xf32>
    %740 = tpu.matmul %738, %739, %cst_204 {dimension_numbers = #tpu.dot_dimension_numbers<[1], [0], [0], [1], [0, 0, 1, 1], [], []>} : vector<8x8xf32>, vector<8x1xf32>, vector<8x1xf32> -> vector<8x1xf32>
    %741 = arith.addf %723, %740 : vector<8x1xf32>
    %742 = vector.broadcast %16 : f32 to vector<8x1xf32>
    %743 = arith.addf %741, %742 : vector<8x1xf32>
    %744 = arith.negf %743 : vector<8x1xf32>
    %745 = math.exp %744 : vector<8x1xf32>
    %cst_205 = arith.constant 1.000000e+00 : f32
    %746 = vector.broadcast %cst_205 : f32 to vector<8x1xf32>
    %747 = arith.addf %746, %745 : vector<8x1xf32>
    %748 = arith.divf %746, %747 : vector<8x1xf32>
    %749 = vector.broadcast %c7_i32 : i32 to vector<8x8xi32>
    %750 = arith.cmpi eq, %14, %749 : vector<8x8xi32>
    %751 = vector.shape_cast %748 : vector<8x1xf32> to vector<8x1xf32>
    %752 = vector.broadcast %751 : vector<8x1xf32> to vector<8x8xf32>
    %753 = arith.select %750, %752, %661 : vector<8x8xi1>, vector<8x8xf32>
    %c8_i32_206 = arith.constant 8 : i32
    %c0_207 = arith.constant 0 : index
    %c0_208 = arith.constant 0 : index
    %754 = vector.load %arg6[%c0_207, %c0_208] : memref<8x8xf32, #tpu.memory_space<vmem>>, vector<8x8xf32>
    tpu.vector_store %arg6[%c0_207, %c0_208], %753 {strides = array<i32>} : memref<8x8xf32, #tpu.memory_space<vmem>>, vector<8x8xf32>,
    return
  }
  func.func @transform_0(%arg0: i32) -> (i32, i32) {
    %c0_i32 = arith.constant 0 : i32
    %c0_i32_0 = arith.constant 0 : i32
    return %arg0, %c0_i32 : i32, i32
  }
  func.func @transform_1(%arg0: i32) -> (i32, i32) {
    %c0_i32 = arith.constant 0 : i32
    %c0_i32_0 = arith.constant 0 : i32
    return %arg0, %c0_i32 : i32, i32
  }
  func.func @transform_2(%arg0: i32) -> (i32, i32) {
    %c0_i32 = arith.constant 0 : i32
    %c0_i32_0 = arith.constant 0 : i32
    %c0_i32_1 = arith.constant 0 : i32
    return %c0_i32, %c0_i32_0 : i32, i32
  }
  func.func @transform_3(%arg0: i32) -> (i32, i32) {
    %c0_i32 = arith.constant 0 : i32
    %c0_i32_0 = arith.constant 0 : i32
    %c0_i32_1 = arith.constant 0 : i32
    return %c0_i32, %c0_i32_0 : i32, i32
  }
  func.func @transform_4(%arg0: i32) -> (i32, i32) {
    %c0_i32 = arith.constant 0 : i32
    %c0_i32_0 = arith.constant 0 : i32
    %c0_i32_1 = arith.constant 0 : i32
    return %c0_i32, %c0_i32_0 : i32, i32
  }
  func.func @transform_5(%arg0: i32) -> (i32, i32) {
    %c0_i32 = arith.constant 0 : i32
    %c0_i32_0 = arith.constant 0 : i32
    return %c0_i32, %arg0 : i32, i32
  }
}

</mosaic_0001>

<bundles_post_ra>
// kernel: gru_with_att_forward.2
= control target key start
LH: loop header
LB: loop body
LE: loop exit
PB: predicated region body
PF: predicated region fallthrough
CT: control target
= control target key end

     0   :  { %v5897_v1 = vmov 0   ;;  %v5899_v63 = vmov 0.0   ;;  %vm4135_vm0 = vmmov 0   ;;  %s5889_s2 = inlined_call_operand.vmem [shape: bf16[2,128,384], index: 2, kind: input, shape index: {}]   ;;  %s5890_s0 = inlined_call_operand.vmem [shape: bf16[64,128], index: 0, kind: input, shape index: {}, may-alias: {0,1}]   ;;  %s5891_s1 = inlined_call_operand.vmem [shape: bf16[64,128], index: 1, kind: input, shape index: {}, may-alias: {0,1}]   ;;  %s5892_s3 = inlined_call_operand.vmem [shape: bf16[2,128,384], index: 3, kind: input, shape index: {}]   ;;  %s5893_s4 = inlined_call_operand.vmem [shape: f32[2,1,384], index: 4, kind: input, shape index: {}]   ;;  %s5894_s5 = inlined_call_operand.vmem [shape: f32[2,1,384], index: 5, kind: input, shape index: {}]   ;;  %s5895_s6 = inlined_call_operand.vmem [shape: bf16[64,128], index: 6, kind: output, shape index: {0}]   ;;  %s5896_s7 = inlined_call_operand.vmem [shape: bf16[64,128], index: 7, kind: output, shape index: {1}]  }
   0x1   :  { %v3746_v0 = vld [vmem:[%s5889_s2 + $0x4] ss:$12 sps:$4 sm:$0xff]   ;;  %309 = vmatprep.mubr.bf16.mxu0 %v5897_v1  ;;  %v3748_v2 = vld [vmem:[%s5889_s2] ss:$12 sps:$4 sm:$0xff]   ;;  %v3749_v3 = vld [vmem:[%s5889_s2 + $0x1c] ss:$12 sps:$4 sm:$0xff]  }
   0x2   :  { %277 = vmatprep.subr.bf16.mxu0 %v3746_v0  ;;  %v3751_v4 = vld [vmem:[%s5889_s2 + $0x18] ss:$12 sps:$4 sm:$0xff]   ;;  %v3752_v5 = vld [vmem:[%s5889_s2 + $0x34] ss:$12 sps:$4 sm:$0xff]   ;;  %v3754_v6 = vld [vmem:[%s5889_s2 + $0x30] ss:$12 sps:$4 sm:$0xff]  }
   0x3   :  { %278 = vmatpush1.bf16.msra.mxu0 %v3748_v2  ;;  %v3755_v7 = vld [vmem:[%s5889_s2 + $0x4c] ss:$12 sps:$4 sm:$0xff]   ;;  %v3767_v8 = vld [vmem:[%s5889_s2 + $0x8] ss:$12 sps:$4 sm:$0xff]   ;;  %v3758_v10 = vld [vmem:[%s5889_s2 + $0x64] ss:$12 sps:$4 sm:$0xff]  }
   0x4   :  { %279 = vmatprep.subr.bf16.mxu0 %v3749_v3  ;;  %v3757_v9 = vld [vmem:[%s5889_s2 + $0x48] ss:$12 sps:$4 sm:$0xff]   ;;  %3374 = vmatprep.subr.bf16.mxu1 %v3767_v8  ;;  %v3771_v11 = vld [vmem:[%s5889_s2 + $0x20] ss:$12 sps:$4 sm:$0xff]   ;;  %v3776_v14 = vld [vmem:[%s5889_s2 + $0x38] ss:$12 sps:$4 sm:$0xff]  }
   0x5   :  { %3375 = vmatpush3.bf16.msra.mxu1 %v3767_v8  ;;  %v3772_v12 = vld [vmem:[%s5890_s0] sm:$0xff]   ;;  %v3761_v15 = vld [vmem:[%s5889_s2 + $0x7c] ss:$12 sps:$4 sm:$0xff]   ;;  %v3768_v21 = vld [vmem:[%s5889_s2 + $0xac] ss:$12 sps:$4 sm:$0xff]  }
   0x6   :  { %v3760_v13 = vld [vmem:[%s5889_s2 + $0x60] ss:$12 sps:$4 sm:$0xff]   ;;  %3376 = vmatprep.subr.bf16.mxu1 %v3771_v11  ;;  %3390 = vmatprep.mubr.bf16.mxu1 %v3772_v12  ;;  %v3780_v16 = vld [vmem:[%s5889_s2 + $0x50] ss:$12 sps:$4 sm:$0xff]   ;;  %v3763_v17 = vld [vmem:[%s5889_s2 + $0x78] ss:$12 sps:$4 sm:$0xff]  }
   0x7   :  { %280 = vmatpush1.bf16.msra.mxu0 %v3751_v4  ;;  %v3764_v18 = vld [vmem:[%s5889_s2 + $0x94] ss:$12 sps:$4 sm:$0xff]   ;;  %v3766_v20 = vld [vmem:[%s5889_s2 + $0x90] ss:$12 sps:$4 sm:$0xff]   ;;  %v3794_v25 = vld [vmem:[%s5889_s2 + $0x98] ss:$12 sps:$4 sm:$0xff]  }
   0x8   :  { %281 = vmatprep.subr.bf16.mxu0 %v3752_v5  ;;  %v3785_v19 = vld [vmem:[%s5889_s2 + $0x68] ss:$12 sps:$4 sm:$0xff]   ;;  %v3789_v22 = vld [vmem:[%s5889_s2 + $0x80] ss:$12 sps:$4 sm:$0xff]   ;;  %v3775_v24 = vld [vmem:[%s5889_s2 + $0xc4] ss:$12 sps:$4 sm:$0xff]  }
   0x9   :  { %3377 = vmatpush3.bf16.msra.mxu1 %v3771_v11  ;;  %v3770_v23 = vld [vmem:[%s5889_s2 + $0xa8] ss:$12 sps:$4 sm:$0xff]   ;;  %v3773_v26 = vld [vmem:[%s5889_s2 + $0xc0] ss:$12 sps:$4 sm:$0xff]   ;;  %v3798_v28 = vld [vmem:[%s5889_s2 + $0xb0] ss:$12 sps:$4 sm:$0xff]  }
   0xa   :  { %3378 = vmatprep.subr.bf16.mxu1 %v3776_v14  ;;  %v3779_v27 = vld [vmem:[%s5889_s2 + $0xdc] ss:$12 sps:$4 sm:$0xff]   ;;  %v3777_v29 = vld [vmem:[%s5889_s2 + $0xd8] ss:$12 sps:$4 sm:$0xff]   ;;  %v3784_v30 = vld [vmem:[%s5889_s2 + $0xf4] ss:$12 sps:$4 sm:$0xff]  }
   0xb   :  { %282 = vmatpush1.bf16.msra.mxu0 %v3754_v6  ;;  %v3781_v31 = vld [vmem:[%s5890_s0 + $0x8] sm:$0xff]   ;;  %v3782_v33 = vld [vmem:[%s5889_s2 + $0xf0] ss:$12 sps:$4 sm:$0xff]   ;;  %v3811_v39 = vld [vmem:[%s5889_s2 + $0xf8] ss:$12 sps:$4 sm:$0xff]  }
   0xc   :  { %283 = vmatprep.subr.bf16.mxu0 %v3755_v7  ;;  %v3803_v32 = vld [vmem:[%s5889_s2 + $0xc8] ss:$12 sps:$4 sm:$0xff]   ;;  %v3788_v34 = vld [vmem:[%s5889_s2 + $0x10c] ss:$12 sps:$4 sm:$0xff]   ;;  %v3793_v38 = vld [vmem:[%s5889_s2 + $0x124] ss:$12 sps:$4 sm:$0xff]  }
   0xd   :  { %3379 = vmatpush3.bf16.msra.mxu1 %v3776_v14  ;;  %v3786_v35 = vld [vmem:[%s5889_s2 + $0x108] ss:$12 sps:$4 sm:$0xff]   ;;  %v3807_v36 = vld [vmem:[%s5889_s2 + $0xe0] ss:$12 sps:$4 sm:$0xff]   ;;  %v3795_v42 = vld [vmem:[%s5889_s2 + $0x138] ss:$12 sps:$4 sm:$0xff]  }
   0xe   :  { %3380 = vmatprep.subr.bf16.mxu1 %v3780_v16  ;;  %v3790_v37 = vld [vmem:[%s5890_s0 + $0x10] sm:$0xff]   ;;  %v3791_v40 = vld [vmem:[%s5889_s2 + $0x120] ss:$12 sps:$4 sm:$0xff]   ;;  %v3797_v41 = vld [vmem:[%s5889_s2 + $0x13c] ss:$12 sps:$4 sm:$0xff]  }
   0xf   :  { %284 = vmatpush1.bf16.msra.mxu0 %v3757_v9  ;;  %v3799_v43 = vld [vmem:[%s5890_s0 + $0x18] sm:$0xff]   ;;  %v3808_v45 = vld [vmem:[%s5891_s1] sm:$0xff]   ;;  %v3820_v47 = vld [vmem:[%s5889_s2 + $0x128] ss:$12 sps:$4 sm:$0xff]  }
  0x10   :  { %285 = vmatprep.subr.bf16.mxu0 %v3758_v10  ;;  %v3815_v44 = vld [vmem:[%s5889_s2 + $0x110] ss:$12 sps:$4 sm:$0xff]   ;;  %v3802_v46 = vld [vmem:[%s5889_s2 + $0x154] ss:$12 sps:$4 sm:$0xff]   ;;  %v3806_v49 = vld [vmem:[%s5889_s2 + $0x16c] ss:$12 sps:$4 sm:$0xff]  }
  0x11   :  { %3381 = vmatpush3.bf16.msra.mxu1 %v3780_v16  ;;  %v3800_v48 = vld [vmem:[%s5889_s2 + $0x150] ss:$12 sps:$4 sm:$0xff]   ;;  %v3824_v50 = vld [vmem:[%s5889_s2 + $0x140] ss:$12 sps:$4 sm:$0xff]   ;;  %v3804_v51 = vld [vmem:[%s5889_s2 + $0x168] ss:$12 sps:$4 sm:$0xff]  }
  0x12   :  { %3382 = vmatprep.subr.bf16.mxu1 %v3785_v19  ;;  %v4338_v52 = vld [vmem:[%s5892_s3 + $0x4] ss:$12 sps:$4 sm:$0xff]   ;;  %v4346_v54 = vld [vmem:[%s5892_s3] ss:$12 sps:$4 sm:$0xff]   ;;  %v4352_v55 = vld [vmem:[%s5892_s3 + $0x1c] ss:$12 sps:$4 sm:$0xff]  }
  0x13   :  { %286 = vmatpush1.bf16.msra.mxu0 %v3760_v13  ;;  %v3829_v53 = vld [vmem:[%s5889_s2 + $0x158] ss:$12 sps:$4 sm:$0xff]   ;;  %v3833_v56 = vld [vmem:[%s5889_s2 + $0x170] ss:$12 sps:$4 sm:$0xff]   ;;  %v4368_v58 = vld [vmem:[%s5892_s3 + $0x34] ss:$12 sps:$4 sm:$0xff]  }
  0x14   :  { %287 = vmatprep.subr.bf16.mxu0 %v3761_v15  ;;  %v4361_v57 = vld [vmem:[%s5892_s3 + $0x18] ss:$12 sps:$4 sm:$0xff]   ;;  %v3817_v59 = vld [vmem:[%s5891_s1 + $0x8] sm:$0xff]   ;;  %v4377_v60 = vld [vmem:[%s5892_s3 + $0x30] ss:$12 sps:$4 sm:$0xff]  }
  0x15   :  { %3383 = vmatpush3.bf16.msra.mxu1 %v3785_v19  ;;  %5952 = vst [vmem:[#allocation5_spill] sm:$0xff] %v4377_v60  ;;  %v4383_v61 = vld [vmem:[%s5892_s3 + $0x4c] ss:$12 sps:$4 sm:$0xff]   ;;  %v4388_v62 = vld [vmem:[%s5892_s3 + $0x8] ss:$12 sps:$4 sm:$0xff]  }
  0x16   :  { %3384 = vmatprep.subr.bf16.mxu1 %v3789_v22  ;;  %5953 = vst [vmem:[#allocation6_spill] sm:$0xff] %v4383_v61  ;;  %v4395_v0 = vld [vmem:[%s5892_s3 + $0x48] ss:$12 sps:$4 sm:$0xff]   ;;  %v4405_v3 = vld [vmem:[%s5892_s3 + $0x64] ss:$12 sps:$4 sm:$0xff]   ;;  %v3835_v8 = vld [vmem:[%s5891_s1 + $0x18] sm:$0xff]  }
  0x17   :  { %288 = vmatpush1.bf16.msra.mxu0 %v3763_v17  ;;  %5954 = vst [vmem:[#allocation7_spill] sm:$0xff] %v4395_v0  ;;  %v3826_v2 = vld [vmem:[%s5891_s1 + $0x10] sm:$0xff]   ;;  %5955 = vst [vmem:[#allocation8_spill] sm:$0xff] %v4405_v3  ;;  %v4411_v4 = vld [vmem:[%s5892_s3 + $0x20] ss:$12 sps:$4 sm:$0xff]  }
  0x18   :  { %289 = vmatprep.subr.bf16.mxu0 %v3764_v18  ;;  %v4418_v5 = vld [vmem:[%s5892_s3 + $0x60] ss:$12 sps:$4 sm:$0xff]   ;;  %v4424_v6 = vld [vmem:[%s5892_s3 + $0x7c] ss:$12 sps:$4 sm:$0xff]   ;;  %v4430_v7 = vld [vmem:[%s5892_s3 + $0x38] ss:$12 sps:$4 sm:$0xff]  }
  0x19   :  { %3385 = vmatpush3.bf16.msra.mxu1 %v3789_v22  ;;  %5956 = vst [vmem:[#allocation9_spill] sm:$0xff] %v4418_v5  ;;  %5957 = vst [vmem:[#allocation10_spill] sm:$0xff] %v4424_v6  ;;  %v4440_v9 = vld [vmem:[%s5892_s3 + $0x78] ss:$12 sps:$4 sm:$0xff]   ;;  %v4447_v10 = vld [vmem:[%s5892_s3 + $0x94] ss:$12 sps:$4 sm:$0xff]  }
  0x1a   :  { %3386 = vmatprep.subr.bf16.mxu1 %v3794_v25  ;;  %5958 = vst [vmem:[#allocation11_spill] sm:$0xff] %v4430_v7  ;;  %5959 = vst [vmem:[#allocation12_spill] sm:$0xff] %v4440_v9  ;;  %v4453_v11 = vld [vmem:[%s5892_s3 + $0x50] ss:$12 sps:$4 sm:$0xff]   ;;  %v4468_v13 = vld [vmem:[%s5892_s3 + $0xac] ss:$12 sps:$4 sm:$0xff]  }
  0x1b   :  { %290 = vmatpush1.bf16.msra.mxu0 %v3766_v20  ;;  %5960 = vst [vmem:[#allocation13_spill] sm:$0xff] %v4447_v10  ;;  %5961 = vst [vmem:[#allocation14_spill] sm:$0xff] %v4453_v11  ;;  %v4474_v14 = vld [vmem:[%s5892_s3 + $0x68] ss:$12 sps:$4 sm:$0xff]   ;;  %v4488_v16 = vld [vmem:[%s5892_s3 + $0xc4] ss:$12 sps:$4 sm:$0xff]  }
  0x1c   :  { %291 = vmatprep.subr.bf16.mxu0 %v3768_v21  ;;  %5963 = vst [vmem:[#allocation16_spill] sm:$0xff] %v4468_v13  ;;  %5964 = vst [vmem:[#allocation17_spill] sm:$0xff] %v4474_v14  ;;  %v4481_v15 = vld [vmem:[%s5892_s3 + $0xa8] ss:$12 sps:$4 sm:$0xff]   ;;  %v4494_v17 = vld [vmem:[%s5892_s3 + $0x80] ss:$12 sps:$4 sm:$0xff]  }
  0x1d   :  { %3387 = vmatpush3.bf16.msra.mxu1 %v3794_v25  ;;  %5965 = vst [vmem:[#allocation18_spill] sm:$0xff] %v4481_v15  ;;  %5966 = vst [vmem:[#allocation19_spill] sm:$0xff] %v4488_v16  ;;  %v4501_v18 = vld [vmem:[%s5892_s3 + $0xc0] ss:$12 sps:$4 sm:$0xff]   ;;  %v4507_v19 = vld [vmem:[%s5892_s3 + $0xdc] ss:$12 sps:$4 sm:$0xff]  }
  0x1e   :  { %3388 = vmatprep.subr.bf16.mxu1 %v3798_v28  ;;  %5967 = vst [vmem:[#allocation20_spill] sm:$0xff] %v4494_v17  ;;  %v4513_v20 = vld [vmem:[%s5892_s3 + $0x98] ss:$12 sps:$4 sm:$0xff]   ;;  %v4136_v21 = vmov 0.0|0.0   ;;  %v4541_v25 = vld [vmem:[%s5892_s3 + $0xf0] ss:$12 sps:$4 sm:$0xff]  }
  0x1f   :  { %292 = vmatpush1.bf16.msra.mxu0 %v3770_v23  ;;  %5968 = vst [vmem:[#allocation21_spill] sm:$0xff] %v4513_v20  ;;  %v4521_v22 = vld [vmem:[%s5892_s3 + $0xd8] ss:$12 sps:$4 sm:$0xff]   ;;  %v4528_v23 = vld [vmem:[%s5892_s3 + $0xf4] ss:$12 sps:$4 sm:$0xff]  }
  0x20   :  { %650 = vmatprep.subr.bf16.mxu0 %v3775_v24  ;;  %v4534_v24 = vld [vmem:[%s5892_s3 + $0xb0] ss:$12 sps:$4 sm:$0xff]  }
  0x21   :  { %3389 = vmatpush3.bf16.msra.mxu1 %v3798_v28  ;;  %5969 = vst [vmem:[#allocation22_spill] sm:$0xff] %v4534_v24  ;;  %v4560_v28 = vld [vmem:[%s5892_s3 + $0x108] ss:$12 sps:$4 sm:$0xff]  }
  0x22   :  { %310 = vmatmul.mubr.bf16.vlgmr.msra.gmra.mrb[0].mxu0 %v3772_v12  ;;  %3398 = vmatprep.subr.bf16.mxu1 %v3803_v32  ;;  %v4462_v12 = vld [vmem:[%s5892_s3 + $0x90] ss:$12 sps:$4 sm:$0xff]  }
  0x23   :  { %651 = vmatpush1.bf16.msra.mxu0 %v3773_v26  ;;  %319 = vmatprep.mubr.bf16.mxu0 %v5897_v1  ;;  %5962 = vst [vmem:[#allocation15_spill] sm:$0xff] %v4462_v12  ;;  %v4547_v26 = vld [vmem:[%s5892_s3 + $0x10c] ss:$12 sps:$4 sm:$0xff]  }
  0x24   :  { %652 = vmatprep.subr.bf16.mxu0 %v3779_v27  ;;  %3391 = vmatmul.mubr.bf16.vlgmr.msra.gmra.mrb[0].mxu1 %v3781_v31  ;;  %v4553_v27 = vld [vmem:[%s5892_s3 + $0xc8] ss:$12 sps:$4 sm:$0xff]  }
  0x25   :  { %3399 = vmatpush3.bf16.msra.mxu1 %v3803_v32  ;;  %3394 = vmatprep.mubr.bf16.mxu1 %v3790_v37  ;;  %v4588_v32 = vld [vmem:[%s5892_s3 + $0x13c] ss:$12 sps:$4 sm:$0xff]  }
  0x26   :  { %3400 = vmatprep.subr.bf16.mxu1 %v3807_v36 }
  0x27   :  { %653 = vmatpush1.bf16.msra.mxu0 %v3777_v29  ;;  %v4566_v29 = vld [vmem:[%s5892_s3 + $0x124] ss:$12 sps:$4 sm:$0xff]  }
  0x28   :  { %654 = vmatprep.subr.bf16.mxu0 %v3784_v30  ;;  %v4573_v30 = vld [vmem:[%s5892_s3 + $0xe0] ss:$12 sps:$4 sm:$0xff]  }
  0x29   :  { %3401 = vmatpush3.bf16.msra.mxu1 %v3807_v36  ;;  %v4613_v36 = vld [vmem:[%s5892_s3 + $0x110] ss:$12 sps:$4 sm:$0xff]  }
  0x2a   :  { %320 = vmatmul.mubr.bf16.gmra.mrb[4].mxu0 %v3781_v31  ;;  %3402 = vmatprep.subr.bf16.mxu1 %v3811_v39  ;;  %v4582_v31 = vld [vmem:[%s5892_s3 + $0x120] ss:$12 sps:$4 sm:$0xff]  }
  0x2b   :  { %655 = vmatpush1.bf16.msra.mxu0 %v3782_v33  ;;  %329 = vmatprep.mubr.bf16.mxu0 %v5897_v1  ;;  %v4594_v33 = vld [vmem:[%s5892_s3 + $0xf8] ss:$12 sps:$4 sm:$0xff]  }
  0x2c   :  { %656 = vmatprep.subr.bf16.mxu0 %v3788_v34  ;;  %3395 = vmatmul.mubr.bf16.gmra.mrb[4].mxu1 %v3799_v43  ;;  %v4601_v34 = vld [vmem:[%s5892_s3 + $0x138] ss:$12 sps:$4 sm:$0xff]  }
  0x2d   :  { %3403 = vmatpush3.bf16.msra.mxu1 %v3811_v39  ;;  %3414 = vmatprep.mubr.bf16.mxu1 %v3808_v45  ;;  %v4632_v39 = vld [vmem:[%s5892_s3 + $0x128] ss:$12 sps:$4 sm:$0xff]  }
  0x2e   :  { %3404 = vmatprep.subr.bf16.mxu1 %v3815_v44 }
  0x2f   :  { %657 = vmatpush1.bf16.msra.mxu0 %v3786_v35  ;;  %v4607_v35 = vld [vmem:[%s5892_s3 + $0x154] ss:$12 sps:$4 sm:$0xff]  }
  0x30   :  { %658 = vmatprep.subr.bf16.mxu0 %v3793_v38  ;;  %v4626_v38 = vld [vmem:[%s5892_s3 + $0x16c] ss:$12 sps:$4 sm:$0xff]  }
  0x31   :  { %3405 = vmatpush3.bf16.msra.mxu1 %v3815_v44  ;;  %v110_v44 = vlaneseq }
  0x32   :  { %330 = vmatmul.mubr.bf16.gmra.mrb[8].mxu0 %v3790_v37  ;;  %3406 = vmatprep.subr.bf16.mxu1 %v3820_v47  ;;  %v4620_v37 = vld [vmem:[%s5892_s3 + $0x150] ss:$12 sps:$4 sm:$0xff]  }
  0x33   :  { %659 = vmatpush1.bf16.msra.mxu0 %v3791_v40  ;;  %339 = vmatprep.mubr.bf16.mxu0 %v5897_v1  ;;  %v4639_v40 = vld [vmem:[%s5892_s3 + $0x168] ss:$12 sps:$4 sm:$0xff]  }
  0x34   :  { %660 = vmatprep.subr.bf16.mxu0 %v3797_v41  ;;  %v4646_v41 = vld [vmem:[%s5892_s3 + $0x140] ss:$12 sps:$4 sm:$0xff]  }
  0x35   :  { %3407 = vmatpush3.bf16.msra.mxu1 %v3820_v47  ;;  %v108_v47 = vld [vmem:[%s5893_s4] sm:$0x7] }
  0x36   :  { %3408 = vmatprep.subr.bf16.mxu1 %v3824_v50 }
  0x37   :  { %661 = vmatpush1.bf16.msra.mxu0 %v3795_v42  ;;  %v4655_v42 = vld [vmem:[%s5892_s3 + $0x158] ss:$12 sps:$4 sm:$0xff]  }
  0x38   :  { %662 = vmatprep.subr.bf16.mxu0 %v3802_v46 }
  0x39   :  { %3409 = vmatpush3.bf16.msra.mxu1 %v3824_v50 }
  0x3a   :  { %340 = vmatmul.mubr.bf16.gmra.mrb[12].mxu0 %v3799_v43  ;;  %3410 = vmatprep.subr.bf16.mxu1 %v3829_v53  ;;  %v4666_v43 = vld [vmem:[%s5892_s3 + $0x170] ss:$12 sps:$4 sm:$0xff]  }
  0x3b   :  { %663 = vmatpush1.bf16.msra.mxu0 %v3800_v48  ;;  %682 = vmatprep.mubr.bf16.mxu0 %v5897_v1 }
  0x3c   :  { %664 = vmatprep.subr.bf16.mxu0 %v3806_v49 }
  0x3d   :  { %3411 = vmatpush3.bf16.msra.mxu1 %v3829_v53 }
  0x3e   :  { %3412 = vmatprep.subr.bf16.mxu1 %v3833_v56 }
  0x3f   :  { %665 = vmatpush1.bf16.msra.mxu0 %v3804_v51 }
  0x40   :  { %1027 = vmatprep.subr.bf16.mxu0 %v4338_v52 }
  0x41   :  { %3413 = vmatpush3.bf16.msra.mxu1 %v3833_v56 }
  0x42   :  { %683 = vmatmul.mubr.bf16.vlgmr.msra.gmra.mrb[16].mxu0 %v3808_v45  ;;  %3422 = vmatprep.subr.bf16.mxu1 %v5899_v63  ;;  %v111_v45 = vshrl.u32 %v110_v44, 7 }
  0x43   :  { %1028 = vmatpush1.bf16.msra.mxu0 %v4346_v54  ;;  %692 = vmatprep.mubr.bf16.mxu0 %v5897_v1 }
  0x44   :  { %1029 = vmatprep.subr.bf16.mxu0 %v4352_v55  ;;  %3415 = vmatmul.mubr.bf16.vlgmr.msra.gmra.mrb[8].mxu1 %v3817_v59  ;;  %v4704_v46 = vsub.s32 0, %v111_v45  ;;  %v4709_v48 = vsub.s32 1, %v111_v45 }
  0x45   :  { %3423 = vmatpush3.bf16.msra.mxu1 %v4388_v62  ;;  %3418 = vmatprep.mubr.bf16.mxu1 %v3826_v2 }
  0x46   :  { %3424 = vmatprep.subr.bf16.mxu1 %v5899_v63  ;;  %v4712_v49 = vrot.slane %v108_v47, %v4704_v46  ;;  %v4719_v53 = vrot.slane %v108_v47, %v4709_v48 }
  0x47   :  { %1030 = vmatpush1.bf16.msra.mxu0 %v4361_v57 }
  0x48   :  { %1031 = vmatprep.subr.bf16.mxu0 %v4368_v58 }
  0x49   :  { %3425 = vmatpush3.bf16.msra.mxu1 %v4411_v4 }
  0x4a   :  { %693 = vmatmul.mubr.bf16.gmra.mrb[20].mxu0 %v3817_v59  ;;  %3426 = vmatprep.subr.bf16.mxu1 %v5899_v63 }
  0x4b   :  { %1032 = vmatpush1.bf16.msra.mxu0 %v4377_v60  ;;  %702 = vmatprep.mubr.bf16.mxu0 %v5897_v1 }
  0x4c   :  { %1033 = vmatprep.subr.bf16.mxu0 %v4383_v61  ;;  %3419 = vmatmul.mubr.bf16.gmra.mrb[12].mxu1 %v3835_v8 }
  0x4d   :  { %3427 = vmatpush3.bf16.msra.mxu1 %v4430_v7  ;;  %3438 = vmatprep.mubr.msk.bf16.mxu1 %vm4135_vm0, %v5899_v63 }
  0x4e   :  { %3428 = vmatprep.subr.bf16.mxu1 %v5899_v63 }
  0x4f   :  { %1034 = vmatpush1.bf16.msra.mxu0 %v4395_v0 }
  0x50   :  { %1035 = vmatprep.subr.bf16.mxu0 %v4405_v3 }
  0x51   :  { %3429 = vmatpush3.bf16.msra.mxu1 %v4453_v11 }
  0x52   :  { %703 = vmatmul.mubr.bf16.gmra.mrb[24].mxu0 %v3826_v2  ;;  %3430 = vmatprep.subr.bf16.mxu1 %v5899_v63 }
  0x53   :  { %1036 = vmatpush1.bf16.msra.mxu0 %v4418_v5  ;;  %712 = vmatprep.mubr.bf16.mxu0 %v5897_v1 }
  0x54   :  { %1037 = vmatprep.subr.bf16.mxu0 %v4424_v6 }
  0x55   :  { %3431 = vmatpush3.bf16.msra.mxu1 %v4474_v14 }
  0x56   :  { %3432 = vmatprep.subr.bf16.mxu1 %v5899_v63 }
  0x57   :  { %1038 = vmatpush1.bf16.msra.mxu0 %v4440_v9 }
  0x58   :  { %1039 = vmatprep.subr.bf16.mxu0 %v4447_v10 }
  0x59   :  { %3433 = vmatpush3.bf16.msra.mxu1 %v4494_v17 }
  0x5a   :  { %713 = vmatmul.mubr.bf16.gmra.mrb[28].mxu0 %v3835_v8  ;;  %3434 = vmatprep.subr.bf16.mxu1 %v5899_v63  ;;  %v4724_v8 = vsub.s32 2, %v111_v45 }
  0x5b   :  { %1040 = vmatpush1.bf16.msra.mxu0 %v4462_v12  ;;  %1059 = vmatprep.mubr.bf16.mxu0 %v5897_v1 }
  0x5c   :  { %1041 = vmatprep.subr.bf16.mxu0 %v4468_v13  ;;  %v4730_v44 = vrot.slane %v108_v47, %v4724_v8 }
  0x5d   :  { %3435 = vmatpush3.bf16.msra.mxu1 %v4513_v20 }
  0x5e   :  { %3436 = vmatprep.subr.bf16.mxu1 %v5899_v63 }
  0x5f   :  { %1042 = vmatpush1.bf16.msra.mxu0 %v4481_v15 }
  0x60   :  { %1253 = vmatprep.subr.bf16.mxu0 %v4488_v16 }
  0x61   :  { %3437 = vmatpush3.bf16.msra.mxu1 %v4534_v24 }
  0x62   :  { %1060 = vmatmul.mubr.bf16.vlgmr.msra.gmra.mrb[32].mxu0 %v4136_v21  ;;  %3442 = vmatprep.subr.bf16.mxu1 %v5899_v63 }
  0x63   :  { %1254 = vmatpush1.bf16.msra.mxu0 %v4501_v18  ;;  %1285 = vmatprep.mubr.bf16.mxu0 %v5897_v1 }
  0x64   :  { %1255 = vmatprep.subr.bf16.mxu0 %v4507_v19  ;;  %3439 = vmatmul.mubr.bf16.vlgmr.msra.gmra.mrb[16].mxu1 %v4136_v21 }
  0x65   :  { %3443 = vmatpush3.bf16.msra.mxu1 %v4553_v27  ;;  %3458 = vmatprep.mubr.msk.bf16.mxu1 %vm4135_vm0, %v5899_v63 }
  0x66   :  { %3444 = vmatprep.subr.bf16.mxu1 %v5899_v63 }
  0x67   :  { %1256 = vmatpush1.bf16.msra.mxu0 %v4521_v22 }
  0x68   :  { %1257 = vmatprep.subr.bf16.mxu0 %v4528_v23 }
  0x69   :  { %3445 = vmatpush3.bf16.msra.mxu1 %v4573_v30 }
  0x6a   :  { %3446 = vmatprep.subr.bf16.mxu1 %v5899_v63 }
  0x6b   :  { %1258 = vmatpush1.bf16.msra.mxu0 %v4541_v25 }
  0x6c   :  { %1259 = vmatprep.subr.bf16.mxu0 %v4547_v26 }
  0x6d   :  { %3447 = vmatpush3.bf16.msra.mxu1 %v4594_v33 }
  0x6e   :  { %3448 = vmatprep.subr.bf16.mxu1 %v5899_v63 }
  0x6f   :  { %1260 = vmatpush1.bf16.msra.mxu0 %v4560_v28 }
  0x70   :  { %1261 = vmatprep.subr.bf16.mxu0 %v4566_v29 }
  0x71   :  { %3449 = vmatpush3.bf16.msra.mxu1 %v4613_v36 }
  0x72   :  { %3450 = vmatprep.subr.bf16.mxu1 %v5899_v63 }
  0x73   :  { %1262 = vmatpush1.bf16.msra.mxu0 %v4582_v31 }
  0x74   :  { %1263 = vmatprep.subr.bf16.mxu0 %v4588_v32 }
  0x75   :  { %3451 = vmatpush3.bf16.msra.mxu1 %v4632_v39 }
  0x76   :  { %3452 = vmatprep.subr.bf16.mxu1 %v5899_v63 }
  0x77   :  { %1264 = vmatpush1.bf16.msra.mxu0 %v4601_v34 }
  0x78   :  { %1265 = vmatprep.subr.bf16.mxu0 %v4607_v35 }
  0x79   :  { %3453 = vmatpush3.bf16.msra.mxu1 %v4646_v41 }
  0x7a   :  { %3454 = vmatprep.subr.bf16.mxu1 %v5899_v63 }
  0x7b   :  { %1266 = vmatpush1.bf16.msra.mxu0 %v4620_v37 }
  0x7c   :  { %1267 = vmatprep.subr.bf16.mxu0 %v4626_v38 }
  0x7d   :  { %3455 = vmatpush3.bf16.msra.mxu1 %v4655_v42 }
  0x7e   :  { %3456 = vmatprep.subr.bf16.mxu1 %v5899_v63 }
  0x7f   :  { %1268 = vmatpush1.bf16.msra.mxu0 %v4639_v40 }
  0x80   :  { %1393 = vmatprep.subr.bf16.mxu0 %v4338_v52 }
  0x81   :  { %3457 = vmatpush3.bf16.msra.mxu1 %v4666_v43 }
  0x82   :  { %1286 = vmatmul.mubr.bf16.vlgmr.msra.gmra.mrb[36].mxu0 %v4136_v21  ;;  %3462 = vmatprep.subr.bf16.mxu1 %v5899_v63 }
  0x83   :  { %1394 = vmatpush1.bf16.msra.mxu0 %v4346_v54  ;;  %1425 = vmatprep.mubr.bf16.mxu0 %v5897_v1 }
  0x84   :  { %1395 = vmatprep.subr.bf16.mxu0 %v4352_v55  ;;  %3459 = vmatmul.mubr.bf16.vlgmr.msra.gmra.mrb[20].mxu1 %v4136_v21 }
  0x85   :  { %3463 = vmatpush3.bf16.msra.mxu1 %v4388_v62  ;;  %3478 = vmatprep.mubr.msk.bf16.mxu1 %vm4135_vm0, %v5899_v63 }
  0x86   :  { %3464 = vmatprep.subr.bf16.mxu1 %v5899_v63 }
  0x87   :  { %1396 = vmatpush1.bf16.msra.mxu0 %v4361_v57 }
  0x88   :  { %1397 = vmatprep.subr.bf16.mxu0 %v4368_v58 }
  0x89   :  { %3465 = vmatpush3.bf16.msra.mxu1 %v4411_v4 }
  0x8a   :  { %3466 = vmatprep.subr.bf16.mxu1 %v5899_v63 }
  0x8b   :  { %1398 = vmatpush1.bf16.msra.mxu0 %v4377_v60 }
  0x8c   :  { %1399 = vmatprep.subr.bf16.mxu0 %v4383_v61 }
  0x8d   :  { %3467 = vmatpush3.bf16.msra.mxu1 %v4430_v7 }
  0x8e   :  { %3468 = vmatprep.subr.bf16.mxu1 %v5899_v63 }
  0x8f   :  { %1400 = vmatpush1.bf16.msra.mxu0 %v4395_v0 }
  0x90   :  { %1401 = vmatprep.subr.bf16.mxu0 %v4405_v3 }
  0x91   :  { %3469 = vmatpush3.bf16.msra.mxu1 %v4453_v11 }
  0x92   :  { %3470 = vmatprep.subr.bf16.mxu1 %v5899_v63 }
  0x93   :  { %1402 = vmatpush1.bf16.msra.mxu0 %v4418_v5 }
  0x94   :  { %1403 = vmatprep.subr.bf16.mxu0 %v4424_v6 }
  0x95   :  { %3471 = vmatpush3.bf16.msra.mxu1 %v4474_v14 }
  0x96   :  { %3472 = vmatprep.subr.bf16.mxu1 %v5899_v63 }
  0x97   :  { %1404 = vmatpush1.bf16.msra.mxu0 %v4440_v9 }
  0x98   :  { %1405 = vmatprep.subr.bf16.mxu0 %v4447_v10 }
  0x99   :  { %3473 = vmatpush3.bf16.msra.mxu1 %v4494_v17 }
  0x9a   :  { %3474 = vmatprep.subr.bf16.mxu1 %v5899_v63 }
  0x9b   :  { %1406 = vmatpush1.bf16.msra.mxu0 %v4462_v12 }
  0x9c   :  { %1407 = vmatprep.subr.bf16.mxu0 %v4468_v13 }
  0x9d   :  { %3475 = vmatpush3.bf16.msra.mxu1 %v4513_v20 }
  0x9e   :  { %3476 = vmatprep.subr.bf16.mxu1 %v5899_v63 }
  0x9f   :  { %1408 = vmatpush1.bf16.msra.mxu0 %v4481_v15 }
  0xa0   :  { %1474 = vmatprep.subr.bf16.mxu0 %v4488_v16 }
  0xa1   :  { %3477 = vmatpush3.bf16.msra.mxu1 %v4534_v24 }
  0xa2   :  { %3482 = vmatprep.subr.bf16.mxu1 %v5899_v63 }
  0xf5   :  { %v4714_v50 = vpop.f32.mrb[0].mxu0 }
  0xf6   :  { %v4716_v51 = vpop.f32.mrb[1].mxu0 }
  0xf7   :  { %v315_v56 = vpop.f32.mrb[2].mxu0 }
  0xf8   :  { %v4722_v59 = vadd.f32 %v315_v56, %v4712_v49  ;;  %v317_v2 = vpop.f32.mrb[3].mxu0  ;;  %v3392_v56 = vpop.f32.mrb[0].mxu1 }
  0xf9   :  { %v4727_v21 = vadd.f32 %v317_v2, %v4719_v53  ;;  %v4742_v2 = vadd.f32 %v3392_v56, %v4730_v44 }
  0xfa   :  { %5970 = vst [vmem:[#allocation23_spill] sm:$0xff] %v4722_v59 }
  0xfb   :  { %5971 = vst [vmem:[#allocation24_spill] sm:$0xff] %v4727_v21  ;;  %5975 = vst [vmem:[#allocation28_spill] sm:$0xff] %v4742_v2  ;;  %v4744_v21 = vpop.f32.mrb[1].mxu1 }
  0xfd   :  { %v321_v1 = vpop.f32.mrb[4].mxu0 }
  0xfe   :  { %v4733_v63 = vadd.f32 %v321_v1, %v4712_v49  ;;  %v323_v16 = vpop.f32.mrb[5].mxu0  ;;  %v3393_v1 = vpop.f32.mrb[2].mxu1 }
  0xff   :  { %v4736_v24 = vadd.f32 %v323_v16, %v4719_v53  ;;  %v325_v15 = vpop.f32.mrb[6].mxu0  ;;  %v387_v16 = vpop.f32.mrb[3].mxu1 }
 0x100   :  { %5972 = vst [vmem:[#allocation25_spill] sm:$0xff] %v4733_v63  ;;  %v4739_v59 = vadd.f32 %v325_v15, %v4712_v49  ;;  %v327_v45 = vpop.f32.mrb[7].mxu0  ;;  %v4750_v63 = vadd.f32 %v3393_v1, %v4730_v44  ;;  %v3396_v20 = vpop.f32.mrb[4].mxu1 }
 0x101   :  { %5973 = vst [vmem:[#allocation26_spill] sm:$0xff] %v4736_v24  ;;  %v4747_v47 = vadd.f32 %v327_v45, %v4719_v53  ;;  %v4753_v24 = vadd.f32 %v387_v16, %v4730_v44  ;;  %v4765_v1 = vadd.f32 %v3396_v20, %v4730_v44 }
 0x102   :  { %5974 = vst [vmem:[#allocation27_spill] sm:$0xff] %v4739_v59  ;;  %5977 = vst [vmem:[#allocation30_spill] sm:$0xff] %v4750_v63  ;;  %v400_v63 = vpop.f32.mrb[5].mxu1 }
 0x103   :  { %5976 = vst [vmem:[#allocation29_spill] sm:$0xff] %v4747_v47  ;;  %5978 = vst [vmem:[#allocation31_spill] sm:$0xff] %v4753_v24 }
 0x104   :  { %5982 = vst [vmem:[#allocation35_spill] sm:$0xff] %v4765_v1 }
 0x105   :  { %v331_v13 = vpop.f32.mrb[8].mxu0 }
 0x106   :  { %v4756_v15 = vadd.f32 %v331_v13, %v4712_v49  ;;  %v333_v59 = vpop.f32.mrb[9].mxu0  ;;  %v4771_v13 = vadd.f32 %v400_v63, %v4730_v44  ;;  %v3050_v63 = vld [vmem:[%s5893_s4 + $0x3] sm:$0x7] }
 0x107   :  { %v4759_v56 = vadd.f32 %v333_v59, %v4719_v53  ;;  %v335_v2 = vpop.f32.mrb[10].mxu0 }
 0x108   :  { %5979 = vst [vmem:[#allocation32_spill] sm:$0xff] %v4756_v15  ;;  %v4762_v45 = vadd.f32 %v335_v2, %v4712_v49  ;;  %v337_v47 = vpop.f32.mrb[11].mxu0  ;;  %5984 = vst [vmem:[#allocation37_spill] sm:$0xff] %v4771_v13  ;;  %v3397_v15 = vpop.f32.mrb[6].mxu1  ;;  %v4813_v13 = vrot.slane %v3050_v63, %v4724_v8 }
 0x109   :  { %5980 = vst [vmem:[#allocation33_spill] sm:$0xff] %v4759_v56  ;;  %v4768_v16 = vadd.f32 %v337_v47, %v4719_v53  ;;  %v4774_v59 = vadd.f32 %v3397_v15, %v4730_v44  ;;  %v403_v56 = vpop.f32.mrb[7].mxu1 }
 0x10a   :  { %5981 = vst [vmem:[#allocation34_spill] sm:$0xff] %v4762_v45  ;;  %v4777_v24 = vadd.f32 %v403_v56, %v4730_v44 }
 0x10b   :  { %5983 = vst [vmem:[#allocation36_spill] sm:$0xff] %v4768_v16  ;;  %5985 = vst [vmem:[#allocation38_spill] sm:$0xff] %v4774_v59 }
 0x10c   :  { %5986 = vst [vmem:[#allocation39_spill] sm:$0xff] %v4777_v24  ;;  %v4795_v24 = vrot.slane %v3050_v63, %v4704_v46 }
 0x10d   :  { %v341_v2 = vpop.f32.mrb[12].mxu0 }
 0x10e   :  { %v4780_v45 = vadd.f32 %v341_v2, %v4712_v49  ;;  %v343_v20 = vpop.f32.mrb[13].mxu0  ;;  %v4798_v2 = vrot.slane %v3050_v63, %v4709_v48 }
 0x10f   :  { %v4783_v1 = vadd.f32 %v343_v20, %v4719_v53  ;;  %v345_v47 = vpop.f32.mrb[14].mxu0 }
 0x110   :  { %5987 = vst [vmem:[#allocation40_spill] sm:$0xff] %v4780_v45  ;;  %v4789_v15 = vadd.f32 %v345_v47, %v4712_v49  ;;  %v347_v59 = vpop.f32.mrb[15].mxu0 }
 0x111   :  { %5988 = vst [vmem:[#allocation41_spill] sm:$0xff] %v4783_v1  ;;  %v4792_v56 = vadd.f32 %v347_v59, %v4719_v53 }
 0x112   :  { %5989 = vst [vmem:[#allocation42_spill] sm:$0xff] %v4789_v15 }
 0x113   :  { %5990 = vst [vmem:[#allocation43_spill] sm:$0xff] %v4792_v56 }
 0x115   :  { %v684_v20 = vpop.f32.mrb[16].mxu0 }
 0x116   :  { %v4801_v1 = vadd.f32 %v684_v20, %v4795_v24  ;;  %v686_v45 = vpop.f32.mrb[17].mxu0 }
 0x117   :  { %v4804_v16 = vadd.f32 %v686_v45, %v4798_v2  ;;  %v688_v47 = vpop.f32.mrb[18].mxu0 }
 0x118   :  { %5991 = vst [vmem:[#allocation44_spill] sm:$0xff] %v4801_v1  ;;  %v4807_v15 = vadd.f32 %v688_v47, %v4795_v24  ;;  %v690_v59 = vpop.f32.mrb[19].mxu0 }
 0x119   :  { %5992 = vst [vmem:[#allocation45_spill] sm:$0xff] %v4804_v16  ;;  %v4810_v56 = vadd.f32 %v690_v59, %v4798_v2  ;;  %v3416_v16 = vpop.f32.mrb[8].mxu1 }
 0x11a   :  { %5993 = vst [vmem:[#allocation46_spill] sm:$0xff] %v4807_v15  ;;  %v4825_v59 = vadd.f32 %v3416_v16, %v4813_v13 }
 0x11b   :  { %5994 = vst [vmem:[#allocation47_spill] sm:$0xff] %v4810_v56  ;;  %v757_v56 = vpop.f32.mrb[9].mxu1 }
 0x11c   :  { %5998 = vst [vmem:[#allocation51_spill] sm:$0xff] %v4825_v59 }
 0x11d   :  { %v694_v12 = vpop.f32.mrb[20].mxu0 }
 0x11e   :  { %v4816_v10 = vadd.f32 %v694_v12, %v4795_v24  ;;  %v696_v20 = vpop.f32.mrb[21].mxu0  ;;  %v4831_v12 = vadd.f32 %v757_v56, %v4813_v13 }
 0x11f   :  { %v4819_v1 = vadd.f32 %v696_v20, %v4798_v2  ;;  %v698_v45 = vpop.f32.mrb[22].mxu0 }
 0x120   :  { %5995 = vst [vmem:[#allocation48_spill] sm:$0xff] %v4816_v10  ;;  %v4822_v47 = vadd.f32 %v698_v45, %v4795_v24  ;;  %v700_v15 = vpop.f32.mrb[23].mxu0  ;;  %6000 = vst [vmem:[#allocation53_spill] sm:$0xff] %v4831_v12  ;;  %v3417_v10 = vpop.f32.mrb[10].mxu1 }
 0x121   :  { %5996 = vst [vmem:[#allocation49_spill] sm:$0xff] %v4819_v1  ;;  %v4828_v63 = vadd.f32 %v700_v15, %v4798_v2  ;;  %v4834_v20 = vadd.f32 %v3417_v10, %v4813_v13  ;;  %v760_v1 = vpop.f32.mrb[11].mxu1 }
 0x122   :  { %5997 = vst [vmem:[#allocation50_spill] sm:$0xff] %v4822_v47  ;;  %v4837_v17 = vadd.f32 %v760_v1, %v4813_v13 }
 0x123   :  { %5999 = vst [vmem:[#allocation52_spill] sm:$0xff] %v4828_v63  ;;  %6001 = vst [vmem:[#allocation54_spill] sm:$0xff] %v4834_v20  ;;  %v3420_v63 = vpop.f32.mrb[12].mxu1 }
 0x124   :  { %6002 = vst [vmem:[#allocation55_spill] sm:$0xff] %v4837_v17  ;;  %v4849_v10 = vadd.f32 %v3420_v63, %v4813_v13  ;;  %v773_v20 = vpop.f32.mrb[13].mxu1 }
 0x125   :  { %v704_v45 = vpop.f32.mrb[24].mxu0  ;;  %v4857_v17 = vpop.f32.mrb[14].mxu1 }
 0x126   :  { %v4840_v47 = vadd.f32 %v704_v45, %v4795_v24  ;;  %v706_v16 = vpop.f32.mrb[25].mxu0  ;;  %6006 = vst [vmem:[#allocation59_spill] sm:$0xff] %v4849_v10  ;;  %v4855_v45 = vadd.f32 %v773_v20, %v4813_v13 }
 0x127   :  { %v4843_v59 = vadd.f32 %v706_v16, %v4798_v2  ;;  %v708_v15 = vpop.f32.mrb[26].mxu0  ;;  %v776_v16 = vpop.f32.mrb[15].mxu1 }
 0x128   :  { %6003 = vst [vmem:[#allocation56_spill] sm:$0xff] %v4840_v47  ;;  %v4846_v56 = vadd.f32 %v708_v15, %v4795_v24  ;;  %v710_v12 = vpop.f32.mrb[27].mxu0  ;;  %6008 = vst [vmem:[#allocation61_spill] sm:$0xff] %v4855_v45 }
 0x129   :  { %6004 = vst [vmem:[#allocation57_spill] sm:$0xff] %v4843_v59  ;;  %v4852_v1 = vadd.f32 %v710_v12, %v4798_v2  ;;  %v4860_v59 = vadd.f32 %v776_v16, %v4813_v13  ;;  %v877_v12 = vld [vmem:[%s5894_s5] sm:$0x7] }
 0x12a   :  { %6005 = vst [vmem:[#allocation58_spill] sm:$0xff] %v4846_v56  ;;  %v4872_v45 = vrot.slane %v877_v12, %v4704_v46  ;;  %v4875_v16 = vrot.slane %v877_v12, %v4709_v48 }
 0x12b   :  { %6007 = vst [vmem:[#allocation60_spill] sm:$0xff] %v4852_v1  ;;  %6009 = vst [vmem:[#allocation62_spill] sm:$0xff] %v4860_v59 }
 0x12c   :  { %6012 = vst [vmem:[#allocation65_spill] sm:$0xff] %v4872_v45 }
 0x12d   :  { %v714_v47 = vpop.f32.mrb[28].mxu0 }
 0x12e   :  { %v4863_v15 = vadd.f32 %v714_v47, %v4795_v24  ;;  %v716_v56 = vpop.f32.mrb[29].mxu0  ;;  %v312_v47 = vadd.f32 %v4714_v50, %v4712_v49 }
 0x12f   :  { %v4866_v63 = vadd.f32 %v716_v56, %v4798_v2  ;;  %v718_v10 = vpop.f32.mrb[30].mxu0 }
 0x130   :  { %6010 = vst [vmem:[#allocation63_spill] sm:$0xff] %v4863_v15  ;;  %v720_v20 = vpop.f32.mrb[31].mxu0 }
 0x131   :  { %6011 = vst [vmem:[#allocation64_spill] sm:$0xff] %v4866_v63  ;;  %v314_v63 = vadd.f32 %v4716_v51, %v4719_v53  ;;  %v719_v53 = vadd.f32 %v718_v10, %v4795_v24 }
 0x135   :  { %v1061_v59 = vpop.f32.mrb[32].mxu0 }
 0x136   :  { %v1062_v1 = vadd.f32 %v1061_v59, %v4872_v45  ;;  %v1063_v56 = vpop.f32.mrb[33].mxu0  ;;  %v4884_v59 = vrot.slane %v877_v12, %v4724_v8 }
 0x137   :  { %v1064_v15 = vadd.f32 %v1063_v56, %v4875_v16  ;;  %v1065_v9 = vpop.f32.mrb[34].mxu0  ;;  %v1102_v0 = vpop.f32.mrb[16].mxu1 }
 0x138   :  { %v1346_v6 = vadd.f32 %v1062_v1, %v312_v47  ;;  %v1066_v14 = vpop.f32.mrb[35].mxu0  ;;  %v3440_v61 = vpop.f32.mrb[17].mxu1  ;;  %6013 = vst [vmem:[#allocation66_spill] sm:$0xff] %v4884_v59  ;;  %v3111_v9 = vld [vmem:[%s5894_s5 + $0x3] sm:$0x7] }
 0x139   :  { %v1353_v5 = vadd.f32 %v1064_v15, %v314_v63  ;;  %v1105_v7 = vpop.f32.mrb[18].mxu1 }
 0x13a   :  { %v3160_v3 = vmul.f32 -1.442695, %v1346_v6  ;;  %v3441_v60 = vpop.f32.mrb[19].mxu1  ;;  %v385_v6 = vadd.f32 %v4744_v21, %v4730_v44 }
 0x13b   :  { %v3161_v11 = vmul.f32 -1.442695, %v1353_v5  ;;  %v4891_v5 = vrot.slane %v3111_v9, %v4704_v46  ;;  %v4894_v60 = vrot.slane %v3111_v9, %v4709_v48 }
 0x13c   :  { %3882 = vpow2.f32 %v3160_v3  ;;  %v1103_v3 = vadd.f32 %v1102_v0, %v4884_v59  ;;  %v721_v0 = vadd.f32 %v720_v20, %v4798_v2 }
 0x13d   :  { %3884 = vpow2.f32 %v3161_v11 }
 0x146   :  { %v3883_v49 = vpop.eup %3882 }
 0x147   :  { %v1350_v50 = vadd.f32 1.0, %v3883_v49  ;;  %v3885_v51 = vpop.eup %3884 }
 0x148   :  { %v1357_v14 = vadd.f32 1.0, %v3885_v51 }
 0x149   :  { %3886 = vrcp.f32 %v1350_v50 }
 0x14a   :  { %3888 = vrcp.f32 %v1357_v14 }
 0x153   :  { %v3887_v61 = vpop.eup %3886 }
 0x154   :  { %v1360_v7 = vmul.f32 %v3887_v61, %v1103_v3  ;;  %v3889_v21 = vpop.eup %3888 }
 0x155   :  { %v1287_v11 = vpop.f32.mrb[36].mxu0  ;;  %v1363_v24 = vsub.f32 1.0, %v3889_v21  ;;  %v1365_v2 = vmul.f32 0.0, %v3889_v21 }
 0x156   :  { %v1361_v1 = vadd.f32 %v1360_v7, %v385_v6  ;;  %v1288_v15 = vadd.f32 %v1287_v11, %v4891_v5  ;;  %v1289_v63 = vpop.f32.mrb[37].mxu0 }
 0x157   :  { %v1290_v46 = vadd.f32 %v1289_v63, %v4894_v60  ;;  %v1291_v12 = vpop.f32.mrb[38].mxu0  ;;  %v1328_v50 = vpop.f32.mrb[20].mxu1 }
 0x158   :  { %3890 = vtanh.f32 %v1361_v1  ;;  %v1367_v48 = vadd.f32 %v1288_v15, %v719_v53  ;;  %v1292_v47 = vpop.f32.mrb[39].mxu0  ;;  %v3460_v51 = vpop.f32.mrb[21].mxu1  ;;  %v6014_v53 = vmov 0.0   ;;  %v4914_v1 = vrot.slane %v3111_v9, %v4724_v8 }
 0x159   :  { %v1374_v56 = vadd.f32 %v1290_v46, %v721_v0  ;;  %v1331_v10 = vpop.f32.mrb[22].mxu1  ;;  %v6015_v15 = vmov 0   ;;  %v785_v9 = vadd.f32 %v4857_v17, %v4813_v13  ;;  %v6021_v51 = vld [vmem:[#allocation8_spill] sm:$0xff] }
 0x15a   :  { %v3162_v49 = vmul.f32 -1.442695, %v1367_v48  ;;  %v3461_v3 = vpop.f32.mrb[23].mxu1  ;;  %v1329_v46 = vadd.f32 %v1328_v50, %v4914_v1  ;;  %v6020_v50 = vld [vmem:[#allocation14_spill] sm:$0xff]  ;;  %v6026_v10 = vld [vmem:[#allocation20_spill] sm:$0xff] }
 0x15b   :  { %v3163_v44 = vmul.f32 -1.442695, %v1374_v56  ;;  %v6028_v3 = vld [vmem:[#allocation15_spill] sm:$0xff] }
 0x15c   :  { %3892 = vpow2.f32 %v3162_v49 }
 0x15d   :  { %3894 = vpow2.f32 %v3163_v44 }
 0x162   :  { %v3891_v14 = vpop.eup %3890 }
 0x163   :  { %v1364_v61 = vmul.f32 %v3891_v14, %v1363_v24  ;;  %v6025_v24 = vld [vmem:[#allocation12_spill] sm:$0xff]  ;;  %v6027_v14 = vld [vmem:[#allocation13_spill] sm:$0xff] }
 0x165   :  { %v4902_v20 = vadd.f32 %v1365_v2, %v1364_v61  ;;  %v6029_v61 = vld [vmem:[#allocation21_spill] sm:$0xff]  ;;  %v6030_v2 = vld [vmem:[#allocation16_spill] sm:$0xff] }
 0x166   :  { %v3893_v6 = vpop.eup %3892 }
 0x167   :  { %v1371_v7 = vadd.f32 1.0, %v3893_v6  ;;  %v1388_v11 = vpack.c.bf16 %v4902_v20, %v4902_v20  ;;  %v3895_v63 = vpop.eup %3894  ;;  %v6031_v6 = vld [vmem:[#allocation18_spill] sm:$0xff] }
 0x168   :  { %v1378_v0 = vadd.f32 1.0, %v3895_v63 }
 0x169   :  { %3896 = vrcp.f32 %v1371_v7  ;;  %1389 = vst [vmem:[%s5895_s6] sm:$0xf] %v1388_v11  ;;  %1426 = vmatmul.mubr.bf16.vlgmr.msra.gmra.mrb[40].mxu0 %v1388_v11  ;;  %3479 = vmatmul.mubr.bf16.vlgmr.msra.gmra.mrb[24].mxu1 %v1388_v11  ;;  %v6032_v7 = vld [vmem:[#allocation22_spill] sm:$0xff]  ;;  %v6033_v11 = vld [vmem:[#allocation19_spill] sm:$0xff] }
 0x16a   :  { %1475 = vmatpush1.bf16.msra.mxu0 %v4501_v18  ;;  %3483 = vmatpush3.bf16.msra.mxu1 %v4553_v27  ;;  %3898 = vrcp.f32 %v1378_v0 }
 0x16b   :  { %1476 = vmatprep.subr.bf16.mxu0 %v4507_v19  ;;  %3484 = vmatprep.subr.bf16.mxu1 %v6014_v53 }
 0x16c   :  { %1506 = vmatprep.mubr.bf16.mxu0 %v6015_v15  ;;  %3498 = vmatprep.mubr.msk.bf16.mxu1 %vm4135_vm0, %v6014_v53 }
 0x16e   :  { %1477 = vmatpush1.bf16.msra.mxu0 %v4521_v22  ;;  %3485 = vmatpush3.bf16.msra.mxu1 %v4573_v30 }
 0x16f   :  { %1478 = vmatprep.subr.bf16.mxu0 %v4528_v23  ;;  %3486 = vmatprep.subr.bf16.mxu1 %v6014_v53 }
 0x172   :  { %1479 = vmatpush1.bf16.msra.mxu0 %v4541_v25  ;;  %3487 = vmatpush3.bf16.msra.mxu1 %v4594_v33 }
 0x173   :  { %v3897_v8 = vpop.eup %3896  ;;  %1480 = vmatprep.subr.bf16.mxu0 %v4547_v26  ;;  %3488 = vmatprep.subr.bf16.mxu1 %v6014_v53 }
 0x174   :  { %v1381_v12 = vmul.f32 %v3897_v8, %v1329_v46  ;;  %v3899_v17 = vpop.eup %3898 }
 0x175   :  { %v1384_v13 = vsub.f32 1.0, %v3899_v17  ;;  %v1386_v49 = vmul.f32 0.0, %v3899_v17 }
 0x176   :  { %v1382_v48 = vadd.f32 %v1381_v12, %v785_v9  ;;  %1481 = vmatpush1.bf16.msra.mxu0 %v4560_v28  ;;  %3489 = vmatpush3.bf16.msra.mxu1 %v4613_v36 }
 0x177   :  { %1482 = vmatprep.subr.bf16.mxu0 %v4566_v29  ;;  %3490 = vmatprep.subr.bf16.mxu1 %v6014_v53 }
 0x178   :  { %3900 = vtanh.f32 %v1382_v48 }
 0x17a   :  { %1483 = vmatpush1.bf16.msra.mxu0 %v4582_v31  ;;  %3491 = vmatpush3.bf16.msra.mxu1 %v4632_v39 }
 0x17b   :  { %1484 = vmatprep.subr.bf16.mxu0 %v4588_v32  ;;  %3492 = vmatprep.subr.bf16.mxu1 %v6014_v53 }
 0x17e   :  { %1485 = vmatpush1.bf16.msra.mxu0 %v4601_v34  ;;  %3493 = vmatpush3.bf16.msra.mxu1 %v4646_v41 }
 0x17f   :  { %1486 = vmatprep.subr.bf16.mxu0 %v4607_v35  ;;  %3494 = vmatprep.subr.bf16.mxu1 %v6014_v53 }
 0x182   :  { %v3901_v47 = vpop.eup %3900  ;;  %1487 = vmatpush1.bf16.msra.mxu0 %v4620_v37  ;;  %3495 = vmatpush3.bf16.msra.mxu1 %v4655_v42 }
 0x183   :  { %1488 = vmatprep.subr.bf16.mxu0 %v4626_v38  ;;  %3496 = vmatprep.subr.bf16.mxu1 %v6014_v53  ;;  %v1385_v56 = vmul.f32 %v3901_v47, %v1384_v13  ;;  %v6034_v13 = vld [vmem:[#allocation23_spill] sm:$0xff] }
 0x185   :  { %v4946_v21 = vadd.f32 %v1386_v49, %v1385_v56 }
 0x186   :  { %1489 = vmatpush1.bf16.msra.mxu0 %v4639_v40  ;;  %3497 = vmatpush3.bf16.msra.mxu1 %v4666_v43 }
 0x187   :  { %v1390_v44 = vpack.c.bf16 %v4946_v21, %v4946_v21  ;;  %1615 = vmatprep.subr.bf16.mxu0 %v4338_v52  ;;  %3502 = vmatprep.subr.bf16.mxu1 %v6014_v53  ;;  %v6016_v52 = vld [vmem:[#allocation5_spill] sm:$0xff] }
 0x189   :  { %3164 = vst [vmem:[%s5896_s7 + $0x1c] sm:$0xf] %v1390_v44  ;;  %1507 = vmatmul.mubr.bf16.vlgmr.msra.gmra.mrb[44].mxu0 %v1390_v44  ;;  %3499 = vmatmul.mubr.bf16.vlgmr.msra.gmra.mrb[28].mxu1 %v1390_v44  ;;  %v6035_v44 = vld [vmem:[#allocation24_spill] sm:$0xff] }
 0x18a   :  { %1616 = vmatpush1.bf16.msra.mxu0 %v4346_v54  ;;  %3503 = vmatpush3.bf16.msra.mxu1 %v4388_v62  ;;  %v6017_v54 = vld [vmem:[#allocation11_spill] sm:$0xff] }
 0x18b   :  { %1617 = vmatprep.subr.bf16.mxu0 %v4352_v55  ;;  %3504 = vmatprep.subr.bf16.mxu1 %v6014_v53  ;;  %v6018_v55 = vld [vmem:[#allocation6_spill] sm:$0xff]  ;;  %v6019_v62 = vld [vmem:[#allocation7_spill] sm:$0xff] }
 0x18c   :  { %1647 = vmatprep.mubr.bf16.mxu0 %v6015_v15  ;;  %3518 = vmatprep.mubr.msk.bf16.mxu1 %vm4135_vm0, %v6014_v53 }
 0x18e   :  { %1618 = vmatpush1.bf16.msra.mxu0 %v4361_v57  ;;  %3505 = vmatpush3.bf16.msra.mxu1 %v4411_v4  ;;  %v6022_v57 = vld [vmem:[#allocation9_spill] sm:$0xff]  ;;  %v6024_v4 = vld [vmem:[#allocation10_spill] sm:$0xff] }
 0x18f   :  { %1619 = vmatprep.subr.bf16.mxu0 %v4368_v58  ;;  %3506 = vmatprep.subr.bf16.mxu1 %v6014_v53  ;;  %v6023_v58 = vld [vmem:[#allocation17_spill] sm:$0xff] }
 0x192   :  { %1620 = vmatpush1.bf16.msra.mxu0 %v6016_v52  ;;  %3507 = vmatpush3.bf16.msra.mxu1 %v6017_v54 }
 0x193   :  { %1621 = vmatprep.subr.bf16.mxu0 %v6018_v55  ;;  %3508 = vmatprep.subr.bf16.mxu1 %v6014_v53 }
 0x196   :  { %1622 = vmatpush1.bf16.msra.mxu0 %v6019_v62  ;;  %3509 = vmatpush3.bf16.msra.mxu1 %v6020_v50 }
 0x197   :  { %1623 = vmatprep.subr.bf16.mxu0 %v6021_v51  ;;  %3510 = vmatprep.subr.bf16.mxu1 %v6014_v53 }
 0x19a   :  { %1624 = vmatpush1.bf16.msra.mxu0 %v6022_v57  ;;  %3511 = vmatpush3.bf16.msra.mxu1 %v6023_v58 }
 0x19b   :  { %1625 = vmatprep.subr.bf16.mxu0 %v6024_v4  ;;  %3512 = vmatprep.subr.bf16.mxu1 %v6014_v53 }
 0x19e   :  { %1626 = vmatpush1.bf16.msra.mxu0 %v6025_v24  ;;  %3513 = vmatpush3.bf16.msra.mxu1 %v6026_v10 }
 0x19f   :  { %1627 = vmatprep.subr.bf16.mxu0 %v6027_v14  ;;  %3514 = vmatprep.subr.bf16.mxu1 %v6014_v53 }
 0x1a2   :  { %1628 = vmatpush1.bf16.msra.mxu0 %v6028_v3  ;;  %3515 = vmatpush3.bf16.msra.mxu1 %v6029_v61 }
 0x1a3   :  { %1629 = vmatprep.subr.bf16.mxu0 %v6030_v2  ;;  %3516 = vmatprep.subr.bf16.mxu1 %v6014_v53 }
 0x1a6   :  { %1630 = vmatpush1.bf16.msra.mxu0 %v6031_v6  ;;  %3517 = vmatpush3.bf16.msra.mxu1 %v6032_v7 }
 0x1a7   :  { %1696 = vmatprep.subr.bf16.mxu0 %v6033_v11  ;;  %3522 = vmatprep.subr.bf16.mxu1 %v6014_v53  ;;  %v6036_v11 = vld [vmem:[#allocation31_spill] sm:$0xff] }
 0x23c   :  { %v1427_v63 = vpop.f32.mrb[40].mxu0  ;;  %v1468_v0 = vpop.f32.mrb[24].mxu1 }
 0x23d   :  { %v1428_v46 = vadd.f32 %v1427_v63, %v4872_v45  ;;  %v1429_v8 = vpop.f32.mrb[41].mxu0  ;;  %v3480_v9 = vpop.f32.mrb[25].mxu1  ;;  %v1469_v24 = vadd.f32 %v1468_v0, %v4884_v59 }
 0x23e   :  { %v1430_v12 = vadd.f32 %v1429_v8, %v4875_v16  ;;  %v1431_v48 = vpop.f32.mrb[42].mxu0  ;;  %v1471_v17 = vpop.f32.mrb[26].mxu1 }
 0x23f   :  { %v1567_v47 = vadd.f32 %v1428_v46, %v6034_v13  ;;  %v1432_v56 = vpop.f32.mrb[43].mxu0  ;;  %v3481_v49 = vpop.f32.mrb[27].mxu1  ;;  %v6037_v13 = vld [vmem:[#allocation63_spill] sm:$0xff] }
 0x240   :  { %v1574_v52 = vadd.f32 %v1430_v12, %v6035_v44  ;;  %v6038_v49 = vld [vmem:[#allocation64_spill] sm:$0xff] }
 0x241   :  { %v3165_v54 = vmul.f32 -1.442695, %v1567_v47 }
 0x242   :  { %v3166_v55 = vmul.f32 -1.442695, %v1574_v52 }
 0x243   :  { %3902 = vpow2.f32 %v3165_v54 }
 0x244   :  { %3904 = vpow2.f32 %v3166_v55 }
 0x24d   :  { %v3903_v62 = vpop.eup %3902 }
 0x24e   :  { %v1571_v51 = vadd.f32 1.0, %v3903_v62  ;;  %v3905_v57 = vpop.eup %3904 }
 0x24f   :  { %v1578_v4 = vadd.f32 1.0, %v3905_v57 }
 0x250   :  { %3906 = vrcp.f32 %v1571_v51 }
 0x251   :  { %3908 = vrcp.f32 %v1578_v4 }
 0x25a   :  { %v3907_v14 = vpop.eup %3906 }
 0x25b   :  { %v1581_v3 = vmul.f32 %v3907_v14, %v1469_v24  ;;  %v3909_v54 = vpop.eup %3908 }
 0x25c   :  { %v1508_v2 = vpop.f32.mrb[44].mxu0  ;;  %v1549_v6 = vpop.f32.mrb[28].mxu1  ;;  %v1584_v62 = vsub.f32 1.0, %v3909_v54  ;;  %v1586_v4 = vmul.f32 %v3909_v54, %v4902_v20  ;;  %v6049_v54 = vld [vmem:[#allocation26_spill] sm:$0xff] }
 0x25d   :  { %v1582_v63 = vadd.f32 %v1581_v3, %v6036_v11  ;;  %v1509_v46 = vadd.f32 %v1508_v2, %v4891_v5  ;;  %v1510_v8 = vpop.f32.mrb[45].mxu0  ;;  %v3500_v9 = vpop.f32.mrb[29].mxu1 }
 0x25e   :  { %v1511_v12 = vadd.f32 %v1510_v8, %v4894_v60  ;;  %v1512_v48 = vpop.f32.mrb[46].mxu0  ;;  %v1552_v17 = vpop.f32.mrb[30].mxu1  ;;  %v5179_v8 = vld [vmem:[%s5892_s3 + $0xa8] ss:$12 sps:$4 sm:$0xff]  }
 0x25f   :  { %3910 = vtanh.f32 %v1582_v63  ;;  %v1588_v47 = vadd.f32 %v1509_v46, %v6037_v13  ;;  %v1513_v56 = vpop.f32.mrb[47].mxu0  ;;  %v3501_v0 = vpop.f32.mrb[31].mxu1  ;;  %v5151_v63 = vld [vmem:[%s5892_s3 + $0x78] ss:$12 sps:$4 sm:$0xff]   ;;  %v5165_v46 = vld [vmem:[%s5892_s3 + $0x90] ss:$12 sps:$4 sm:$0xff]  }
 0x260   :  { %v1595_v44 = vadd.f32 %v1511_v12, %v6038_v49  ;;  %6042 = vst [vmem:[#allocation6_spill] sm:$0xff] %v5151_v63  ;;  %6044 = vst [vmem:[#allocation14_spill] sm:$0xff] %v5165_v46 }
 0x261   :  { %v3167_v52 = vmul.f32 -1.442695, %v1588_v47  ;;  %6046 = vst [vmem:[#allocation9_spill] sm:$0xff] %v5179_v8 }
 0x262   :  { %v3168_v55 = vmul.f32 -1.442695, %v1595_v44 }
 0x263   :  { %3912 = vpow2.f32 %v3167_v52 }
 0x264   :  { %3914 = vpow2.f32 %v3168_v55 }
 0x269   :  { %v3911_v51 = vpop.eup %3910 }
 0x26a   :  { %v1585_v57 = vmul.f32 %v3911_v51, %v1584_v62 }
 0x26c   :  { %v5003_v24 = vadd.f32 %v1586_v4, %v1585_v57 }
 0x26d   :  { %v3913_v14 = vpop.eup %3912 }
 0x26e   :  { %v1592_v3 = vadd.f32 1.0, %v3913_v14  ;;  %v1609_v2 = vpack.c.bf16 %v5003_v24, %v5003_v24  ;;  %v3915_v20 = vpop.eup %3914 }
 0x270   :  { %3916 = vrcp.f32 %v1592_v3  ;;  %3169 = vst [vmem:[%s5895_s6 + $0x4] sm:$0xf] %v1609_v2  ;;  %1648 = vmatmul.mubr.bf16.vlgmr.msra.gmra.mrb[48].mxu0 %v1609_v2  ;;  %3519 = vmatmul.mubr.bf16.vlgmr.msra.gmra.mrb[32].mxu1 %v1609_v2 }
 0x271   :  { %1697 = vmatpush1.bf16.msra.mxu0 %v4501_v18  ;;  %3523 = vmatpush3.bf16.msra.mxu1 %v4553_v27  ;;  %v1599_v18 = vadd.f32 1.0, %v3915_v20  ;;  %v1550_v27 = vadd.f32 %v1549_v6, %v4914_v1  ;;  %v5137_v6 = vld [vmem:[%s5892_s3 + $0x60] ss:$12 sps:$4 sm:$0xff]  }
 0x272   :  { %1698 = vmatprep.subr.bf16.mxu0 %v4507_v19  ;;  %3524 = vmatprep.subr.bf16.mxu1 %v6014_v53  ;;  %6040 = vst [vmem:[#allocation5_spill] sm:$0xff] %v5137_v6 }
 0x273   :  { %1728 = vmatprep.mubr.bf16.mxu0 %v6015_v15  ;;  %3538 = vmatprep.mubr.msk.bf16.mxu1 %vm4135_vm0, %v6014_v53  ;;  %3918 = vrcp.f32 %v1599_v18 }
 0x275   :  { %1699 = vmatpush1.bf16.msra.mxu0 %v4521_v22  ;;  %3525 = vmatpush3.bf16.msra.mxu1 %v4573_v30  ;;  %v6039_v22 = vld [vmem:[#allocation59_spill] sm:$0xff] }
 0x276   :  { %1700 = vmatprep.subr.bf16.mxu0 %v4528_v23  ;;  %3526 = vmatprep.subr.bf16.mxu1 %v6014_v53 }
 0x279   :  { %1701 = vmatpush1.bf16.msra.mxu0 %v4541_v25  ;;  %3527 = vmatpush3.bf16.msra.mxu1 %v4594_v33  ;;  %v5053_v33 = vld [vmem:[%s5892_s3 + $0x4] ss:$12 sps:$4 sm:$0xff]  }
 0x27a   :  { %v3917_v19 = vpop.eup %3916  ;;  %1702 = vmatprep.subr.bf16.mxu0 %v4547_v26  ;;  %3528 = vmatprep.subr.bf16.mxu1 %v6014_v53 }
 0x27b   :  { %v1602_v11 = vmul.f32 %v3917_v19, %v1550_v27 }
 0x27d   :  { %v1603_v30 = vadd.f32 %v1602_v11, %v6039_v22  ;;  %1703 = vmatpush1.bf16.msra.mxu0 %v4560_v28  ;;  %3529 = vmatpush3.bf16.msra.mxu1 %v4613_v36  ;;  %v3919_v23 = vpop.eup %3918  ;;  %v5075_v36 = vld [vmem:[%s5892_s3 + $0x1c] ss:$12 sps:$4 sm:$0xff]  }
 0x27e   :  { %1704 = vmatprep.subr.bf16.mxu0 %v4566_v29  ;;  %3530 = vmatprep.subr.bf16.mxu1 %v6014_v53  ;;  %v1605_v25 = vsub.f32 1.0, %v3919_v23  ;;  %v1607_v29 = vmul.f32 %v3919_v23, %v4946_v21  ;;  %v5130_v21 = vld [vmem:[%s5892_s3 + $0x64] ss:$12 sps:$4 sm:$0xff]   ;;  %v6050_v11 = vld [vmem:[#allocation28_spill] sm:$0xff] }
 0x27f   :  { %3920 = vtanh.f32 %v1603_v30 }
 0x281   :  { %1705 = vmatpush1.bf16.msra.mxu0 %v4582_v31  ;;  %3531 = vmatpush3.bf16.msra.mxu1 %v4632_v39  ;;  %v5097_v39 = vld [vmem:[%s5892_s3 + $0x34] ss:$12 sps:$4 sm:$0xff]  }
 0x282   :  { %1706 = vmatprep.subr.bf16.mxu0 %v4588_v32  ;;  %3532 = vmatprep.subr.bf16.mxu1 %v6014_v53 }
 0x285   :  { %1707 = vmatpush1.bf16.msra.mxu0 %v4601_v34  ;;  %3533 = vmatpush3.bf16.msra.mxu1 %v4646_v41  ;;  %v5063_v34 = vld [vmem:[%s5892_s3] ss:$12 sps:$4 sm:$0xff]   ;;  %v5110_v41 = vld [vmem:[%s5892_s3 + $0x38] ss:$12 sps:$4 sm:$0xff]  }
 0x286   :  { %1708 = vmatprep.subr.bf16.mxu0 %v4607_v35  ;;  %3534 = vmatprep.subr.bf16.mxu1 %v6014_v53  ;;  %v5069_v35 = vld [vmem:[%s5892_s3 + $0x8] ss:$12 sps:$4 sm:$0xff]  }
 0x289   :  { %v3921_v26 = vpop.eup %3920  ;;  %1709 = vmatpush1.bf16.msra.mxu0 %v4620_v37  ;;  %3535 = vmatpush3.bf16.msra.mxu1 %v4655_v42  ;;  %v5085_v37 = vld [vmem:[%s5892_s3 + $0x18] ss:$12 sps:$4 sm:$0xff]  }
 0x28a   :  { %1710 = vmatprep.subr.bf16.mxu0 %v4626_v38  ;;  %3536 = vmatprep.subr.bf16.mxu1 %v6014_v53  ;;  %v1606_v28 = vmul.f32 %v3921_v26, %v1605_v25  ;;  %v5091_v38 = vld [vmem:[%s5892_s3 + $0x20] ss:$12 sps:$4 sm:$0xff]  }
 0x28b   :  { %v5116_v42 = vld [vmem:[%s5892_s3 + $0x4c] ss:$12 sps:$4 sm:$0xff]  }
 0x28c   :  { %v5044_v31 = vadd.f32 %v1607_v29, %v1606_v28 }
 0x28d   :  { %1711 = vmatpush1.bf16.msra.mxu0 %v4639_v40  ;;  %3537 = vmatpush3.bf16.msra.mxu1 %v4666_v43  ;;  %v5104_v40 = vld [vmem:[%s5892_s3 + $0x30] ss:$12 sps:$4 sm:$0xff]   ;;  %v5123_v43 = vld [vmem:[%s5892_s3 + $0x48] ss:$12 sps:$4 sm:$0xff]  }
 0x28e   :  { %v1612_v32 = vpack.c.bf16 %v5044_v31, %v5044_v31  ;;  %1837 = vmatprep.subr.bf16.mxu0 %v5053_v33  ;;  %3542 = vmatprep.subr.bf16.mxu1 %v6014_v53 }
 0x290   :  { %3170 = vst [vmem:[%s5896_s7 + $0x18] sm:$0xf] %v1612_v32  ;;  %1729 = vmatmul.mubr.bf16.vlgmr.msra.gmra.mrb[52].mxu0 %v1612_v32  ;;  %3539 = vmatmul.mubr.bf16.vlgmr.msra.gmra.mrb[36].mxu1 %v1612_v32  ;;  %v6051_v32 = vld [vmem:[#allocation58_spill] sm:$0xff] }
 0x291   :  { %1838 = vmatpush1.bf16.msra.mxu0 %v5063_v34  ;;  %3543 = vmatpush3.bf16.msra.mxu1 %v5069_v35 }
 0x292   :  { %1839 = vmatprep.subr.bf16.mxu0 %v5075_v36  ;;  %3544 = vmatprep.subr.bf16.mxu1 %v6014_v53 }
 0x293   :  { %1869 = vmatprep.mubr.bf16.mxu0 %v6015_v15  ;;  %3558 = vmatprep.mubr.msk.bf16.mxu1 %vm4135_vm0, %v6014_v53 }
 0x295   :  { %1840 = vmatpush1.bf16.msra.mxu0 %v5085_v37  ;;  %3545 = vmatpush3.bf16.msra.mxu1 %v5091_v38 }
 0x296   :  { %1841 = vmatprep.subr.bf16.mxu0 %v5097_v39  ;;  %3546 = vmatprep.subr.bf16.mxu1 %v6014_v53 }
 0x299   :  { %1842 = vmatpush1.bf16.msra.mxu0 %v5104_v40  ;;  %3547 = vmatpush3.bf16.msra.mxu1 %v5110_v41 }
 0x29a   :  { %1843 = vmatprep.subr.bf16.mxu0 %v5116_v42  ;;  %3548 = vmatprep.subr.bf16.mxu1 %v6014_v53 }
 0x29d   :  { %1844 = vmatpush1.bf16.msra.mxu0 %v5123_v43  ;;  %3549 = vmatpush3.bf16.msra.mxu1 %v6020_v50  ;;  %v5144_v50 = vld [vmem:[%s5892_s3 + $0x7c] ss:$12 sps:$4 sm:$0xff]  }
 0x29e   :  { %1845 = vmatprep.subr.bf16.mxu0 %v5130_v21  ;;  %3550 = vmatprep.subr.bf16.mxu1 %v6014_v53  ;;  %6041 = vst [vmem:[#allocation11_spill] sm:$0xff] %v5144_v50 }
 0x2a1   :  { %1846 = vmatpush1.bf16.msra.mxu0 %v5137_v6  ;;  %3551 = vmatpush3.bf16.msra.mxu1 %v6023_v58  ;;  %v5158_v58 = vld [vmem:[%s5892_s3 + $0x94] ss:$12 sps:$4 sm:$0xff]  }
 0x2a2   :  { %1847 = vmatprep.subr.bf16.mxu0 %v5144_v50  ;;  %3552 = vmatprep.subr.bf16.mxu1 %v6014_v53  ;;  %6043 = vst [vmem:[#allocation7_spill] sm:$0xff] %v5158_v58 }
 0x2a5   :  { %1848 = vmatpush1.bf16.msra.mxu0 %v5151_v63  ;;  %3553 = vmatpush3.bf16.msra.mxu1 %v6026_v10  ;;  %v5172_v10 = vld [vmem:[%s5892_s3 + $0xac] ss:$12 sps:$4 sm:$0xff]  }
 0x2a6   :  { %1849 = vmatprep.subr.bf16.mxu0 %v5158_v58  ;;  %3554 = vmatprep.subr.bf16.mxu1 %v6014_v53  ;;  %6045 = vst [vmem:[#allocation8_spill] sm:$0xff] %v5172_v10 }
 0x2a9   :  { %1850 = vmatpush1.bf16.msra.mxu0 %v5165_v46  ;;  %3555 = vmatpush3.bf16.msra.mxu1 %v6029_v61  ;;  %v5186_v61 = vld [vmem:[%s5892_s3 + $0xc4] ss:$12 sps:$4 sm:$0xff]  }
 0x2aa   :  { %1851 = vmatprep.subr.bf16.mxu0 %v5172_v10  ;;  %3556 = vmatprep.subr.bf16.mxu1 %v6014_v53  ;;  %6047 = vst [vmem:[#allocation17_spill] sm:$0xff] %v5186_v61 }
 0x2ad   :  { %1852 = vmatpush1.bf16.msra.mxu0 %v5179_v8  ;;  %3557 = vmatpush3.bf16.msra.mxu1 %v6032_v7  ;;  %v6048_v7 = vld [vmem:[#allocation25_spill] sm:$0xff] }
 0x2ae   :  { %1918 = vmatprep.subr.bf16.mxu0 %v5186_v61  ;;  %3562 = vmatprep.subr.bf16.mxu1 %v6014_v53 }
 0x343   :  { %v1649_v9 = vpop.f32.mrb[48].mxu0  ;;  %v1690_v12 = vpop.f32.mrb[32].mxu1 }
 0x344   :  { %v1650_v48 = vadd.f32 %v1649_v9, %v4872_v45  ;;  %v1651_v17 = vpop.f32.mrb[49].mxu0  ;;  %v3520_v13 = vpop.f32.mrb[33].mxu1  ;;  %v1691_v2 = vadd.f32 %v1690_v12, %v4884_v59 }
 0x345   :  { %v1652_v47 = vadd.f32 %v1651_v17, %v4875_v16  ;;  %v1653_v56 = vpop.f32.mrb[50].mxu0  ;;  %v1693_v0 = vpop.f32.mrb[34].mxu1  ;;  %v6052_v17 = vld [vmem:[#allocation60_spill] sm:$0xff] }
 0x346   :  { %v1789_v49 = vadd.f32 %v1650_v48, %v6048_v7  ;;  %v1654_v44 = vpop.f32.mrb[51].mxu0  ;;  %v3521_v52 = vpop.f32.mrb[35].mxu1 }
 0x347   :  { %v1796_v55 = vadd.f32 %v1652_v47, %v6049_v54 }
 0x348   :  { %v3171_v62 = vmul.f32 -1.442695, %v1789_v49 }
 0x349   :  { %v3172_v51 = vmul.f32 -1.442695, %v1796_v55 }
 0x34a   :  { %3922 = vpow2.f32 %v3171_v62 }
 0x34b   :  { %3924 = vpow2.f32 %v3172_v51 }
 0x354   :  { %v3923_v57 = vpop.eup %3922 }
 0x355   :  { %v1793_v4 = vadd.f32 1.0, %v3923_v57  ;;  %v3925_v14 = vpop.eup %3924  ;;  %v5211_v57 = vld [vmem:[%s5892_s3 + $0xc0] ss:$12 sps:$4 sm:$0xff]  }
 0x356   :  { %v1800_v3 = vadd.f32 1.0, %v3925_v14 }
 0x357   :  { %3926 = vrcp.f32 %v1793_v4  ;;  %v5223_v4 = vld [vmem:[%s5892_s3 + $0xdc] ss:$12 sps:$4 sm:$0xff]  }
 0x358   :  { %3928 = vrcp.f32 %v1800_v3  ;;  %v5233_v3 = vld [vmem:[%s5892_s3 + $0xd8] ss:$12 sps:$4 sm:$0xff]  }
 0x361   :  { %v3927_v20 = vpop.eup %3926 }
 0x362   :  { %v1803_v18 = vmul.f32 %v3927_v20, %v1691_v2  ;;  %v3929_v56 = vpop.eup %3928  ;;  %v5239_v2 = vld [vmem:[%s5892_s3 + $0xe0] ss:$12 sps:$4 sm:$0xff]  }
 0x363   :  { %v1730_v27 = vpop.f32.mrb[52].mxu0  ;;  %v1771_v19 = vpop.f32.mrb[36].mxu1  ;;  %v1806_v7 = vsub.f32 1.0, %v3929_v56  ;;  %v1808_v52 = vmul.f32 %v3929_v56, %v5003_v24  ;;  %v5217_v24 = vld [vmem:[%s5892_s3 + $0xc8] ss:$12 sps:$4 sm:$0xff]  }
 0x364   :  { %v1804_v22 = vadd.f32 %v1803_v18, %v6050_v11  ;;  %v1731_v30 = vadd.f32 %v1730_v27, %v4891_v5  ;;  %v1732_v23 = vpop.f32.mrb[53].mxu0  ;;  %v3540_v25 = vpop.f32.mrb[37].mxu1  ;;  %v5245_v20 = vld [vmem:[%s5892_s3 + $0xf4] ss:$12 sps:$4 sm:$0xff]   ;;  %v1772_v27 = vadd.f32 %v1771_v19, %v4914_v1  ;;  %v5253_v11 = vld [vmem:[%s5892_s3 + $0xf0] ss:$12 sps:$4 sm:$0xff]  }
 0x365   :  { %v1733_v26 = vadd.f32 %v1732_v23, %v4894_v60  ;;  %v1734_v28 = vpop.f32.mrb[54].mxu0  ;;  %v1774_v29 = vpop.f32.mrb[38].mxu1  ;;  %v5265_v23 = vld [vmem:[%s5892_s3 + $0x10c] ss:$12 sps:$4 sm:$0xff]   ;;  %v5323_v56 = vld [vmem:[%s5892_s3 + $0x154] ss:$12 sps:$4 sm:$0xff]  }
 0x366   :  { %3930 = vtanh.f32 %v1804_v22  ;;  %v1810_v9 = vadd.f32 %v1731_v30, %v6051_v32  ;;  %v1735_v48 = vpop.f32.mrb[55].mxu0  ;;  %v3541_v12 = vpop.f32.mrb[39].mxu1  ;;  %v5259_v22 = vld [vmem:[%s5892_s3 + $0xf8] ss:$12 sps:$4 sm:$0xff]   ;;  %v6053_v25 = vld [vmem:[#allocation62_spill] sm:$0xff] }
 0x367   :  { %v1817_v13 = vadd.f32 %v1733_v26, %v6052_v17  ;;  %v5273_v28 = vld [vmem:[%s5892_s3 + $0x108] ss:$12 sps:$4 sm:$0xff]   ;;  %v5279_v29 = vld [vmem:[%s5892_s3 + $0x110] ss:$12 sps:$4 sm:$0xff]  }
 0x368   :  { %v3173_v47 = vmul.f32 -1.442695, %v1810_v9  ;;  %v5285_v32 = vld [vmem:[%s5892_s3 + $0x124] ss:$12 sps:$4 sm:$0xff]   ;;  %v5292_v9 = vld [vmem:[%s5892_s3 + $0x120] ss:$12 sps:$4 sm:$0xff]  }
 0x369   :  { %v3174_v0 = vmul.f32 -1.442695, %v1817_v13  ;;  %v5298_v48 = vld [vmem:[%s5892_s3 + $0x128] ss:$12 sps:$4 sm:$0xff]   ;;  %v5311_v13 = vld [vmem:[%s5892_s3 + $0x138] ss:$12 sps:$4 sm:$0xff]  }
 0x36a   :  { %3932 = vpow2.f32 %v3173_v47  ;;  %v5304_v12 = vld [vmem:[%s5892_s3 + $0x13c] ss:$12 sps:$4 sm:$0xff]   ;;  %v5317_v47 = vld [vmem:[%s5892_s3 + $0x140] ss:$12 sps:$4 sm:$0xff]  }
 0x36b   :  { %3934 = vpow2.f32 %v3174_v0 }
 0x370   :  { %v3931_v49 = vpop.eup %3930 }
 0x371   :  { %v1807_v44 = vmul.f32 %v3931_v49, %v1806_v7  ;;  %v5330_v49 = vld [vmem:[%s5892_s3 + $0x150] ss:$12 sps:$4 sm:$0xff]  }
 0x373   :  { %v5201_v54 = vadd.f32 %v1808_v52, %v1807_v44  ;;  %v5336_v44 = vld [vmem:[%s5892_s3 + $0x158] ss:$12 sps:$4 sm:$0xff]  }
 0x374   :  { %v3933_v55 = vpop.eup %3932  ;;  %v5342_v52 = vld [vmem:[%s5892_s3 + $0x16c] ss:$12 sps:$4 sm:$0xff]  }
 0x375   :  { %v1814_v62 = vadd.f32 1.0, %v3933_v55  ;;  %v1831_v51 = vpack.c.bf16 %v5201_v54, %v5201_v54  ;;  %v3935_v14 = vpop.eup %3934 }
 0x376   :  { %v1821_v18 = vadd.f32 1.0, %v3935_v14  ;;  %v5352_v14 = vld [vmem:[%s5892_s3 + $0x168] ss:$12 sps:$4 sm:$0xff]  }
 0x377   :  { %3936 = vrcp.f32 %v1814_v62  ;;  %3175 = vst [vmem:[%s5895_s6 + $0x8] sm:$0xf] %v1831_v51  ;;  %1870 = vmatmul.mubr.bf16.vlgmr.msra.gmra.mrb[56].mxu0 %v1831_v51  ;;  %3559 = vmatmul.mubr.bf16.vlgmr.msra.gmra.mrb[40].mxu1 %v1831_v51 }
 0x378   :  { %1919 = vmatpush1.bf16.msra.mxu0 %v5211_v57  ;;  %3563 = vmatpush3.bf16.msra.mxu1 %v5217_v24  ;;  %3938 = vrcp.f32 %v1821_v18  ;;  %v5358_v18 = vld [vmem:[%s5892_s3 + $0x170] ss:$12 sps:$4 sm:$0xff]  }
 0x379   :  { %1920 = vmatprep.subr.bf16.mxu0 %v5223_v4  ;;  %3564 = vmatprep.subr.bf16.mxu1 %v6014_v53 }
 0x37a   :  { %1950 = vmatprep.mubr.bf16.mxu0 %v6015_v15  ;;  %3578 = vmatprep.mubr.msk.bf16.mxu1 %vm4135_vm0, %v6014_v53 }
 0x37c   :  { %1921 = vmatpush1.bf16.msra.mxu0 %v5233_v3  ;;  %3565 = vmatpush3.bf16.msra.mxu1 %v5239_v2 }
 0x37d   :  { %1922 = vmatprep.subr.bf16.mxu0 %v5245_v20  ;;  %3566 = vmatprep.subr.bf16.mxu1 %v6014_v53 }
 0x380   :  { %1923 = vmatpush1.bf16.msra.mxu0 %v5253_v11  ;;  %3567 = vmatpush3.bf16.msra.mxu1 %v5259_v22 }
 0x381   :  { %v3937_v30 = vpop.eup %3936  ;;  %1924 = vmatprep.subr.bf16.mxu0 %v5265_v23  ;;  %3568 = vmatprep.subr.bf16.mxu1 %v6014_v53 }
 0x382   :  { %v1824_v19 = vmul.f32 %v3937_v30, %v1772_v27  ;;  %v3939_v17 = vpop.eup %3938  ;;  %v5396_v30 = vld [vmem:[%s5892_s3 + $0x68] ss:$12 sps:$4 sm:$0xff]  }
 0x383   :  { %v1827_v0 = vsub.f32 1.0, %v3939_v17  ;;  %v1829_v62 = vmul.f32 %v3939_v17, %v5044_v31  ;;  %v5387_v31 = vld [vmem:[%s5892_s3 + $0x50] ss:$12 sps:$4 sm:$0xff]   ;;  %6054 = vst [vmem:[#allocation10_spill] sm:$0xff] %v5396_v30 }
 0x384   :  { %v1825_v26 = vadd.f32 %v1824_v19, %v6053_v25  ;;  %1925 = vmatpush1.bf16.msra.mxu0 %v5273_v28  ;;  %3569 = vmatpush3.bf16.msra.mxu1 %v5279_v29  ;;  %v5405_v19 = vld [vmem:[%s5892_s3 + $0x80] ss:$12 sps:$4 sm:$0xff]   ;;  %v5414_v25 = vld [vmem:[%s5892_s3 + $0x98] ss:$12 sps:$4 sm:$0xff]  }
 0x385   :  { %1926 = vmatprep.subr.bf16.mxu0 %v5285_v32  ;;  %3570 = vmatprep.subr.bf16.mxu1 %v6014_v53  ;;  %6055 = vst [vmem:[#allocation12_spill] sm:$0xff] %v5405_v19  ;;  %6056 = vst [vmem:[#allocation20_spill] sm:$0xff] %v5414_v25 }
 0x386   :  { %3940 = vtanh.f32 %v1825_v26  ;;  %v5423_v26 = vld [vmem:[%s5892_s3 + $0xb0] ss:$12 sps:$4 sm:$0xff]  }
 0x387   :  { %6057 = vst [vmem:[#allocation13_spill] sm:$0xff] %v5423_v26 }
 0x388   :  { %1927 = vmatpush1.bf16.msra.mxu0 %v5292_v9  ;;  %3571 = vmatpush3.bf16.msra.mxu1 %v5298_v48 }
 0x389   :  { %1928 = vmatprep.subr.bf16.mxu0 %v5304_v12  ;;  %3572 = vmatprep.subr.bf16.mxu1 %v6014_v53 }
 0x38c   :  { %1929 = vmatpush1.bf16.msra.mxu0 %v5311_v13  ;;  %3573 = vmatpush3.bf16.msra.mxu1 %v5317_v47 }
 0x38d   :  { %1930 = vmatprep.subr.bf16.mxu0 %v5323_v56  ;;  %3574 = vmatprep.subr.bf16.mxu1 %v6014_v53 }
 0x390   :  { %v3941_v7 = vpop.eup %3940  ;;  %1931 = vmatpush1.bf16.msra.mxu0 %v5330_v49  ;;  %3575 = vmatpush3.bf16.msra.mxu1 %v5336_v44 }
 0x391   :  { %1932 = vmatprep.subr.bf16.mxu0 %v5342_v52  ;;  %3576 = vmatprep.subr.bf16.mxu1 %v6014_v53  ;;  %v1828_v55 = vmul.f32 %v3941_v7, %v1827_v0 }
 0x393   :  { %v5347_v51 = vadd.f32 %v1829_v62, %v1828_v55 }
 0x394   :  { %1933 = vmatpush1.bf16.msra.mxu0 %v5352_v14  ;;  %3577 = vmatpush3.bf16.msra.mxu1 %v5358_v18 }
 0x395   :  { %v1834_v27 = vpack.c.bf16 %v5347_v51, %v5347_v51  ;;  %2059 = vmatprep.subr.bf16.mxu0 %v5053_v33  ;;  %3582 = vmatprep.subr.bf16.mxu1 %v6014_v53 }
 0x397   :  { %3176 = vst [vmem:[%s5896_s7 + $0x14] sm:$0xf] %v1834_v27  ;;  %1951 = vmatmul.mubr.bf16.vlgmr.msra.gmra.mrb[60].mxu0 %v1834_v27  ;;  %3579 = vmatmul.mubr.bf16.vlgmr.msra.gmra.mrb[44].mxu1 %v1834_v27 }
 0x398   :  { %2060 = vmatpush1.bf16.msra.mxu0 %v5063_v34  ;;  %3583 = vmatpush3.bf16.msra.mxu1 %v5069_v35 }
 0x399   :  { %2061 = vmatprep.subr.bf16.mxu0 %v5075_v36  ;;  %3584 = vmatprep.subr.bf16.mxu1 %v6014_v53 }
 0x39a   :  { %2091 = vmatprep.mubr.bf16.mxu0 %v6015_v15  ;;  %3598 = vmatprep.mubr.msk.bf16.mxu1 %vm4135_vm0, %v6014_v53 }
 0x39c   :  { %2062 = vmatpush1.bf16.msra.mxu0 %v5085_v37  ;;  %3585 = vmatpush3.bf16.msra.mxu1 %v5091_v38 }
 0x39d   :  { %2063 = vmatprep.subr.bf16.mxu0 %v5097_v39  ;;  %3586 = vmatprep.subr.bf16.mxu1 %v6014_v53 }
 0x3a0   :  { %2064 = vmatpush1.bf16.msra.mxu0 %v5104_v40  ;;  %3587 = vmatpush3.bf16.msra.mxu1 %v5110_v41 }
 0x3a1   :  { %2065 = vmatprep.subr.bf16.mxu0 %v5116_v42  ;;  %3588 = vmatprep.subr.bf16.mxu1 %v6014_v53 }
 0x3a4   :  { %2066 = vmatpush1.bf16.msra.mxu0 %v5123_v43  ;;  %3589 = vmatpush3.bf16.msra.mxu1 %v5387_v31 }
 0x3a5   :  { %2067 = vmatprep.subr.bf16.mxu0 %v5130_v21  ;;  %3590 = vmatprep.subr.bf16.mxu1 %v6014_v53 }
 0x3a8   :  { %2068 = vmatpush1.bf16.msra.mxu0 %v5137_v6  ;;  %3591 = vmatpush3.bf16.msra.mxu1 %v5396_v30 }
 0x3a9   :  { %2069 = vmatprep.subr.bf16.mxu0 %v5144_v50  ;;  %3592 = vmatprep.subr.bf16.mxu1 %v6014_v53 }
 0x3ac   :  { %2070 = vmatpush1.bf16.msra.mxu0 %v5151_v63  ;;  %3593 = vmatpush3.bf16.msra.mxu1 %v5405_v19  ;;  %v6059_v63 = vld [vmem:[#allocation29_spill] sm:$0xff] }
 0x3ad   :  { %2071 = vmatprep.subr.bf16.mxu0 %v5158_v58  ;;  %3594 = vmatprep.subr.bf16.mxu1 %v6014_v53 }
 0x3b0   :  { %2072 = vmatpush1.bf16.msra.mxu0 %v5165_v46  ;;  %3595 = vmatpush3.bf16.msra.mxu1 %v5414_v25  ;;  %v6058_v25 = vld [vmem:[#allocation27_spill] sm:$0xff] }
 0x3b1   :  { %2073 = vmatprep.subr.bf16.mxu0 %v5172_v10  ;;  %3596 = vmatprep.subr.bf16.mxu1 %v6014_v53 }
 0x3b4   :  { %2074 = vmatpush1.bf16.msra.mxu0 %v5179_v8  ;;  %3597 = vmatpush3.bf16.msra.mxu1 %v5423_v26 }
 0x3b5   :  { %2140 = vmatprep.subr.bf16.mxu0 %v5186_v61  ;;  %3602 = vmatprep.subr.bf16.mxu1 %v6014_v53 }
 0x44a   :  { %v1871_v17 = vpop.f32.mrb[56].mxu0  ;;  %v1912_v0 = vpop.f32.mrb[40].mxu1 }
 0x44b   :  { %v1872_v7 = vadd.f32 %v1871_v17, %v4872_v45  ;;  %v1873_v55 = vpop.f32.mrb[57].mxu0  ;;  %v3560_v62 = vpop.f32.mrb[41].mxu1 }
 0x44c   :  { %v1874_v27 = vadd.f32 %v1873_v55, %v4875_v16  ;;  %v1875_v8 = vpop.f32.mrb[58].mxu0  ;;  %v1915_v10 = vpop.f32.mrb[42].mxu1  ;;  %v1913_v62 = vadd.f32 %v1912_v0, %v4884_v59 }
 0x44d   :  { %v2011_v46 = vadd.f32 %v1872_v7, %v6058_v25  ;;  %v1876_v58 = vpop.f32.mrb[59].mxu0  ;;  %v3561_v19 = vpop.f32.mrb[43].mxu1 }
 0x44e   :  { %v2018_v26 = vadd.f32 %v1874_v27, %v6059_v63  ;;  %v6060_v58 = vld [vmem:[#allocation30_spill] sm:$0xff] }
 0x44f   :  { %v3177_v50 = vmul.f32 -1.442695, %v2011_v46 }
 0x450   :  { %v3178_v61 = vmul.f32 -1.442695, %v2018_v26 }
 0x451   :  { %3942 = vpow2.f32 %v3177_v50 }
 0x452   :  { %3944 = vpow2.f32 %v3178_v61 }
 0x45b   :  { %v3943_v30 = vpop.eup %3942 }
 0x45c   :  { %v2015_v6 = vadd.f32 1.0, %v3943_v30  ;;  %v3945_v17 = vpop.eup %3944 }
 0x45d   :  { %v2022_v45 = vadd.f32 1.0, %v3945_v17  ;;  %v6062_v17 = vld [vmem:[#allocation57_spill] sm:$0xff] }
 0x45e   :  { %3946 = vrcp.f32 %v2015_v6  ;;  %v6061_v6 = vld [vmem:[#allocation56_spill] sm:$0xff] }
 0x45f   :  { %3948 = vrcp.f32 %v2022_v45 }
 0x468   :  { %v3947_v55 = vpop.eup %3946 }
 0x469   :  { %v2025_v8 = vmul.f32 %v3947_v55, %v1913_v62  ;;  %v3949_v55 = vpop.eup %3948 }
 0x46a   :  { %v1952_v10 = vpop.f32.mrb[60].mxu0  ;;  %v1993_v25 = vpop.f32.mrb[44].mxu1 }
 0x46b   :  { %v2026_v19 = vadd.f32 %v2025_v8, %v6060_v58  ;;  %v1953_v63 = vadd.f32 %v1952_v10, %v4891_v5  ;;  %v1954_v46 = vpop.f32.mrb[61].mxu0  ;;  %v3580_v50 = vpop.f32.mrb[45].mxu1  ;;  %v2028_v8 = vsub.f32 1.0, %v3949_v55 }
 0x46c   :  { %v1955_v61 = vadd.f32 %v1954_v46, %v4894_v60  ;;  %v1956_v26 = vpop.f32.mrb[62].mxu0  ;;  %v1996_v30 = vpop.f32.mrb[46].mxu1  ;;  %v2030_v50 = vmul.f32 %v3949_v55, %v5201_v54 }
 0x46d   :  { %3950 = vtanh.f32 %v2026_v19  ;;  %v2032_v7 = vadd.f32 %v1953_v63, %v6061_v6  ;;  %v1957_v27 = vpop.f32.mrb[63].mxu0  ;;  %v3581_v0 = vpop.f32.mrb[47].mxu1 }
 0x46e   :  { %v2039_v62 = vadd.f32 %v1955_v61, %v6062_v17  ;;  %v1994_v61 = vadd.f32 %v1993_v25, %v4914_v1 }
 0x46f   :  { %v3179_v45 = vmul.f32 -1.442695, %v2032_v7  ;;  %v6063_v7 = vld [vmem:[#allocation61_spill] sm:$0xff] }
 0x470   :  { %v3180_v59 = vmul.f32 -1.442695, %v2039_v62 }
 0x471   :  { %3952 = vpow2.f32 %v3179_v45 }
 0x472   :  { %3954 = vpow2.f32 %v3180_v59 }
 0x477   :  { %v3951_v58 = vpop.eup %3950 }
 0x478   :  { %v2029_v10 = vmul.f32 %v3951_v58, %v2028_v8  ;;  %v6065_v58 = vld [vmem:[#allocation10_spill] sm:$0xff] }
 0x47a   :  { %v5439_v46 = vadd.f32 %v2030_v50, %v2029_v10  ;;  %v6066_v10 = vld [vmem:[#allocation11_spill] sm:$0xff]  ;;  %v6067_v50 = vld [vmem:[#allocation6_spill] sm:$0xff] }
 0x47b   :  { %v3953_v26 = vpop.eup %3952 }
 0x47c   :  { %v2036_v19 = vadd.f32 1.0, %v3953_v26  ;;  %v2053_v63 = vpack.c.bf16 %v5439_v46, %v5439_v46  ;;  %v3955_v59 = vpop.eup %3954  ;;  %v6068_v26 = vld [vmem:[#allocation12_spill] sm:$0xff] }
 0x47d   :  { %v2043_v54 = vadd.f32 1.0, %v3955_v59  ;;  %v6071_v59 = vld [vmem:[#allocation20_spill] sm:$0xff] }
 0x47e   :  { %3956 = vrcp.f32 %v2036_v19  ;;  %3181 = vst [vmem:[%s5895_s6 + $0xc] sm:$0xf] %v2053_v63  ;;  %2092 = vmatmul.mubr.bf16.vlgmr.msra.gmra.mrb[64].mxu0 %v2053_v63  ;;  %3599 = vmatmul.mubr.bf16.vlgmr.msra.gmra.mrb[48].mxu1 %v2053_v63  ;;  %v6069_v19 = vld [vmem:[#allocation7_spill] sm:$0xff]  ;;  %v6070_v63 = vld [vmem:[#allocation14_spill] sm:$0xff] }
 0x47f   :  { %2141 = vmatpush1.bf16.msra.mxu0 %v5211_v57  ;;  %3603 = vmatpush3.bf16.msra.mxu1 %v5217_v24  ;;  %3958 = vrcp.f32 %v2043_v54  ;;  %v6072_v54 = vld [vmem:[#allocation8_spill] sm:$0xff] }
 0x480   :  { %2142 = vmatprep.subr.bf16.mxu0 %v5223_v4  ;;  %3604 = vmatprep.subr.bf16.mxu1 %v6014_v53 }
 0x481   :  { %2172 = vmatprep.mubr.bf16.mxu0 %v6015_v15  ;;  %3618 = vmatprep.mubr.msk.bf16.mxu1 %vm4135_vm0, %v6014_v53 }
 0x483   :  { %2143 = vmatpush1.bf16.msra.mxu0 %v5233_v3  ;;  %3605 = vmatpush3.bf16.msra.mxu1 %v5239_v2 }
 0x484   :  { %2144 = vmatprep.subr.bf16.mxu0 %v5245_v20  ;;  %3606 = vmatprep.subr.bf16.mxu1 %v6014_v53 }
 0x487   :  { %2145 = vmatpush1.bf16.msra.mxu0 %v5253_v11  ;;  %3607 = vmatpush3.bf16.msra.mxu1 %v5259_v22 }
 0x488   :  { %v3957_v30 = vpop.eup %3956  ;;  %2146 = vmatprep.subr.bf16.mxu0 %v5265_v23  ;;  %3608 = vmatprep.subr.bf16.mxu1 %v6014_v53 }
 0x489   :  { %v2046_v6 = vmul.f32 %v3957_v30, %v1994_v61  ;;  %v3959_v25 = vpop.eup %3958  ;;  %v6073_v61 = vld [vmem:[#allocation9_spill] sm:$0xff] }
 0x48a   :  { %v2049_v0 = vsub.f32 1.0, %v3959_v25  ;;  %v2051_v45 = vmul.f32 %v3959_v25, %v5347_v51  ;;  %v6064_v51 = vld [vmem:[#allocation5_spill] sm:$0xff] }
 0x48b   :  { %v2047_v27 = vadd.f32 %v2046_v6, %v6063_v7  ;;  %2147 = vmatpush1.bf16.msra.mxu0 %v5273_v28  ;;  %3609 = vmatpush3.bf16.msra.mxu1 %v5279_v29  ;;  %v6074_v30 = vld [vmem:[#allocation13_spill] sm:$0xff] }
 0x48c   :  { %2148 = vmatprep.subr.bf16.mxu0 %v5285_v32  ;;  %3610 = vmatprep.subr.bf16.mxu1 %v6014_v53  ;;  %v6075_v6 = vld [vmem:[#allocation17_spill] sm:$0xff] }
 0x48d   :  { %3960 = vtanh.f32 %v2047_v27  ;;  %v6076_v25 = vld [vmem:[#allocation65_spill] sm:$0xff] }
 0x48f   :  { %2149 = vmatpush1.bf16.msra.mxu0 %v5292_v9  ;;  %3611 = vmatpush3.bf16.msra.mxu1 %v5298_v48 }
 0x490   :  { %2150 = vmatprep.subr.bf16.mxu0 %v5304_v12  ;;  %3612 = vmatprep.subr.bf16.mxu1 %v6014_v53 }
 0x493   :  { %2151 = vmatpush1.bf16.msra.mxu0 %v5311_v13  ;;  %3613 = vmatpush3.bf16.msra.mxu1 %v5317_v47 }
 0x494   :  { %2152 = vmatprep.subr.bf16.mxu0 %v5323_v56  ;;  %3614 = vmatprep.subr.bf16.mxu1 %v6014_v53 }
 0x497   :  { %v3961_v17 = vpop.eup %3960  ;;  %2153 = vmatpush1.bf16.msra.mxu0 %v5330_v49  ;;  %3615 = vmatpush3.bf16.msra.mxu1 %v5336_v44 }
 0x498   :  { %2154 = vmatprep.subr.bf16.mxu0 %v5342_v52  ;;  %3616 = vmatprep.subr.bf16.mxu1 %v6014_v53  ;;  %v2050_v62 = vmul.f32 %v3961_v17, %v2049_v0 }
 0x49a   :  { %v5480_v55 = vadd.f32 %v2051_v45, %v2050_v62 }
 0x49b   :  { %2155 = vmatpush1.bf16.msra.mxu0 %v5352_v14  ;;  %3617 = vmatpush3.bf16.msra.mxu1 %v5358_v18 }
 0x49c   :  { %v2056_v8 = vpack.c.bf16 %v5480_v55, %v5480_v55  ;;  %2279 = vmatprep.subr.bf16.mxu0 %v5053_v33  ;;  %3622 = vmatprep.subr.bf16.mxu1 %v6014_v53 }
 0x49e   :  { %3182 = vst [vmem:[%s5896_s7 + $0x10] sm:$0xf] %v2056_v8  ;;  %2173 = vmatmul.mubr.bf16.vlgmr.msra.gmra.mrb[68].mxu0 %v2056_v8  ;;  %3619 = vmatmul.mubr.bf16.vlgmr.msra.gmra.mrb[52].mxu1 %v2056_v8 }
 0x49f   :  { %2280 = vmatpush1.bf16.msra.mxu0 %v5063_v34  ;;  %3623 = vmatpush3.bf16.msra.mxu1 %v5069_v35 }
 0x4a0   :  { %2281 = vmatprep.subr.bf16.mxu0 %v5075_v36  ;;  %3624 = vmatprep.subr.bf16.mxu1 %v6014_v53 }
 0x4a1   :  { %2311 = vmatprep.mubr.bf16.mxu0 %v6015_v15  ;;  %3638 = vmatprep.mubr.msk.bf16.mxu1 %vm4135_vm0, %v6014_v53 }
 0x4a3   :  { %2282 = vmatpush1.bf16.msra.mxu0 %v5085_v37  ;;  %3625 = vmatpush3.bf16.msra.mxu1 %v5091_v38 }
 0x4a4   :  { %2283 = vmatprep.subr.bf16.mxu0 %v5097_v39  ;;  %3626 = vmatprep.subr.bf16.mxu1 %v6014_v53 }
 0x4a7   :  { %2284 = vmatpush1.bf16.msra.mxu0 %v5104_v40  ;;  %3627 = vmatpush3.bf16.msra.mxu1 %v5110_v41 }
 0x4a8   :  { %2285 = vmatprep.subr.bf16.mxu0 %v5116_v42  ;;  %3628 = vmatprep.subr.bf16.mxu1 %v6014_v53 }
 0x4ab   :  { %2286 = vmatpush1.bf16.msra.mxu0 %v5123_v43  ;;  %3629 = vmatpush3.bf16.msra.mxu1 %v5387_v31 }
 0x4ac   :  { %2287 = vmatprep.subr.bf16.mxu0 %v5130_v21  ;;  %3630 = vmatprep.subr.bf16.mxu1 %v6014_v53 }
 0x4af   :  { %2288 = vmatpush1.bf16.msra.mxu0 %v6064_v51  ;;  %3631 = vmatpush3.bf16.msra.mxu1 %v6065_v58 }
 0x4b0   :  { %2289 = vmatprep.subr.bf16.mxu0 %v6066_v10  ;;  %3632 = vmatprep.subr.bf16.mxu1 %v6014_v53 }
 0x4b3   :  { %2290 = vmatpush1.bf16.msra.mxu0 %v6067_v50  ;;  %3633 = vmatpush3.bf16.msra.mxu1 %v6068_v26  ;;  %v6078_v26 = vld [vmem:[#allocation33_spill] sm:$0xff] }
 0x4b4   :  { %2291 = vmatprep.subr.bf16.mxu0 %v6069_v19  ;;  %3634 = vmatprep.subr.bf16.mxu1 %v6014_v53 }
 0x4b7   :  { %2292 = vmatpush1.bf16.msra.mxu0 %v6070_v63  ;;  %3635 = vmatpush3.bf16.msra.mxu1 %v6071_v59  ;;  %v6077_v59 = vld [vmem:[#allocation32_spill] sm:$0xff] }
 0x4b8   :  { %2293 = vmatprep.subr.bf16.mxu0 %v6072_v54  ;;  %3636 = vmatprep.subr.bf16.mxu1 %v6014_v53 }
 0x4bb   :  { %2294 = vmatpush1.bf16.msra.mxu0 %v6073_v61  ;;  %3637 = vmatpush3.bf16.msra.mxu1 %v6074_v30 }
 0x4bc   :  { %2360 = vmatprep.subr.bf16.mxu0 %v6075_v6  ;;  %3642 = vmatprep.subr.bf16.mxu1 %v6014_v53 }
 0x551   :  { %v2093_v7 = vpop.f32.mrb[64].mxu0  ;;  %v2134_v27 = vpop.f32.mrb[48].mxu1 }
 0x552   :  { %v2094_v0 = vadd.f32 %v2093_v7, %v6076_v25  ;;  %v2095_v17 = vpop.f32.mrb[65].mxu0  ;;  %v3600_v62 = vpop.f32.mrb[49].mxu1 }
 0x553   :  { %v2096_v45 = vadd.f32 %v2095_v17, %v4875_v16  ;;  %v2097_v8 = vpop.f32.mrb[66].mxu0  ;;  %v2137_v54 = vpop.f32.mrb[50].mxu1  ;;  %v6079_v62 = vld [vmem:[#allocation66_spill] sm:$0xff] }
 0x554   :  { %v2231_v63 = vadd.f32 %v2094_v0, %v6077_v59  ;;  %v2098_v19 = vpop.f32.mrb[67].mxu0  ;;  %v3601_v61 = vpop.f32.mrb[51].mxu1  ;;  %v2135_v51 = vadd.f32 %v2134_v27, %v6079_v62 }
 0x555   :  { %v2238_v30 = vadd.f32 %v2096_v45, %v6078_v26  ;;  %v6080_v19 = vld [vmem:[#allocation37_spill] sm:$0xff] }
 0x556   :  { %v3183_v50 = vmul.f32 -1.442695, %v2231_v63 }
 0x557   :  { %v3184_v6 = vmul.f32 -1.442695, %v2238_v30 }
 0x558   :  { %3962 = vpow2.f32 %v3183_v50 }
 0x559   :  { %3964 = vpow2.f32 %v3184_v6 }
 0x562   :  { %v3963_v10 = vpop.eup %3962 }
 0x563   :  { %v2235_v58 = vadd.f32 1.0, %v3963_v10  ;;  %v3965_v7 = vpop.eup %3964 }
 0x564   :  { %v2242_v25 = vadd.f32 1.0, %v3965_v7  ;;  %v6082_v7 = vld [vmem:[#allocation52_spill] sm:$0xff] }
 0x565   :  { %3966 = vrcp.f32 %v2235_v58  ;;  %v6081_v58 = vld [vmem:[#allocation50_spill] sm:$0xff] }
 0x566   :  { %3968 = vrcp.f32 %v2242_v25 }
 0x56f   :  { %v3967_v17 = vpop.eup %3966 }
 0x570   :  { %v2245_v8 = vmul.f32 %v3967_v17, %v2135_v51  ;;  %v3969_v17 = vpop.eup %3968 }
 0x571   :  { %v2174_v54 = vpop.f32.mrb[68].mxu0  ;;  %v2215_v59 = vpop.f32.mrb[52].mxu1 }
 0x572   :  { %v2246_v61 = vadd.f32 %v2245_v8, %v6080_v19  ;;  %v2175_v26 = vadd.f32 %v2174_v54, %v4891_v5  ;;  %v2176_v63 = vpop.f32.mrb[69].mxu0  ;;  %v3620_v50 = vpop.f32.mrb[53].mxu1  ;;  %v2248_v8 = vsub.f32 1.0, %v3969_v17 }
 0x573   :  { %v2177_v30 = vadd.f32 %v2176_v63, %v4894_v60  ;;  %v2178_v6 = vpop.f32.mrb[70].mxu0  ;;  %v2218_v10 = vpop.f32.mrb[54].mxu1  ;;  %v2250_v50 = vmul.f32 %v3969_v17, %v5439_v46 }
 0x574   :  { %3970 = vtanh.f32 %v2246_v61  ;;  %v2252_v0 = vadd.f32 %v2175_v26, %v6081_v58  ;;  %v2179_v45 = vpop.f32.mrb[71].mxu0  ;;  %v3621_v27 = vpop.f32.mrb[55].mxu1 }
 0x575   :  { %v2259_v51 = vadd.f32 %v2177_v30, %v6082_v7  ;;  %v2216_v30 = vadd.f32 %v2215_v59, %v4914_v1 }
 0x576   :  { %v3185_v25 = vmul.f32 -1.442695, %v2252_v0  ;;  %v6083_v0 = vld [vmem:[#allocation54_spill] sm:$0xff] }
 0x577   :  { %v3186_v62 = vmul.f32 -1.442695, %v2259_v51 }
 0x578   :  { %3972 = vpow2.f32 %v3185_v25 }
 0x579   :  { %3974 = vpow2.f32 %v3186_v62 }
 0x57e   :  { %v3971_v19 = vpop.eup %3970 }
 0x57f   :  { %v2249_v54 = vmul.f32 %v3971_v19, %v2248_v8 }
 0x581   :  { %v5537_v63 = vadd.f32 %v2250_v50, %v2249_v54  ;;  %v6096_v54 = vld [vmem:[#allocation65_spill] sm:$0xff] }
 0x582   :  { %v3973_v6 = vpop.eup %3972 }
 0x583   :  { %v2256_v61 = vadd.f32 1.0, %v3973_v6  ;;  %v2273_v26 = vpack.c.bf16 %v5537_v63, %v5537_v63  ;;  %v3975_v46 = vpop.eup %3974 }
 0x584   :  { %v2263_v62 = vadd.f32 1.0, %v3975_v46 }
 0x585   :  { %3976 = vrcp.f32 %v2256_v61  ;;  %3187 = vst [vmem:[%s5895_s6 + $0x10] sm:$0xf] %v2273_v26  ;;  %2312 = vmatmul.mubr.bf16.vlgmr.msra.gmra.mrb[72].mxu0 %v2273_v26  ;;  %3639 = vmatmul.mubr.bf16.vlgmr.msra.gmra.mrb[56].mxu1 %v2273_v26 }
 0x586   :  { %2361 = vmatpush1.bf16.msra.mxu0 %v5211_v57  ;;  %3643 = vmatpush3.bf16.msra.mxu1 %v5217_v24  ;;  %3978 = vrcp.f32 %v2263_v62 }
 0x587   :  { %2362 = vmatprep.subr.bf16.mxu0 %v5223_v4  ;;  %3644 = vmatprep.subr.bf16.mxu1 %v6014_v53 }
 0x588   :  { %2392 = vmatprep.mubr.bf16.mxu0 %v6015_v15  ;;  %3658 = vmatprep.mubr.msk.bf16.mxu1 %vm4135_vm0, %v6014_v53 }
 0x58a   :  { %2363 = vmatpush1.bf16.msra.mxu0 %v5233_v3  ;;  %3645 = vmatpush3.bf16.msra.mxu1 %v5239_v2 }
 0x58b   :  { %2364 = vmatprep.subr.bf16.mxu0 %v5245_v20  ;;  %3646 = vmatprep.subr.bf16.mxu1 %v6014_v53 }
 0x58e   :  { %2365 = vmatpush1.bf16.msra.mxu0 %v5253_v11  ;;  %3647 = vmatpush3.bf16.msra.mxu1 %v5259_v22 }
 0x58f   :  { %v3977_v10 = vpop.eup %3976  ;;  %2366 = vmatprep.subr.bf16.mxu0 %v5265_v23  ;;  %3648 = vmatprep.subr.bf16.mxu1 %v6014_v53 }
 0x590   :  { %v2266_v58 = vmul.f32 %v3977_v10, %v2216_v30  ;;  %v3979_v59 = vpop.eup %3978  ;;  %v6097_v30 = vld [vmem:[#allocation34_spill] sm:$0xff] }
 0x591   :  { %v2269_v27 = vsub.f32 1.0, %v3979_v59  ;;  %v2271_v25 = vmul.f32 %v3979_v59, %v5480_v55 }
 0x592   :  { %v2267_v45 = vadd.f32 %v2266_v58, %v6083_v0  ;;  %2367 = vmatpush1.bf16.msra.mxu0 %v5273_v28  ;;  %3649 = vmatpush3.bf16.msra.mxu1 %v5279_v29 }
 0x593   :  { %2368 = vmatprep.subr.bf16.mxu0 %v5285_v32  ;;  %3650 = vmatprep.subr.bf16.mxu1 %v6014_v53 }
 0x594   :  { %3980 = vtanh.f32 %v2267_v45  ;;  %v6098_v45 = vld [vmem:[#allocation36_spill] sm:$0xff] }
 0x596   :  { %2369 = vmatpush1.bf16.msra.mxu0 %v5292_v9  ;;  %3651 = vmatpush3.bf16.msra.mxu1 %v5298_v48 }
 0x597   :  { %2370 = vmatprep.subr.bf16.mxu0 %v5304_v12  ;;  %3652 = vmatprep.subr.bf16.mxu1 %v6014_v53 }
 0x59a   :  { %2371 = vmatpush1.bf16.msra.mxu0 %v5311_v13  ;;  %3653 = vmatpush3.bf16.msra.mxu1 %v5317_v47 }
 0x59b   :  { %2372 = vmatprep.subr.bf16.mxu0 %v5323_v56  ;;  %3654 = vmatprep.subr.bf16.mxu1 %v6014_v53 }
 0x59e   :  { %v3981_v7 = vpop.eup %3980  ;;  %2373 = vmatpush1.bf16.msra.mxu0 %v5330_v49  ;;  %3655 = vmatpush3.bf16.msra.mxu1 %v5336_v44 }
 0x59f   :  { %2374 = vmatprep.subr.bf16.mxu0 %v5342_v52  ;;  %3656 = vmatprep.subr.bf16.mxu1 %v6014_v53  ;;  %v2270_v51 = vmul.f32 %v3981_v7, %v2269_v27 }
 0x5a1   :  { %v5578_v17 = vadd.f32 %v2271_v25, %v2270_v51 }
 0x5a2   :  { %2375 = vmatpush1.bf16.msra.mxu0 %v5352_v14  ;;  %3657 = vmatpush3.bf16.msra.mxu1 %v5358_v18 }
 0x5a3   :  { %v2276_v8 = vpack.c.bf16 %v5578_v17, %v5578_v17  ;;  %2499 = vmatprep.subr.bf16.mxu0 %v5053_v33  ;;  %3662 = vmatprep.subr.bf16.mxu1 %v6014_v53  ;;  %v6084_v33 = vld [vmem:[#allocation5_spill] sm:$0xff] }
 0x5a5   :  { %3188 = vst [vmem:[%s5896_s7 + $0xc] sm:$0xf] %v2276_v8  ;;  %2393 = vmatmul.mubr.bf16.vlgmr.msra.gmra.mrb[76].mxu0 %v2276_v8  ;;  %3659 = vmatmul.mubr.bf16.vlgmr.msra.gmra.mrb[60].mxu1 %v2276_v8 }
 0x5a6   :  { %2500 = vmatpush1.bf16.msra.mxu0 %v5063_v34  ;;  %3663 = vmatpush3.bf16.msra.mxu1 %v5069_v35  ;;  %v6085_v34 = vld [vmem:[#allocation10_spill] sm:$0xff]  ;;  %v6086_v35 = vld [vmem:[#allocation11_spill] sm:$0xff] }
 0x5a7   :  { %2501 = vmatprep.subr.bf16.mxu0 %v5075_v36  ;;  %3664 = vmatprep.subr.bf16.mxu1 %v6014_v53  ;;  %v6087_v36 = vld [vmem:[#allocation6_spill] sm:$0xff] }
 0x5a8   :  { %2531 = vmatprep.mubr.bf16.mxu0 %v6015_v15  ;;  %3678 = vmatprep.mubr.msk.bf16.mxu1 %vm4135_vm0, %v6014_v53 }
 0x5aa   :  { %2502 = vmatpush1.bf16.msra.mxu0 %v5085_v37  ;;  %3665 = vmatpush3.bf16.msra.mxu1 %v5091_v38  ;;  %v6088_v37 = vld [vmem:[#allocation12_spill] sm:$0xff]  ;;  %v6089_v38 = vld [vmem:[#allocation7_spill] sm:$0xff] }
 0x5ab   :  { %2503 = vmatprep.subr.bf16.mxu0 %v5097_v39  ;;  %3666 = vmatprep.subr.bf16.mxu1 %v6014_v53  ;;  %v6090_v39 = vld [vmem:[#allocation14_spill] sm:$0xff] }
 0x5ae   :  { %2504 = vmatpush1.bf16.msra.mxu0 %v5104_v40  ;;  %3667 = vmatpush3.bf16.msra.mxu1 %v5110_v41  ;;  %v6091_v40 = vld [vmem:[#allocation20_spill] sm:$0xff] }
 0x5af   :  { %2505 = vmatprep.subr.bf16.mxu0 %v5116_v42  ;;  %3668 = vmatprep.subr.bf16.mxu1 %v6014_v53  ;;  %v6092_v41 = vld [vmem:[#allocation8_spill] sm:$0xff]  ;;  %v6093_v42 = vld [vmem:[#allocation9_spill] sm:$0xff] }
 0x5b2   :  { %2506 = vmatpush1.bf16.msra.mxu0 %v5123_v43  ;;  %3669 = vmatpush3.bf16.msra.mxu1 %v5387_v31  ;;  %v6094_v43 = vld [vmem:[#allocation13_spill] sm:$0xff] }
 0x5b3   :  { %2507 = vmatprep.subr.bf16.mxu0 %v5130_v21  ;;  %3670 = vmatprep.subr.bf16.mxu1 %v6014_v53  ;;  %v6095_v21 = vld [vmem:[#allocation17_spill] sm:$0xff] }
 0x5b6   :  { %2508 = vmatpush1.bf16.msra.mxu0 %v6084_v33  ;;  %3671 = vmatpush3.bf16.msra.mxu1 %v6085_v34 }
 0x5b7   :  { %2509 = vmatprep.subr.bf16.mxu0 %v6086_v35  ;;  %3672 = vmatprep.subr.bf16.mxu1 %v6014_v53  ;;  %v6099_v35 = vld [vmem:[#allocation66_spill] sm:$0xff] }
 0x5ba   :  { %2510 = vmatpush1.bf16.msra.mxu0 %v6087_v36  ;;  %3673 = vmatpush3.bf16.msra.mxu1 %v6088_v37 }
 0x5bb   :  { %2511 = vmatprep.subr.bf16.mxu0 %v6089_v38  ;;  %3674 = vmatprep.subr.bf16.mxu1 %v6014_v53 }
 0x5be   :  { %2512 = vmatpush1.bf16.msra.mxu0 %v6090_v39  ;;  %3675 = vmatpush3.bf16.msra.mxu1 %v6091_v40 }
 0x5bf   :  { %2513 = vmatprep.subr.bf16.mxu0 %v6092_v41  ;;  %3676 = vmatprep.subr.bf16.mxu1 %v6014_v53 }
 0x5c2   :  { %2514 = vmatpush1.bf16.msra.mxu0 %v6093_v42  ;;  %3677 = vmatpush3.bf16.msra.mxu1 %v6094_v43 }
 0x5c3   :  { %2580 = vmatprep.subr.bf16.mxu0 %v6095_v21  ;;  %3682 = vmatprep.subr.bf16.mxu1 %v6014_v53  ;;  %v6100_v21 = vld [vmem:[#allocation39_spill] sm:$0xff] }
 0x658   :  { %v2313_v55 = vpop.f32.mrb[72].mxu0  ;;  %v2354_v19 = vpop.f32.mrb[56].mxu1 }
 0x659   :  { %v2314_v50 = vadd.f32 %v2313_v55, %v6096_v54  ;;  %v2315_v6 = vpop.f32.mrb[73].mxu0  ;;  %v3640_v61 = vpop.f32.mrb[57].mxu1  ;;  %v2355_v36 = vadd.f32 %v2354_v19, %v6099_v35 }
 0x65a   :  { %v2316_v26 = vadd.f32 %v2315_v6, %v4875_v16  ;;  %v2317_v46 = vpop.f32.mrb[74].mxu0  ;;  %v2357_v62 = vpop.f32.mrb[58].mxu1 }
 0x65b   :  { %v2451_v10 = vadd.f32 %v2314_v50, %v6097_v30  ;;  %v2318_v58 = vpop.f32.mrb[75].mxu0  ;;  %v3641_v0 = vpop.f32.mrb[59].mxu1  ;;  %v6101_v30 = vld [vmem:[#allocation48_spill] sm:$0xff] }
 0x65c   :  { %v2458_v59 = vadd.f32 %v2316_v26, %v6098_v45  ;;  %v6102_v0 = vld [vmem:[#allocation49_spill] sm:$0xff] }
 0x65d   :  { %v3189_v27 = vmul.f32 -1.442695, %v2451_v10 }
 0x65e   :  { %v3190_v7 = vmul.f32 -1.442695, %v2458_v59 }
 0x65f   :  { %3982 = vpow2.f32 %v3189_v27 }
 0x660   :  { %3984 = vpow2.f32 %v3190_v7 }
 0x669   :  { %v3983_v51 = vpop.eup %3982 }
 0x66a   :  { %v2455_v25 = vadd.f32 1.0, %v3983_v51  ;;  %v3985_v8 = vpop.eup %3984 }
 0x66b   :  { %v2462_v33 = vadd.f32 1.0, %v3985_v8 }
 0x66c   :  { %3986 = vrcp.f32 %v2455_v25 }
 0x66d   :  { %3988 = vrcp.f32 %v2462_v33 }
 0x676   :  { %v3987_v38 = vpop.eup %3986 }
 0x677   :  { %v2465_v39 = vmul.f32 %v3987_v38, %v2355_v36  ;;  %v3989_v27 = vpop.eup %3988 }
 0x678   :  { %v2394_v41 = vpop.f32.mrb[76].mxu0  ;;  %v2435_v42 = vpop.f32.mrb[60].mxu1  ;;  %v2468_v51 = vsub.f32 1.0, %v3989_v27  ;;  %v2470_v33 = vmul.f32 %v3989_v27, %v5537_v63  ;;  %v6105_v27 = vld [vmem:[#allocation41_spill] sm:$0xff] }
 0x679   :  { %v2466_v55 = vadd.f32 %v2465_v39, %v6100_v21  ;;  %v2395_v50 = vadd.f32 %v2394_v41, %v4891_v5  ;;  %v2396_v6 = vpop.f32.mrb[77].mxu0  ;;  %v3660_v61 = vpop.f32.mrb[61].mxu1 }
 0x67a   :  { %v2397_v26 = vadd.f32 %v2396_v6, %v4894_v60  ;;  %v2398_v46 = vpop.f32.mrb[78].mxu0  ;;  %v2438_v62 = vpop.f32.mrb[62].mxu1  ;;  %v4107_v6 = vld [vmem:[%s5892_s3 + $0xac] ss:$12 sps:$4 sm:$0xff]   ;;  %v4109_v61 = vld [vmem:[%s5892_s3 + $0xc4] ss:$12 sps:$4 sm:$0xff]  }
 0x67b   :  { %3990 = vtanh.f32 %v2466_v55  ;;  %v2472_v10 = vadd.f32 %v2395_v50, %v6101_v30  ;;  %v2399_v58 = vpop.f32.mrb[79].mxu0  ;;  %v3661_v19 = vpop.f32.mrb[63].mxu1  ;;  %v4103_v55 = vld [vmem:[%s5892_s3 + $0x7c] ss:$12 sps:$4 sm:$0xff]   ;;  %v4105_v50 = vld [vmem:[%s5892_s3 + $0x94] ss:$12 sps:$4 sm:$0xff]  }
 0x67c   :  { %v2479_v45 = vadd.f32 %v2397_v26, %v6102_v0  ;;  %v6104_v0 = vld [vmem:[#allocation40_spill] sm:$0xff] }
 0x67d   :  { %v3191_v59 = vmul.f32 -1.442695, %v2472_v10 }
 0x67e   :  { %v3192_v7 = vmul.f32 -1.442695, %v2479_v45 }
 0x67f   :  { %3992 = vpow2.f32 %v3191_v59 }
 0x680   :  { %3994 = vpow2.f32 %v3192_v7 }
 0x685   :  { %v3991_v25 = vpop.eup %3990 }
 0x686   :  { %v2469_v8 = vmul.f32 %v3991_v25, %v2468_v51 }
 0x688   :  { %v5635_v36 = vadd.f32 %v2470_v33, %v2469_v8 }
 0x689   :  { %v3993_v38 = vpop.eup %3992 }
 0x68a   :  { %v2476_v39 = vadd.f32 1.0, %v3993_v38  ;;  %v2493_v41 = vpack.c.bf16 %v5635_v36, %v5635_v36  ;;  %v3995_v63 = vpop.eup %3994 }
 0x68c   :  { %3996 = vrcp.f32 %v2476_v39  ;;  %3193 = vst [vmem:[%s5895_s6 + $0x14] sm:$0xf] %v2493_v41  ;;  %2532 = vmatmul.mubr.bf16.vlgmr.msra.gmra.mrb[80].mxu0 %v2493_v41  ;;  %3679 = vmatmul.mubr.bf16.vlgmr.msra.gmra.mrb[64].mxu1 %v2493_v41 }
 0x68d   :  { %2581 = vmatpush1.bf16.msra.mxu0 %v5211_v57  ;;  %3683 = vmatpush3.bf16.msra.mxu1 %v5217_v24  ;;  %v2483_v57 = vadd.f32 1.0, %v3995_v63  ;;  %v2436_v24 = vadd.f32 %v2435_v42, %v4914_v1  ;;  %v4102_v42 = vld [vmem:[%s5892_s3 + $0x60] ss:$12 sps:$4 sm:$0xff]  }
 0x68e   :  { %2582 = vmatprep.subr.bf16.mxu0 %v5223_v4  ;;  %3684 = vmatprep.subr.bf16.mxu1 %v6014_v53 }
 0x68f   :  { %2612 = vmatprep.mubr.bf16.mxu0 %v6015_v15  ;;  %3698 = vmatprep.mubr.msk.bf16.mxu1 %vm4135_vm0, %v6014_v53  ;;  %3998 = vrcp.f32 %v2483_v57 }
 0x691   :  { %2583 = vmatpush1.bf16.msra.mxu0 %v5233_v3  ;;  %3685 = vmatpush3.bf16.msra.mxu1 %v5239_v2  ;;  %v6103_v3 = vld [vmem:[#allocation51_spill] sm:$0xff] }
 0x692   :  { %2584 = vmatprep.subr.bf16.mxu0 %v5245_v20  ;;  %3686 = vmatprep.subr.bf16.mxu1 %v6014_v53 }
 0x695   :  { %2585 = vmatpush1.bf16.msra.mxu0 %v5253_v11  ;;  %3687 = vmatpush3.bf16.msra.mxu1 %v5259_v22 }
 0x696   :  { %v3997_v4 = vpop.eup %3996  ;;  %2586 = vmatprep.subr.bf16.mxu0 %v5265_v23  ;;  %3688 = vmatprep.subr.bf16.mxu1 %v6014_v53 }
 0x697   :  { %v2486_v21 = vmul.f32 %v3997_v4, %v2436_v24 }
 0x699   :  { %v2487_v2 = vadd.f32 %v2486_v21, %v6103_v3  ;;  %2587 = vmatpush1.bf16.msra.mxu0 %v5273_v28  ;;  %3689 = vmatpush3.bf16.msra.mxu1 %v5279_v29  ;;  %v3999_v20 = vpop.eup %3998  ;;  %v6106_v21 = vld [vmem:[#allocation35_spill] sm:$0xff] }
 0x69a   :  { %2588 = vmatprep.subr.bf16.mxu0 %v5285_v32  ;;  %3690 = vmatprep.subr.bf16.mxu1 %v6014_v53  ;;  %v2489_v11 = vsub.f32 1.0, %v3999_v20  ;;  %v2491_v28 = vmul.f32 %v3999_v20, %v5578_v17  ;;  %v4101_v17 = vld [vmem:[%s5892_s3 + $0x64] ss:$12 sps:$4 sm:$0xff]  }
 0x69b   :  { %4000 = vtanh.f32 %v2487_v2 }
 0x69d   :  { %2589 = vmatpush1.bf16.msra.mxu0 %v5292_v9  ;;  %3691 = vmatpush3.bf16.msra.mxu1 %v5298_v48  ;;  %v4090_v9 = vld [vmem:[%s5892_s3 + $0x4] ss:$12 sps:$4 sm:$0xff]   ;;  %v4091_v48 = vld [vmem:[%s5892_s3] ss:$12 sps:$4 sm:$0xff]  }
 0x69e   :  { %2590 = vmatprep.subr.bf16.mxu0 %v5304_v12  ;;  %3692 = vmatprep.subr.bf16.mxu1 %v6014_v53  ;;  %v4092_v12 = vld [vmem:[%s5892_s3 + $0x8] ss:$12 sps:$4 sm:$0xff]  }
 0x6a1   :  { %2591 = vmatpush1.bf16.msra.mxu0 %v5311_v13  ;;  %3693 = vmatpush3.bf16.msra.mxu1 %v5317_v47  ;;  %v4093_v13 = vld [vmem:[%s5892_s3 + $0x1c] ss:$12 sps:$4 sm:$0xff]   ;;  %v4094_v47 = vld [vmem:[%s5892_s3 + $0x18] ss:$12 sps:$4 sm:$0xff]  }
 0x6a2   :  { %2592 = vmatprep.subr.bf16.mxu0 %v5323_v56  ;;  %3694 = vmatprep.subr.bf16.mxu1 %v6014_v53  ;;  %v4095_v56 = vld [vmem:[%s5892_s3 + $0x20] ss:$12 sps:$4 sm:$0xff]  }
 0x6a5   :  { %v4001_v22 = vpop.eup %4000  ;;  %2593 = vmatpush1.bf16.msra.mxu0 %v5330_v49  ;;  %3695 = vmatpush3.bf16.msra.mxu1 %v5336_v44  ;;  %v4096_v49 = vld [vmem:[%s5892_s3 + $0x34] ss:$12 sps:$4 sm:$0xff]   ;;  %v4097_v44 = vld [vmem:[%s5892_s3 + $0x30] ss:$12 sps:$4 sm:$0xff]  }
 0x6a6   :  { %2594 = vmatprep.subr.bf16.mxu0 %v5342_v52  ;;  %3696 = vmatprep.subr.bf16.mxu1 %v6014_v53  ;;  %v2490_v23 = vmul.f32 %v4001_v22, %v2489_v11  ;;  %v4098_v52 = vld [vmem:[%s5892_s3 + $0x38] ss:$12 sps:$4 sm:$0xff]  }
 0x6a8   :  { %v5676_v29 = vadd.f32 %v2491_v28, %v2490_v23 }
 0x6a9   :  { %2595 = vmatpush1.bf16.msra.mxu0 %v5352_v14  ;;  %3697 = vmatpush3.bf16.msra.mxu1 %v5358_v18  ;;  %v4099_v14 = vld [vmem:[%s5892_s3 + $0x4c] ss:$12 sps:$4 sm:$0xff]   ;;  %v4100_v18 = vld [vmem:[%s5892_s3 + $0x48] ss:$12 sps:$4 sm:$0xff]  }
 0x6aa   :  { %v2496_v32 = vpack.c.bf16 %v5676_v29, %v5676_v29  ;;  %2719 = vmatprep.subr.bf16.mxu0 %v4090_v9  ;;  %3702 = vmatprep.subr.bf16.mxu1 %v6014_v53 }
 0x6ac   :  { %3194 = vst [vmem:[%s5896_s7 + $0x8] sm:$0xf] %v2496_v32  ;;  %2613 = vmatmul.mubr.bf16.vlgmr.msra.gmra.mrb[84].mxu0 %v2496_v32  ;;  %3699 = vmatmul.mubr.bf16.vlgmr.msra.gmra.mrb[68].mxu1 %v2496_v32  ;;  %v6107_v32 = vld [vmem:[#allocation46_spill] sm:$0xff] }
 0x6ad   :  { %2720 = vmatpush1.bf16.msra.mxu0 %v4091_v48  ;;  %3703 = vmatpush3.bf16.msra.mxu1 %v4092_v12 }
 0x6ae   :  { %2721 = vmatprep.subr.bf16.mxu0 %v4093_v13  ;;  %3704 = vmatprep.subr.bf16.mxu1 %v6014_v53  ;;  %v6108_v13 = vld [vmem:[#allocation47_spill] sm:$0xff] }
 0x6af   :  { %2751 = vmatprep.mubr.bf16.mxu0 %v6015_v15  ;;  %3718 = vmatprep.mubr.msk.bf16.mxu1 %vm4135_vm0, %v6014_v53 }
 0x6b1   :  { %2722 = vmatpush1.bf16.msra.mxu0 %v4094_v47  ;;  %3705 = vmatpush3.bf16.msra.mxu1 %v4095_v56 }
 0x6b2   :  { %2723 = vmatprep.subr.bf16.mxu0 %v4096_v49  ;;  %3706 = vmatprep.subr.bf16.mxu1 %v6014_v53 }
 0x6b5   :  { %2724 = vmatpush1.bf16.msra.mxu0 %v4097_v44  ;;  %3707 = vmatpush3.bf16.msra.mxu1 %v4098_v52 }
 0x6b6   :  { %2725 = vmatprep.subr.bf16.mxu0 %v4099_v14  ;;  %3708 = vmatprep.subr.bf16.mxu1 %v6014_v53 }
 0x6b9   :  { %2726 = vmatpush1.bf16.msra.mxu0 %v4100_v18  ;;  %3709 = vmatpush3.bf16.msra.mxu1 %v5387_v31  ;;  %v4104_v31 = vld [vmem:[%s5892_s3 + $0x78] ss:$12 sps:$4 sm:$0xff]  }
 0x6ba   :  { %2727 = vmatprep.subr.bf16.mxu0 %v4101_v17  ;;  %3710 = vmatprep.subr.bf16.mxu1 %v6014_v53 }
 0x6bd   :  { %2728 = vmatpush1.bf16.msra.mxu0 %v4102_v42  ;;  %3711 = vmatpush3.bf16.msra.mxu1 %v6085_v34  ;;  %v4106_v34 = vld [vmem:[%s5892_s3 + $0x90] ss:$12 sps:$4 sm:$0xff]  }
 0x6be   :  { %2729 = vmatprep.subr.bf16.mxu0 %v4103_v55  ;;  %3712 = vmatprep.subr.bf16.mxu1 %v6014_v53 }
 0x6c1   :  { %2730 = vmatpush1.bf16.msra.mxu0 %v4104_v31  ;;  %3713 = vmatpush3.bf16.msra.mxu1 %v6088_v37  ;;  %v4108_v37 = vld [vmem:[%s5892_s3 + $0xa8] ss:$12 sps:$4 sm:$0xff]  }
 0x6c2   :  { %2731 = vmatprep.subr.bf16.mxu0 %v4105_v50  ;;  %3714 = vmatprep.subr.bf16.mxu1 %v6014_v53 }
 0x6c5   :  { %2732 = vmatpush1.bf16.msra.mxu0 %v4106_v34  ;;  %3715 = vmatpush3.bf16.msra.mxu1 %v6091_v40  ;;  %v4110_v34 = vld [vmem:[%s5892_s3 + $0xc0] ss:$12 sps:$4 sm:$0xff]  }
 0x6c6   :  { %2733 = vmatprep.subr.bf16.mxu0 %v4107_v6  ;;  %3716 = vmatprep.subr.bf16.mxu1 %v6014_v53  ;;  %v4112_v6 = vld [vmem:[%s5892_s3 + $0xdc] ss:$12 sps:$4 sm:$0xff]  }
 0x6c9   :  { %2734 = vmatpush1.bf16.msra.mxu0 %v4108_v37  ;;  %3717 = vmatpush3.bf16.msra.mxu1 %v6094_v43 }
 0x6ca   :  { %2800 = vmatprep.subr.bf16.mxu0 %v4109_v61  ;;  %3722 = vmatprep.subr.bf16.mxu1 %v6014_v53  ;;  %v4113_v61 = vld [vmem:[%s5892_s3 + $0xd8] ss:$12 sps:$4 sm:$0xff]  }
 0x75f   :  { %v2533_v40 = vpop.f32.mrb[80].mxu0  ;;  %v2574_v26 = vpop.f32.mrb[64].mxu1 }
 0x760   :  { %v2534_v46 = vadd.f32 %v2533_v40, %v6096_v54  ;;  %v2535_v62 = vpop.f32.mrb[81].mxu0  ;;  %v3680_v30 = vpop.f32.mrb[65].mxu1  ;;  %v2575_v41 = vadd.f32 %v2574_v26, %v6099_v35  ;;  %v4114_v40 = vld [vmem:[%s5892_s3 + $0xe0] ss:$12 sps:$4 sm:$0xff]  }
 0x761   :  { %v2536_v10 = vadd.f32 %v2535_v62, %v4875_v16  ;;  %v2537_v58 = vpop.f32.mrb[82].mxu0  ;;  %v2577_v19 = vpop.f32.mrb[66].mxu1  ;;  %v4115_v26 = vld [vmem:[%s5892_s3 + $0xf4] ss:$12 sps:$4 sm:$0xff]   ;;  %v4116_v62 = vld [vmem:[%s5892_s3 + $0xf0] ss:$12 sps:$4 sm:$0xff]  }
 0x762   :  { %v2671_v45 = vadd.f32 %v2534_v46, %v6104_v0  ;;  %v2538_v43 = vpop.f32.mrb[83].mxu0  ;;  %v3681_v59 = vpop.f32.mrb[67].mxu1  ;;  %v4117_v30 = vld [vmem:[%s5892_s3 + $0xf8] ss:$12 sps:$4 sm:$0xff]   ;;  %v6109_v0 = vld [vmem:[#allocation55_spill] sm:$0xff] }
 0x763   :  { %v2678_v7 = vadd.f32 %v2536_v10, %v6105_v27  ;;  %v4118_v58 = vld [vmem:[%s5892_s3 + $0x10c] ss:$12 sps:$4 sm:$0xff]   ;;  %v4119_v43 = vld [vmem:[%s5892_s3 + $0x108] ss:$12 sps:$4 sm:$0xff]   ;;  %v4120_v59 = vld [vmem:[%s5892_s3 + $0x110] ss:$12 sps:$4 sm:$0xff]  }
 0x764   :  { %v3195_v51 = vmul.f32 -1.442695, %v2671_v45  ;;  %v4121_v27 = vld [vmem:[%s5892_s3 + $0x124] ss:$12 sps:$4 sm:$0xff]  }
 0x765   :  { %v3196_v25 = vmul.f32 -1.442695, %v2678_v7  ;;  %v4122_v7 = vld [vmem:[%s5892_s3 + $0x120] ss:$12 sps:$4 sm:$0xff]  }
 0x766   :  { %4002 = vpow2.f32 %v3195_v51  ;;  %v4123_v51 = vld [vmem:[%s5892_s3 + $0x128] ss:$12 sps:$4 sm:$0xff]  }
 0x767   :  { %4004 = vpow2.f32 %v3196_v25  ;;  %v4124_v25 = vld [vmem:[%s5892_s3 + $0x13c] ss:$12 sps:$4 sm:$0xff]  }
 0x770   :  { %v4003_v8 = vpop.eup %4002 }
 0x771   :  { %v2675_v33 = vadd.f32 1.0, %v4003_v8  ;;  %v4005_v38 = vpop.eup %4004 }
 0x772   :  { %v2682_v39 = vadd.f32 1.0, %v4005_v38  ;;  %v4126_v38 = vld [vmem:[%s5892_s3 + $0x140] ss:$12 sps:$4 sm:$0xff]  }
 0x773   :  { %4006 = vrcp.f32 %v2675_v33  ;;  %v4125_v33 = vld [vmem:[%s5892_s3 + $0x138] ss:$12 sps:$4 sm:$0xff]  }
 0x774   :  { %4008 = vrcp.f32 %v2682_v39  ;;  %v4127_v39 = vld [vmem:[%s5892_s3 + $0x154] ss:$12 sps:$4 sm:$0xff]  }
 0x77d   :  { %v4007_v63 = vpop.eup %4006 }
 0x77e   :  { %v2685_v57 = vmul.f32 %v4007_v63, %v2575_v41  ;;  %v4009_v49 = vpop.eup %4008 }
 0x77f   :  { %v2614_v24 = vpop.f32.mrb[84].mxu0  ;;  %v2655_v4 = vpop.f32.mrb[68].mxu1  ;;  %v2688_v52 = vsub.f32 1.0, %v4009_v49  ;;  %v2690_v17 = vmul.f32 %v4009_v49, %v5635_v36  ;;  %v4111_v36 = vld [vmem:[%s5892_s3 + $0xc8] ss:$12 sps:$4 sm:$0xff]  }
 0x780   :  { %v2686_v3 = vadd.f32 %v2685_v57, %v6106_v21  ;;  %v2615_v2 = vadd.f32 %v2614_v24, %v4891_v5  ;;  %v2616_v20 = vpop.f32.mrb[85].mxu0  ;;  %v3700_v11 = vpop.f32.mrb[69].mxu1  ;;  %v2656_v46 = vadd.f32 %v2655_v4, %v4914_v1  ;;  %v4128_v57 = vld [vmem:[%s5892_s3 + $0x150] ss:$12 sps:$4 sm:$0xff]   ;;  %v4129_v24 = vld [vmem:[%s5892_s3 + $0x158] ss:$12 sps:$4 sm:$0xff]  }
 0x781   :  { %v2617_v22 = vadd.f32 %v2616_v20, %v4894_v60  ;;  %v2618_v23 = vpop.f32.mrb[86].mxu0  ;;  %v2658_v28 = vpop.f32.mrb[70].mxu1  ;;  %v4130_v4 = vld [vmem:[%s5892_s3 + $0x16c] ss:$12 sps:$4 sm:$0xff]   ;;  %v4131_v20 = vld [vmem:[%s5892_s3 + $0x168] ss:$12 sps:$4 sm:$0xff]  }
 0x782   :  { %4010 = vtanh.f32 %v2686_v3  ;;  %v2692_v9 = vadd.f32 %v2615_v2, %v6107_v32  ;;  %v2619_v48 = vpop.f32.mrb[87].mxu0  ;;  %v3701_v12 = vpop.f32.mrb[71].mxu1  ;;  %v4132_v11 = vld [vmem:[%s5892_s3 + $0x170] ss:$12 sps:$4 sm:$0xff]  }
 0x783   :  { %v2699_v47 = vadd.f32 %v2617_v22, %v6108_v13  ;;  %v6110_v13 = vld [vmem:[#allocation42_spill] sm:$0xff] }
 0x784   :  { %v3197_v56 = vmul.f32 -1.442695, %v2692_v9 }
 0x785   :  { %v3198_v44 = vmul.f32 -1.442695, %v2699_v47 }
 0x786   :  { %4012 = vpow2.f32 %v3197_v56 }
 0x787   :  { %4014 = vpow2.f32 %v3198_v44  ;;  %v6111_v44 = vld [vmem:[#allocation43_spill] sm:$0xff] }
 0x78c   :  { %v4011_v14 = vpop.eup %4010 }
 0x78d   :  { %v2689_v18 = vmul.f32 %v4011_v14, %v2688_v52 }
 0x78f   :  { %v5773_v42 = vadd.f32 %v2690_v17, %v2689_v18 }
 0x790   :  { %v4013_v55 = vpop.eup %4012 }
 0x791   :  { %v2696_v31 = vadd.f32 1.0, %v4013_v55  ;;  %v2713_v50 = vpack.c.bf16 %v5773_v42, %v5773_v42  ;;  %v4015_v37 = vpop.eup %4014 }
 0x793   :  { %4016 = vrcp.f32 %v2696_v31  ;;  %3199 = vst [vmem:[%s5895_s6 + $0x18] sm:$0xf] %v2713_v50  ;;  %2752 = vmatmul.mubr.bf16.vlgmr.msra.gmra.mrb[88].mxu0 %v2713_v50  ;;  %3719 = vmatmul.mubr.bf16.vlgmr.msra.gmra.mrb[72].mxu1 %v2713_v50 }
 0x794   :  { %2801 = vmatpush1.bf16.msra.mxu0 %v4110_v34  ;;  %3723 = vmatpush3.bf16.msra.mxu1 %v4111_v36 }
 0x795   :  { %2802 = vmatprep.subr.bf16.mxu0 %v4112_v6  ;;  %3724 = vmatprep.subr.bf16.mxu1 %v6014_v53 }
 0x796   :  { %2832 = vmatprep.mubr.bf16.mxu0 %v6015_v15  ;;  %3738 = vmatprep.mubr.msk.bf16.mxu1 %vm4135_vm0, %v6014_v53  ;;  %v2703_v15 = vadd.f32 1.0, %v4015_v37  ;;  %v6112_v37 = vld [vmem:[#allocation38_spill] sm:$0xff] }
 0x798   :  { %2803 = vmatpush1.bf16.msra.mxu0 %v4113_v61  ;;  %3725 = vmatpush3.bf16.msra.mxu1 %v4114_v40  ;;  %4018 = vrcp.f32 %v2703_v15 }
 0x799   :  { %2804 = vmatprep.subr.bf16.mxu0 %v4115_v26  ;;  %3726 = vmatprep.subr.bf16.mxu1 %v6014_v53 }
 0x79c   :  { %2805 = vmatpush1.bf16.msra.mxu0 %v4116_v62  ;;  %3727 = vmatpush3.bf16.msra.mxu1 %v4117_v30 }
 0x79d   :  { %v4017_v10 = vpop.eup %4016  ;;  %2806 = vmatprep.subr.bf16.mxu0 %v4118_v58  ;;  %3728 = vmatprep.subr.bf16.mxu1 %v6014_v53 }
 0x79e   :  { %v2706_v19 = vmul.f32 %v4017_v10, %v2656_v46  ;;  %v6113_v10 = vld [vmem:[#allocation44_spill] sm:$0xff] }
 0x7a0   :  { %v2707_v45 = vadd.f32 %v2706_v19, %v6109_v0  ;;  %2807 = vmatpush1.bf16.msra.mxu0 %v4119_v43  ;;  %3729 = vmatpush3.bf16.msra.mxu1 %v4120_v59  ;;  %v6114_v0 = vld [vmem:[#allocation45_spill] sm:$0xff] }
 0x7a1   :  { %2808 = vmatprep.subr.bf16.mxu0 %v4121_v27  ;;  %3730 = vmatprep.subr.bf16.mxu1 %v6014_v53 }
 0x7a2   :  { %4020 = vtanh.f32 %v2707_v45  ;;  %v4019_v8 = vpop.eup %4018 }
 0x7a3   :  { %v2709_v41 = vsub.f32 1.0, %v4019_v8  ;;  %v2711_v3 = vmul.f32 %v4019_v8, %v5676_v29 }
 0x7a4   :  { %2809 = vmatpush1.bf16.msra.mxu0 %v4122_v7  ;;  %3731 = vmatpush3.bf16.msra.mxu1 %v4123_v51 }
 0x7a5   :  { %2810 = vmatprep.subr.bf16.mxu0 %v4124_v25  ;;  %3732 = vmatprep.subr.bf16.mxu1 %v6014_v53 }
 0x7a8   :  { %2811 = vmatpush1.bf16.msra.mxu0 %v4125_v33  ;;  %3733 = vmatpush3.bf16.msra.mxu1 %v4126_v38 }
 0x7a9   :  { %2812 = vmatprep.subr.bf16.mxu0 %v4127_v39  ;;  %3734 = vmatprep.subr.bf16.mxu1 %v6014_v53 }
 0x7ac   :  { %v4021_v63 = vpop.eup %4020  ;;  %2813 = vmatpush1.bf16.msra.mxu0 %v4128_v57  ;;  %3735 = vmatpush3.bf16.msra.mxu1 %v4129_v24 }
 0x7ad   :  { %2814 = vmatprep.subr.bf16.mxu0 %v4130_v4  ;;  %3736 = vmatprep.subr.bf16.mxu1 %v6014_v53  ;;  %v2710_v21 = vmul.f32 %v4021_v63, %v2709_v41  ;;  %v6115_v4 = vld [vmem:[#allocation53_spill] sm:$0xff] }
 0x7af   :  { %v5856_v2 = vadd.f32 %v2711_v3, %v2710_v21 }
 0x7b0   :  { %2815 = vmatpush1.bf16.msra.mxu0 %v4131_v20  ;;  %3737 = vmatpush3.bf16.msra.mxu1 %v4132_v11 }
 0x7b1   :  { %v2716_v22 = vpack.c.bf16 %v5856_v2, %v5856_v2 }
 0x7b3   :  { %3200 = vst [vmem:[%s5896_s7 + $0x4] sm:$0xf] %v2716_v22  ;;  %2833 = vmatmul.mubr.bf16.vlgmr.msra.gmra.mrb[92].mxu0 %v2716_v22  ;;  %3739 = vmatmul.mubr.bf16.vlgmr.msra.gmra.mrb[76].mxu1 %v2716_v22 }
 0x866   :  { %v2753_v53 = vpop.f32.mrb[88].mxu0  ;;  %v2794_v29 = vpop.f32.mrb[72].mxu1 }
 0x867   :  { %v2754_v23 = vadd.f32 %v2753_v53, %v6096_v54  ;;  %v2755_v28 = vpop.f32.mrb[89].mxu0  ;;  %v3720_v32 = vpop.f32.mrb[73].mxu1  ;;  %v2795_v50 = vadd.f32 %v2794_v29, %v6099_v35 }
 0x868   :  { %v2756_v9 = vadd.f32 %v2755_v28, %v4875_v16  ;;  %v2757_v48 = vpop.f32.mrb[90].mxu0  ;;  %v2797_v12 = vpop.f32.mrb[74].mxu1 }
 0x869   :  { %v2891_v47 = vadd.f32 %v2754_v23, %v6110_v13  ;;  %v2758_v56 = vpop.f32.mrb[91].mxu0  ;;  %v3721_v49 = vpop.f32.mrb[75].mxu1 }
 0x86a   :  { %v2898_v52 = vadd.f32 %v2756_v9, %v6111_v44 }
 0x86b   :  { %v3201_v14 = vmul.f32 -1.442695, %v2891_v47 }
 0x86c   :  { %v3202_v18 = vmul.f32 -1.442695, %v2898_v52 }
 0x86d   :  { %4022 = vpow2.f32 %v3201_v14 }
 0x86e   :  { %4024 = vpow2.f32 %v3202_v18 }
 0x877   :  { %v4023_v17 = vpop.eup %4022 }
 0x878   :  { %v2895_v55 = vadd.f32 1.0, %v4023_v17  ;;  %v4025_v54 = vpop.eup %4024 }
 0x879   :  { %v2902_v31 = vadd.f32 1.0, %v4025_v54 }
 0x87a   :  { %4026 = vrcp.f32 %v2895_v55 }
 0x87b   :  { %4028 = vrcp.f32 %v2902_v31 }
 0x884   :  { %v4027_v16 = vpop.eup %4026 }
 0x885   :  { %v2905_v34 = vmul.f32 %v4027_v16, %v2795_v50  ;;  %v4029_v59 = vpop.eup %4028 }
 0x886   :  { %v2834_v36 = vpop.f32.mrb[92].mxu0  ;;  %v2875_v6 = vpop.f32.mrb[76].mxu1  ;;  %v2908_v7 = vsub.f32 1.0, %v4029_v59  ;;  %v2910_v25 = vmul.f32 %v4029_v59, %v5773_v42 }
 0x887   :  { %v2906_v61 = vadd.f32 %v2905_v34, %v6112_v37  ;;  %v2835_v40 = vadd.f32 %v2834_v36, %v4891_v5  ;;  %v2836_v26 = vpop.f32.mrb[93].mxu0  ;;  %v3740_v15 = vpop.f32.mrb[77].mxu1  ;;  %v2876_v63 = vadd.f32 %v2875_v6, %v4914_v1 }
 0x888   :  { %v2837_v46 = vadd.f32 %v2836_v26, %v4894_v60  ;;  %v2838_v62 = vpop.f32.mrb[94].mxu0  ;;  %v2878_v30 = vpop.f32.mrb[78].mxu1 }
 0x889   :  { %4030 = vtanh.f32 %v2906_v61  ;;  %v2912_v58 = vadd.f32 %v2835_v40, %v6113_v10  ;;  %v2839_v19 = vpop.f32.mrb[95].mxu0  ;;  %v3741_v35 = vpop.f32.mrb[79].mxu1 }
 0x88a   :  { %v2919_v45 = vadd.f32 %v2837_v46, %v6114_v0 }
 0x88b   :  { %v3203_v43 = vmul.f32 -1.442695, %v2912_v58 }
 0x88c   :  { %v3204_v27 = vmul.f32 -1.442695, %v2919_v45 }
 0x88d   :  { %4032 = vpow2.f32 %v3203_v43 }
 0x88e   :  { %4034 = vpow2.f32 %v3204_v27 }
 0x893   :  { %v4031_v51 = vpop.eup %4030 }
 0x894   :  { %v2909_v5 = vmul.f32 %v4031_v51, %v2908_v7 }
 0x896   :  { %v2911_v60 = vadd.f32 %v2910_v25, %v2909_v5 }
 0x897   :  { %v4033_v8 = vpop.eup %4032 }
 0x898   :  { %v2933_v33 = vpack.c.bf16 %v2911_v60, %v2911_v60  ;;  %v2916_v38 = vadd.f32 1.0, %v4033_v8  ;;  %v4035_v39 = vpop.eup %4034 }
 0x899   :  { %v2923_v41 = vadd.f32 1.0, %v4035_v39 }
 0x89a   :  { %3205 = vst [vmem:[%s5895_s6 + $0x1c] sm:$0xf] %v2933_v33  ;;  %4036 = vrcp.f32 %v2916_v38 }
 0x89b   :  { %4038 = vrcp.f32 %v2923_v41 }
 0x8a4   :  { %v4037_v57 = vpop.eup %4036 }
 0x8a5   :  { %v2926_v24 = vmul.f32 %v4037_v57, %v2876_v63  ;;  %v4039_v42 = vpop.eup %4038 }
 0x8a6   :  { %v2929_v3 = vsub.f32 1.0, %v4039_v42  ;;  %v2931_v22 = vmul.f32 %v4039_v42, %v5856_v2 }
 0x8a7   :  { %v2927_v21 = vadd.f32 %v2926_v24, %v6115_v4 }
 0x8a9   :  { %4040 = vtanh.f32 %v2927_v21 }
 0x8b3   :  { %v4041_v20 = vpop.eup %4040 }
 0x8b4   :  { %v2930_v11 = vmul.f32 %v4041_v20, %v2929_v3 }
 0x8b6   :  { %v2932_v53 = vadd.f32 %v2931_v22, %v2930_v11 }
 0x8b8   :  { %v2936_v29 = vpack.c.bf16 %v2932_v53, %v2932_v53 }
 0x8ba   :  { %2937 = vst [vmem:[%s5896_s7] sm:$0xf] %v2936_v29 }

// kernel: gru_with_att_forward.3
= control target key start
LH: loop header
LB: loop body
LE: loop exit
PB: predicated region body
PF: predicated region fallthrough
CT: control target
= control target key end

     0   :  { %v7647_v1 = vmov 0   ;;  %vm7649_vm0 = vmmov 0   ;;  %vm1141_vm1 = vcmask 523264   ;;  %s7650_s16 = smov 64   ;;  %vm1219_vm3 = vcmask 64512   ;;  %s7652_s17 = smov 126   ;;  %s8720_s2 = inlined_call_operand.vmem [shape: bf16[256,640], index: 2, kind: input, shape index: {}]   ;;  %s8721_s1 = inlined_call_operand.vmem [shape: bf16[64,128], index: 1, kind: input, shape index: {}]   ;;  %s8722_s0 = inlined_call_operand.vmem [shape: bf16[64,128], index: 0, kind: input, shape index: {}]   ;;  %s8723_s3 = inlined_call_operand.vmem [shape: f32[1,640], index: 3, kind: input, shape index: {}]   ;;  %s8724_s4 = inlined_call_operand.<no memory space> [shape: f32[1,1], index: 4, kind: input, shape index: {}]   ;;  %s8725_s5 = inlined_call_operand.vmem [shape: f32[8,8], index: 5, kind: output, shape index: {}]  }
   0x1   :  { %v7367_v0 = vld [vmem:[%s8720_s2 + $0x144] ss:$20 sps:$4 sm:$0xff]   ;;  %472 = vmatprep.mubr.bf16.mxu1 %v7647_v1  ;;  %399 = vmatprep.mubr.bf16.mxu0 %v7647_v1  ;;  %v7369_v2 = vld [vmem:[%s8720_s2 + $0x14c] ss:$20 sps:$4 sm:$0xff]   ;;  %v7372_v4 = vld [vmem:[%s8720_s2 + $0x148] ss:$20 sps:$4 sm:$0xff]  }
   0x2   :  { %7365 = vset.pattern.permute.xlu1 %v7647_v1  ;;  %7366 = vset.pattern.permute.xlu0 %v7647_v1  ;;  %v7371_v3 = vld [vmem:[%s8720_s2 + $0x140] ss:$20 sps:$4 sm:$0xff]   ;;  %v7377_v7 = vld [vmem:[%s8720_s2 + $0x168] ss:$20 sps:$4 sm:$0xff]   ;;  %v7378_v8 = vld [vmem:[%s8720_s2 + $0x170] ss:$20 sps:$4 sm:$0xff]  }
   0x3   :  { %367 = vmatprep.subr.bf16.mxu0 %v7367_v0  ;;  %440 = vmatprep.subr.bf16.mxu1 %v7369_v2  ;;  %v7373_v5 = vld [vmem:[%s8720_s2 + $0x16c] ss:$20 sps:$4 sm:$0xff]   ;;  %v7375_v6 = vld [vmem:[%s8720_s2 + $0x174] ss:$20 sps:$4 sm:$0xff]   ;;  %v7381_v10 = vld [vmem:[%s8720_s2 + $0x19c] ss:$20 sps:$4 sm:$0xff]  }
   0x4   :  { %368 = vmatpush1.bf16.msra.mxu0 %v7371_v3  ;;  %441 = vmatpush1.bf16.msra.mxu1 %v7372_v4  ;;  %v7379_v9 = vld [vmem:[%s8720_s2 + $0x194] ss:$20 sps:$4 sm:$0xff]   ;;  %v7383_v11 = vld [vmem:[%s8720_s2 + $0x190] ss:$20 sps:$4 sm:$0xff]   ;;  %v7384_v12 = vld [vmem:[%s8720_s2 + $0x198] ss:$20 sps:$4 sm:$0xff]  }
   0x5   :  { %369 = vmatprep.subr.bf16.mxu0 %v7373_v5  ;;  %442 = vmatprep.subr.bf16.mxu1 %v7375_v6  ;;  %v7385_v13 = vld [vmem:[%s8720_s2 + $0x1bc] ss:$20 sps:$4 sm:$0xff]   ;;  %v7387_v14 = vld [vmem:[%s8720_s2 + $0x1c4] ss:$20 sps:$4 sm:$0xff]   ;;  %v7390_v16 = vld [vmem:[%s8720_s2 + $0x1c0] ss:$20 sps:$4 sm:$0xff]  }
   0x6   :  { %v7389_v15 = vld [vmem:[%s8720_s2 + $0x1b8] ss:$20 sps:$4 sm:$0xff]   ;;  %v7395_v19 = vld [vmem:[%s8720_s2 + $0x1e0] ss:$20 sps:$4 sm:$0xff]   ;;  %v7396_v20 = vld [vmem:[%s8720_s2 + $0x1e8] ss:$20 sps:$4 sm:$0xff]  }
   0x7   :  { %v7391_v17 = vld [vmem:[%s8720_s2 + $0x1e4] ss:$20 sps:$4 sm:$0xff]   ;;  %v7393_v18 = vld [vmem:[%s8720_s2 + $0x1ec] ss:$20 sps:$4 sm:$0xff]   ;;  %v7399_v22 = vld [vmem:[%s8720_s2 + $0x214] ss:$20 sps:$4 sm:$0xff]  }
   0x8   :  { %370 = vmatpush1.bf16.msra.mxu0 %v7377_v7  ;;  %443 = vmatpush1.bf16.msra.mxu1 %v7378_v8  ;;  %v7397_v21 = vld [vmem:[%s8720_s2 + $0x20c] ss:$20 sps:$4 sm:$0xff]   ;;  %v7401_v23 = vld [vmem:[%s8720_s2 + $0x208] ss:$20 sps:$4 sm:$0xff]   ;;  %v7402_v24 = vld [vmem:[%s8720_s2 + $0x210] ss:$20 sps:$4 sm:$0xff]  }
   0x9   :  { %371 = vmatprep.subr.bf16.mxu0 %v7379_v9  ;;  %444 = vmatprep.subr.bf16.mxu1 %v7381_v10  ;;  %v7403_v25 = vld [vmem:[%s8720_s2 + $0x234] ss:$20 sps:$4 sm:$0xff]   ;;  %v7405_v26 = vld [vmem:[%s8720_s2 + $0x23c] ss:$20 sps:$4 sm:$0xff]   ;;  %v7408_v28 = vld [vmem:[%s8720_s2 + $0x238] ss:$20 sps:$4 sm:$0xff]  }
   0xa   :  { %v7407_v27 = vld [vmem:[%s8720_s2 + $0x230] ss:$20 sps:$4 sm:$0xff]   ;;  %v7413_v31 = vld [vmem:[%s8720_s2 + $0x258] ss:$20 sps:$4 sm:$0xff]   ;;  %v7414_v32 = vld [vmem:[%s8720_s2 + $0x260] ss:$20 sps:$4 sm:$0xff]  }
   0xb   :  { %v7409_v29 = vld [vmem:[%s8720_s2 + $0x25c] ss:$20 sps:$4 sm:$0xff]   ;;  %v7411_v30 = vld [vmem:[%s8720_s2 + $0x264] ss:$20 sps:$4 sm:$0xff]   ;;  %v7419_v34 = vld [vmem:[%s8720_s2 + $0xc] ss:$20 sps:$4 sm:$0xff]  }
   0xc   :  { %372 = vmatpush1.bf16.msra.mxu0 %v7383_v11  ;;  %445 = vmatpush1.bf16.msra.mxu1 %v7384_v12  ;;  %v7416_v33 = vld [vmem:[%s8720_s2 + $0x150] ss:$20 sps:$4 sm:$0xff]   ;;  %v7417_v36 = vld [vmem:[%s8720_s2 + $0x8] ss:$20 sps:$4 sm:$0xff]   ;;  %v7420_v37 = vld [vmem:[%s8720_s2 + $0x178] ss:$20 sps:$4 sm:$0xff]  }
   0xd   :  { %373 = vmatprep.subr.bf16.mxu0 %v7385_v13  ;;  %446 = vmatprep.subr.bf16.mxu1 %v7387_v14  ;;  %v7793_v35 = vld [vmem:[%s8721_s1] sm:$0xff]   ;;  %v7423_v38 = vld [vmem:[%s8720_s2 + $0x34] ss:$20 sps:$4 sm:$0xff]   ;;  %v7428_v41 = vld [vmem:[%s8720_s2 + $0x5c] ss:$20 sps:$4 sm:$0xff]   ;;  %s7653_s18 = smov 125  }
   0xe   :  { %v7421_v39 = vld [vmem:[%s8720_s2 + $0x30] ss:$20 sps:$4 sm:$0xff]   ;;  %v7425_v40 = vld [vmem:[%s8720_s2 + $0x1a0] ss:$20 sps:$4 sm:$0xff]   ;;  %v7820_v42 = vld [vmem:[%s8721_s1 + $0x8] sm:$0xff]  }
   0xf   :  { %v7426_v43 = vld [vmem:[%s8720_s2 + $0x58] ss:$20 sps:$4 sm:$0xff]   ;;  %v7429_v44 = vld [vmem:[%s8720_s2 + $0x1c8] ss:$20 sps:$4 sm:$0xff]   ;;  %v7430_v46 = vld [vmem:[%s8720_s2 + $0x80] ss:$20 sps:$4 sm:$0xff]  }
  0x10   :  { %374 = vmatpush1.bf16.msra.mxu0 %v7389_v15  ;;  %447 = vmatpush1.bf16.msra.mxu1 %v7390_v16  ;;  %v7432_v45 = vld [vmem:[%s8720_s2 + $0x84] ss:$20 sps:$4 sm:$0xff]   ;;  %v7437_v48 = vld [vmem:[%s8720_s2 + $0xac] ss:$20 sps:$4 sm:$0xff]   ;;  %v7433_v49 = vld [vmem:[%s8721_s1 + $0x10] sm:$0xff]  }
  0x11   :  { %375 = vmatprep.subr.bf16.mxu0 %v7391_v17  ;;  %448 = vmatprep.subr.bf16.mxu1 %v7393_v18  ;;  %v7434_v47 = vld [vmem:[%s8720_s2 + $0x1f0] ss:$20 sps:$4 sm:$0xff]   ;;  %v7435_v50 = vld [vmem:[%s8720_s2 + $0xa8] ss:$20 sps:$4 sm:$0xff]   ;;  %v7438_v51 = vld [vmem:[%s8720_s2 + $0x218] ss:$20 sps:$4 sm:$0xff]  }
  0x12   :  { %v7441_v52 = vld [vmem:[%s8720_s2 + $0xd4] ss:$20 sps:$4 sm:$0xff]   ;;  %v7439_v53 = vld [vmem:[%s8720_s2 + $0xd0] ss:$20 sps:$4 sm:$0xff]   ;;  %v7442_v56 = vld [vmem:[%s8721_s1 + $0x18] sm:$0xff]  }
  0x13   :  { %v7443_v54 = vld [vmem:[%s8720_s2 + $0x240] ss:$20 sps:$4 sm:$0xff]   ;;  %v7446_v55 = vld [vmem:[%s8720_s2 + $0xfc] ss:$20 sps:$4 sm:$0xff]   ;;  %v7444_v57 = vld [vmem:[%s8720_s2 + $0xf8] ss:$20 sps:$4 sm:$0xff]  }
  0x14   :  { %376 = vmatpush1.bf16.msra.mxu0 %v7395_v19  ;;  %449 = vmatpush1.bf16.msra.mxu1 %v7396_v20  ;;  %v7447_v58 = vld [vmem:[%s8720_s2 + $0x268] ss:$20 sps:$4 sm:$0xff]   ;;  %v7450_v59 = vld [vmem:[%s8720_s2 + $0x124] ss:$20 sps:$4 sm:$0xff]   ;;  %v7448_v60 = vld [vmem:[%s8720_s2 + $0x120] ss:$20 sps:$4 sm:$0xff]  }
  0x15   :  { %377 = vmatprep.subr.bf16.mxu0 %v7397_v21  ;;  %450 = vmatprep.subr.bf16.mxu1 %v7399_v22  ;;  %v7453_v61 = vld [vmem:[%s8720_s2 + $0x4] ss:$20 sps:$4 sm:$0xff]   ;;  %v7451_v63 = vld [vmem:[%s8720_s2] ss:$20 sps:$4 sm:$0xff]   ;;  %v7455_v2 = vld [vmem:[%s8720_s2 + $0x28] ss:$20 sps:$4 sm:$0xff]  }
  0x16   :  { %v7890_v62 = vld [vmem:[%s8722_s0] sm:$0xff]   ;;  %v7460_v3 = vld [vmem:[%s8720_s2 + $0x54] ss:$20 sps:$4 sm:$0xff]   ;;  %v7464_v6 = vld [vmem:[%s8720_s2 + $0x7c] ss:$20 sps:$4 sm:$0xff]  }
  0x17   :  { %v7457_v0 = vld [vmem:[%s8720_s2 + $0x2c] ss:$20 sps:$4 sm:$0xff]   ;;  %v7458_v5 = vld [vmem:[%s8720_s2 + $0x50] ss:$20 sps:$4 sm:$0xff]   ;;  %v7469_v12 = vld [vmem:[%s8720_s2 + $0xc8] ss:$20 sps:$4 sm:$0xff]  }
  0x18   :  { %378 = vmatpush1.bf16.msra.mxu0 %v7401_v23  ;;  %451 = vmatpush1.bf16.msra.mxu1 %v7402_v24  ;;  %v7910_v4 = vld [vmem:[%s8722_s0 + $0x8] sm:$0xff]   ;;  %v7467_v8 = vld [vmem:[%s8720_s2 + $0xa4] ss:$20 sps:$4 sm:$0xff]   ;;  %v7468_v9 = vld [vmem:[%s8722_s0 + $0x10] sm:$0xff]  }
  0x19   :  { %379 = vmatprep.subr.bf16.mxu0 %v7403_v25  ;;  %452 = vmatprep.subr.bf16.mxu1 %v7405_v26  ;;  %v7462_v7 = vld [vmem:[%s8720_s2 + $0x78] ss:$20 sps:$4 sm:$0xff]   ;;  %v7465_v10 = vld [vmem:[%s8720_s2 + $0xa0] ss:$20 sps:$4 sm:$0xff]   ;;  %v7472_v15 = vld [vmem:[%s8720_s2 + $0xf0] ss:$20 sps:$4 sm:$0xff]   ;;  %v1023_v26 = vlaneseq }
  0x1a   :  { %v7471_v11 = vld [vmem:[%s8720_s2 + $0xcc] ss:$20 sps:$4 sm:$0xff]   ;;  %v7474_v13 = vld [vmem:[%s8720_s2 + $0xf4] ss:$20 sps:$4 sm:$0xff]   ;;  %v7475_v14 = vld [vmem:[%s8722_s0 + $0x18] sm:$0xff]  }
  0x1b   :  { %v7478_v16 = vld [vmem:[%s8720_s2 + $0x11c] ss:$20 sps:$4 sm:$0xff]   ;;  %v7476_v17 = vld [vmem:[%s8720_s2 + $0x118] ss:$20 sps:$4 sm:$0xff]   ;;  %v7481_v20 = vld [vmem:[%s8720_s2 + $0x60] ss:$20 sps:$4 sm:$0xff]  }
  0x1c   :  { %380 = vmatpush1.bf16.msra.mxu0 %v7407_v27  ;;  %453 = vmatpush1.bf16.msra.mxu1 %v7408_v28  ;;  %v7479_v18 = vld [vmem:[%s8720_s2 + $0x10] ss:$20 sps:$4 sm:$0xff]   ;;  %v7480_v19 = vld [vmem:[%s8720_s2 + $0x38] ss:$20 sps:$4 sm:$0xff]   ;;  %v7482_v21 = vld [vmem:[%s8720_s2 + $0x88] ss:$20 sps:$4 sm:$0xff]  }
  0x1d   :  { %381 = vmatprep.subr.bf16.mxu0 %v7409_v29  ;;  %454 = vmatprep.subr.bf16.mxu1 %v7411_v30  ;;  %v7483_v22 = vld [vmem:[%s8720_s2 + $0xb0] ss:$20 sps:$4 sm:$0xff]   ;;  %v7484_v23 = vld [vmem:[%s8720_s2 + $0xd8] ss:$20 sps:$4 sm:$0xff]   ;;  %v7485_v24 = vld [vmem:[%s8720_s2 + $0x100] ss:$20 sps:$4 sm:$0xff]  }
  0x1e   :  { %v7486_v25 = vld [vmem:[%s8720_s2 + $0x128] ss:$20 sps:$4 sm:$0xff]   ;;  %v1024_v27 = vshrl.u32 %v1023_v26, 7  ;;  %v1021_v29 = vld [vmem:[%s8723_s3] sm:$0x1f]  ;;  %s7651_s3 = smov 127  }
  0x20   :  { %382 = vmatpush1.bf16.msra.mxu0 %v7413_v31  ;;  %455 = vmatpush1.bf16.msra.mxu1 %v7414_v32  ;;  %v1041_v28 = vsub.s32 4, %v1024_v27  ;;  %v1033_v31 = vsub.s32 2, %v1024_v27  ;;  %v1037_v32 = vsub.s32 3, %v1024_v27 }
  0x21   :  { %6948 = vmatprep.subr.bf16.mxu0 %v7416_v33  ;;  %883 = vmatprep.subr.bf16.mxu1 %v7419_v34 }
  0x22   :  { %v7996_v30 = vrot.slane %v1021_v29, %v1041_v28  ;;  %v1038_v34 = vrot.slane %v1021_v29, %v1037_v32 }
  0x23   :  { %473 = vmatmul.mubr.bf16.vlgmr.msra.gmra.mrb[0].mxu1 %v7793_v35  ;;  %400 = vmatmul.mubr.bf16.vlgmr.msra.gmra.mrb[0].mxu0 %v7793_v35 }
  0x24   :  { %6949 = vmatpush3.bf16.msra.mxu0 %v7416_v33  ;;  %884 = vmatpush1.bf16.msra.mxu1 %v7417_v36  ;;  %v1034_v33 = vrot.slane %v1021_v29, %v1033_v31 }
  0x25   :  { %6950 = vmatprep.subr.bf16.mxu0 %v7420_v37  ;;  %885 = vmatprep.subr.bf16.mxu1 %v7423_v38 }
  0x26   :  { %482 = vmatprep.mubr.bf16.mxu1 %v7647_v1  ;;  %409 = vmatprep.mubr.bf16.mxu0 %v7647_v1 }
  0x28   :  { %6951 = vmatpush3.bf16.msra.mxu0 %v7420_v37  ;;  %886 = vmatpush1.bf16.msra.mxu1 %v7421_v39 }
  0x29   :  { %6952 = vmatprep.subr.bf16.mxu0 %v7425_v40  ;;  %887 = vmatprep.subr.bf16.mxu1 %v7428_v41 }
  0x2b   :  { %483 = vmatmul.mubr.bf16.gmra.mrb[4].mxu1 %v7820_v42  ;;  %410 = vmatmul.mubr.bf16.gmra.mrb[4].mxu0 %v7820_v42 }
  0x2c   :  { %6953 = vmatpush3.bf16.msra.mxu0 %v7425_v40  ;;  %888 = vmatpush1.bf16.msra.mxu1 %v7426_v43 }
  0x2d   :  { %6954 = vmatprep.subr.bf16.mxu0 %v7429_v44  ;;  %889 = vmatprep.subr.bf16.mxu1 %v7432_v45 }
  0x2e   :  { %492 = vmatprep.mubr.bf16.mxu1 %v7647_v1  ;;  %419 = vmatprep.mubr.bf16.mxu0 %v7647_v1 }
  0x30   :  { %6955 = vmatpush3.bf16.msra.mxu0 %v7429_v44  ;;  %890 = vmatpush1.bf16.msra.mxu1 %v7430_v46 }
  0x31   :  { %6956 = vmatprep.subr.bf16.mxu0 %v7434_v47  ;;  %891 = vmatprep.subr.bf16.mxu1 %v7437_v48 }
  0x33   :  { %493 = vmatmul.mubr.bf16.gmra.mrb[8].mxu1 %v7433_v49  ;;  %420 = vmatmul.mubr.bf16.gmra.mrb[8].mxu0 %v7433_v49 }
  0x34   :  { %6957 = vmatpush3.bf16.msra.mxu0 %v7434_v47  ;;  %892 = vmatpush1.bf16.msra.mxu1 %v7435_v50 }
  0x35   :  { %6958 = vmatprep.subr.bf16.mxu0 %v7438_v51  ;;  %893 = vmatprep.subr.bf16.mxu1 %v7441_v52 }
  0x36   :  { %502 = vmatprep.mubr.bf16.mxu1 %v7647_v1  ;;  %429 = vmatprep.mubr.bf16.mxu0 %v7647_v1 }
  0x38   :  { %6959 = vmatpush3.bf16.msra.mxu0 %v7438_v51  ;;  %894 = vmatpush1.bf16.msra.mxu1 %v7439_v53 }
  0x39   :  { %6960 = vmatprep.subr.bf16.mxu0 %v7443_v54  ;;  %895 = vmatprep.subr.bf16.mxu1 %v7446_v55 }
  0x3b   :  { %503 = vmatmul.mubr.bf16.gmra.mrb[12].mxu1 %v7442_v56  ;;  %430 = vmatmul.mubr.bf16.gmra.mrb[12].mxu0 %v7442_v56 }
  0x3c   :  { %6961 = vmatpush3.bf16.msra.mxu0 %v7443_v54  ;;  %896 = vmatpush1.bf16.msra.mxu1 %v7444_v57 }
  0x3d   :  { %6962 = vmatprep.subr.bf16.mxu0 %v7447_v58  ;;  %897 = vmatprep.subr.bf16.mxu1 %v7450_v59 }
  0x3e   :  { %915 = vmatprep.mubr.bf16.mxu1 %v7647_v1  ;;  %6964 = vmatprep.mubr.bf16.mxu0 %v7793_v35 }
  0x40   :  { %6963 = vmatpush3.bf16.msra.mxu0 %v7447_v58  ;;  %898 = vmatpush1.bf16.msra.mxu1 %v7448_v60 }
  0x41   :  { %810 = vmatprep.subr.bf16.mxu0 %v7453_v61 }
  0x43   :  { %916 = vmatmul.mubr.bf16.vlgmr.msra.gmra.mrb[0].mxu1 %v7890_v62  ;;  %6965 = vmatmul.mubr.bf16.vlgmr.msra.gmra.mrb[16].mxu0 %v7820_v42 }
  0x44   :  { %811 = vmatpush1.bf16.msra.mxu0 %v7451_v63  ;;  %925 = vmatprep.mubr.bf16.mxu1 %v7647_v1 }
  0x45   :  { %812 = vmatprep.subr.bf16.mxu0 %v7457_v0  ;;  %6968 = vmatprep.mubr.bf16.mxu0 %v7433_v49 }
  0x48   :  { %813 = vmatpush1.bf16.msra.mxu0 %v7455_v2  ;;  %v1029_v2 = vsub.s32 1, %v1024_v27 }
  0x49   :  { %814 = vmatprep.subr.bf16.mxu0 %v7460_v3 }
  0x4b   :  { %926 = vmatmul.mubr.bf16.gmra.mrb[4].mxu1 %v7910_v4  ;;  %6969 = vmatmul.mubr.bf16.gmra.mrb[20].mxu0 %v7442_v56 }
  0x4c   :  { %815 = vmatpush1.bf16.msra.mxu0 %v7458_v5  ;;  %935 = vmatprep.mubr.bf16.mxu1 %v7647_v1 }
  0x4d   :  { %816 = vmatprep.subr.bf16.mxu0 %v7464_v6  ;;  %842 = vmatprep.mubr.bf16.mxu0 %v7647_v1 }
  0x50   :  { %817 = vmatpush1.bf16.msra.mxu0 %v7462_v7  ;;  %v1030_v7 = vrot.slane %v1021_v29, %v1029_v2 }
  0x51   :  { %818 = vmatprep.subr.bf16.mxu0 %v7467_v8 }
  0x53   :  { %936 = vmatmul.mubr.bf16.gmra.mrb[8].mxu1 %v7468_v9 }
  0x54   :  { %819 = vmatpush1.bf16.msra.mxu0 %v7465_v10  ;;  %945 = vmatprep.mubr.bf16.mxu1 %v7647_v1 }
  0x55   :  { %820 = vmatprep.subr.bf16.mxu0 %v7471_v11 }
  0x58   :  { %821 = vmatpush1.bf16.msra.mxu0 %v7469_v12 }
  0x59   :  { %822 = vmatprep.subr.bf16.mxu0 %v7474_v13 }
  0x5b   :  { %946 = vmatmul.mubr.bf16.gmra.mrb[12].mxu1 %v7475_v14 }
  0x5c   :  { %823 = vmatpush1.bf16.msra.mxu0 %v7472_v15 }
  0x5d   :  { %824 = vmatprep.subr.bf16.mxu0 %v7478_v16 }
  0x60   :  { %825 = vmatpush1.bf16.msra.mxu0 %v7476_v17 }
  0x61   :  { %6972 = vmatprep.subr.bf16.mxu0 %v7479_v18 }
  0x63   :  { %843 = vmatmul.mubr.bf16.vlgmr.msra.gmra.mrb[0].mxu0 %v7890_v62 }
  0x64   :  { %6973 = vmatpush3.bf16.msra.mxu0 %v7479_v18  ;;  %852 = vmatprep.mubr.bf16.mxu0 %v7647_v1 }
  0x65   :  { %6974 = vmatprep.subr.bf16.mxu0 %v7480_v19 }
  0x68   :  { %6975 = vmatpush3.bf16.msra.mxu0 %v7480_v19 }
  0x69   :  { %6976 = vmatprep.subr.bf16.mxu0 %v7481_v20 }
  0x6b   :  { %853 = vmatmul.mubr.bf16.gmra.mrb[4].mxu0 %v7910_v4 }
  0x6c   :  { %6977 = vmatpush3.bf16.msra.mxu0 %v7481_v20  ;;  %862 = vmatprep.mubr.bf16.mxu0 %v7647_v1 }
  0x6d   :  { %6978 = vmatprep.subr.bf16.mxu0 %v7482_v21 }
  0x70   :  { %6979 = vmatpush3.bf16.msra.mxu0 %v7482_v21 }
  0x71   :  { %6980 = vmatprep.subr.bf16.mxu0 %v7483_v22 }
  0x73   :  { %863 = vmatmul.mubr.bf16.gmra.mrb[8].mxu0 %v7468_v9 }
  0x74   :  { %6981 = vmatpush3.bf16.msra.mxu0 %v7483_v22  ;;  %872 = vmatprep.mubr.bf16.mxu0 %v7647_v1  ;;  %v7648_v1 = vmov 0.0  }
  0x75   :  { %6982 = vmatprep.subr.bf16.mxu0 %v7484_v23  ;;  %6996 = vmatprep.subr.mxu1 %v7648_v1 }
  0x76   :  { %6998 = vmatprep.mubr.msk.f32.mxu1 %vm7649_vm0, %v7648_v1 }
  0x78   :  { %6983 = vmatpush3.bf16.msra.mxu0 %v7484_v23 }
  0x79   :  { %6984 = vmatprep.subr.bf16.mxu0 %v7485_v24 }
  0x7b   :  { %873 = vmatmul.mubr.bf16.gmra.mrb[12].mxu0 %v7475_v14 }
  0x7c   :  { %6985 = vmatpush3.bf16.msra.mxu0 %v7485_v24  ;;  %6988 = vmatprep.mubr.bf16.mxu0 %v7890_v62  ;;  %v1025_v62 = vsub.s32 0, %v1024_v27 }
  0x7d   :  { %6986 = vmatprep.subr.bf16.mxu0 %v7486_v25 }
  0x7e   :  { %v1026_v6 = vrot.slane %v1021_v29, %v1025_v62 }
  0x80   :  { %6987 = vmatpush3.bf16.msra.mxu0 %v7486_v25 }
  0x81   :  { %7056 = vmatprep.subr.mxu0 %v7648_v1 }
  0x83   :  { %6989 = vmatmul.mubr.bf16.vlgmr.msra.gmra.mrb[16].mxu0 %v7910_v4 }
  0x84   :  { %6992 = vmatprep.mubr.bf16.mxu0 %v7468_v9 }
  0x8b   :  { %6993 = vmatmul.mubr.bf16.gmra.mrb[20].mxu0 %v7475_v14 }
  0x8c   :  { %7058 = vmatprep.mubr.msk.f32.mxu0 %vm7649_vm0, %v7648_v1 }
 0x116   :  { %v917_v35 = vpop.f32.mrb[0].mxu1 }
 0x117   :  { %v1050_v36 = vadd.f32 %v1034_v33, %v917_v35  ;;  %v919_v37 = vpop.f32.mrb[1].mxu1 }
 0x118   :  { %v7998_v38 = vadd.f32 %v1038_v34, %v919_v37  ;;  %v921_v39 = vpop.f32.mrb[2].mxu1 }
 0x119   :  { %v8000_v40 = vadd.f32 %v1034_v33, %v921_v39  ;;  %1233 = vrot.lane.b32.xlu0 %v1050_v36, %s7650_s16  ;;  %v923_v41 = vpop.f32.mrb[3].mxu1  ;;  %6997 = vmatpush3.xpose.msk.msra.mxu1 %vm1141_vm1, %v1050_v36 }
 0x11a   :  { %v8004_v42 = vadd.f32 %v1038_v34, %v923_v41  ;;  %7001 = vmatprep.subr.mxu1 %v7648_v1 }
 0x11c   :  { %7057 = vmatpush3.xpose.msk.msra.mxu0 %vm1141_vm1, %v8004_v42 }
 0x11d   :  { %7066 = vmatprep.subr.mxu0 %v7648_v1 }
 0x11e   :  { %v927_v43 = vpop.f32.mrb[4].mxu1 }
 0x11f   :  { %v8010_v44 = vadd.f32 %v1034_v33, %v927_v43  ;;  %v929_v45 = vpop.f32.mrb[5].mxu1 }
 0x120   :  { %v8012_v46 = vadd.f32 %v1038_v34, %v929_v45  ;;  %v931_v47 = vpop.f32.mrb[6].mxu1 }
 0x121   :  { %v8014_v48 = vadd.f32 %v1034_v33, %v931_v47  ;;  %v933_v49 = vpop.f32.mrb[7].mxu1 }
 0x122   :  { %v8016_v50 = vadd.f32 %v1038_v34, %v933_v49 }
 0x126   :  { %v937_v51 = vpop.f32.mrb[8].mxu1 }
 0x127   :  { %v8018_v52 = vadd.f32 %v1034_v33, %v937_v51  ;;  %v939_v53 = vpop.f32.mrb[9].mxu1 }
 0x128   :  { %v8020_v54 = vadd.f32 %v1038_v34, %v939_v53  ;;  %v941_v55 = vpop.f32.mrb[10].mxu1 }
 0x129   :  { %v8022_v56 = vadd.f32 %v1034_v33, %v941_v55  ;;  %v943_v57 = vpop.f32.mrb[11].mxu1 }
 0x12a   :  { %v8024_v58 = vadd.f32 %v1038_v34, %v943_v57 }
 0x12e   :  { %v947_v59 = vpop.f32.mrb[12].mxu1 }
 0x12f   :  { %v8026_v60 = vadd.f32 %v1034_v33, %v947_v59  ;;  %v949_v61 = vpop.f32.mrb[13].mxu1 }
 0x130   :  { %v8028_v63 = vadd.f32 %v1038_v34, %v949_v61  ;;  %v951_v0 = vpop.f32.mrb[14].mxu1 }
 0x131   :  { %v8030_v3 = vadd.f32 %v1034_v33, %v951_v0  ;;  %v953_v4 = vpop.f32.mrb[15].mxu1 }
 0x132   :  { %v8032_v5 = vadd.f32 %v1038_v34, %v953_v4 }
 0x136   :  { %v844_v8 = vpop.f32.mrb[0].mxu0 }
 0x137   :  { %v1048_v9 = vadd.f32 %v1026_v6, %v844_v8  ;;  %v846_v10 = vpop.f32.mrb[1].mxu0 }
 0x138   :  { %v8034_v11 = vadd.f32 %v1030_v7, %v846_v10  ;;  %v848_v12 = vpop.f32.mrb[2].mxu0 }
 0x139   :  { %v8036_v13 = vadd.f32 %v1026_v6, %v848_v12  ;;  %1231 = vrot.lane.b32.xlu0 %v1048_v9, %s7650_s16  ;;  %v850_v14 = vpop.f32.mrb[3].mxu0  ;;  %6999 = vmatmul.mubr.msk.f32.vlgmr.msra.gmra.mrb[16].mxu1 %vm1141_vm1, %v1048_v9 }
 0x13a   :  { %v8040_v15 = vadd.f32 %v1030_v7, %v850_v14  ;;  %7003 = vmatprep.mubr.msk.f32.mxu1 %vm7649_vm0, %v7648_v1 }
 0x13c   :  { %7059 = vmatmul.mubr.msk.f32.vlgmr.msra.gmra.mrb[24].mxu0 %vm1141_vm1, %v8040_v15 }
 0x13d   :  { %7068 = vmatprep.mubr.msk.f32.mxu0 %vm7649_vm0, %v7648_v1 }
 0x13e   :  { %v854_v16 = vpop.f32.mrb[4].mxu0 }
 0x13f   :  { %v8048_v17 = vadd.f32 %v1026_v6, %v854_v16  ;;  %v856_v18 = vpop.f32.mrb[5].mxu0 }
 0x140   :  { %v8050_v19 = vadd.f32 %v1030_v7, %v856_v18  ;;  %v858_v20 = vpop.f32.mrb[6].mxu0 }
 0x141   :  { %v8052_v21 = vadd.f32 %v1026_v6, %v858_v20  ;;  %v860_v22 = vpop.f32.mrb[7].mxu0 }
 0x142   :  { %v8054_v23 = vadd.f32 %v1030_v7, %v860_v22  ;;  %v8104_v22 = vand.u32 127, %v1023_v26 }
 0x144   :  { %vm1130_vm2 = vcmp.lt.s32.totalorder %v8104_v22, 2  ;;  %vm1811_vm4 = vcmp.eq.s32.totalorder %v8104_v22, 0  ;;  %vm2493_vm5 = vcmp.eq.s32.totalorder %v8104_v22, 1  ;;  %vm3175_vm6 = vcmp.eq.s32.totalorder %v8104_v22, 2 }
 0x145   :  { %vm3857_vm7 = vcmp.eq.s32.totalorder %v8104_v22, 3  ;;  %vm4539_vm8 = vcmp.eq.s32.totalorder %v8104_v22, 4  ;;  %vm5221_vm9 = vcmp.eq.s32.totalorder %v8104_v22, 5  ;;  %vm5903_vm10 = vcmp.eq.s32.totalorder %v8104_v22, 6 }
 0x146   :  { %v864_v24 = vpop.f32.mrb[8].mxu0  ;;  %vm6585_vm11 = vcmp.eq.s32.totalorder %v8104_v22, 7 }
 0x147   :  { %v8056_v25 = vadd.f32 %v1026_v6, %v864_v24  ;;  %v866_v27 = vpop.f32.mrb[9].mxu0 }
 0x148   :  { %v8058_v28 = vadd.f32 %v1030_v7, %v866_v27  ;;  %v868_v29 = vpop.f32.mrb[10].mxu0 }
 0x149   :  { %v8060_v31 = vadd.f32 %v1026_v6, %v868_v29  ;;  %v870_v32 = vpop.f32.mrb[11].mxu0 }
 0x14a   :  { %v8062_v33 = vadd.f32 %v1030_v7, %v870_v32 }
 0x14e   :  { %v874_v34 = vpop.f32.mrb[12].mxu0 }
 0x14f   :  { %v8064_v35 = vadd.f32 %v1026_v6, %v874_v34  ;;  %v876_v36 = vpop.f32.mrb[13].mxu0 }
 0x150   :  { %v8066_v37 = vadd.f32 %v1030_v7, %v876_v36  ;;  %v878_v39 = vpop.f32.mrb[14].mxu0 }
 0x151   :  { %v8068_v41 = vadd.f32 %v1026_v6, %v878_v39  ;;  %v880_v43 = vpop.f32.mrb[15].mxu0 }
 0x152   :  { %v8070_v45 = vadd.f32 %v1030_v7, %v880_v43 }
 0x156   :  { %v6990_v47 = vpop.f32.mrb[16].mxu0 }
 0x157   :  { %v8073_v49 = vadd.f32 %v6990_v47, %v7996_v30  ;;  %v990_v51 = vpop.f32.mrb[17].mxu0 }
 0x158   :  { %v8076_v53 = vadd.f32 %v7996_v30, %v990_v51  ;;  %v6991_v55 = vpop.f32.mrb[18].mxu0 }
 0x159   :  { %v8079_v57 = vadd.f32 %v6991_v55, %v7996_v30  ;;  %v993_v59 = vpop.f32.mrb[19].mxu0 }
 0x15a   :  { %v8082_v61 = vadd.f32 %v7996_v30, %v993_v59 }
 0x15e   :  { %v6994_v62 = vpop.f32.mrb[20].mxu0 }
 0x15f   :  { %v8085_v0 = vadd.f32 %v6994_v62, %v7996_v30  ;;  %v1006_v2 = vpop.f32.mrb[21].mxu0 }
 0x160   :  { %v8088_v4 = vadd.f32 %v7996_v30, %v1006_v2  ;;  %v6995_v6 = vpop.f32.mrb[22].mxu0 }
 0x161   :  { %v8091_v7 = vadd.f32 %v6995_v6, %v7996_v30  ;;  %v1009_v8 = vpop.f32.mrb[23].mxu0 }
 0x162   :  { %v8094_v9 = vadd.f32 %v7996_v30, %v1009_v8 }
 0x18b   :  { %v1234_v10 = vpop.permute.xlu0 %1233 }
 0x18c   :  { %7002 = vmatpush3.xpose.msk.msra.mxu1 %vm1141_vm1, %v1234_v10 }
 0x18d   :  { %7006 = vmatprep.subr.mxu1 %v7648_v1 }
 0x1ab   :  { %v1232_v12 = vpop.permute.xlu0 %1231 }
 0x1ac   :  { %7004 = vmatmul.mubr.msk.f32.vlgmr.msra.gmra.mrb[18].mxu1 %vm1141_vm1, %v1232_v12 }
 0x1ad   :  { %7008 = vmatprep.mubr.msk.f32.mxu1 %vm7649_vm0, %v7648_v1 }
 0x20c   :  { %v1214_v14 = vpop.f32.mrb[16].mxu1 }
 0x20d   :  { %v7000_v16 = vpop.f32.mrb[17].mxu1  ;;  %v1218_v32 = vsel %vm1130_vm2, %v1214_v14, -1e+30 }
 0x20e   :  { %v1220_v34 = vsel %vm1219_vm3, %v1218_v32, -inf }
 0x20f   :  { %v8101_v18 = vpop.f32.mrb[24].mxu0 }
 0x210   :  { %v7060_v20 = vpop.f32.mrb[25].mxu0 }
 0x27f   :  { %v1305_v30 = vpop.f32.mrb[18].mxu1 }
 0x280   :  { %v1309_v24 = vsel %vm1130_vm2, %v1305_v30, -1e+30  ;;  %v7005_v27 = vpop.f32.mrb[19].mxu1 }
 0x281   :  { %v1310_v29 = vsel %vm1219_vm3, %v1309_v24, -inf }
 0x282   :  { %1311 = vmax.xlane.f32.xlu1 %v1310_v29 }
 0x286   :  { %1221 = vmax.xlane.f32.xlu1 %v1220_v34 }
 0x30f   :  { %v1312_v36 = vpop.xlane.xlu1 %1311 }
 0x310   :  { %v1313_v26 = vsub.f32 %v1309_v24, %v1312_v36 }
 0x312   :  { %v1314_v39 = vmul.f32 1.442695, %v1313_v26 }
 0x313   :  { %v1222_v43 = vpop.xlane.xlu1 %1221 }
 0x314   :  { %7487 = vpow2.f32 %v1314_v39  ;;  %v1223_v47 = vsub.f32 %v1218_v32, %v1222_v43 }
 0x316   :  { %v1224_v51 = vmul.f32 1.442695, %v1223_v47 }
 0x318   :  { %7489 = vpow2.f32 %v1224_v51 }
 0x31e   :  { %v7488_v55 = vpop.eup %7487 }
 0x31f   :  { %v1316_v59 = vsel %vm1219_vm3, %v7488_v55, 0.0 }
 0x320   :  { %1317 = vadd.xlane.f32.xlu0 %v1316_v59 }
 0x322   :  { %v7490_v62 = vpop.eup %7489 }
 0x323   :  { %v1226_v2 = vsel %vm1219_vm3, %v7490_v62, 0.0 }
 0x324   :  { %1227 = vadd.xlane.f32.xlu1 %v1226_v2 }
 0x335   :  { %1322 = vrot.lane.b32.xlu1 %v8076_v53, %s7651_s3 }
 0x336   :  { %1559 = vrot.lane.b32.xlu0 %v8076_v53, %s7652_s17 }
 0x3ad   :  { %v1318_v6 = vpop.xlane.xlu0 %1317 }
 0x3ae   :  { %7491 = vrcp.f32 %v1318_v6 }
 0x3b1   :  { %v1228_v8 = vpop.xlane.xlu1 %1227  ;;  %v1560_v30 = vpop.permute.xlu0 %1559 }
 0x3b2   :  { %7493 = vrcp.f32 %v1228_v8 }
 0x3b5   :  { %v1323_v10 = vpop.permute.xlu1 %1322 }
 0x3b6   :  { %7007 = vmatpush3.msra.mxu1 %v1323_v10 }
 0x3b7   :  { %7011 = vmatprep.subr.mxu1 %v7648_v1 }
 0x3b8   :  { %v7492_v12 = vpop.eup %7491 }
 0x3b9   :  { %v1320_v14 = vmul.f32 %v7492_v12, %v7488_v55 }
 0x3bb   :  { %7009 = vmatmul.mubr.msk.f32.vlgmr.msra.gmra.mrb[20].mxu1 %vm1219_vm3, %v1320_v14 }
 0x3bc   :  { %v7494_v16 = vpop.eup %7493  ;;  %7012 = vmatpush3.msra.mxu1 %v8076_v53  ;;  %7013 = vmatprep.mubr.msk.f32.mxu1 %vm7649_vm0, %v7648_v1 }
 0x3bd   :  { %v1230_v20 = vmul.f32 %v7494_v16, %v7490_v62  ;;  %7016 = vmatprep.subr.mxu1 %v7648_v1 }
 0x3bf   :  { %7014 = vmatmul.mubr.msk.f32.vlgmr.msra.gmra.mrb[22].mxu1 %vm1219_vm3, %v1230_v20 }
 0x3c0   :  { %7018 = vmatprep.mubr.msk.f32.mxu1 %vm7649_vm0, %v7648_v1 }
 0x3c3   :  { %7017 = vmatpush3.xpose.msk.msra.mxu1 %vm1141_vm1, %v7998_v38 }
 0x3c4   :  { %7021 = vmatprep.subr.mxu1 %v7648_v1 }
 0x3c6   :  { %7019 = vmatmul.mubr.msk.f32.vlgmr.msra.gmra.mrb[24].mxu1 %vm1141_vm1, %v8034_v11 }
 0x3c7   :  { %7022 = vmatpush3.msra.mxu1 %v1560_v30  ;;  %7023 = vmatprep.mubr.msk.f32.mxu1 %vm7649_vm0, %v7648_v1 }
 0x3c8   :  { %7026 = vmatprep.subr.mxu1 %v7648_v1 }
 0x48e   :  { %v1394_v24 = vpop.f32.mrb[20].mxu1 }
 0x48f   :  { %v7010_v27 = vpop.f32.mrb[21].mxu1 }
 0x492   :  { %v1467_v29 = vpop.f32.mrb[22].mxu1 }
 0x493   :  { %v1468_v32 = vadd.f32 %v1467_v29, %v1394_v24  ;;  %v7015_v34 = vpop.f32.mrb[23].mxu1 }
 0x499   :  { %v1543_v36 = vpop.f32.mrb[24].mxu1 }
 0x49a   :  { %v1547_v26 = vsel %vm1130_vm2, %v1543_v36, -1e+30  ;;  %v7020_v39 = vpop.f32.mrb[25].mxu1 }
 0x49b   :  { %v1548_v43 = vsel %vm1219_vm3, %v1547_v26, -inf }
 0x49c   :  { %1549 = vmax.xlane.f32.xlu1 %v1548_v43 }
 0x4ad   :  { %1636 = vrot.lane.b32.xlu1 %v8034_v11, %s7650_s16 }
 0x529   :  { %v1550_v47 = vpop.xlane.xlu1 %1549 }
 0x52a   :  { %v1551_v51 = vsub.f32 %v1547_v26, %v1550_v47 }
 0x52c   :  { %v1552_v55 = vmul.f32 1.442695, %v1551_v51 }
 0x52d   :  { %v1637_v11 = vpop.permute.xlu1 %1636 }
 0x52e   :  { %7495 = vpow2.f32 %v1552_v55 }
 0x538   :  { %v7496_v59 = vpop.eup %7495 }
 0x539   :  { %v1554_v62 = vsel %vm1219_vm3, %v7496_v59, 0.0 }
 0x53a   :  { %1555 = vadd.xlane.f32.xlu0 %v1554_v62 }
 0x550   :  { %1638 = vrot.lane.b32.xlu0 %v7998_v38, %s7650_s16 }
 0x5c7   :  { %v1556_v2 = vpop.xlane.xlu0 %1555 }
 0x5c8   :  { %7497 = vrcp.f32 %v1556_v2 }
 0x5cb   :  { %v1639_v10 = vpop.permute.xlu0 %1638 }
 0x5d2   :  { %v7498_v6 = vpop.eup %7497 }
 0x5d3   :  { %v1558_v8 = vmul.f32 %v7498_v6, %v7496_v59 }
 0x5d5   :  { %7024 = vmatmul.mubr.msk.f32.vlgmr.msra.gmra.mrb[26].mxu1 %vm1219_vm3, %v1558_v8 }
 0x5d6   :  { %7027 = vmatpush3.xpose.msk.msra.mxu1 %vm1141_vm1, %v1639_v10  ;;  %7028 = vmatprep.mubr.msk.f32.mxu1 %vm7649_vm0, %v7648_v1 }
 0x5d7   :  { %7031 = vmatprep.subr.mxu1 %v7648_v1 }
 0x5d9   :  { %7029 = vmatmul.mubr.msk.f32.vlgmr.msra.gmra.mrb[28].mxu1 %vm1141_vm1, %v1637_v11 }
 0x5da   :  { %7033 = vmatprep.mubr.msk.f32.mxu1 %vm7649_vm0, %v7648_v1 }
 0x6a8   :  { %v1631_v38 = vpop.f32.mrb[26].mxu1 }
 0x6a9   :  { %v1635_v12 = vadd.f32 %v1631_v38, %v1468_v32  ;;  %v7025_v14 = vpop.f32.mrb[27].mxu1 }
 0x6ac   :  { %v1710_v16 = vpop.f32.mrb[28].mxu1 }
 0x6ad   :  { %v1714_v20 = vsel %vm1130_vm2, %v1710_v16, -1e+30  ;;  %v7030_v30 = vpop.f32.mrb[29].mxu1 }
 0x6ae   :  { %v1715_v24 = vsel %vm1219_vm3, %v1714_v20, -inf }
 0x6af   :  { %1716 = vmax.xlane.f32.xlu0 %v1715_v24 }
 0x6c5   :  { %1726 = vrot.lane.b32.xlu0 %v8076_v53, %s7653_s18 }
 0x6c9   :  { %1914 = vrot.lane.b32.xlu0 %v8036_v13, %s7650_s16 }
 0x6cd   :  { %2321 = vrot.lane.b32.xlu0 %v8004_v42, %s7650_s16 }
 0x6d1   :  { %2319 = vrot.lane.b32.xlu0 %v8040_v15, %s7650_s16  ;;  %v10_v15 = vstv %s8724_s4 }
 0x6d2   :  { %11 = vst [vmem:[#allocation3] sm:$0x1] %v10_v15 }
 0x6d9   :  { %v1131_v43 = vld [vmem:[#allocation3] sm:$0x1] }
 0x6da   :  { %7356 = vpush %v1131_v43 }
 0x70b   :  { %s7357_s4 = spop %7356 }
 0x73c   :  { %v1717_v27 = vpop.xlane.xlu0 %1716 }
 0x73d   :  { %v1718_v29 = vsub.f32 %v1714_v20, %v1717_v27 }
 0x73f   :  { %v1719_v32 = vmul.f32 1.442695, %v1718_v29 }
 0x740   :  { %v1727_v34 = vpop.permute.xlu0 %1726 }
 0x741   :  { %7499 = vpow2.f32 %v1719_v32  ;;  %7032 = vmatpush3.msra.mxu1 %v1727_v34 }
 0x742   :  { %7036 = vmatprep.subr.mxu1 %v7648_v1 }
 0x744   :  { %v1915_v36 = vpop.permute.xlu0 %1914 }
 0x748   :  { %v2322_v26 = vpop.permute.xlu0 %2321 }
 0x749   :  { %7067 = vmatpush3.xpose.msk.msra.mxu0 %vm1141_vm1, %v2322_v26 }
 0x74a   :  { %7076 = vmatprep.subr.mxu0 %v7648_v1 }
 0x74b   :  { %v7500_v53 = vpop.eup %7499 }
 0x74c   :  { %v2320_v39 = vpop.permute.xlu0 %2319  ;;  %v1721_v42 = vsel %vm1219_vm3, %v7500_v53, 0.0 }
 0x74d   :  { %1722 = vadd.xlane.f32.xlu1 %v1721_v42  ;;  %7069 = vmatmul.mubr.msk.f32.vlgmr.msra.gmra.mrb[26].mxu0 %vm1141_vm1, %v2320_v39 }
 0x74e   :  { %7077 = vmatpush3.xpose.msk.msra.mxu0 %vm1141_vm1, %v8010_v44  ;;  %7078 = vmatprep.mubr.msk.f32.mxu0 %vm7649_vm0, %v7648_v1 }
 0x74f   :  { %7086 = vmatprep.subr.mxu0 %v7648_v1 }
 0x751   :  { %7079 = vmatmul.mubr.msk.f32.vlgmr.msra.gmra.mrb[28].mxu0 %vm1141_vm1, %v8048_v17 }
 0x752   :  { %7088 = vmatprep.mubr.msk.f32.mxu0 %vm7649_vm0, %v7648_v1 }
 0x75e   :  { %1916 = vrot.lane.b32.xlu1 %v8000_v40, %s7650_s16 }
 0x7da   :  { %v1723_v47 = vpop.xlane.xlu1 %1722 }
 0x7db   :  { %7501 = vrcp.f32 %v1723_v47 }
 0x7de   :  { %v1917_v59 = vpop.permute.xlu1 %1916 }
 0x7e5   :  { %v7502_v51 = vpop.eup %7501 }
 0x7e6   :  { %v1725_v55 = vmul.f32 %v7502_v51, %v7500_v53 }
 0x7e8   :  { %7034 = vmatmul.mubr.msk.f32.vlgmr.msra.gmra.mrb[30].mxu1 %vm1219_vm3, %v1725_v55 }
 0x7e9   :  { %7037 = vmatpush3.xpose.msk.msra.mxu1 %vm1141_vm1, %v8000_v40  ;;  %7038 = vmatprep.mubr.msk.f32.mxu1 %vm7649_vm0, %v7648_v1 }
 0x7ea   :  { %7041 = vmatprep.subr.mxu1 %v7648_v1 }
 0x7ec   :  { %7039 = vmatmul.mubr.msk.f32.vlgmr.msra.gmra.mrb[32].mxu1 %vm1141_vm1, %v8036_v13 }
 0x7ed   :  { %7042 = vmatpush3.xpose.msk.msra.mxu1 %vm1141_vm1, %v1917_v59  ;;  %7043 = vmatprep.mubr.msk.f32.mxu1 %vm7649_vm0, %v7648_v1 }
 0x7ee   :  { %7046 = vmatprep.subr.mxu1 %v7648_v1 }
 0x7f0   :  { %7044 = vmatmul.mubr.msk.f32.vlgmr.msra.gmra.mrb[34].mxu1 %vm1141_vm1, %v1915_v36 }
 0x7f1   :  { %7048 = vmatprep.mubr.msk.f32.mxu1 %vm7649_vm0, %v7648_v1 }
 0x820   :  { %v2393_v40 = vpop.f32.mrb[26].mxu0 }
 0x821   :  { %v7070_v62 = vpop.f32.mrb[27].mxu0  ;;  %v2397_v32 = vsel %vm1130_vm2, %v2393_v40, -1e+30 }
 0x822   :  { %v2398_v34 = vsel %vm1219_vm3, %v2397_v32, -inf }
 0x824   :  { %v8197_v2 = vpop.f32.mrb[28].mxu0 }
 0x825   :  { %v7080_v6 = vpop.f32.mrb[29].mxu0 }
 0x8bb   :  { %v1798_v8 = vpop.f32.mrb[30].mxu1 }
 0x8bc   :  { %v8199_v10 = vadd.f32 %v1798_v8, %v1635_v12  ;;  %v7035_v13 = vpop.f32.mrb[31].mxu1  ;;  %v2230_v12 = vsel %vm1130_vm2, %v8101_v18, -1e+30 }
 0x8bd   :  { %v2231_v29 = vsel %vm1219_vm3, %v2230_v12, -inf }
 0x8bf   :  { %v1898_v11 = vpop.f32.mrb[32].mxu1 }
 0x8c0   :  { %v1902_v38 = vsel %vm1130_vm2, %v1898_v11, -1e+30  ;;  %v7040_v14 = vpop.f32.mrb[33].mxu1 }
 0x8c1   :  { %v1903_v16 = vsel %vm1219_vm3, %v1902_v38, -inf }
 0x8c2   :  { %1904 = vmax.xlane.f32.xlu1 %v1903_v16 }
 0x8c3   :  { %v1988_v20 = vpop.f32.mrb[34].mxu1 }
 0x8c4   :  { %v1992_v30 = vsel %vm1130_vm2, %v1988_v20, -1e+30  ;;  %v7045_v24 = vpop.f32.mrb[35].mxu1 }
 0x8c5   :  { %v1993_v27 = vsel %vm1219_vm3, %v1992_v30, -inf }
 0x8c6   :  { %1994 = vmax.xlane.f32.xlu0 %v1993_v27 }
 0x8ca   :  { %2232 = vmax.xlane.f32.xlu0 %v2231_v29 }
 0x8ce   :  { %2399 = vmax.xlane.f32.xlu0 %v2398_v34 }
 0x94f   :  { %v1905_v26 = vpop.xlane.xlu1 %1904 }
 0x950   :  { %v1906_v42 = vsub.f32 %v1902_v38, %v1905_v26 }
 0x952   :  { %v1907_v18 = vmul.f32 1.442695, %v1906_v42 }
 0x953   :  { %v1995_v36 = vpop.xlane.xlu0 %1994 }
 0x954   :  { %v1996_v13 = vsub.f32 %v1992_v30, %v1995_v36 }
 0x956   :  { %v1997_v11 = vmul.f32 1.442695, %v1996_v13 }
 0x957   :  { %v2233_v53 = vpop.xlane.xlu0 %2232 }
 0x958   :  { %v2234_v39 = vsub.f32 %v2230_v12, %v2233_v53 }
 0x95a   :  { %v2235_v15 = vmul.f32 1.442695, %v2234_v39 }
 0x95b   :  { %v2400_v43 = vpop.xlane.xlu0 %2399 }
 0x95c   :  { %7503 = vpow2.f32 %v2235_v15  ;;  %v2401_v47 = vsub.f32 %v2397_v32, %v2400_v43 }
 0x95e   :  { %v2402_v51 = vmul.f32 1.442695, %v2401_v47 }
 0x960   :  { %7505 = vpow2.f32 %v2402_v51 }
 0x961   :  { %7507 = vpow2.f32 %v1907_v18 }
 0x962   :  { %7509 = vpow2.f32 %v1997_v11 }
 0x966   :  { %v7504_v55 = vpop.eup %7503 }
 0x967   :  { %v2237_v59 = vsel %vm1219_vm3, %v7504_v55, 0.0 }
 0x968   :  { %2238 = vadd.xlane.f32.xlu1 %v2237_v59 }
 0x96a   :  { %v7506_v40 = vpop.eup %7505 }
 0x96b   :  { %v2404_v62 = vsel %vm1219_vm3, %v7506_v40, 0.0  ;;  %v7508_v6 = vpop.eup %7507 }
 0x96c   :  { %2405 = vadd.xlane.f32.xlu0 %v2404_v62  ;;  %v1909_v8 = vsel %vm1219_vm3, %v7508_v6, 0.0  ;;  %v7510_v38 = vpop.eup %7509 }
 0x96d   :  { %v1999_v14 = vsel %vm1219_vm3, %v7510_v38, 0.0 }
 0x970   :  { %1910 = vadd.xlane.f32.xlu0 %v1909_v8 }
 0x979   :  { %2005 = vrot.lane.b32.xlu1 %v8082_v61, %s7651_s3 }
 0x986   :  { %2242 = vrot.lane.b32.xlu0 %v8082_v61, %s7652_s17 }
 0x98a   :  { %2596 = vrot.lane.b32.xlu0 %v8048_v17, %s7650_s16 }
 0x99d   :  { %2000 = vadd.xlane.f32.xlu1 %v1999_v14 }
 0x9ae   :  { %2409 = vrot.lane.b32.xlu1 %v8082_v61, %s7653_s18 }
 0x9b2   :  { %2598 = vrot.lane.b32.xlu1 %v8010_v44, %s7650_s16 }
 0x9f5   :  { %v2239_v16 = vpop.xlane.xlu1 %2238 }
 0x9f9   :  { %v2006_v20 = vpop.permute.xlu1 %2005  ;;  %v2406_v30 = vpop.xlane.xlu0 %2405 }
 0x9fa   :  { %7047 = vmatpush3.msra.mxu1 %v2006_v20 }
 0x9fb   :  { %7051 = vmatprep.subr.mxu1 %v7648_v1 }
 0x9fd   :  { %v1911_v24 = vpop.xlane.xlu0 %1910 }
 0xa01   :  { %v2243_v34 = vpop.permute.xlu0 %2242 }
 0xa05   :  { %v2597_v42 = vpop.permute.xlu0 %2596 }
 0xa2a   :  { %v2001_v17 = vpop.xlane.xlu1 %2000 }
 0xa2b   :  { %7511 = vrcp.f32 %v2001_v17 }
 0xa2c   :  { %7513 = vrcp.f32 %v1911_v24 }
 0xa2d   :  { %7515 = vrcp.f32 %v2239_v16 }
 0xa2e   :  { %7517 = vrcp.f32 %v2406_v30  ;;  %v2410_v53 = vpop.permute.xlu1 %2409 }
 0xa32   :  { %v2599_v39 = vpop.permute.xlu1 %2598 }
 0xa35   :  { %v7512_v27 = vpop.eup %7511 }
 0xa36   :  { %v2003_v12 = vmul.f32 %v7512_v27, %v7510_v38  ;;  %v7514_v29 = vpop.eup %7513  ;;  %v2584_v27 = vsel %vm1130_vm2, %v8197_v2, -1e+30 }
 0xa37   :  { %v1913_v44 = vmul.f32 %v7514_v29, %v7508_v6  ;;  %v7516_v32 = vpop.eup %7515 }
 0xa38   :  { %7049 = vmatmul.mubr.msk.f32.vlgmr.msra.gmra.mrb[36].mxu1 %vm1219_vm3, %v2003_v12  ;;  %v2241_v36 = vmul.f32 %v7516_v32, %v7504_v55  ;;  %v7518_v26 = vpop.eup %7517  ;;  %v2585_v12 = vsel %vm1219_vm3, %v2584_v27, -inf }
 0xa39   :  { %7052 = vmatpush3.msra.mxu1 %v8082_v61  ;;  %7053 = vmatprep.mubr.msk.f32.mxu1 %vm7649_vm0, %v7648_v1  ;;  %v2408_v61 = vmul.f32 %v7518_v26, %v7506_v40 }
 0xa3a   :  { %7061 = vmatprep.subr.mxu1 %v7648_v1 }
 0xa3c   :  { %7054 = vmatmul.mubr.msk.f32.vlgmr.msra.gmra.mrb[38].mxu1 %vm1219_vm3, %v1913_v44 }
 0xa3d   :  { %7062 = vmatpush3.msra.mxu1 %v2243_v34  ;;  %7063 = vmatprep.mubr.msk.f32.mxu1 %vm7649_vm0, %v7648_v1 }
 0xa3e   :  { %7071 = vmatprep.subr.mxu1 %v7648_v1 }
 0xa40   :  { %7064 = vmatmul.mubr.msk.f32.vlgmr.msra.gmra.mrb[40].mxu1 %vm1219_vm3, %v2241_v36 }
 0xa41   :  { %7072 = vmatpush3.msra.mxu1 %v2410_v53  ;;  %7073 = vmatprep.mubr.msk.f32.mxu1 %vm7649_vm0, %v7648_v1 }
 0xa42   :  { %7081 = vmatprep.subr.mxu1 %v7648_v1 }
 0xa44   :  { %7074 = vmatmul.mubr.msk.f32.vlgmr.msra.gmra.mrb[42].mxu1 %vm1219_vm3, %v2408_v61 }
 0xa45   :  { %7083 = vmatprep.mubr.msk.f32.mxu1 %vm7649_vm0, %v7648_v1 }
 0xa48   :  { %7082 = vmatpush3.xpose.msk.msra.mxu1 %vm1141_vm1, %v2599_v39 }
 0xa49   :  { %7091 = vmatprep.subr.mxu1 %v7648_v1 }
 0xa4b   :  { %7084 = vmatmul.mubr.msk.f32.vlgmr.msra.gmra.mrb[44].mxu1 %vm1141_vm1, %v2597_v42 }
 0xa4c   :  { %7092 = vmatpush3.msra.mxu1 %v8073_v49  ;;  %7093 = vmatprep.mubr.msk.f32.mxu1 %vm7649_vm0, %v7648_v1 }
 0xa4d   :  { %7101 = vmatprep.subr.mxu1 %v7648_v1 }
 0xb0b   :  { %v2077_v15 = vpop.f32.mrb[36].mxu1 }
 0xb0c   :  { %v7050_v43 = vpop.f32.mrb[37].mxu1 }
 0xb0f   :  { %v2150_v47 = vpop.f32.mrb[38].mxu1 }
 0xb10   :  { %v2151_v18 = vadd.f32 %v2150_v47, %v2077_v15  ;;  %v7055_v51 = vpop.f32.mrb[39].mxu1 }
 0xb13   :  { %v2314_v55 = vpop.f32.mrb[40].mxu1 }
 0xb14   :  { %v2318_v59 = vadd.f32 %v2314_v55, %v2151_v18  ;;  %v7065_v40 = vpop.f32.mrb[41].mxu1 }
 0xb17   :  { %v2481_v62 = vpop.f32.mrb[42].mxu1 }
 0xb18   :  { %v8252_v6 = vadd.f32 %v2481_v62, %v2318_v59  ;;  %v7075_v8 = vpop.f32.mrb[43].mxu1 }
 0xb1e   :  { %v2670_v13 = vpop.f32.mrb[44].mxu1 }
 0xb1f   :  { %v2674_v11 = vsel %vm1130_vm2, %v2670_v13, -1e+30  ;;  %v7085_v38 = vpop.f32.mrb[45].mxu1 }
 0xb20   :  { %v2675_v14 = vsel %vm1219_vm3, %v2674_v11, -inf }
 0xb21   :  { %2676 = vmax.xlane.f32.xlu1 %v2675_v14 }
 0xb32   :  { %3003 = vrot.lane.b32.xlu1 %v8012_v46, %s7650_s16 }
 0xb36   :  { %3001 = vrot.lane.b32.xlu1 %v8050_v19, %s7650_s16 }
 0xbae   :  { %v2677_v16 = vpop.xlane.xlu1 %2676 }
 0xbaf   :  { %v2678_v20 = vsub.f32 %v2674_v11, %v2677_v16 }
 0xbb1   :  { %v2679_v30 = vmul.f32 1.442695, %v2678_v20 }
 0xbb2   :  { %v3004_v36 = vpop.permute.xlu1 %3003 }
 0xbb3   :  { %7519 = vpow2.f32 %v2679_v30 }
 0xbb6   :  { %v3002_v2 = vpop.permute.xlu1 %3001 }
 0xbbd   :  { %v7520_v24 = vpop.eup %7519 }
 0xbbe   :  { %v2681_v17 = vsel %vm1219_vm3, %v7520_v24, 0.0 }
 0xbbf   :  { %2682 = vadd.xlane.f32.xlu0 %v2681_v17 }
 0xbd5   :  { %2687 = vrot.lane.b32.xlu0 %v8073_v49, %s7651_s3 }
 0xbf4   :  { %2586 = vmax.xlane.f32.xlu0 %v2585_v12 }
 0xc4c   :  { %v2683_v29 = vpop.xlane.xlu0 %2682 }
 0xc4d   :  { %7521 = vrcp.f32 %v2683_v29 }
 0xc50   :  { %v2688_v44 = vpop.permute.xlu0 %2687 }
 0xc51   :  { %7087 = vmatpush3.msra.mxu0 %v2688_v44 }
 0xc52   :  { %7096 = vmatprep.subr.mxu0 %v7648_v1 }
 0xc57   :  { %v7522_v32 = vpop.eup %7521 }
 0xc58   :  { %v2685_v34 = vmul.f32 %v7522_v32, %v7520_v24 }
 0xc5a   :  { %7089 = vmatmul.mubr.msk.f32.vlgmr.msra.gmra.mrb[30].mxu0 %vm1219_vm3, %v2685_v34 }
 0xc5b   :  { %7097 = vmatpush3.xpose.msk.msra.mxu0 %vm1141_vm1, %v8012_v46  ;;  %7098 = vmatprep.mubr.msk.f32.mxu0 %vm7649_vm0, %v7648_v1 }
 0xc5c   :  { %7106 = vmatprep.subr.mxu0 %v7648_v1 }
 0xc5e   :  { %7099 = vmatmul.mubr.msk.f32.vlgmr.msra.gmra.mrb[32].mxu0 %vm1141_vm1, %v8050_v19 }
 0xc5f   :  { %7107 = vmatpush3.xpose.msk.msra.mxu0 %vm1141_vm1, %v3004_v36  ;;  %7108 = vmatprep.mubr.msk.f32.mxu0 %vm7649_vm0, %v7648_v1 }
 0xc60   :  { %7116 = vmatprep.subr.mxu0 %v7648_v1 }
 0xc62   :  { %7109 = vmatmul.mubr.msk.f32.vlgmr.msra.gmra.mrb[34].mxu0 %vm1141_vm1, %v3002_v2 }
 0xc63   :  { %7117 = vmatpush3.xpose.msk.msra.mxu0 %vm1141_vm1, %v8014_v48  ;;  %7118 = vmatprep.mubr.msk.f32.mxu0 %vm7649_vm0, %v7648_v1 }
 0xc64   :  { %7126 = vmatprep.subr.mxu0 %v7648_v1 }
 0xc66   :  { %7119 = vmatmul.mubr.msk.f32.vlgmr.msra.gmra.mrb[36].mxu0 %vm1141_vm1, %v8052_v21 }
 0xc67   :  { %7128 = vmatprep.mubr.msk.f32.mxu0 %vm7649_vm0, %v7648_v1 }
 0xc81   :  { %v2587_v46 = vpop.xlane.xlu0 %2586 }
 0xc82   :  { %v2588_v19 = vsub.f32 %v2584_v27, %v2587_v46 }
 0xc84   :  { %v2589_v26 = vmul.f32 1.442695, %v2588_v19 }
 0xc86   :  { %7523 = vpow2.f32 %v2589_v26 }
 0xc90   :  { %v7524_v59 = vpop.eup %7523 }
 0xc91   :  { %v2591_v8 = vsel %vm1219_vm3, %v7524_v59, 0.0 }
 0xd2d   :  { %v8291_v53 = vpop.f32.mrb[30].mxu0 }
 0xd2e   :  { %v7090_v61 = vpop.f32.mrb[31].mxu0 }
 0xd31   :  { %v2908_v39 = vpop.f32.mrb[32].mxu0 }
 0xd32   :  { %v2912_v42 = vsel %vm1130_vm2, %v2908_v39, -1e+30  ;;  %v7100_v15 = vpop.f32.mrb[33].mxu0 }
 0xd33   :  { %v2913_v43 = vsel %vm1219_vm3, %v2912_v42, -inf }
 0xd34   :  { %2914 = vmax.xlane.f32.xlu1 %v2913_v43 }
 0xd35   :  { %v3075_v47 = vpop.f32.mrb[34].mxu0 }
 0xd36   :  { %v3079_v18 = vsel %vm1130_vm2, %v3075_v47, -1e+30  ;;  %v7110_v51 = vpop.f32.mrb[35].mxu0 }
 0xd37   :  { %v3080_v55 = vsel %vm1219_vm3, %v3079_v18, -inf }
 0xd38   :  { %3081 = vmax.xlane.f32.xlu0 %v3080_v55 }
 0xd39   :  { %v8299_v40 = vpop.f32.mrb[36].mxu0 }
 0xd3a   :  { %v7120_v62 = vpop.f32.mrb[37].mxu0 }
 0xd3c   :  { %2592 = vadd.xlane.f32.xlu0 %v2591_v8 }
 0xd45   :  { %2924 = vrot.lane.b32.xlu1 %v8073_v49, %s7652_s17 }
 0xdc1   :  { %v2915_v13 = vpop.xlane.xlu1 %2914 }
 0xdc2   :  { %v2916_v11 = vsub.f32 %v2912_v42, %v2915_v13 }
 0xdc4   :  { %v2917_v38 = vmul.f32 1.442695, %v2916_v11 }
 0xdc5   :  { %v3082_v14 = vpop.xlane.xlu0 %3081  ;;  %v2925_v32 = vpop.permute.xlu1 %2924 }
 0xdc6   :  { %7525 = vpow2.f32 %v2917_v38  ;;  %v3083_v16 = vsub.f32 %v3079_v18, %v3082_v14 }
 0xdc8   :  { %v3084_v20 = vmul.f32 1.442695, %v3083_v16 }
 0xdc9   :  { %v2593_v30 = vpop.xlane.xlu0 %2592 }
 0xdca   :  { %7527 = vpow2.f32 %v3084_v20 }
 0xdcb   :  { %7529 = vrcp.f32 %v2593_v30  ;;  %v3266_v30 = vsel %vm1130_vm2, %v8299_v40, -1e+30 }
 0xdd0   :  { %v7526_v24 = vpop.eup %7525 }
 0xdd1   :  { %v2919_v17 = vsel %vm1219_vm3, %v7526_v24, 0.0 }
 0xdd2   :  { %2920 = vadd.xlane.f32.xlu1 %v2919_v17 }
 0xdd4   :  { %v7528_v27 = vpop.eup %7527 }
 0xdd5   :  { %v7530_v12 = vpop.eup %7529  ;;  %v3086_v29 = vsel %vm1219_vm3, %v7528_v27, 0.0 }
 0xdd6   :  { %v2595_v44 = vmul.f32 %v7530_v12, %v7524_v59  ;;  %3087 = vadd.xlane.f32.xlu0 %v3086_v29 }
 0xdd8   :  { %7094 = vmatmul.mubr.msk.f32.vlgmr.msra.gmra.mrb[46].mxu1 %vm1219_vm3, %v2595_v44 }
 0xdd9   :  { %7102 = vmatpush3.msra.mxu1 %v2925_v32  ;;  %7103 = vmatprep.mubr.msk.f32.mxu1 %vm7649_vm0, %v7648_v1 }
 0xdda   :  { %7111 = vmatprep.subr.mxu1 %v7648_v1 }
 0xde3   :  { %3280 = vrot.lane.b32.xlu1 %v8014_v48, %s7650_s16 }
 0xde7   :  { %3278 = vrot.lane.b32.xlu1 %v8052_v21, %s7650_s16 }
 0xdec   :  { %3091 = vrot.lane.b32.xlu0 %v8073_v49, %s7653_s18 }
 0xe5f   :  { %v2921_v34 = vpop.xlane.xlu1 %2920 }
 0xe60   :  { %7531 = vrcp.f32 %v2921_v34 }
 0xe63   :  { %v3088_v36 = vpop.xlane.xlu0 %3087  ;;  %v3281_v21 = vpop.permute.xlu1 %3280 }
 0xe64   :  { %7533 = vrcp.f32 %v3088_v36 }
 0xe67   :  { %v3092_v19 = vpop.permute.xlu0 %3091  ;;  %v3279_v49 = vpop.permute.xlu1 %3278 }
 0xe6a   :  { %v7532_v2 = vpop.eup %7531 }
 0xe6b   :  { %v2923_v46 = vmul.f32 %v7532_v2, %v7526_v24  ;;  %v3267_v24 = vsel %vm1219_vm3, %v3266_v30, -inf }
 0xe6d   :  { %7104 = vmatmul.mubr.msk.f32.vlgmr.msra.gmra.mrb[48].mxu1 %vm1219_vm3, %v2923_v46 }
 0xe6e   :  { %v7534_v26 = vpop.eup %7533  ;;  %7112 = vmatpush3.msra.mxu1 %v3092_v19  ;;  %7113 = vmatprep.mubr.msk.f32.mxu1 %vm7649_vm0, %v7648_v1 }
 0xe6f   :  { %v3090_v48 = vmul.f32 %v7534_v26, %v7528_v27  ;;  %7121 = vmatprep.subr.mxu1 %v7648_v1 }
 0xe71   :  { %7114 = vmatmul.mubr.msk.f32.vlgmr.msra.gmra.mrb[50].mxu1 %vm1219_vm3, %v3090_v48 }
 0xe72   :  { %7123 = vmatprep.mubr.msk.f32.mxu1 %vm7649_vm0, %v7648_v1 }
 0xe75   :  { %7122 = vmatpush3.xpose.msk.msra.mxu1 %vm1141_vm1, %v3281_v21 }
 0xe76   :  { %7131 = vmatprep.subr.mxu1 %v7648_v1 }
 0xe78   :  { %7124 = vmatmul.mubr.msk.f32.vlgmr.msra.gmra.mrb[52].mxu1 %vm1141_vm1, %v3279_v49 }
 0xe79   :  { %7132 = vmatpush3.msra.mxu1 %v8079_v57  ;;  %7133 = vmatprep.mubr.msk.f32.mxu1 %vm7649_vm0, %v7648_v1 }
 0xe7a   :  { %7141 = vmatprep.subr.mxu1 %v7648_v1 }
 0xeab   :  { %v2832_v61 = vpop.f32.mrb[46].mxu1 }
 0xeac   :  { %v2833_v39 = vadd.f32 %v2832_v61, %v8291_v53  ;;  %v7095_v42 = vpop.f32.mrb[47].mxu1 }
 0xf40   :  { %v2996_v15 = vpop.f32.mrb[48].mxu1 }
 0xf41   :  { %v3000_v43 = vadd.f32 %v2996_v15, %v2833_v39  ;;  %v7105_v47 = vpop.f32.mrb[49].mxu1 }
 0xf44   :  { %v3163_v18 = vpop.f32.mrb[50].mxu1 }
 0xf45   :  { %v8331_v51 = vadd.f32 %v3163_v18, %v3000_v43  ;;  %v7115_v55 = vpop.f32.mrb[51].mxu1 }
 0xf4b   :  { %v3352_v59 = vpop.f32.mrb[52].mxu1 }
 0xf4c   :  { %v3356_v62 = vsel %vm1130_vm2, %v3352_v59, -1e+30  ;;  %v7125_v8 = vpop.f32.mrb[53].mxu1 }
 0xf4d   :  { %v3357_v13 = vsel %vm1219_vm3, %v3356_v62, -inf }
 0xf4e   :  { %3358 = vmax.xlane.f32.xlu0 %v3357_v13 }
 0xf64   :  { %3369 = vrot.lane.b32.xlu0 %v8079_v57, %s7651_s3 }
 0xf68   :  { %3683 = vrot.lane.b32.xlu0 %v8054_v23, %s7650_s16 }
 0xfdb   :  { %v3359_v53 = vpop.xlane.xlu0 %3358 }
 0xfdc   :  { %v3360_v11 = vsub.f32 %v3356_v62, %v3359_v53 }
 0xfde   :  { %v3361_v38 = vmul.f32 1.442695, %v3360_v11 }
 0xfdf   :  { %v3370_v14 = vpop.permute.xlu0 %3369 }
 0xfe0   :  { %7535 = vpow2.f32 %v3361_v38  ;;  %7127 = vmatpush3.msra.mxu0 %v3370_v14 }
 0xfe1   :  { %7136 = vmatprep.subr.mxu0 %v7648_v1 }
 0xfe3   :  { %v3684_v40 = vpop.permute.xlu0 %3683 }
 0xfea   :  { %v7536_v16 = vpop.eup %7535 }
 0xfeb   :  { %v3363_v20 = vsel %vm1219_vm3, %v7536_v16, 0.0 }
 0xfec   :  { %3364 = vadd.xlane.f32.xlu1 %v3363_v20 }
 0xffd   :  { %3685 = vrot.lane.b32.xlu1 %v8016_v50, %s7650_s16 }
0x1021   :  { %3268 = vmax.xlane.f32.xlu1 %v3267_v24 }
0x1079   :  { %v3365_v17 = vpop.xlane.xlu1 %3364 }
0x107a   :  { %7537 = vrcp.f32 %v3365_v17 }
0x107d   :  { %v3686_v29 = vpop.permute.xlu1 %3685 }
0x1084   :  { %v7538_v27 = vpop.eup %7537 }
0x1085   :  { %v3367_v12 = vmul.f32 %v7538_v27, %v7536_v16 }
0x1087   :  { %7129 = vmatmul.mubr.msk.f32.vlgmr.msra.gmra.mrb[38].mxu0 %vm1219_vm3, %v3367_v12 }
0x1088   :  { %7137 = vmatpush3.xpose.msk.msra.mxu0 %vm1141_vm1, %v8016_v50  ;;  %7138 = vmatprep.mubr.msk.f32.mxu0 %vm7649_vm0, %v7648_v1 }
0x1089   :  { %7146 = vmatprep.subr.mxu0 %v7648_v1 }
0x108b   :  { %7139 = vmatmul.mubr.msk.f32.vlgmr.msra.gmra.mrb[40].mxu0 %vm1141_vm1, %v8054_v23 }
0x108c   :  { %7147 = vmatpush3.xpose.msk.msra.mxu0 %vm1141_vm1, %v3686_v29  ;;  %7148 = vmatprep.mubr.msk.f32.mxu0 %vm7649_vm0, %v7648_v1 }
0x108d   :  { %7156 = vmatprep.subr.mxu0 %v7648_v1 }
0x108f   :  { %7149 = vmatmul.mubr.msk.f32.vlgmr.msra.gmra.mrb[42].mxu0 %vm1141_vm1, %v3684_v40 }
0x1090   :  { %7157 = vmatpush3.xpose.msk.msra.mxu0 %vm1141_vm1, %v8018_v52  ;;  %7158 = vmatprep.mubr.msk.f32.mxu0 %vm7649_vm0, %v7648_v1 }
0x1091   :  { %7166 = vmatprep.subr.mxu0 %v7648_v1 }
0x1093   :  { %7159 = vmatmul.mubr.msk.f32.vlgmr.msra.gmra.mrb[44].mxu0 %vm1141_vm1, %v8056_v25 }
0x1094   :  { %7168 = vmatprep.mubr.msk.f32.mxu0 %vm7649_vm0, %v7648_v1 }
0x10ae   :  { %v3269_v50 = vpop.xlane.xlu1 %3268 }
0x10af   :  { %v3270_v23 = vsub.f32 %v3266_v30, %v3269_v50 }
0x10b1   :  { %v3271_v44 = vmul.f32 1.442695, %v3270_v23 }
0x10b3   :  { %7539 = vpow2.f32 %v3271_v44 }
0x10bd   :  { %v7540_v32 = vpop.eup %7539 }
0x10be   :  { %v3273_v34 = vsel %vm1219_vm3, %v7540_v32, 0.0 }
0x10bf   :  { %3274 = vadd.xlane.f32.xlu1 %v3273_v34 }
0x10d0   :  { %3773 = vrot.lane.b32.xlu1 %v8079_v57, %s7653_s18 }
0x114c   :  { %v3275_v36 = vpop.xlane.xlu1 %3274 }
0x114d   :  { %7541 = vrcp.f32 %v3275_v36 }
0x1150   :  { %v3774_v17 = vpop.permute.xlu1 %3773 }
0x1157   :  { %v7542_v2 = vpop.eup %7541 }
0x1158   :  { %v3277_v46 = vmul.f32 %v7542_v2, %v7540_v32 }
0x115a   :  { %v3441_v19 = vpop.f32.mrb[38].mxu0  ;;  %7134 = vmatmul.mubr.msk.f32.vlgmr.msra.gmra.mrb[54].mxu1 %vm1219_vm3, %v3277_v46 }
0x115b   :  { %v7130_v26 = vpop.f32.mrb[39].mxu0  ;;  %7143 = vmatprep.mubr.msk.f32.mxu1 %vm7649_vm0, %v7648_v1 }
0x115e   :  { %v3590_v48 = vpop.f32.mrb[40].mxu0 }
0x115f   :  { %v3594_v21 = vsel %vm1130_vm2, %v3590_v48, -1e+30  ;;  %v7140_v49 = vpop.f32.mrb[41].mxu0 }
0x1160   :  { %v3595_v61 = vsel %vm1219_vm3, %v3594_v21, -inf }
0x1161   :  { %3596 = vmax.xlane.f32.xlu0 %v3595_v61 }
0x1162   :  { %v3757_v39 = vpop.f32.mrb[42].mxu0 }
0x1163   :  { %v3761_v42 = vsel %vm1130_vm2, %v3757_v39, -1e+30  ;;  %v7150_v15 = vpop.f32.mrb[43].mxu0 }
0x1164   :  { %v3762_v43 = vsel %vm1219_vm3, %v3761_v42, -inf }
0x1165   :  { %3763 = vmax.xlane.f32.xlu0 %v3762_v43 }
0x1166   :  { %v8382_v47 = vpop.f32.mrb[44].mxu0 }
0x1167   :  { %v7160_v18 = vpop.f32.mrb[45].mxu0  ;;  %v3948_v43 = vsel %vm1130_vm2, %v8382_v47, -1e+30 }
0x1168   :  { %v3949_v18 = vsel %vm1219_vm3, %v3948_v43, -inf }
0x11ee   :  { %v3597_v55 = vpop.xlane.xlu0 %3596 }
0x11ef   :  { %v3598_v59 = vsub.f32 %v3594_v21, %v3597_v55 }
0x11f1   :  { %v3599_v62 = vmul.f32 1.442695, %v3598_v59 }
0x11f2   :  { %v3764_v8 = vpop.xlane.xlu0 %3763 }
0x11f3   :  { %7543 = vpow2.f32 %v3599_v62  ;;  %v3765_v13 = vsub.f32 %v3761_v42, %v3764_v8 }
0x11f5   :  { %v3766_v53 = vmul.f32 1.442695, %v3765_v13 }
0x11f7   :  { %7545 = vpow2.f32 %v3766_v53 }
0x11fd   :  { %v7544_v11 = vpop.eup %7543 }
0x11fe   :  { %v3601_v38 = vsel %vm1219_vm3, %v7544_v11, 0.0 }
0x11ff   :  { %3602 = vadd.xlane.f32.xlu0 %v3601_v38 }
0x1201   :  { %v7546_v14 = vpop.eup %7545 }
0x1202   :  { %v3768_v16 = vsel %vm1219_vm3, %v7546_v14, 0.0 }
0x1203   :  { %3769 = vadd.xlane.f32.xlu1 %v3768_v16 }
0x1214   :  { %3962 = vrot.lane.b32.xlu1 %v8018_v52, %s7650_s16 }
0x1215   :  { %3606 = vrot.lane.b32.xlu0 %v8079_v57, %s7652_s17 }
0x1219   :  { %3960 = vrot.lane.b32.xlu0 %v8056_v25, %s7650_s16 }
0x122d   :  { %v3514_v20 = vpop.f32.mrb[54].mxu1 }
0x122e   :  { %v3515_v30 = vadd.f32 %v3514_v20, %v3441_v19  ;;  %v7135_v24 = vpop.f32.mrb[55].mxu1 }
0x128c   :  { %v3603_v27 = vpop.xlane.xlu0 %3602 }
0x128d   :  { %7547 = vrcp.f32 %v3603_v27 }
0x1290   :  { %v3770_v12 = vpop.xlane.xlu1 %3769  ;;  %v3607_v29 = vpop.permute.xlu0 %3606 }
0x1291   :  { %7549 = vrcp.f32 %v3770_v12  ;;  %7142 = vmatpush3.msra.mxu1 %v3607_v29 }
0x1292   :  { %7151 = vmatprep.subr.mxu1 %v7648_v1 }
0x1294   :  { %v3963_v50 = vpop.permute.xlu1 %3962  ;;  %v3961_v23 = vpop.permute.xlu0 %3960 }
0x1297   :  { %v7548_v40 = vpop.eup %7547 }
0x1298   :  { %v3605_v52 = vmul.f32 %v7548_v40, %v7544_v11 }
0x129a   :  { %7144 = vmatmul.mubr.msk.f32.vlgmr.msra.gmra.mrb[56].mxu1 %vm1219_vm3, %v3605_v52 }
0x129b   :  { %v7550_v57 = vpop.eup %7549  ;;  %7152 = vmatpush3.msra.mxu1 %v3774_v17  ;;  %7153 = vmatprep.mubr.msk.f32.mxu1 %vm7649_vm0, %v7648_v1 }
0x129c   :  { %v3772_v25 = vmul.f32 %v7550_v57, %v7546_v14  ;;  %7161 = vmatprep.subr.mxu1 %v7648_v1 }
0x129e   :  { %7154 = vmatmul.mubr.msk.f32.vlgmr.msra.gmra.mrb[58].mxu1 %vm1219_vm3, %v3772_v25 }
0x129f   :  { %7163 = vmatprep.mubr.msk.f32.mxu1 %vm7649_vm0, %v7648_v1 }
0x12a2   :  { %7162 = vmatpush3.xpose.msk.msra.mxu1 %vm1141_vm1, %v3963_v50 }
0x12a3   :  { %7171 = vmatprep.subr.mxu1 %v7648_v1 }
0x12a5   :  { %7164 = vmatmul.mubr.msk.f32.vlgmr.msra.gmra.mrb[60].mxu1 %vm1141_vm1, %v3961_v23 }
0x12a6   :  { %7172 = vmatpush3.msra.mxu1 %v8088_v4  ;;  %7173 = vmatprep.mubr.msk.f32.mxu1 %vm7649_vm0, %v7648_v1 }
0x12a7   :  { %7181 = vmatprep.subr.mxu1 %v7648_v1 }
0x136d   :  { %v3678_v44 = vpop.f32.mrb[56].mxu1 }
0x136e   :  { %v3682_v32 = vadd.f32 %v3678_v44, %v3515_v30  ;;  %v7145_v34 = vpop.f32.mrb[57].mxu1 }
0x1371   :  { %v3845_v36 = vpop.f32.mrb[58].mxu1 }
0x1372   :  { %v8407_v2 = vadd.f32 %v3845_v36, %v3682_v32  ;;  %v7155_v46 = vpop.f32.mrb[59].mxu1 }
0x1378   :  { %v4034_v19 = vpop.f32.mrb[60].mxu1 }
0x1379   :  { %v4038_v26 = vsel %vm1130_vm2, %v4034_v19, -1e+30  ;;  %v7165_v48 = vpop.f32.mrb[61].mxu1 }
0x137a   :  { %v4039_v21 = vsel %vm1219_vm3, %v4038_v26, -inf }
0x137b   :  { %4040 = vmax.xlane.f32.xlu1 %v4039_v21 }
0x138c   :  { %4367 = vrot.lane.b32.xlu1 %v8020_v54, %s7650_s16 }
0x1390   :  { %4365 = vrot.lane.b32.xlu1 %v8058_v28, %s7650_s16 }
0x1408   :  { %v4041_v49 = vpop.xlane.xlu1 %4040 }
0x1409   :  { %v4042_v61 = vsub.f32 %v4038_v26, %v4041_v49 }
0x140b   :  { %v4043_v39 = vmul.f32 1.442695, %v4042_v61 }
0x140c   :  { %v4368_v13 = vpop.permute.xlu1 %4367 }
0x140d   :  { %7551 = vpow2.f32 %v4043_v39 }
0x1410   :  { %v4366_v47 = vpop.permute.xlu1 %4365 }
0x1417   :  { %v7552_v42 = vpop.eup %7551 }
0x1418   :  { %v4045_v15 = vsel %vm1219_vm3, %v7552_v42, 0.0 }
0x1419   :  { %4046 = vadd.xlane.f32.xlu0 %v4045_v15 }
0x142f   :  { %4051 = vrot.lane.b32.xlu0 %v8088_v4, %s7651_s3 }
0x144e   :  { %3950 = vmax.xlane.f32.xlu0 %v3949_v18 }
0x14a6   :  { %v4047_v55 = vpop.xlane.xlu0 %4046 }
0x14a7   :  { %7553 = vrcp.f32 %v4047_v55 }
0x14aa   :  { %v4052_v59 = vpop.permute.xlu0 %4051 }
0x14ab   :  { %7167 = vmatpush3.msra.mxu0 %v4052_v59 }
0x14ac   :  { %7176 = vmatprep.subr.mxu0 %v7648_v1 }
0x14b1   :  { %v7554_v62 = vpop.eup %7553 }
0x14b2   :  { %v4049_v8 = vmul.f32 %v7554_v62, %v7552_v42 }
0x14b4   :  { %7169 = vmatmul.mubr.msk.f32.vlgmr.msra.gmra.mrb[46].mxu0 %vm1219_vm3, %v4049_v8 }
0x14b5   :  { %7177 = vmatpush3.xpose.msk.msra.mxu0 %vm1141_vm1, %v8020_v54  ;;  %7178 = vmatprep.mubr.msk.f32.mxu0 %vm7649_vm0, %v7648_v1 }
0x14b6   :  { %7186 = vmatprep.subr.mxu0 %v7648_v1 }
0x14b8   :  { %7179 = vmatmul.mubr.msk.f32.vlgmr.msra.gmra.mrb[48].mxu0 %vm1141_vm1, %v8058_v28 }
0x14b9   :  { %7187 = vmatpush3.xpose.msk.msra.mxu0 %vm1141_vm1, %v4368_v13  ;;  %7188 = vmatprep.mubr.msk.f32.mxu0 %vm7649_vm0, %v7648_v1 }
0x14ba   :  { %7196 = vmatprep.subr.mxu0 %v7648_v1 }
0x14bc   :  { %7189 = vmatmul.mubr.msk.f32.vlgmr.msra.gmra.mrb[50].mxu0 %vm1141_vm1, %v4366_v47 }
0x14bd   :  { %7197 = vmatpush3.xpose.msk.msra.mxu0 %vm1141_vm1, %v8022_v56  ;;  %7198 = vmatprep.mubr.msk.f32.mxu0 %vm7649_vm0, %v7648_v1 }
0x14be   :  { %7206 = vmatprep.subr.mxu0 %v7648_v1 }
0x14c0   :  { %7199 = vmatmul.mubr.msk.f32.vlgmr.msra.gmra.mrb[52].mxu0 %vm1141_vm1, %v8060_v31 }
0x14c1   :  { %7208 = vmatprep.mubr.msk.f32.mxu0 %vm7649_vm0, %v7648_v1 }
0x14db   :  { %v3951_v54 = vpop.xlane.xlu0 %3950 }
0x14dc   :  { %v3952_v28 = vsub.f32 %v3948_v43, %v3951_v54 }
0x14de   :  { %v3953_v53 = vmul.f32 1.442695, %v3952_v28 }
0x14e0   :  { %7555 = vpow2.f32 %v3953_v53 }
0x14ea   :  { %v7556_v29 = vpop.eup %7555 }
0x14eb   :  { %v3955_v57 = vsel %vm1219_vm3, %v7556_v29, 0.0 }
0x1587   :  { %v8446_v11 = vpop.f32.mrb[46].mxu0 }
0x1588   :  { %v7170_v38 = vpop.f32.mrb[47].mxu0 }
0x158b   :  { %v4272_v14 = vpop.f32.mrb[48].mxu0 }
0x158c   :  { %v4276_v16 = vsel %vm1130_vm2, %v4272_v14, -1e+30  ;;  %v7180_v20 = vpop.f32.mrb[49].mxu0 }
0x158d   :  { %v4277_v30 = vsel %vm1219_vm3, %v4276_v16, -inf }
0x158e   :  { %4278 = vmax.xlane.f32.xlu1 %v4277_v30 }
0x158f   :  { %v4439_v24 = vpop.f32.mrb[50].mxu0 }
0x1590   :  { %v4443_v17 = vsel %vm1130_vm2, %v4439_v24, -1e+30  ;;  %v7190_v27 = vpop.f32.mrb[51].mxu0 }
0x1591   :  { %v4444_v12 = vsel %vm1219_vm3, %v4443_v17, -inf }
0x1592   :  { %4445 = vmax.xlane.f32.xlu0 %v4444_v12 }
0x1593   :  { %v8454_v40 = vpop.f32.mrb[52].mxu0 }
0x1594   :  { %v7200_v52 = vpop.f32.mrb[53].mxu0 }
0x1595   :  { %v4630_v52 = vsel %vm1130_vm2, %v8454_v40, -1e+30 }
0x1596   :  { %3956 = vadd.xlane.f32.xlu0 %v3955_v57  ;;  %v4631_v57 = vsel %vm1219_vm3, %v4630_v52, -inf }
0x159f   :  { %4288 = vrot.lane.b32.xlu1 %v8088_v4, %s7652_s17 }
0x161b   :  { %v4279_v25 = vpop.xlane.xlu1 %4278 }
0x161c   :  { %v4280_v50 = vsub.f32 %v4276_v16, %v4279_v25 }
0x161e   :  { %v4281_v23 = vmul.f32 1.442695, %v4280_v50 }
0x161f   :  { %v4446_v44 = vpop.xlane.xlu0 %4445  ;;  %v4289_v61 = vpop.permute.xlu1 %4288 }
0x1620   :  { %7557 = vpow2.f32 %v4281_v23  ;;  %v4447_v32 = vsub.f32 %v4443_v17, %v4446_v44 }
0x1622   :  { %v4448_v34 = vmul.f32 1.442695, %v4447_v32 }
0x1623   :  { %v3957_v36 = vpop.xlane.xlu0 %3956 }
0x1624   :  { %7559 = vpow2.f32 %v4448_v34 }
0x1625   :  { %7561 = vrcp.f32 %v3957_v36 }
0x162a   :  { %v7558_v46 = vpop.eup %7557 }
0x162b   :  { %v4283_v19 = vsel %vm1219_vm3, %v7558_v46, 0.0 }
0x162c   :  { %4284 = vadd.xlane.f32.xlu1 %v4283_v19 }
0x162e   :  { %v7560_v26 = vpop.eup %7559 }
0x162f   :  { %v7562_v48 = vpop.eup %7561  ;;  %v4450_v21 = vsel %vm1219_vm3, %v7560_v26, 0.0 }
0x1630   :  { %v3959_v49 = vmul.f32 %v7562_v48, %v7556_v29  ;;  %4451 = vadd.xlane.f32.xlu0 %v4450_v21 }
0x1632   :  { %7174 = vmatmul.mubr.msk.f32.vlgmr.msra.gmra.mrb[62].mxu1 %vm1219_vm3, %v3959_v49 }
0x1633   :  { %7182 = vmatpush3.msra.mxu1 %v4289_v61  ;;  %7183 = vmatprep.mubr.msk.f32.mxu1 %vm7649_vm0, %v7648_v1 }
0x1634   :  { %7191 = vmatprep.subr.mxu1 %v7648_v1 }
0x163d   :  { %4644 = vrot.lane.b32.xlu1 %v8022_v56, %s7650_s16 }
0x1641   :  { %4642 = vrot.lane.b32.xlu1 %v8060_v31, %s7650_s16 }
0x1646   :  { %4455 = vrot.lane.b32.xlu0 %v8088_v4, %s7653_s18 }
0x16b9   :  { %v4285_v39 = vpop.xlane.xlu1 %4284 }
0x16ba   :  { %7563 = vrcp.f32 %v4285_v39 }
0x16bd   :  { %v4452_v42 = vpop.xlane.xlu0 %4451  ;;  %v4645_v31 = vpop.permute.xlu1 %4644 }
0x16be   :  { %7565 = vrcp.f32 %v4452_v42 }
0x16c1   :  { %v4456_v18 = vpop.permute.xlu0 %4455  ;;  %v4643_v4 = vpop.permute.xlu1 %4642 }
0x16c4   :  { %v7564_v15 = vpop.eup %7563 }
0x16c5   :  { %v4287_v43 = vmul.f32 %v7564_v15, %v7558_v46 }
0x16c7   :  { %7184 = vmatmul.mubr.msk.f32.vlgmr.msra.gmra.mrb[64].mxu1 %vm1219_vm3, %v4287_v43 }
0x16c8   :  { %v7566_v55 = vpop.eup %7565  ;;  %7192 = vmatpush3.msra.mxu1 %v4456_v18  ;;  %7193 = vmatprep.mubr.msk.f32.mxu1 %vm7649_vm0, %v7648_v1 }
0x16c9   :  { %v4454_v56 = vmul.f32 %v7566_v55, %v7560_v26  ;;  %7201 = vmatprep.subr.mxu1 %v7648_v1 }
0x16cb   :  { %7194 = vmatmul.mubr.msk.f32.vlgmr.msra.gmra.mrb[66].mxu1 %vm1219_vm3, %v4454_v56 }
0x16cc   :  { %7203 = vmatprep.mubr.msk.f32.mxu1 %vm7649_vm0, %v7648_v1 }
0x16cf   :  { %7202 = vmatpush3.xpose.msk.msra.mxu1 %vm1141_vm1, %v4645_v31 }
0x16d0   :  { %7211 = vmatprep.subr.mxu1 %v7648_v1 }
0x16d2   :  { %7204 = vmatmul.mubr.msk.f32.vlgmr.msra.gmra.mrb[68].mxu1 %vm1141_vm1, %v4643_v4 }
0x16d3   :  { %7212 = vmatpush3.msra.mxu1 %v8094_v9  ;;  %7213 = vmatprep.mubr.msk.f32.mxu1 %vm7649_vm0, %v7648_v1 }
0x16d4   :  { %7221 = vmatprep.subr.mxu1 %v7648_v1 }
0x1705   :  { %v4196_v59 = vpop.f32.mrb[62].mxu1 }
0x1706   :  { %v4197_v62 = vadd.f32 %v4196_v59, %v8446_v11  ;;  %v7175_v8 = vpop.f32.mrb[63].mxu1 }
0x179a   :  { %v4360_v13 = vpop.f32.mrb[64].mxu1 }
0x179b   :  { %v4364_v47 = vadd.f32 %v4360_v13, %v4197_v62  ;;  %v7185_v54 = vpop.f32.mrb[65].mxu1 }
0x179e   :  { %v4527_v28 = vpop.f32.mrb[66].mxu1 }
0x179f   :  { %v8486_v53 = vadd.f32 %v4527_v28, %v4364_v47  ;;  %v7195_v38 = vpop.f32.mrb[67].mxu1 }
0x17a5   :  { %v4716_v14 = vpop.f32.mrb[68].mxu1 }
0x17a6   :  { %v4720_v16 = vsel %vm1130_vm2, %v4716_v14, -1e+30  ;;  %v7205_v20 = vpop.f32.mrb[69].mxu1 }
0x17a7   :  { %v4721_v30 = vsel %vm1219_vm3, %v4720_v16, -inf }
0x17a8   :  { %4722 = vmax.xlane.f32.xlu0 %v4721_v30 }
0x17be   :  { %4733 = vrot.lane.b32.xlu0 %v8094_v9, %s7651_s3 }
0x17c2   :  { %5047 = vrot.lane.b32.xlu0 %v8062_v33, %s7650_s16 }
0x1835   :  { %v4723_v11 = vpop.xlane.xlu0 %4722 }
0x1836   :  { %v4724_v24 = vsub.f32 %v4720_v16, %v4723_v11 }
0x1838   :  { %v4725_v17 = vmul.f32 1.442695, %v4724_v24 }
0x1839   :  { %v4734_v27 = vpop.permute.xlu0 %4733 }
0x183a   :  { %7567 = vpow2.f32 %v4725_v17  ;;  %7207 = vmatpush3.msra.mxu0 %v4734_v27 }
0x183b   :  { %7216 = vmatprep.subr.mxu0 %v7648_v1 }
0x183d   :  { %v5048_v40 = vpop.permute.xlu0 %5047 }
0x1844   :  { %v7568_v12 = vpop.eup %7567 }
0x1845   :  { %v4727_v29 = vsel %vm1219_vm3, %v7568_v12, 0.0 }
0x1846   :  { %4728 = vadd.xlane.f32.xlu1 %v4727_v29 }
0x1857   :  { %5049 = vrot.lane.b32.xlu1 %v8024_v58, %s7650_s16 }
0x187b   :  { %4632 = vmax.xlane.f32.xlu1 %v4631_v57 }
0x18d3   :  { %v4729_v25 = vpop.xlane.xlu1 %4728 }
0x18d4   :  { %7569 = vrcp.f32 %v4729_v25 }
0x18d7   :  { %v5050_v44 = vpop.permute.xlu1 %5049 }
0x18de   :  { %v7570_v50 = vpop.eup %7569 }
0x18df   :  { %v4731_v23 = vmul.f32 %v7570_v50, %v7568_v12 }
0x18e1   :  { %7209 = vmatmul.mubr.msk.f32.vlgmr.msra.gmra.mrb[54].mxu0 %vm1219_vm3, %v4731_v23 }
0x18e2   :  { %7217 = vmatpush3.xpose.msk.msra.mxu0 %vm1141_vm1, %v8024_v58  ;;  %7218 = vmatprep.mubr.msk.f32.mxu0 %vm7649_vm0, %v7648_v1 }
0x18e3   :  { %7226 = vmatprep.subr.mxu0 %v7648_v1 }
0x18e5   :  { %7219 = vmatmul.mubr.msk.f32.vlgmr.msra.gmra.mrb[56].mxu0 %vm1141_vm1, %v8062_v33 }
0x18e6   :  { %7227 = vmatpush3.xpose.msk.msra.mxu0 %vm1141_vm1, %v5050_v44  ;;  %7228 = vmatprep.mubr.msk.f32.mxu0 %vm7649_vm0, %v7648_v1 }
0x18e7   :  { %7236 = vmatprep.subr.mxu0 %v7648_v1 }
0x18e9   :  { %7229 = vmatmul.mubr.msk.f32.vlgmr.msra.gmra.mrb[58].mxu0 %vm1141_vm1, %v5048_v40 }
0x18ea   :  { %7237 = vmatpush3.xpose.msk.msra.mxu0 %vm1141_vm1, %v8026_v60  ;;  %7238 = vmatprep.mubr.msk.f32.mxu0 %vm7649_vm0, %v7648_v1 }
0x18eb   :  { %7246 = vmatprep.subr.mxu0 %v7648_v1 }
0x18ed   :  { %7239 = vmatmul.mubr.msk.f32.vlgmr.msra.gmra.mrb[60].mxu0 %vm1141_vm1, %v8064_v35 }
0x18ee   :  { %7248 = vmatprep.mubr.msk.f32.mxu0 %vm7649_vm0, %v7648_v1 }
0x1908   :  { %v4633_v58 = vpop.xlane.xlu1 %4632 }
0x1909   :  { %v4634_v33 = vsub.f32 %v4630_v52, %v4633_v58 }
0x190b   :  { %v4635_v32 = vmul.f32 1.442695, %v4634_v33 }
0x190d   :  { %7571 = vpow2.f32 %v4635_v32 }
0x1917   :  { %v7572_v34 = vpop.eup %7571 }
0x1918   :  { %v4637_v36 = vsel %vm1219_vm3, %v7572_v34, 0.0 }
0x1919   :  { %4638 = vadd.xlane.f32.xlu1 %v4637_v36 }
0x192a   :  { %5137 = vrot.lane.b32.xlu1 %v8094_v9, %s7653_s18 }
0x19a6   :  { %v4639_v46 = vpop.xlane.xlu1 %4638 }
0x19a7   :  { %7573 = vrcp.f32 %v4639_v46 }
0x19aa   :  { %v5138_v11 = vpop.permute.xlu1 %5137 }
0x19b1   :  { %v7574_v19 = vpop.eup %7573 }
0x19b2   :  { %v4641_v26 = vmul.f32 %v7574_v19, %v7572_v34 }
0x19b4   :  { %v4805_v48 = vpop.f32.mrb[54].mxu0  ;;  %7214 = vmatmul.mubr.msk.f32.vlgmr.msra.gmra.mrb[70].mxu1 %vm1219_vm3, %v4641_v26 }
0x19b5   :  { %v7210_v21 = vpop.f32.mrb[55].mxu0  ;;  %7223 = vmatprep.mubr.msk.f32.mxu1 %vm7649_vm0, %v7648_v1 }
0x19b8   :  { %v4954_v49 = vpop.f32.mrb[56].mxu0 }
0x19b9   :  { %v4958_v61 = vsel %vm1130_vm2, %v4954_v49, -1e+30  ;;  %v7220_v39 = vpop.f32.mrb[57].mxu0 }
0x19ba   :  { %v4959_v42 = vsel %vm1219_vm3, %v4958_v61, -inf }
0x19bb   :  { %4960 = vmax.xlane.f32.xlu0 %v4959_v42 }
0x19bc   :  { %v5121_v15 = vpop.f32.mrb[58].mxu0 }
0x19bd   :  { %v5125_v43 = vsel %vm1130_vm2, %v5121_v15, -1e+30  ;;  %v7230_v18 = vpop.f32.mrb[59].mxu0 }
0x19be   :  { %v5126_v55 = vsel %vm1219_vm3, %v5125_v43, -inf }
0x19bf   :  { %5127 = vmax.xlane.f32.xlu0 %v5126_v55 }
0x19c0   :  { %v8537_v56 = vpop.f32.mrb[60].mxu0 }
0x19c1   :  { %v7240_v31 = vpop.f32.mrb[61].mxu0  ;;  %v5312_v21 = vsel %vm1130_vm2, %v8537_v56, -1e+30 }
0x19c2   :  { %v5313_v49 = vsel %vm1219_vm3, %v5312_v21, -inf }
0x1a48   :  { %v4961_v4 = vpop.xlane.xlu0 %4960 }
0x1a49   :  { %v4962_v59 = vsub.f32 %v4958_v61, %v4961_v4 }
0x1a4b   :  { %v4963_v62 = vmul.f32 1.442695, %v4962_v59 }
0x1a4c   :  { %v5128_v8 = vpop.xlane.xlu0 %5127 }
0x1a4d   :  { %7575 = vpow2.f32 %v4963_v62  ;;  %v5129_v13 = vsub.f32 %v5125_v43, %v5128_v8 }
0x1a4f   :  { %v5130_v47 = vmul.f32 1.442695, %v5129_v13 }
0x1a51   :  { %7577 = vpow2.f32 %v5130_v47 }
0x1a57   :  { %v7576_v54 = vpop.eup %7575 }
0x1a58   :  { %v4965_v28 = vsel %vm1219_vm3, %v7576_v54, 0.0 }
0x1a59   :  { %4966 = vadd.xlane.f32.xlu0 %v4965_v28 }
0x1a5b   :  { %v7578_v38 = vpop.eup %7577 }
0x1a5c   :  { %v5132_v14 = vsel %vm1219_vm3, %v7578_v38, 0.0 }
0x1a5d   :  { %5133 = vadd.xlane.f32.xlu1 %v5132_v14 }
0x1a6e   :  { %5326 = vrot.lane.b32.xlu1 %v8026_v60, %s7650_s16 }
0x1a6f   :  { %4970 = vrot.lane.b32.xlu0 %v8094_v9, %s7652_s17 }
0x1a73   :  { %5324 = vrot.lane.b32.xlu0 %v8064_v35, %s7650_s16 }
0x1a87   :  { %v4878_v16 = vpop.f32.mrb[70].mxu1 }
0x1a88   :  { %v4879_v20 = vadd.f32 %v4878_v16, %v4805_v48  ;;  %v7215_v30 = vpop.f32.mrb[71].mxu1 }
0x1ae6   :  { %v4967_v24 = vpop.xlane.xlu0 %4966 }
0x1ae7   :  { %7579 = vrcp.f32 %v4967_v24 }
0x1aea   :  { %v5134_v17 = vpop.xlane.xlu1 %5133  ;;  %v4971_v27 = vpop.permute.xlu0 %4970 }
0x1aeb   :  { %7581 = vrcp.f32 %v5134_v17  ;;  %7222 = vmatpush3.msra.mxu1 %v4971_v27 }
0x1aec   :  { %7231 = vmatprep.subr.mxu1 %v7648_v1 }
0x1aee   :  { %v5327_v29 = vpop.permute.xlu1 %5326  ;;  %v5325_v52 = vpop.permute.xlu0 %5324 }
0x1af1   :  { %v7580_v12 = vpop.eup %7579 }
0x1af2   :  { %v4969_v60 = vmul.f32 %v7580_v12, %v7576_v54 }
0x1af4   :  { %7224 = vmatmul.mubr.msk.f32.vlgmr.msra.gmra.mrb[72].mxu1 %vm1219_vm3, %v4969_v60 }
0x1af5   :  { %v7582_v9 = vpop.eup %7581  ;;  %7232 = vmatpush3.msra.mxu1 %v5138_v11  ;;  %7233 = vmatprep.mubr.msk.f32.mxu1 %vm7649_vm0, %v7648_v1 }
0x1af6   :  { %v5136_v35 = vmul.f32 %v7582_v9, %v7578_v38  ;;  %7241 = vmatprep.subr.mxu1 %v7648_v1 }
0x1af8   :  { %7234 = vmatmul.mubr.msk.f32.vlgmr.msra.gmra.mrb[74].mxu1 %vm1219_vm3, %v5136_v35 }
0x1af9   :  { %7243 = vmatprep.mubr.msk.f32.mxu1 %vm7649_vm0, %v7648_v1 }
0x1afc   :  { %7242 = vmatpush3.xpose.msk.msra.mxu1 %vm1141_vm1, %v5327_v29 }
0x1afd   :  { %7251 = vmatprep.subr.mxu1 %v7648_v1 }
0x1aff   :  { %7244 = vmatmul.mubr.msk.f32.vlgmr.msra.gmra.mrb[76].mxu1 %vm1141_vm1, %v5325_v52 }
0x1b00   :  { %7252 = vmatpush3.msra.mxu1 %v8085_v0  ;;  %7253 = vmatprep.mubr.msk.f32.mxu1 %vm7649_vm0, %v7648_v1 }
0x1b01   :  { %7261 = vmatprep.subr.mxu1 %v7648_v1 }
0x1bc7   :  { %v5042_v57 = vpop.f32.mrb[72].mxu1 }
0x1bc8   :  { %v5046_v25 = vadd.f32 %v5042_v57, %v4879_v20  ;;  %v7225_v50 = vpop.f32.mrb[73].mxu1 }
0x1bcb   :  { %v5209_v23 = vpop.f32.mrb[74].mxu1 }
0x1bcc   :  { %v8562_v44 = vadd.f32 %v5209_v23, %v5046_v25  ;;  %v7235_v40 = vpop.f32.mrb[75].mxu1 }
0x1bd2   :  { %v5398_v58 = vpop.f32.mrb[76].mxu1 }
0x1bd3   :  { %v5402_v33 = vsel %vm1130_vm2, %v5398_v58, -1e+30  ;;  %v7245_v32 = vpop.f32.mrb[77].mxu1 }
0x1bd4   :  { %v5403_v34 = vsel %vm1219_vm3, %v5402_v33, -inf }
0x1bd5   :  { %5404 = vmax.xlane.f32.xlu1 %v5403_v34 }
0x1be6   :  { %5731 = vrot.lane.b32.xlu1 %v8028_v63, %s7650_s16 }
0x1bea   :  { %5729 = vrot.lane.b32.xlu1 %v8066_v37, %s7650_s16 }
0x1c62   :  { %v5405_v36 = vpop.xlane.xlu1 %5404 }
0x1c63   :  { %v5406_v46 = vsub.f32 %v5402_v33, %v5405_v36 }
0x1c65   :  { %v5407_v19 = vmul.f32 1.442695, %v5406_v46 }
0x1c66   :  { %v5732_v43 = vpop.permute.xlu1 %5731 }
0x1c67   :  { %7583 = vpow2.f32 %v5407_v19 }
0x1c6a   :  { %v5730_v18 = vpop.permute.xlu1 %5729 }
0x1c71   :  { %v7584_v26 = vpop.eup %7583 }
0x1c72   :  { %v5409_v48 = vsel %vm1219_vm3, %v7584_v26, 0.0 }
0x1c73   :  { %5410 = vadd.xlane.f32.xlu0 %v5409_v48 }
0x1c89   :  { %5415 = vrot.lane.b32.xlu0 %v8085_v0, %s7651_s3 }
0x1ca8   :  { %5314 = vmax.xlane.f32.xlu0 %v5313_v49 }
0x1d00   :  { %v5411_v61 = vpop.xlane.xlu0 %5410 }
0x1d01   :  { %7585 = vrcp.f32 %v5411_v61 }
0x1d04   :  { %v5416_v39 = vpop.permute.xlu0 %5415 }
0x1d05   :  { %7247 = vmatpush3.msra.mxu0 %v5416_v39 }
0x1d06   :  { %7256 = vmatprep.subr.mxu0 %v7648_v1 }
0x1d0b   :  { %v7586_v42 = vpop.eup %7585 }
0x1d0c   :  { %v5413_v15 = vmul.f32 %v7586_v42, %v7584_v26 }
0x1d0e   :  { %7249 = vmatmul.mubr.msk.f32.vlgmr.msra.gmra.mrb[62].mxu0 %vm1219_vm3, %v5413_v15 }
0x1d0f   :  { %7257 = vmatpush3.xpose.msk.msra.mxu0 %vm1141_vm1, %v8028_v63  ;;  %7258 = vmatprep.mubr.msk.f32.mxu0 %vm7649_vm0, %v7648_v1 }
0x1d10   :  { %7266 = vmatprep.subr.mxu0 %v7648_v1 }
0x1d12   :  { %7259 = vmatmul.mubr.msk.f32.vlgmr.msra.gmra.mrb[64].mxu0 %vm1141_vm1, %v8066_v37 }
0x1d13   :  { %7267 = vmatpush3.xpose.msk.msra.mxu0 %vm1141_vm1, %v5732_v43  ;;  %7268 = vmatprep.mubr.msk.f32.mxu0 %vm7649_vm0, %v7648_v1 }
0x1d14   :  { %7276 = vmatprep.subr.mxu0 %v7648_v1 }
0x1d16   :  { %7269 = vmatmul.mubr.msk.f32.vlgmr.msra.gmra.mrb[66].mxu0 %vm1141_vm1, %v5730_v18 }
0x1d17   :  { %7277 = vmatpush3.xpose.msk.msra.mxu0 %vm1141_vm1, %v8030_v3  ;;  %7278 = vmatprep.mubr.msk.f32.mxu0 %vm7649_vm0, %v7648_v1 }
0x1d18   :  { %7286 = vmatprep.subr.mxu0 %v7648_v1 }
0x1d1a   :  { %7279 = vmatmul.mubr.msk.f32.vlgmr.msra.gmra.mrb[68].mxu0 %vm1141_vm1, %v8068_v41 }
0x1d1b   :  { %7288 = vmatprep.mubr.msk.f32.mxu0 %vm7649_vm0, %v7648_v1 }
0x1d35   :  { %v5315_v63 = vpop.xlane.xlu0 %5314 }
0x1d36   :  { %v5316_v37 = vsub.f32 %v5312_v21, %v5315_v63 }
0x1d38   :  { %v5317_v55 = vmul.f32 1.442695, %v5316_v37 }
0x1d3a   :  { %7587 = vpow2.f32 %v5317_v55 }
0x1d44   :  { %v7588_v38 = vpop.eup %7587 }
0x1d45   :  { %v5319_v20 = vsel %vm1219_vm3, %v7588_v38, 0.0 }
0x1de1   :  { %v8601_v56 = vpop.f32.mrb[62].mxu0 }
0x1de2   :  { %v7250_v31 = vpop.f32.mrb[63].mxu0 }
0x1de5   :  { %v5636_v4 = vpop.f32.mrb[64].mxu0 }
0x1de6   :  { %v5640_v59 = vsel %vm1130_vm2, %v5636_v4, -1e+30  ;;  %v7260_v62 = vpop.f32.mrb[65].mxu0 }
0x1de7   :  { %v5641_v8 = vsel %vm1219_vm3, %v5640_v59, -inf }
0x1de8   :  { %5642 = vmax.xlane.f32.xlu1 %v5641_v8 }
0x1de9   :  { %v5803_v13 = vpop.f32.mrb[66].mxu0 }
0x1dea   :  { %v5807_v47 = vsel %vm1130_vm2, %v5803_v13, -1e+30  ;;  %v7270_v54 = vpop.f32.mrb[67].mxu0 }
0x1deb   :  { %v5808_v28 = vsel %vm1219_vm3, %v5807_v47, -inf }
0x1dec   :  { %5809 = vmax.xlane.f32.xlu0 %v5808_v28 }
0x1ded   :  { %v8609_v14 = vpop.f32.mrb[68].mxu0 }
0x1dee   :  { %v7280_v16 = vpop.f32.mrb[69].mxu0  ;;  %v5994_v28 = vsel %vm1130_vm2, %v8609_v14, -1e+30 }
0x1df0   :  { %5320 = vadd.xlane.f32.xlu0 %v5319_v20 }
0x1df9   :  { %5652 = vrot.lane.b32.xlu1 %v8085_v0, %s7652_s17 }
0x1e75   :  { %v5643_v30 = vpop.xlane.xlu1 %5642 }
0x1e76   :  { %v5644_v11 = vsub.f32 %v5640_v59, %v5643_v30  ;;  %v8652_v59 = vstv %s7357_s4 }
0x1e77   :  { %v1804_v62 = vadd.f32 %v8652_v59, %v8199_v10  ;;  %v2486_v13 = vadd.f32 %v8252_v6, %v8652_v59  ;;  %v3168_v54 = vadd.f32 %v8331_v51, %v8652_v59  ;;  %v3850_v16 = vadd.f32 %v8407_v2, %v8652_v59 }
0x1e78   :  { %v5645_v24 = vmul.f32 1.442695, %v5644_v11  ;;  %v5995_v10 = vsel %vm1219_vm3, %v5994_v28, -inf  ;;  %v4532_v6 = vadd.f32 %v8486_v53, %v8652_v59 }
0x1e79   :  { %v5810_v17 = vpop.xlane.xlu0 %5809  ;;  %v5653_v50 = vpop.permute.xlu1 %5652  ;;  %v6704_v8 = vmul.f32 -1.442695, %v1804_v62  ;;  %v6743_v30 = vmul.f32 -1.442695, %v3850_v16  ;;  %v5214_v62 = vadd.f32 %v8562_v44, %v8652_v59 }
0x1e7a   :  { %7589 = vpow2.f32 %v5645_v24  ;;  %v5811_v27 = vsub.f32 %v5807_v47, %v5810_v17  ;;  %v6717_v47 = vmul.f32 -1.442695, %v2486_v13  ;;  %v6756_v51 = vmul.f32 -1.442695, %v4532_v6 }
0x1e7b   :  { %v6769_v13 = vmul.f32 -1.442695, %v5214_v62 }
0x1e7c   :  { %v5812_v12 = vmul.f32 1.442695, %v5811_v27 }
0x1e7d   :  { %v5321_v60 = vpop.xlane.xlu0 %5320 }
0x1e7e   :  { %7591 = vpow2.f32 %v5812_v12 }
0x1e7f   :  { %7593 = vrcp.f32 %v5321_v60 }
0x1e84   :  { %v7590_v9 = vpop.eup %7589 }
0x1e85   :  { %v5647_v35 = vsel %vm1219_vm3, %v7590_v9, 0.0 }
0x1e86   :  { %5648 = vadd.xlane.f32.xlu1 %v5647_v35 }
0x1e88   :  { %v7592_v29 = vpop.eup %7591 }
0x1e89   :  { %v7594_v52 = vpop.eup %7593  ;;  %v5814_v57 = vsel %vm1219_vm3, %v7592_v29, 0.0 }
0x1e8a   :  { %v5323_v25 = vmul.f32 %v7594_v52, %v7588_v38  ;;  %5815 = vadd.xlane.f32.xlu0 %v5814_v57  ;;  %v6730_v38 = vmul.f32 -1.442695, %v3168_v54 }
0x1e8c   :  { %7254 = vmatmul.mubr.msk.f32.vlgmr.msra.gmra.mrb[78].mxu1 %vm1219_vm3, %v5323_v25 }
0x1e8d   :  { %7262 = vmatpush3.msra.mxu1 %v5653_v50  ;;  %7263 = vmatprep.mubr.msk.f32.mxu1 %vm7649_vm0, %v7648_v1 }
0x1e8e   :  { %7271 = vmatprep.subr.mxu1 %v7648_v1 }
0x1e97   :  { %6008 = vrot.lane.b32.xlu1 %v8030_v3, %s7650_s16 }
0x1e9b   :  { %6006 = vrot.lane.b32.xlu1 %v8068_v41, %s7650_s16 }
0x1ea0   :  { %5819 = vrot.lane.b32.xlu0 %v8085_v0, %s7653_s18 }
0x1f13   :  { %v5649_v23 = vpop.xlane.xlu1 %5648 }
0x1f14   :  { %7595 = vrcp.f32 %v5649_v23 }
0x1f17   :  { %v5816_v40 = vpop.xlane.xlu0 %5815  ;;  %v6009_v41 = vpop.permute.xlu1 %6008 }
0x1f18   :  { %7597 = vrcp.f32 %v5816_v40 }
0x1f1b   :  { %v5820_v32 = vpop.permute.xlu0 %5819  ;;  %v6007_v0 = vpop.permute.xlu1 %6006 }
0x1f1e   :  { %v7596_v58 = vpop.eup %7595 }
0x1f1f   :  { %v5651_v33 = vmul.f32 %v7596_v58, %v7590_v9 }
0x1f21   :  { %7264 = vmatmul.mubr.msk.f32.vlgmr.msra.gmra.mrb[80].mxu1 %vm1219_vm3, %v5651_v33 }
0x1f22   :  { %v7598_v34 = vpop.eup %7597  ;;  %7272 = vmatpush3.msra.mxu1 %v5820_v32  ;;  %7273 = vmatprep.mubr.msk.f32.mxu1 %vm7649_vm0, %v7648_v1 }
0x1f23   :  { %v5818_v3 = vmul.f32 %v7598_v34, %v7592_v29  ;;  %7281 = vmatprep.subr.mxu1 %v7648_v1 }
0x1f25   :  { %7274 = vmatmul.mubr.msk.f32.vlgmr.msra.gmra.mrb[82].mxu1 %vm1219_vm3, %v5818_v3 }
0x1f26   :  { %7283 = vmatprep.mubr.msk.f32.mxu1 %vm7649_vm0, %v7648_v1 }
0x1f29   :  { %7282 = vmatpush3.xpose.msk.msra.mxu1 %vm1141_vm1, %v6009_v41 }
0x1f2a   :  { %7291 = vmatprep.subr.mxu1 %v7648_v1 }
0x1f2c   :  { %7284 = vmatmul.mubr.msk.f32.vlgmr.msra.gmra.mrb[84].mxu1 %vm1141_vm1, %v6007_v0 }
0x1f2d   :  { %7292 = vmatpush3.msra.mxu1 %v8091_v7  ;;  %7293 = vmatprep.mubr.msk.f32.mxu1 %vm7649_vm0, %v7648_v1 }
0x1f2e   :  { %7301 = vmatprep.subr.mxu1 %v7648_v1 }
0x1f5f   :  { %v5560_v36 = vpop.f32.mrb[78].mxu1 }
0x1f60   :  { %v5561_v46 = vadd.f32 %v5560_v36, %v8601_v56  ;;  %v7255_v19 = vpop.f32.mrb[79].mxu1 }
0x1ff4   :  { %v5724_v26 = vpop.f32.mrb[80].mxu1 }
0x1ff5   :  { %v5728_v48 = vadd.f32 %v5724_v26, %v5561_v46  ;;  %v7265_v21 = vpop.f32.mrb[81].mxu1 }
0x1ff8   :  { %v5891_v49 = vpop.f32.mrb[82].mxu1 }
0x1ff9   :  { %v5895_v61 = vadd.f32 %v5891_v49, %v5728_v48  ;;  %v7275_v39 = vpop.f32.mrb[83].mxu1 }
0x1ffb   :  { %v5896_v24 = vadd.f32 %v5895_v61, %v8652_v59 }
0x1ffd   :  { %v6782_v17 = vmul.f32 -1.442695, %v5896_v24 }
0x1fff   :  { %v6080_v42 = vpop.f32.mrb[84].mxu1 }
0x2000   :  { %v6084_v15 = vsel %vm1130_vm2, %v6080_v42, -1e+30  ;;  %v7285_v43 = vpop.f32.mrb[85].mxu1 }
0x2001   :  { %v6085_v18 = vsel %vm1219_vm3, %v6084_v15, -inf }
0x2002   :  { %6086 = vmax.xlane.f32.xlu0 %v6085_v18 }
0x2018   :  { %6097 = vrot.lane.b32.xlu0 %v8091_v7, %s7651_s3 }
0x201c   :  { %6411 = vrot.lane.b32.xlu0 %v8070_v45, %s7650_s16 }
0x208f   :  { %v6087_v63 = vpop.xlane.xlu0 %6086 }
0x2090   :  { %v6088_v37 = vsub.f32 %v6084_v15, %v6087_v63 }
0x2092   :  { %v6089_v55 = vmul.f32 1.442695, %v6088_v37 }
0x2093   :  { %v6098_v56 = vpop.permute.xlu0 %6097 }
0x2094   :  { %7599 = vpow2.f32 %v6089_v55  ;;  %7287 = vmatpush3.msra.mxu0 %v6098_v56 }
0x2095   :  { %7296 = vmatprep.subr.mxu0 %v7648_v1  ;;  %7601 = vpow2.f32 %v6704_v8 }
0x2096   :  { %7603 = vpow2.f32 %v6717_v47 }
0x2097   :  { %7605 = vpow2.f32 %v6730_v38  ;;  %v6412_v41 = vpop.permute.xlu0 %6411 }
0x2098   :  { %7607 = vpow2.f32 %v6743_v30 }
0x209e   :  { %v7600_v31 = vpop.eup %7599 }
0x209f   :  { %v6091_v4 = vsel %vm1219_vm3, %v7600_v31, 0.0  ;;  %v7602_v20 = vpop.eup %7601 }
0x20a0   :  { %6092 = vadd.xlane.f32.xlu1 %v6091_v4  ;;  %v1808_v11 = vadd.f32 1.0, %v7602_v20  ;;  %v7604_v14 = vpop.eup %7603 }
0x20a1   :  { %v2490_v27 = vadd.f32 1.0, %v7604_v14  ;;  %v7606_v2 = vpop.eup %7605 }
0x20a2   :  { %7609 = vrcp.f32 %v1808_v11  ;;  %v3172_v12 = vadd.f32 1.0, %v7606_v2  ;;  %v7608_v60 = vpop.eup %7607 }
0x20a3   :  { %7611 = vpow2.f32 %v6756_v51  ;;  %v3854_v35 = vadd.f32 1.0, %v7608_v60 }
0x20a4   :  { %7613 = vpow2.f32 %v6782_v17 }
0x20a5   :  { %7615 = vrcp.f32 %v2490_v27 }
0x20a6   :  { %7617 = vrcp.f32 %v3172_v12 }
0x20a7   :  { %7619 = vrcp.f32 %v3854_v35 }
0x20ac   :  { %v7610_v9 = vpop.eup %7609 }
0x20ad   :  { %v7612_v53 = vpop.eup %7611 }
0x20ae   :  { %v4536_v29 = vadd.f32 1.0, %v7612_v53  ;;  %v7614_v52 = vpop.eup %7613 }
0x20af   :  { %v7616_v57 = vpop.eup %7615  ;;  %v5900_v25 = vadd.f32 1.0, %v7614_v52 }
0x20b0   :  { %7621 = vrcp.f32 %v4536_v29  ;;  %v7618_v50 = vpop.eup %7617 }
0x20b1   :  { %6413 = vrot.lane.b32.xlu1 %v8032_v5, %s7650_s16  ;;  %7623 = vrcp.f32 %v5900_v25  ;;  %v7620_v23 = vpop.eup %7619 }
0x20ba   :  { %v7622_v40 = vpop.eup %7621 }
0x20bb   :  { %v7624_v58 = vpop.eup %7623 }
0x20d5   :  { %5996 = vmax.xlane.f32.xlu1 %v5995_v10 }
0x20e6   :  { %1814 = vperm.xlu1 %7365, %v7610_v9  }
0x20ea   :  { %6501 = vrot.lane.b32.xlu1 %v8091_v7, %s7653_s18 }
0x20ee   :  { %2496 = vperm.xlu1 %7365, %v7616_v57  }
0x20f2   :  { %3178 = vperm.xlu1 %7365, %v7618_v50  }
0x20f6   :  { %3860 = vperm.xlu1 %7365, %v7620_v23  }
0x20fa   :  { %4542 = vperm.xlu1 %7365, %v7622_v40  }
0x20fe   :  { %5906 = vperm.xlu1 %7365, %v7624_v58  }
0x212d   :  { %v6093_v33 = vpop.xlane.xlu1 %6092 }
0x212e   :  { %7625 = vrcp.f32 %v6093_v33 }
0x2131   :  { %v6414_v3 = vpop.permute.xlu1 %6413 }
0x2138   :  { %v7626_v32 = vpop.eup %7625 }
0x2139   :  { %v6095_v34 = vmul.f32 %v7626_v32, %v7600_v31 }
0x213b   :  { %7289 = vmatmul.mubr.msk.f32.vlgmr.msra.gmra.mrb[70].mxu0 %vm1219_vm3, %v6095_v34 }
0x213c   :  { %7297 = vmatpush3.xpose.msk.msra.mxu0 %vm1141_vm1, %v8032_v5  ;;  %7298 = vmatprep.mubr.msk.f32.mxu0 %vm7649_vm0, %v7648_v1 }
0x213d   :  { %7306 = vmatprep.subr.mxu0 %v7648_v1 }
0x213f   :  { %7299 = vmatmul.mubr.msk.f32.vlgmr.msra.gmra.mrb[72].mxu0 %vm1141_vm1, %v8070_v45 }
0x2140   :  { %7307 = vmatpush3.xpose.msk.msra.mxu0 %vm1141_vm1, %v6414_v3  ;;  %7308 = vmatprep.mubr.msk.f32.mxu0 %vm7649_vm0, %v7648_v1 }
0x2143   :  { %7309 = vmatmul.mubr.msk.f32.vlgmr.msra.gmra.mrb[74].mxu0 %vm1141_vm1, %v6412_v41 }
0x2162   :  { %v5997_v0 = vpop.xlane.xlu1 %5996 }
0x2163   :  { %v5998_v36 = vsub.f32 %v5994_v28, %v5997_v0 }
0x2165   :  { %v5999_v5 = vmul.f32 1.442695, %v5998_v36 }
0x2166   :  { %v1815_v11 = vpop.permute.xlu1 %1814 }
0x2167   :  { %7627 = vpow2.f32 %v5999_v5  ;;  %v1817_v3 = vsel %vm1811_vm4, %v1815_v11, 0.0 }
0x216a   :  { %v6502_v17 = vpop.permute.xlu1 %6501 }
0x216e   :  { %v2497_v58 = vpop.permute.xlu1 %2496 }
0x2171   :  { %v7628_v15 = vpop.eup %7627 }
0x2172   :  { %v6001_v43 = vsel %vm1219_vm3, %v7628_v15, 0.0  ;;  %v3179_v33 = vpop.permute.xlu1 %3178 }
0x2176   :  { %v3861_v32 = vpop.permute.xlu1 %3860 }
0x217a   :  { %v4543_v34 = vpop.permute.xlu1 %4542 }
0x220e   :  { %v8683_v46 = vpop.f32.mrb[70].mxu0 }
0x220f   :  { %v7290_v19 = vpop.f32.mrb[71].mxu0 }
0x2212   :  { %v6318_v26 = vpop.f32.mrb[72].mxu0 }
0x2213   :  { %v6322_v48 = vsel %vm1130_vm2, %v6318_v26, -1e+30  ;;  %v7300_v45 = vpop.f32.mrb[73].mxu0 }
0x2214   :  { %v6323_v21 = vsel %vm1219_vm3, %v6322_v48, -inf }
0x2215   :  { %6324 = vmax.xlane.f32.xlu0 %v6323_v21 }
0x2216   :  { %v6485_v49 = vpop.f32.mrb[74].mxu0 }
0x2217   :  { %v6489_v61 = vsel %vm1130_vm2, %v6485_v49, -1e+30  ;;  %v7310_v39 = vpop.f32.mrb[75].mxu0 }
0x2218   :  { %v6490_v42 = vsel %vm1219_vm3, %v6489_v61, -inf }
0x2219   :  { %6491 = vmax.xlane.f32.xlu0 %v6490_v42 }
0x221d   :  { %6002 = vadd.xlane.f32.xlu0 %v6001_v43 }
0x22a2   :  { %v6325_v18 = vpop.xlane.xlu0 %6324 }
0x22a3   :  { %v6326_v63 = vsub.f32 %v6322_v48, %v6325_v18 }
0x22a5   :  { %v6327_v37 = vmul.f32 1.442695, %v6326_v63 }
0x22a6   :  { %v6492_v55 = vpop.xlane.xlu0 %6491 }
0x22a7   :  { %7629 = vpow2.f32 %v6327_v37  ;;  %v6493_v56 = vsub.f32 %v6489_v61, %v6492_v55 }
0x22a9   :  { %v6494_v31 = vmul.f32 1.442695, %v6493_v56 }
0x22aa   :  { %v6003_v4 = vpop.xlane.xlu0 %6002 }
0x22ab   :  { %7631 = vpow2.f32 %v6494_v31 }
0x22ac   :  { %7633 = vrcp.f32 %v6003_v4 }
0x22ad   :  { %7635 = vpow2.f32 %v6769_v13 }
0x22b1   :  { %v7630_v8 = vpop.eup %7629 }
0x22b2   :  { %v6329_v47 = vsel %vm1219_vm3, %v7630_v8, 0.0 }
0x22b3   :  { %6330 = vadd.xlane.f32.xlu0 %v6329_v47 }
0x22b5   :  { %v7632_v54 = vpop.eup %7631 }
0x22b6   :  { %v7634_v28 = vpop.eup %7633  ;;  %v6496_v38 = vsel %vm1219_vm3, %v7632_v54, 0.0 }
0x22b7   :  { %v6005_v16 = vmul.f32 %v7634_v28, %v7628_v15  ;;  %6497 = vadd.xlane.f32.xlu0 %v6496_v38  ;;  %v7636_v20 = vpop.eup %7635 }
0x22b8   :  { %v5218_v10 = vadd.f32 1.0, %v7636_v20 }
0x22b9   :  { %7294 = vmatmul.mubr.msk.f32.vlgmr.msra.gmra.mrb[86].mxu1 %vm1219_vm3, %v6005_v16 }
0x22ba   :  { %7303 = vmatprep.mubr.msk.f32.mxu1 %vm7649_vm0, %v7648_v1  ;;  %7637 = vrcp.f32 %v5218_v10 }
0x22c4   :  { %v7638_v44 = vpop.eup %7637 }
0x22cd   :  { %6334 = vrot.lane.b32.xlu0 %v8091_v7, %s7652_s17 }
0x22d1   :  { %5224 = vperm.xlu0 %7366, %v7638_v44  }
0x2340   :  { %v6331_v30 = vpop.xlane.xlu0 %6330 }
0x2341   :  { %7639 = vrcp.f32 %v6331_v30 }
0x2344   :  { %v6498_v6 = vpop.xlane.xlu0 %6497 }
0x2345   :  { %7641 = vrcp.f32 %v6498_v6 }
0x2348   :  { %v6335_v51 = vpop.permute.xlu0 %6334 }
0x2349   :  { %7302 = vmatpush3.msra.mxu1 %v6335_v51 }
0x234a   :  { %7311 = vmatprep.subr.mxu1 %v7648_v1 }
0x234b   :  { %v7640_v24 = vpop.eup %7639 }
0x234c   :  { %v6333_v14 = vmul.f32 %v7640_v24, %v7630_v8 }
0x234e   :  { %7304 = vmatmul.mubr.msk.f32.vlgmr.msra.gmra.mrb[88].mxu1 %vm1219_vm3, %v6333_v14 }
0x234f   :  { %v7642_v27 = vpop.eup %7641  ;;  %7312 = vmatpush3.msra.mxu1 %v6502_v17  ;;  %7313 = vmatprep.mubr.msk.f32.mxu1 %vm7649_vm0, %v7648_v1 }
0x2350   :  { %v6500_v7 = vmul.f32 %v7642_v27, %v7632_v54  ;;  %v5225_v0 = vpop.permute.xlu0 %5224 }
0x2352   :  { %7314 = vmatmul.mubr.msk.f32.vlgmr.msra.gmra.mrb[90].mxu1 %vm1219_vm3, %v6500_v7 }
0x238c   :  { %v6242_v2 = vpop.f32.mrb[86].mxu1 }
0x238d   :  { %v6243_v12 = vadd.f32 %v6242_v2, %v8683_v46  ;;  %v7295_v60 = vpop.f32.mrb[87].mxu1  ;;  %v5907_v46 = vpop.permute.xlu1 %5906 }
0x2421   :  { %v6406_v9 = vpop.f32.mrb[88].mxu1 }
0x2422   :  { %v6410_v35 = vadd.f32 %v6406_v9, %v6243_v12  ;;  %v7305_v53 = vpop.f32.mrb[89].mxu1 }
0x2425   :  { %v6573_v29 = vpop.f32.mrb[90].mxu1 }
0x2426   :  { %v6577_v52 = vadd.f32 %v6573_v29, %v6410_v35  ;;  %v7315_v57 = vpop.f32.mrb[91].mxu1 }
0x2428   :  { %v6578_v25 = vadd.f32 %v6577_v52, %v8652_v59  ;;  %v2499_v59 = vsel %vm2493_vm5, %v2497_v58, %v1817_v3 }
0x2429   :  { %v3181_v41 = vsel %vm3175_vm6, %v3179_v33, %v2499_v59 }
0x242a   :  { %v6795_v50 = vmul.f32 -1.442695, %v6578_v25  ;;  %v3863_v36 = vsel %vm3857_vm7, %v3861_v32, %v3181_v41 }
0x242b   :  { %v4545_v5 = vsel %vm4539_vm8, %v4543_v34, %v3863_v36 }
0x242c   :  { %7643 = vpow2.f32 %v6795_v50  ;;  %v5227_v19 = vsel %vm5221_vm9, %v5225_v0, %v4545_v5 }
0x242d   :  { %v5909_v26 = vsel %vm5903_vm10, %v5907_v46, %v5227_v19 }
0x2436   :  { %v7644_v23 = vpop.eup %7643 }
0x2437   :  { %v6582_v40 = vadd.f32 1.0, %v7644_v23 }
0x2439   :  { %7645 = vrcp.f32 %v6582_v40 }
0x2443   :  { %v7646_v1 = vpop.eup %7645 }
0x2444   :  { %6588 = vperm.xlu1 %7365, %v7646_v1  }
0x24c3   :  { %v6589_v48 = vpop.permute.xlu1 %6588 }
0x24c4   :  { %v6591_v45 = vsel %vm6585_vm11, %v6589_v48, %v5909_v26 }
0x24c5   :  { %6592 = vst.msk [vmem:[%s8725_s5] sm:$0xff] %vm1219_vm3, %v6591_v45 }

</bundles_post_ra>
